<compile_context>
chip_gen: v7x
topology: tpu7x:2x2x1
jax: 0.10.0
libtpu: 0.0.40
codegen_flags: <defaults>
</compile_context>

<pallas_src>
import functools

import jax
import jax.numpy as jnp
from jax.experimental import pallas as pl
from jax.experimental.pallas import tpu as pltpu


def _next_pow2(v):
    return 1 << (v - 1).bit_length()


# ----------------------------------------------------------------------------
# Fused DownBlock kernel: one grid step = one batch tile, everything in VMEM.
# ----------------------------------------------------------------------------
def _down_block_kernel(x_ref, w1_ref, ws_ref, b_ref, o_ref, *,
                       cout, bt, h, w, ho, wo, hp2, wp2):
    f32, i32 = jnp.float32, jnp.int32
    blk = hp2 * wp2                    # flat block per image (padded geometry)
    lpad = bt * blk                    # flat length of a padded activation
    lv = lpad - (2 * wp2 + 2)          # flat length of a conv output
    lsrc = bt * h * w                  # flat length of the raw-input block
    wbits = wp2.bit_length() - 1
    bbits = blk.bit_length() - 1

    x = x_ref[...]                                             # (Cin, lsrc)

    def iabs(t):
        return jnp.maximum(t, -t)

    def shl(v, k):                     # position i <- v[i + k]  (zero fill)
        z = jnp.zeros((v.shape[0], k), v.dtype)
        return jnp.concatenate([v[:, k:], z], axis=1)

    def shr(v, k):                     # position i <- v[i - k]  (zero fill)
        z = jnp.zeros((v.shape[0], k), v.dtype)
        return jnp.concatenate([z, v[:, :v.shape[1] - k]], axis=1)

    # destination-position decomposition (shared by phase gather + repad)
    q = jax.lax.broadcasted_iota(i32, (1, lpad), 1)
    q_b = q >> bbits                   # image within the batch tile
    q_r = (q >> wbits) & (hp2 - 1)     # padded row
    q_c = q & (wp2 - 1)                # padded col

    # ---- [R3] reflect-pad + stride-2 phase split, fully in-kernel ----------
    # phase(r,c)[b, a, d] = x[b, reflect(2a + r - 1), reflect(2d + c - 1)]
    # TODO(synk): at large H*W replace this O((H*W)^2)-sized one-hot gather
    # with a strided-DMA phase split; it is only intended for small tiles.
    def reflect(t, n):                 # reflect-pad(1) index map onto [0, n)
        return (n - 1) - iabs((n - 1) - iabs(t))

    def gather(src_idx):               # (Cin, lsrc) gathered to (Cin, lpad)
        rows = jax.lax.broadcasted_iota(i32, (lsrc, lpad), 0)
        onehot = jnp.where(rows == src_idx, 1.0, 0.0).astype(f32)
        return jnp.dot(x, onehot, preferred_element_type=f32)

    phases = []
    for r in (0, 1):
        for c in (0, 1):
            src = (q_b * (h * w)
                   + reflect(2 * q_r + (r - 1), h) * w
                   + reflect(2 * q_c + (c - 1), w))
            phases.append(gather(src))

    def tap_slice(src, off):
        return src[:, off:off + lv]

    # ---- [R2] conv1 (3x3 stride 2) + fused 1x1 shortcut: ONE matmul --------
    x9 = jnp.concatenate(
        [tap_slice(phases[(i % 2) * 2 + (j % 2)], (i // 2) * wp2 + (j // 2))
         for i in range(3) for j in range(3)], axis=0)          # (9*Cin, lv)
    y1 = jnp.dot(w1_ref[...], x9, preferred_element_type=f32)   # (2*Cout, lv)
    h1 = jnp.maximum(y1[:cout] + b_ref[0], 0.0)                 # relu(conv1)
    sc = y1[cout:] + b_ref[1]                                   # 1x1 shortcut

    # ---- [R1] vectorised repad: valid layout -> reflect-padded flat image --
    def repad(v):                                               # (C,lv)->(C,lpad)
        z = jnp.zeros((v.shape[0], wp2 + 1), v.dtype)
        p = jnp.concatenate([z, v, z], axis=1)
        p = jnp.where(q_c == 0, shl(p, 2), p)                   # left border
        p = jnp.where(q_c == wo + 1, shr(p, 2), p)              # right border
        p = jnp.where(q_r == 0, shl(p, 2 * wp2), p)             # top border
        p = jnp.where(q_r == ho + 1, shr(p, 2 * wp2), p)        # bottom border
        return p

    # ---- [R2] stride-1 3x3 conv as one stacked-K matmul --------------------
    def conv3x3(padded, wmat):
        xs = jnp.concatenate(
            [tap_slice(padded, i * wp2 + j)
             for i in range(3) for j in range(3)], axis=0)      # (9*Cout, lv)
        return jnp.dot(wmat, xs, preferred_element_type=f32)

    # block 1: conv2 + shortcut residual
    a2 = jnp.maximum(conv3x3(repad(h1), ws_ref[0]) + b_ref[2], 0.0)
    x1 = jnp.maximum(a2 + sc, 0.0)
    # block 2: conv1 / conv2 + identity residual
    h2 = jnp.maximum(conv3x3(repad(x1), ws_ref[1]) + b_ref[3], 0.0)
    a4 = jnp.maximum(conv3x3(repad(h2), ws_ref[2]) + b_ref[4], 0.0)
    out = jnp.maximum(a4 + x1, 0.0)                             # (Cout, lv)

    # ---- [R8] compact valid columns -> lane-dense slab, ONE store ----------
    p = jax.lax.broadcasted_iota(i32, (lv, 1), 0)
    p_b = p >> bbits
    p_r = (p >> wbits) & (hp2 - 1)
    p_c = p & (wp2 - 1)
    is_valid = jnp.logical_and(p_r < ho, p_c < wo)
    dense = p_b * (ho * wo) + p_r * wo + p_c
    qd = jax.lax.broadcasted_iota(i32, (1, bt * ho * wo), 1)
    sel = jnp.where(jnp.logical_and(is_valid, dense == qd), 1.0, 0.0).astype(f32)
    o_ref[...] = jnp.dot(out, sel, preferred_element_type=f32)


# ----------------------------------------------------------------------------
# Wrapper: minimal glue (one input transpose, static weight re-layout).
# ----------------------------------------------------------------------------
def down_block(x_nchw, params, *, batch_tile=None):
    n, cin, h, w = x_nchw.shape
    assert h % 2 == 0 and w % 2 == 0, "spatial dims must be even"
    ho, wo = h // 2, w // 2
    hp2, wp2 = _next_pow2(ho + 2), _next_pow2(wo + 2)

    b1p, b2p = params["block1"], params["block2"]
    cout = b1p["w1"].shape[0]

    # [R4] batch tile folded onto the lane axis (>=128 output lanes per step).
    if batch_tile is None:
        batch_tile = min(n, max(1, pl.cdiv(128, ho * wo)))
    while n % batch_tile:
        batch_tile -= 1
    bt = batch_tile
    steps = n // bt

    # weight re-layout: column block t = i*3 + j holds the (i, j) tap.
    def taps2d(wgt):                   # (Co, Ci, 3, 3) -> (Co, 9*Ci)
        co, ci = wgt.shape[0], wgt.shape[1]
        return jnp.transpose(wgt, (0, 2, 3, 1)).reshape(co, 9 * ci)

    w1_2d = taps2d(b1p["w1"])                                   # (Cout, 9*Cin)
    sc_row = jnp.zeros((cout, 9 * cin), jnp.float32)
    sc_row = sc_row.at[:, 4 * cin:5 * cin].set(b1p["sc_w"][:, :, 0, 0])
    w1_big = jnp.concatenate([w1_2d, sc_row], axis=0)           # (2*Cout, 9*Cin)
    ws = jnp.stack([taps2d(b1p["w2"]), taps2d(b2p["w1"]), taps2d(b2p["w2"])])
    biases = jnp.stack([b1p["b1"], b1p["sc_b"], b1p["b2"],
                        b2p["b1"], b2p["b2"]])[:, :, None]      # (5, Cout, 1)

    # only glue left on the host side: channel-major flat view of the input
    x_flat = jnp.transpose(x_nchw, (1, 0, 2, 3)).reshape(cin, n * h * w)
    x_flat = x_flat.astype(jnp.float32)

    lpad = bt * hp2 * wp2
    lv = lpad - (2 * wp2 + 2)
    gather_flops = 2 * cin * (bt * h * w) * (4 * lpad) \
        + 2 * cout * lv * (bt * ho * wo)
    conv_flops = 2 * lv * ((2 * cout) * 9 * cin + 3 * cout * 9 * cout)
    flops = steps * (gather_flops + conv_flops)
    bytes_accessed = 4 * (x_flat.size + w1_big.size + ws.size + biases.size
                          + cout * n * ho * wo)

    kernel = functools.partial(
        _down_block_kernel, cout=cout, bt=bt, h=h, w=w,
        ho=ho, wo=wo, hp2=hp2, wp2=wp2)

    out_flat = pl.pallas_call(
        kernel,
        out_shape=jax.ShapeDtypeStruct((cout, n * ho * wo), jnp.float32),
        grid=(steps,),
        in_specs=[
            pl.BlockSpec((cin, bt * h * w), lambda i: (0, i)),
            # constant-index weight inputs stay resident across grid steps
            # ([R7]: pipeline_mode=pl.Buffered(1) only matters at large Cout)
            pl.BlockSpec(w1_big.shape, lambda i: (0, 0)),
            pl.BlockSpec(ws.shape, lambda i: (0, 0, 0)),
            pl.BlockSpec(biases.shape, lambda i: (0, 0, 0)),
        ],
        out_specs=pl.BlockSpec((cout, bt * ho * wo), lambda i: (0, i)),
        compiler_params=pltpu.CompilerParams(
            dimension_semantics=("parallel",),
            vmem_limit_bytes=32 * 1024 * 1024),                 # [R6]
        cost_estimate=pl.CostEstimate(flops=flops, transcendentals=0,
                                      bytes_accessed=bytes_accessed),
    )(x_flat, w1_big, ws, biases)

    return out_flat.reshape(cout, n, ho, wo).transpose(1, 0, 2, 3)


# ----------------------------------------------------------------------------
# Pure-JAX reference (lax.conv) for correctness checking
# ----------------------------------------------------------------------------
def _ref_conv(x, w, b, stride, pad):
    if pad > 0:
        x = jnp.pad(x, ((0, 0), (0, 0), (pad, pad), (pad, pad)), mode="reflect")
    y = jax.lax.conv_general_dilated(
        x, w, (stride, stride), "VALID",
        dimension_numbers=("NCHW", "OIHW", "NCHW"))
    return y + b[None, :, None, None]


def _ref_res_block(x, p, downsample):
    if downsample:
        sc = _ref_conv(x, p["sc_w"], p["sc_b"], 2, 0)
        h = jax.nn.relu(_ref_conv(x, p["w1"], p["b1"], 2, 1))
    else:
        sc = x
        h = jax.nn.relu(_ref_conv(x, p["w1"], p["b1"], 1, 1))
    h = jax.nn.relu(_ref_conv(h, p["w2"], p["b2"], 1, 1))
    return jax.nn.relu(h + sc)


def _ref_down_block(x, params):
    x1 = _ref_res_block(x, params["block1"], True)
    return _ref_res_block(x1, params["block2"], False)


# ----------------------------------------------------------------------------
# Deterministic parameter init (shapes match the PyTorch module __init__)
# ----------------------------------------------------------------------------
def init_params(key, in_channels=4, growth_factor=2.0, kernel_size=3):
    out_channels = int(growth_factor * in_channels)
    ks = jax.random.split(key, 10)

    def conv_init(kw, kb, co, ci, kh_, kw_):
        fan_in = ci * kh_ * kw_
        bound = 1.0 / jnp.sqrt(fan_in)
        wgt = jax.random.uniform(kw, (co, ci, kh_, kw_), jnp.float32,
                                 -bound, bound)
        bia = jax.random.uniform(kb, (co,), jnp.float32, -bound, bound)
        return wgt, bia

    w1, b1 = conv_init(ks[0], ks[1], out_channels, in_channels,
                       kernel_size, kernel_size)
    scw, scb = conv_init(ks[2], ks[3], out_channels, in_channels, 1, 1)
    w2, b2 = conv_init(ks[4], ks[5], out_channels, out_channels,
                       kernel_size, kernel_size)
    block1 = {"w1": w1, "b1": b1, "sc_w": scw, "sc_b": scb,
              "w2": w2, "b2": b2}

    w1b, b1b = conv_init(ks[6], ks[7], out_channels, out_channels,
                         kernel_size, kernel_size)
    w2b, b2b = conv_init(ks[8], ks[9], out_channels, out_channels,
                         kernel_size, kernel_size)
    block2 = {"w1": w1b, "b1": b1b, "w2": w2b, "b2": b2b}

    return {"block1": block1, "block2": block2}


# ----------------------------------------------------------------------------
if __name__ == "__main__":
    key = jax.random.PRNGKey(0)
    kx, kp = jax.random.split(key)

    # PyTorch-style NCHW input: batch=2, in_channels=4, 16x16 spatial
    x = jax.random.normal(kx, (2, 4, 16, 16), dtype=jnp.float32)
    params = init_params(kp, in_channels=4)

    down_block_jit = jax.jit(down_block)
    out = jax.block_until_ready(down_block_jit(x, params))
    assert out.shape == (2, 8, 8, 8), out.shape  # (N, out_channels=8, H/2, W/2)

    ref = jax.block_until_ready(_ref_down_block(x, params))
    assert jnp.allclose(out, ref, atol=1e-4, rtol=1e-4), \
        float(jnp.max(jnp.abs(out - ref)))

    print("KERNEL_OK")
</pallas_src>

<mosaic_0001>
module attributes {stable_mosaic.version = 11 : i64} {
  func.func @_down_block_kernel(%arg0: i32, %arg1: memref<4x512xf32, #tpu.memory_space<vmem>>, %arg2: memref<16x36xf32, #tpu.memory_space<vmem>>, %arg3: memref<3x8x72xf32, #tpu.memory_space<vmem>>, %arg4: memref<5x8x1xf32, #tpu.memory_space<vmem>>, %arg5: memref<8x128xf32, #tpu.memory_space<vmem>>) attributes {dimension_semantics = [#tpu.dimension_semantics<parallel>], iteration_bounds = array<i64: 1>, scalar_prefetch = 0 : i64, scratch_operands = 0 : i64, tpu.core_type = #tpu.core_type<tc>, window_params = [{transform_indices = @transform_0, window_bounds = array<i64: 4, 512>}, {pipeline_mode = #tpu.pipeline_mode<synchronous>, transform_indices = @transform_1, window_bounds = array<i64: 16, 36>}, {pipeline_mode = #tpu.pipeline_mode<synchronous>, transform_indices = @transform_2, window_bounds = array<i64: 3, 8, 72>}, {pipeline_mode = #tpu.pipeline_mode<synchronous>, transform_indices = @transform_3, window_bounds = array<i64: 5, 8, 1>}, {transform_indices = @transform_4, window_bounds = array<i64: 8, 128>}]} {
    %c0 = arith.constant 0 : index
    %c0_0 = arith.constant 0 : index
    %0 = vector.load %arg1[%c0, %c0_0] : memref<4x512xf32, #tpu.memory_space<vmem>>, vector<4x512xf32>
    %1 = tpu.iota {dimensions = array<i32: 1>} : vector<1x512xi32>
    %c8_i32 = arith.constant 8 : i32
    %2 = vector.broadcast %c8_i32 : i32 to vector<1x512xi32>
    %3 = arith.shrsi %1, %2 : vector<1x512xi32>
    %c4_i32 = arith.constant 4 : i32
    %4 = vector.broadcast %c4_i32 : i32 to vector<1x512xi32>
    %5 = arith.shrsi %1, %4 : vector<1x512xi32>
    %c15_i32 = arith.constant 15 : i32
    %6 = vector.broadcast %c15_i32 : i32 to vector<1x512xi32>
    %7 = arith.andi %5, %6 : vector<1x512xi32>
    %c15_i32_1 = arith.constant 15 : i32
    %8 = vector.broadcast %c15_i32_1 : i32 to vector<1x512xi32>
    %9 = arith.andi %1, %8 : vector<1x512xi32>
    %c256_i32 = arith.constant 256 : i32
    %10 = vector.broadcast %c256_i32 : i32 to vector<1x512xi32>
    %11 = arith.muli %3, %10 : vector<1x512xi32>
    %c2_i32 = arith.constant 2 : i32
    %12 = vector.broadcast %c2_i32 : i32 to vector<1x512xi32>
    %13 = arith.muli %12, %7 : vector<1x512xi32>
    %c-1_i32 = arith.constant -1 : i32
    %14 = vector.broadcast %c-1_i32 : i32 to vector<1x512xi32>
    %15 = arith.addi %13, %14 : vector<1x512xi32>
    %c0_i32 = arith.constant 0 : i32
    %16 = vector.broadcast %c0_i32 : i32 to vector<1x512xi32>
    %17 = arith.subi %16, %15 : vector<1x512xi32>
    %18 = arith.maxsi %15, %17 : vector<1x512xi32>
    %c15_i32_2 = arith.constant 15 : i32
    %19 = vector.broadcast %c15_i32_2 : i32 to vector<1x512xi32>
    %20 = arith.subi %19, %18 : vector<1x512xi32>
    %c0_i32_3 = arith.constant 0 : i32
    %21 = vector.broadcast %c0_i32_3 : i32 to vector<1x512xi32>
    %22 = arith.subi %21, %20 : vector<1x512xi32>
    %23 = arith.maxsi %20, %22 : vector<1x512xi32>
    %c15_i32_4 = arith.constant 15 : i32
    %24 = vector.broadcast %c15_i32_4 : i32 to vector<1x512xi32>
    %25 = arith.subi %24, %23 : vector<1x512xi32>
    %c16_i32 = arith.constant 16 : i32
    %26 = vector.broadcast %c16_i32 : i32 to vector<1x512xi32>
    %27 = arith.muli %25, %26 : vector<1x512xi32>
    %28 = arith.addi %11, %27 : vector<1x512xi32>
    %c2_i32_5 = arith.constant 2 : i32
    %29 = vector.broadcast %c2_i32_5 : i32 to vector<1x512xi32>
    %30 = arith.muli %29, %9 : vector<1x512xi32>
    %c-1_i32_6 = arith.constant -1 : i32
    %31 = vector.broadcast %c-1_i32_6 : i32 to vector<1x512xi32>
    %32 = arith.addi %30, %31 : vector<1x512xi32>
    %c0_i32_7 = arith.constant 0 : i32
    %33 = vector.broadcast %c0_i32_7 : i32 to vector<1x512xi32>
    %34 = arith.subi %33, %32 : vector<1x512xi32>
    %35 = arith.maxsi %32, %34 : vector<1x512xi32>
    %c15_i32_8 = arith.constant 15 : i32
    %36 = vector.broadcast %c15_i32_8 : i32 to vector<1x512xi32>
    %37 = arith.subi %36, %35 : vector<1x512xi32>
    %c0_i32_9 = arith.constant 0 : i32
    %38 = vector.broadcast %c0_i32_9 : i32 to vector<1x512xi32>
    %39 = arith.subi %38, %37 : vector<1x512xi32>
    %40 = arith.maxsi %37, %39 : vector<1x512xi32>
    %c15_i32_10 = arith.constant 15 : i32
    %41 = vector.broadcast %c15_i32_10 : i32 to vector<1x512xi32>
    %42 = arith.subi %41, %40 : vector<1x512xi32>
    %43 = arith.addi %28, %42 : vector<1x512xi32>
    %44 = tpu.iota {dimensions = array<i32: 0>} : vector<512x512xi32>
    %45 = vector.broadcast %43 : vector<1x512xi32> to vector<512x512xi32>
    %46 = arith.cmpi eq, %44, %45 : vector<512x512xi32>
    %cst = arith.constant 1.000000e+00 : f32
    %cst_11 = arith.constant 0.000000e+00 : f32
    %47 = vector.broadcast %cst : f32 to vector<512x512xf32>
    %48 = vector.broadcast %cst_11 : f32 to vector<512x512xf32>
    %49 = arith.select %46, %47, %48 : vector<512x512xi1>, vector<512x512xf32>
    %cst_12 = arith.constant dense<0.000000e+00> : vector<4x512xf32>
    %50 = tpu.matmul %0, %49, %cst_12 {dimension_numbers = #tpu.dot_dimension_numbers<[1], [0], [0], [1], [0, 0, 1, 1], [], []>} : vector<4x512xf32>, vector<512x512xf32>, vector<4x512xf32> -> vector<4x512xf32>
    %c256_i32_13 = arith.constant 256 : i32
    %51 = vector.broadcast %c256_i32_13 : i32 to vector<1x512xi32>
    %52 = arith.muli %3, %51 : vector<1x512xi32>
    %c2_i32_14 = arith.constant 2 : i32
    %53 = vector.broadcast %c2_i32_14 : i32 to vector<1x512xi32>
    %54 = arith.muli %53, %7 : vector<1x512xi32>
    %c-1_i32_15 = arith.constant -1 : i32
    %55 = vector.broadcast %c-1_i32_15 : i32 to vector<1x512xi32>
    %56 = arith.addi %54, %55 : vector<1x512xi32>
    %c0_i32_16 = arith.constant 0 : i32
    %57 = vector.broadcast %c0_i32_16 : i32 to vector<1x512xi32>
    %58 = arith.subi %57, %56 : vector<1x512xi32>
    %59 = arith.maxsi %56, %58 : vector<1x512xi32>
    %c15_i32_17 = arith.constant 15 : i32
    %60 = vector.broadcast %c15_i32_17 : i32 to vector<1x512xi32>
    %61 = arith.subi %60, %59 : vector<1x512xi32>
    %c0_i32_18 = arith.constant 0 : i32
    %62 = vector.broadcast %c0_i32_18 : i32 to vector<1x512xi32>
    %63 = arith.subi %62, %61 : vector<1x512xi32>
    %64 = arith.maxsi %61, %63 : vector<1x512xi32>
    %c15_i32_19 = arith.constant 15 : i32
    %65 = vector.broadcast %c15_i32_19 : i32 to vector<1x512xi32>
    %66 = arith.subi %65, %64 : vector<1x512xi32>
    %c16_i32_20 = arith.constant 16 : i32
    %67 = vector.broadcast %c16_i32_20 : i32 to vector<1x512xi32>
    %68 = arith.muli %66, %67 : vector<1x512xi32>
    %69 = arith.addi %52, %68 : vector<1x512xi32>
    %c2_i32_21 = arith.constant 2 : i32
    %70 = vector.broadcast %c2_i32_21 : i32 to vector<1x512xi32>
    %71 = arith.muli %70, %9 : vector<1x512xi32>
    %c0_i32_22 = arith.constant 0 : i32
    %72 = vector.broadcast %c0_i32_22 : i32 to vector<1x512xi32>
    %73 = arith.addi %71, %72 : vector<1x512xi32>
    %c0_i32_23 = arith.constant 0 : i32
    %74 = vector.broadcast %c0_i32_23 : i32 to vector<1x512xi32>
    %75 = arith.subi %74, %73 : vector<1x512xi32>
    %76 = arith.maxsi %73, %75 : vector<1x512xi32>
    %c15_i32_24 = arith.constant 15 : i32
    %77 = vector.broadcast %c15_i32_24 : i32 to vector<1x512xi32>
    %78 = arith.subi %77, %76 : vector<1x512xi32>
    %c0_i32_25 = arith.constant 0 : i32
    %79 = vector.broadcast %c0_i32_25 : i32 to vector<1x512xi32>
    %80 = arith.subi %79, %78 : vector<1x512xi32>
    %81 = arith.maxsi %78, %80 : vector<1x512xi32>
    %c15_i32_26 = arith.constant 15 : i32
    %82 = vector.broadcast %c15_i32_26 : i32 to vector<1x512xi32>
    %83 = arith.subi %82, %81 : vector<1x512xi32>
    %84 = arith.addi %69, %83 : vector<1x512xi32>
    %85 = tpu.iota {dimensions = array<i32: 0>} : vector<512x512xi32>
    %86 = vector.broadcast %84 : vector<1x512xi32> to vector<512x512xi32>
    %87 = arith.cmpi eq, %85, %86 : vector<512x512xi32>
    %cst_27 = arith.constant 1.000000e+00 : f32
    %cst_28 = arith.constant 0.000000e+00 : f32
    %88 = vector.broadcast %cst_27 : f32 to vector<512x512xf32>
    %89 = vector.broadcast %cst_28 : f32 to vector<512x512xf32>
    %90 = arith.select %87, %88, %89 : vector<512x512xi1>, vector<512x512xf32>
    %cst_29 = arith.constant dense<0.000000e+00> : vector<4x512xf32>
    %91 = tpu.matmul %0, %90, %cst_29 {dimension_numbers = #tpu.dot_dimension_numbers<[1], [0], [0], [1], [0, 0, 1, 1], [], []>} : vector<4x512xf32>, vector<512x512xf32>, vector<4x512xf32> -> vector<4x512xf32>
    %c256_i32_30 = arith.constant 256 : i32
    %92 = vector.broadcast %c256_i32_30 : i32 to vector<1x512xi32>
    %93 = arith.muli %3, %92 : vector<1x512xi32>
    %c2_i32_31 = arith.constant 2 : i32
    %94 = vector.broadcast %c2_i32_31 : i32 to vector<1x512xi32>
    %95 = arith.muli %94, %7 : vector<1x512xi32>
    %c0_i32_32 = arith.constant 0 : i32
    %96 = vector.broadcast %c0_i32_32 : i32 to vector<1x512xi32>
    %97 = arith.addi %95, %96 : vector<1x512xi32>
    %c0_i32_33 = arith.constant 0 : i32
    %98 = vector.broadcast %c0_i32_33 : i32 to vector<1x512xi32>
    %99 = arith.subi %98, %97 : vector<1x512xi32>
    %100 = arith.maxsi %97, %99 : vector<1x512xi32>
    %c15_i32_34 = arith.constant 15 : i32
    %101 = vector.broadcast %c15_i32_34 : i32 to vector<1x512xi32>
    %102 = arith.subi %101, %100 : vector<1x512xi32>
    %c0_i32_35 = arith.constant 0 : i32
    %103 = vector.broadcast %c0_i32_35 : i32 to vector<1x512xi32>
    %104 = arith.subi %103, %102 : vector<1x512xi32>
    %105 = arith.maxsi %102, %104 : vector<1x512xi32>
    %c15_i32_36 = arith.constant 15 : i32
    %106 = vector.broadcast %c15_i32_36 : i32 to vector<1x512xi32>
    %107 = arith.subi %106, %105 : vector<1x512xi32>
    %c16_i32_37 = arith.constant 16 : i32
    %108 = vector.broadcast %c16_i32_37 : i32 to vector<1x512xi32>
    %109 = arith.muli %107, %108 : vector<1x512xi32>
    %110 = arith.addi %93, %109 : vector<1x512xi32>
    %c2_i32_38 = arith.constant 2 : i32
    %111 = vector.broadcast %c2_i32_38 : i32 to vector<1x512xi32>
    %112 = arith.muli %111, %9 : vector<1x512xi32>
    %c-1_i32_39 = arith.constant -1 : i32
    %113 = vector.broadcast %c-1_i32_39 : i32 to vector<1x512xi32>
    %114 = arith.addi %112, %113 : vector<1x512xi32>
    %c0_i32_40 = arith.constant 0 : i32
    %115 = vector.broadcast %c0_i32_40 : i32 to vector<1x512xi32>
    %116 = arith.subi %115, %114 : vector<1x512xi32>
    %117 = arith.maxsi %114, %116 : vector<1x512xi32>
    %c15_i32_41 = arith.constant 15 : i32
    %118 = vector.broadcast %c15_i32_41 : i32 to vector<1x512xi32>
    %119 = arith.subi %118, %117 : vector<1x512xi32>
    %c0_i32_42 = arith.constant 0 : i32
    %120 = vector.broadcast %c0_i32_42 : i32 to vector<1x512xi32>
    %121 = arith.subi %120, %119 : vector<1x512xi32>
    %122 = arith.maxsi %119, %121 : vector<1x512xi32>
    %c15_i32_43 = arith.constant 15 : i32
    %123 = vector.broadcast %c15_i32_43 : i32 to vector<1x512xi32>
    %124 = arith.subi %123, %122 : vector<1x512xi32>
    %125 = arith.addi %110, %124 : vector<1x512xi32>
    %126 = tpu.iota {dimensions = array<i32: 0>} : vector<512x512xi32>
    %127 = vector.broadcast %125 : vector<1x512xi32> to vector<512x512xi32>
    %128 = arith.cmpi eq, %126, %127 : vector<512x512xi32>
    %cst_44 = arith.constant 1.000000e+00 : f32
    %cst_45 = arith.constant 0.000000e+00 : f32
    %129 = vector.broadcast %cst_44 : f32 to vector<512x512xf32>
    %130 = vector.broadcast %cst_45 : f32 to vector<512x512xf32>
    %131 = arith.select %128, %129, %130 : vector<512x512xi1>, vector<512x512xf32>
    %cst_46 = arith.constant dense<0.000000e+00> : vector<4x512xf32>
    %132 = tpu.matmul %0, %131, %cst_46 {dimension_numbers = #tpu.dot_dimension_numbers<[1], [0], [0], [1], [0, 0, 1, 1], [], []>} : vector<4x512xf32>, vector<512x512xf32>, vector<4x512xf32> -> vector<4x512xf32>
    %c256_i32_47 = arith.constant 256 : i32
    %133 = vector.broadcast %c256_i32_47 : i32 to vector<1x512xi32>
    %134 = arith.muli %3, %133 : vector<1x512xi32>
    %c2_i32_48 = arith.constant 2 : i32
    %135 = vector.broadcast %c2_i32_48 : i32 to vector<1x512xi32>
    %136 = arith.muli %135, %7 : vector<1x512xi32>
    %c0_i32_49 = arith.constant 0 : i32
    %137 = vector.broadcast %c0_i32_49 : i32 to vector<1x512xi32>
    %138 = arith.addi %136, %137 : vector<1x512xi32>
    %c0_i32_50 = arith.constant 0 : i32
    %139 = vector.broadcast %c0_i32_50 : i32 to vector<1x512xi32>
    %140 = arith.subi %139, %138 : vector<1x512xi32>
    %141 = arith.maxsi %138, %140 : vector<1x512xi32>
    %c15_i32_51 = arith.constant 15 : i32
    %142 = vector.broadcast %c15_i32_51 : i32 to vector<1x512xi32>
    %143 = arith.subi %142, %141 : vector<1x512xi32>
    %c0_i32_52 = arith.constant 0 : i32
    %144 = vector.broadcast %c0_i32_52 : i32 to vector<1x512xi32>
    %145 = arith.subi %144, %143 : vector<1x512xi32>
    %146 = arith.maxsi %143, %145 : vector<1x512xi32>
    %c15_i32_53 = arith.constant 15 : i32
    %147 = vector.broadcast %c15_i32_53 : i32 to vector<1x512xi32>
    %148 = arith.subi %147, %146 : vector<1x512xi32>
    %c16_i32_54 = arith.constant 16 : i32
    %149 = vector.broadcast %c16_i32_54 : i32 to vector<1x512xi32>
    %150 = arith.muli %148, %149 : vector<1x512xi32>
    %151 = arith.addi %134, %150 : vector<1x512xi32>
    %c2_i32_55 = arith.constant 2 : i32
    %152 = vector.broadcast %c2_i32_55 : i32 to vector<1x512xi32>
    %153 = arith.muli %152, %9 : vector<1x512xi32>
    %c0_i32_56 = arith.constant 0 : i32
    %154 = vector.broadcast %c0_i32_56 : i32 to vector<1x512xi32>
    %155 = arith.addi %153, %154 : vector<1x512xi32>
    %c0_i32_57 = arith.constant 0 : i32
    %156 = vector.broadcast %c0_i32_57 : i32 to vector<1x512xi32>
    %157 = arith.subi %156, %155 : vector<1x512xi32>
    %158 = arith.maxsi %155, %157 : vector<1x512xi32>
    %c15_i32_58 = arith.constant 15 : i32
    %159 = vector.broadcast %c15_i32_58 : i32 to vector<1x512xi32>
    %160 = arith.subi %159, %158 : vector<1x512xi32>
    %c0_i32_59 = arith.constant 0 : i32
    %161 = vector.broadcast %c0_i32_59 : i32 to vector<1x512xi32>
    %162 = arith.subi %161, %160 : vector<1x512xi32>
    %163 = arith.maxsi %160, %162 : vector<1x512xi32>
    %c15_i32_60 = arith.constant 15 : i32
    %164 = vector.broadcast %c15_i32_60 : i32 to vector<1x512xi32>
    %165 = arith.subi %164, %163 : vector<1x512xi32>
    %166 = arith.addi %151, %165 : vector<1x512xi32>
    %167 = tpu.iota {dimensions = array<i32: 0>} : vector<512x512xi32>
    %168 = vector.broadcast %166 : vector<1x512xi32> to vector<512x512xi32>
    %169 = arith.cmpi eq, %167, %168 : vector<512x512xi32>
    %cst_61 = arith.constant 1.000000e+00 : f32
    %cst_62 = arith.constant 0.000000e+00 : f32
    %170 = vector.broadcast %cst_61 : f32 to vector<512x512xf32>
    %171 = vector.broadcast %cst_62 : f32 to vector<512x512xf32>
    %172 = arith.select %169, %170, %171 : vector<512x512xi1>, vector<512x512xf32>
    %cst_63 = arith.constant dense<0.000000e+00> : vector<4x512xf32>
    %173 = tpu.matmul %0, %172, %cst_63 {dimension_numbers = #tpu.dot_dimension_numbers<[1], [0], [0], [1], [0, 0, 1, 1], [], []>} : vector<4x512xf32>, vector<512x512xf32>, vector<4x512xf32> -> vector<4x512xf32>
    %174 = vector.extract_strided_slice %50 {offsets = [0, 0], sizes = [4, 478], strides = [1, 1]} : vector<4x512xf32> to vector<4x478xf32>
    %175 = vector.extract_strided_slice %91 {offsets = [0, 0], sizes = [4, 478], strides = [1, 1]} : vector<4x512xf32> to vector<4x478xf32>
    %176 = vector.extract_strided_slice %50 {offsets = [0, 1], sizes = [4, 478], strides = [1, 1]} : vector<4x512xf32> to vector<4x478xf32>
    %177 = vector.extract_strided_slice %132 {offsets = [0, 0], sizes = [4, 478], strides = [1, 1]} : vector<4x512xf32> to vector<4x478xf32>
    %178 = vector.extract_strided_slice %173 {offsets = [0, 0], sizes = [4, 478], strides = [1, 1]} : vector<4x512xf32> to vector<4x478xf32>
    %179 = vector.extract_strided_slice %132 {offsets = [0, 1], sizes = [4, 478], strides = [1, 1]} : vector<4x512xf32> to vector<4x478xf32>
    %180 = vector.extract_strided_slice %50 {offsets = [0, 16], sizes = [4, 478], strides = [1, 1]} : vector<4x512xf32> to vector<4x478xf32>
    %181 = vector.extract_strided_slice %91 {offsets = [0, 16], sizes = [4, 478], strides = [1, 1]} : vector<4x512xf32> to vector<4x478xf32>
    %182 = vector.extract_strided_slice %50 {offsets = [0, 17], sizes = [4, 478], strides = [1, 1]} : vector<4x512xf32> to vector<4x478xf32>
    %183 = tpu.concatenate %174, %175, %176, %177, %178, %179, %180, %181, %182 in 0 : vector<4x478xf32>, vector<4x478xf32>, vector<4x478xf32>, vector<4x478xf32>, vector<4x478xf32>, vector<4x478xf32>, vector<4x478xf32>, vector<4x478xf32>, vector<4x478xf32> -> vector<36x478xf32>
    %c0_64 = arith.constant 0 : index
    %c0_65 = arith.constant 0 : index
    %184 = vector.load %arg2[%c0_64, %c0_65] : memref<16x36xf32, #tpu.memory_space<vmem>>, vector<16x36xf32>
    %cst_66 = arith.constant dense<0.000000e+00> : vector<16x478xf32>
    %185 = tpu.matmul %184, %183, %cst_66 {dimension_numbers = #tpu.dot_dimension_numbers<[1], [0], [0], [1], [0, 0, 1, 1], [], []>} : vector<16x36xf32>, vector<36x478xf32>, vector<16x478xf32> -> vector<16x478xf32>
    %186 = vector.extract_strided_slice %185 {offsets = [0, 0], sizes = [8, 478], strides = [1, 1]} : vector<16x478xf32> to vector<8x478xf32>
    %c0_67 = arith.constant 0 : index
    %c0_68 = arith.constant 0 : index
    %c0_69 = arith.constant 0 : index
    %187 = vector.load %arg4[%c0_67, %c0_68, %c0_69] : memref<5x8x1xf32, #tpu.memory_space<vmem>>, vector<1x8x1xf32>
    %188 = vector.shape_cast %187 : vector<1x8x1xf32> to vector<8x1xf32>
    %189 = vector.broadcast %188 : vector<8x1xf32> to vector<8x478xf32>
    %190 = arith.addf %186, %189 : vector<8x478xf32>
    %cst_70 = arith.constant 0.000000e+00 : f32
    %191 = vector.broadcast %cst_70 : f32 to vector<8x478xf32>
    %192 = arith.maximumf %190, %191 : vector<8x478xf32>
    %193 = vector.extract_strided_slice %185 {offsets = [8, 0], sizes = [8, 478], strides = [1, 1]} : vector<16x478xf32> to vector<8x478xf32>
    %c1 = arith.constant 1 : index
    %c0_71 = arith.constant 0 : index
    %c0_72 = arith.constant 0 : index
    %194 = vector.load %arg4[%c1, %c0_71, %c0_72] : memref<5x8x1xf32, #tpu.memory_space<vmem>>, vector<1x8x1xf32>
    %195 = vector.shape_cast %194 : vector<1x8x1xf32> to vector<8x1xf32>
    %196 = vector.broadcast %195 : vector<8x1xf32> to vector<8x478xf32>
    %197 = arith.addf %193, %196 : vector<8x478xf32>
    %cst_73 = arith.constant 0.000000e+00 : f32
    %198 = vector.broadcast %cst_73 : f32 to vector<8x17xf32>
    %199 = tpu.concatenate %198, %192, %198 in 1 : vector<8x17xf32>, vector<8x478xf32>, vector<8x17xf32> -> vector<8x512xf32>
    %c0_i32_74 = arith.constant 0 : i32
    %200 = vector.broadcast %c0_i32_74 : i32 to vector<1x512xi32>
    %201 = arith.cmpi eq, %9, %200 : vector<1x512xi32>
    %cst_75 = arith.constant 0.000000e+00 : f32
    %202 = vector.broadcast %cst_75 : f32 to vector<8x2xf32>
    %203 = vector.extract_strided_slice %199 {offsets = [0, 2], sizes = [8, 510], strides = [1, 1]} : vector<8x512xf32> to vector<8x510xf32>
    %204 = tpu.concatenate %203, %202 in 1 : vector<8x510xf32>, vector<8x2xf32> -> vector<8x512xf32>
    %205 = vector.shape_cast %201 : vector<1x512xi1> to vector<1x512xi1>
    %206 = vector.broadcast %205 : vector<1x512xi1> to vector<8x512xi1>
    %207 = arith.select %206, %204, %199 : vector<8x512xi1>, vector<8x512xf32>
    %c9_i32 = arith.constant 9 : i32
    %208 = vector.broadcast %c9_i32 : i32 to vector<1x512xi32>
    %209 = arith.cmpi eq, %9, %208 : vector<1x512xi32>
    %cst_76 = arith.constant 0.000000e+00 : f32
    %210 = vector.broadcast %cst_76 : f32 to vector<8x2xf32>
    %211 = vector.extract_strided_slice %207 {offsets = [0, 0], sizes = [8, 510], strides = [1, 1]} : vector<8x512xf32> to vector<8x510xf32>
    %212 = tpu.concatenate %210, %211 in 1 : vector<8x2xf32>, vector<8x510xf32> -> vector<8x512xf32>
    %213 = vector.shape_cast %209 : vector<1x512xi1> to vector<1x512xi1>
    %214 = vector.broadcast %213 : vector<1x512xi1> to vector<8x512xi1>
    %215 = arith.select %214, %212, %207 : vector<8x512xi1>, vector<8x512xf32>
    %c0_i32_77 = arith.constant 0 : i32
    %216 = vector.broadcast %c0_i32_77 : i32 to vector<1x512xi32>
    %217 = arith.cmpi eq, %7, %216 : vector<1x512xi32>
    %cst_78 = arith.constant 0.000000e+00 : f32
    %218 = vector.broadcast %cst_78 : f32 to vector<8x32xf32>
    %219 = vector.extract_strided_slice %215 {offsets = [0, 32], sizes = [8, 480], strides = [1, 1]} : vector<8x512xf32> to vector<8x480xf32>
    %220 = tpu.concatenate %219, %218 in 1 : vector<8x480xf32>, vector<8x32xf32> -> vector<8x512xf32>
    %221 = vector.shape_cast %217 : vector<1x512xi1> to vector<1x512xi1>
    %222 = vector.broadcast %221 : vector<1x512xi1> to vector<8x512xi1>
    %223 = arith.select %222, %220, %215 : vector<8x512xi1>, vector<8x512xf32>
    %c9_i32_79 = arith.constant 9 : i32
    %224 = vector.broadcast %c9_i32_79 : i32 to vector<1x512xi32>
    %225 = arith.cmpi eq, %7, %224 : vector<1x512xi32>
    %cst_80 = arith.constant 0.000000e+00 : f32
    %226 = vector.broadcast %cst_80 : f32 to vector<8x32xf32>
    %227 = vector.extract_strided_slice %223 {offsets = [0, 0], sizes = [8, 480], strides = [1, 1]} : vector<8x512xf32> to vector<8x480xf32>
    %228 = tpu.concatenate %226, %227 in 1 : vector<8x32xf32>, vector<8x480xf32> -> vector<8x512xf32>
    %229 = vector.shape_cast %225 : vector<1x512xi1> to vector<1x512xi1>
    %230 = vector.broadcast %229 : vector<1x512xi1> to vector<8x512xi1>
    %231 = arith.select %230, %228, %223 : vector<8x512xi1>, vector<8x512xf32>
    %c0_81 = arith.constant 0 : index
    %c0_82 = arith.constant 0 : index
    %c0_83 = arith.constant 0 : index
    %232 = vector.load %arg3[%c0_81, %c0_82, %c0_83] : memref<3x8x72xf32, #tpu.memory_space<vmem>>, vector<1x8x72xf32>
    %233 = vector.shape_cast %232 : vector<1x8x72xf32> to vector<8x72xf32>
    %234 = vector.extract_strided_slice %231 {offsets = [0, 0], sizes = [8, 478], strides = [1, 1]} : vector<8x512xf32> to vector<8x478xf32>
    %235 = vector.extract_strided_slice %231 {offsets = [0, 1], sizes = [8, 478], strides = [1, 1]} : vector<8x512xf32> to vector<8x478xf32>
    %236 = vector.extract_strided_slice %231 {offsets = [0, 2], sizes = [8, 478], strides = [1, 1]} : vector<8x512xf32> to vector<8x478xf32>
    %237 = vector.extract_strided_slice %231 {offsets = [0, 16], sizes = [8, 478], strides = [1, 1]} : vector<8x512xf32> to vector<8x478xf32>
    %238 = vector.extract_strided_slice %231 {offsets = [0, 17], sizes = [8, 478], strides = [1, 1]} : vector<8x512xf32> to vector<8x478xf32>
    %239 = vector.extract_strided_slice %231 {offsets = [0, 18], sizes = [8, 478], strides = [1, 1]} : vector<8x512xf32> to vector<8x478xf32>
    %240 = vector.extract_strided_slice %231 {offsets = [0, 32], sizes = [8, 478], strides = [1, 1]} : vector<8x512xf32> to vector<8x478xf32>
    %241 = vector.extract_strided_slice %231 {offsets = [0, 33], sizes = [8, 478], strides = [1, 1]} : vector<8x512xf32> to vector<8x478xf32>
    %242 = vector.extract_strided_slice %231 {offsets = [0, 34], sizes = [8, 478], strides = [1, 1]} : vector<8x512xf32> to vector<8x478xf32>
    %243 = tpu.concatenate %234, %235, %236, %237, %238, %239, %240, %241, %242 in 0 : vector<8x478xf32>, vector<8x478xf32>, vector<8x478xf32>, vector<8x478xf32>, vector<8x478xf32>, vector<8x478xf32>, vector<8x478xf32>, vector<8x478xf32>, vector<8x478xf32> -> vector<72x478xf32>
    %cst_84 = arith.constant dense<0.000000e+00> : vector<8x478xf32>
    %244 = tpu.matmul %233, %243, %cst_84 {dimension_numbers = #tpu.dot_dimension_numbers<[1], [0], [0], [1], [0, 0, 1, 1], [], []>} : vector<8x72xf32>, vector<72x478xf32>, vector<8x478xf32> -> vector<8x478xf32>
    %c2 = arith.constant 2 : index
    %c0_85 = arith.constant 0 : index
    %c0_86 = arith.constant 0 : index
    %245 = vector.load %arg4[%c2, %c0_85, %c0_86] : memref<5x8x1xf32, #tpu.memory_space<vmem>>, vector<1x8x1xf32>
    %246 = vector.shape_cast %245 : vector<1x8x1xf32> to vector<8x1xf32>
    %247 = vector.broadcast %246 : vector<8x1xf32> to vector<8x478xf32>
    %248 = arith.addf %244, %247 : vector<8x478xf32>
    %cst_87 = arith.constant 0.000000e+00 : f32
    %249 = vector.broadcast %cst_87 : f32 to vector<8x478xf32>
    %250 = arith.maximumf %248, %249 : vector<8x478xf32>
    %251 = arith.addf %250, %197 : vector<8x478xf32>
    %cst_88 = arith.constant 0.000000e+00 : f32
    %252 = vector.broadcast %cst_88 : f32 to vector<8x478xf32>
    %253 = arith.maximumf %251, %252 : vector<8x478xf32>
    %cst_89 = arith.constant 0.000000e+00 : f32
    %254 = vector.broadcast %cst_89 : f32 to vector<8x17xf32>
    %255 = tpu.concatenate %254, %253, %254 in 1 : vector<8x17xf32>, vector<8x478xf32>, vector<8x17xf32> -> vector<8x512xf32>
    %c0_i32_90 = arith.constant 0 : i32
    %256 = vector.broadcast %c0_i32_90 : i32 to vector<1x512xi32>
    %257 = arith.cmpi eq, %9, %256 : vector<1x512xi32>
    %cst_91 = arith.constant 0.000000e+00 : f32
    %258 = vector.broadcast %cst_91 : f32 to vector<8x2xf32>
    %259 = vector.extract_strided_slice %255 {offsets = [0, 2], sizes = [8, 510], strides = [1, 1]} : vector<8x512xf32> to vector<8x510xf32>
    %260 = tpu.concatenate %259, %258 in 1 : vector<8x510xf32>, vector<8x2xf32> -> vector<8x512xf32>
    %261 = vector.shape_cast %257 : vector<1x512xi1> to vector<1x512xi1>
    %262 = vector.broadcast %261 : vector<1x512xi1> to vector<8x512xi1>
    %263 = arith.select %262, %260, %255 : vector<8x512xi1>, vector<8x512xf32>
    %c9_i32_92 = arith.constant 9 : i32
    %264 = vector.broadcast %c9_i32_92 : i32 to vector<1x512xi32>
    %265 = arith.cmpi eq, %9, %264 : vector<1x512xi32>
    %cst_93 = arith.constant 0.000000e+00 : f32
    %266 = vector.broadcast %cst_93 : f32 to vector<8x2xf32>
    %267 = vector.extract_strided_slice %263 {offsets = [0, 0], sizes = [8, 510], strides = [1, 1]} : vector<8x512xf32> to vector<8x510xf32>
    %268 = tpu.concatenate %266, %267 in 1 : vector<8x2xf32>, vector<8x510xf32> -> vector<8x512xf32>
    %269 = vector.shape_cast %265 : vector<1x512xi1> to vector<1x512xi1>
    %270 = vector.broadcast %269 : vector<1x512xi1> to vector<8x512xi1>
    %271 = arith.select %270, %268, %263 : vector<8x512xi1>, vector<8x512xf32>
    %c0_i32_94 = arith.constant 0 : i32
    %272 = vector.broadcast %c0_i32_94 : i32 to vector<1x512xi32>
    %273 = arith.cmpi eq, %7, %272 : vector<1x512xi32>
    %cst_95 = arith.constant 0.000000e+00 : f32
    %274 = vector.broadcast %cst_95 : f32 to vector<8x32xf32>
    %275 = vector.extract_strided_slice %271 {offsets = [0, 32], sizes = [8, 480], strides = [1, 1]} : vector<8x512xf32> to vector<8x480xf32>
    %276 = tpu.concatenate %275, %274 in 1 : vector<8x480xf32>, vector<8x32xf32> -> vector<8x512xf32>
    %277 = vector.shape_cast %273 : vector<1x512xi1> to vector<1x512xi1>
    %278 = vector.broadcast %277 : vector<1x512xi1> to vector<8x512xi1>
    %279 = arith.select %278, %276, %271 : vector<8x512xi1>, vector<8x512xf32>
    %c9_i32_96 = arith.constant 9 : i32
    %280 = vector.broadcast %c9_i32_96 : i32 to vector<1x512xi32>
    %281 = arith.cmpi eq, %7, %280 : vector<1x512xi32>
    %cst_97 = arith.constant 0.000000e+00 : f32
    %282 = vector.broadcast %cst_97 : f32 to vector<8x32xf32>
    %283 = vector.extract_strided_slice %279 {offsets = [0, 0], sizes = [8, 480], strides = [1, 1]} : vector<8x512xf32> to vector<8x480xf32>
    %284 = tpu.concatenate %282, %283 in 1 : vector<8x32xf32>, vector<8x480xf32> -> vector<8x512xf32>
    %285 = vector.shape_cast %281 : vector<1x512xi1> to vector<1x512xi1>
    %286 = vector.broadcast %285 : vector<1x512xi1> to vector<8x512xi1>
    %287 = arith.select %286, %284, %279 : vector<8x512xi1>, vector<8x512xf32>
    %c1_98 = arith.constant 1 : index
    %c0_99 = arith.constant 0 : index
    %c0_100 = arith.constant 0 : index
    %288 = vector.load %arg3[%c1_98, %c0_99, %c0_100] : memref<3x8x72xf32, #tpu.memory_space<vmem>>, vector<1x8x72xf32>
    %289 = vector.shape_cast %288 : vector<1x8x72xf32> to vector<8x72xf32>
    %290 = vector.extract_strided_slice %287 {offsets = [0, 0], sizes = [8, 478], strides = [1, 1]} : vector<8x512xf32> to vector<8x478xf32>
    %291 = vector.extract_strided_slice %287 {offsets = [0, 1], sizes = [8, 478], strides = [1, 1]} : vector<8x512xf32> to vector<8x478xf32>
    %292 = vector.extract_strided_slice %287 {offsets = [0, 2], sizes = [8, 478], strides = [1, 1]} : vector<8x512xf32> to vector<8x478xf32>
    %293 = vector.extract_strided_slice %287 {offsets = [0, 16], sizes = [8, 478], strides = [1, 1]} : vector<8x512xf32> to vector<8x478xf32>
    %294 = vector.extract_strided_slice %287 {offsets = [0, 17], sizes = [8, 478], strides = [1, 1]} : vector<8x512xf32> to vector<8x478xf32>
    %295 = vector.extract_strided_slice %287 {offsets = [0, 18], sizes = [8, 478], strides = [1, 1]} : vector<8x512xf32> to vector<8x478xf32>
    %296 = vector.extract_strided_slice %287 {offsets = [0, 32], sizes = [8, 478], strides = [1, 1]} : vector<8x512xf32> to vector<8x478xf32>
    %297 = vector.extract_strided_slice %287 {offsets = [0, 33], sizes = [8, 478], strides = [1, 1]} : vector<8x512xf32> to vector<8x478xf32>
    %298 = vector.extract_strided_slice %287 {offsets = [0, 34], sizes = [8, 478], strides = [1, 1]} : vector<8x512xf32> to vector<8x478xf32>
    %299 = tpu.concatenate %290, %291, %292, %293, %294, %295, %296, %297, %298 in 0 : vector<8x478xf32>, vector<8x478xf32>, vector<8x478xf32>, vector<8x478xf32>, vector<8x478xf32>, vector<8x478xf32>, vector<8x478xf32>, vector<8x478xf32>, vector<8x478xf32> -> vector<72x478xf32>
    %cst_101 = arith.constant dense<0.000000e+00> : vector<8x478xf32>
    %300 = tpu.matmul %289, %299, %cst_101 {dimension_numbers = #tpu.dot_dimension_numbers<[1], [0], [0], [1], [0, 0, 1, 1], [], []>} : vector<8x72xf32>, vector<72x478xf32>, vector<8x478xf32> -> vector<8x478xf32>
    %c3 = arith.constant 3 : index
    %c0_102 = arith.constant 0 : index
    %c0_103 = arith.constant 0 : index
    %301 = vector.load %arg4[%c3, %c0_102, %c0_103] : memref<5x8x1xf32, #tpu.memory_space<vmem>>, vector<1x8x1xf32>
    %302 = vector.shape_cast %301 : vector<1x8x1xf32> to vector<8x1xf32>
    %303 = vector.broadcast %302 : vector<8x1xf32> to vector<8x478xf32>
    %304 = arith.addf %300, %303 : vector<8x478xf32>
    %cst_104 = arith.constant 0.000000e+00 : f32
    %305 = vector.broadcast %cst_104 : f32 to vector<8x478xf32>
    %306 = arith.maximumf %304, %305 : vector<8x478xf32>
    %cst_105 = arith.constant 0.000000e+00 : f32
    %307 = vector.broadcast %cst_105 : f32 to vector<8x17xf32>
    %308 = tpu.concatenate %307, %306, %307 in 1 : vector<8x17xf32>, vector<8x478xf32>, vector<8x17xf32> -> vector<8x512xf32>
    %c0_i32_106 = arith.constant 0 : i32
    %309 = vector.broadcast %c0_i32_106 : i32 to vector<1x512xi32>
    %310 = arith.cmpi eq, %9, %309 : vector<1x512xi32>
    %cst_107 = arith.constant 0.000000e+00 : f32
    %311 = vector.broadcast %cst_107 : f32 to vector<8x2xf32>
    %312 = vector.extract_strided_slice %308 {offsets = [0, 2], sizes = [8, 510], strides = [1, 1]} : vector<8x512xf32> to vector<8x510xf32>
    %313 = tpu.concatenate %312, %311 in 1 : vector<8x510xf32>, vector<8x2xf32> -> vector<8x512xf32>
    %314 = vector.shape_cast %310 : vector<1x512xi1> to vector<1x512xi1>
    %315 = vector.broadcast %314 : vector<1x512xi1> to vector<8x512xi1>
    %316 = arith.select %315, %313, %308 : vector<8x512xi1>, vector<8x512xf32>
    %c9_i32_108 = arith.constant 9 : i32
    %317 = vector.broadcast %c9_i32_108 : i32 to vector<1x512xi32>
    %318 = arith.cmpi eq, %9, %317 : vector<1x512xi32>
    %cst_109 = arith.constant 0.000000e+00 : f32
    %319 = vector.broadcast %cst_109 : f32 to vector<8x2xf32>
    %320 = vector.extract_strided_slice %316 {offsets = [0, 0], sizes = [8, 510], strides = [1, 1]} : vector<8x512xf32> to vector<8x510xf32>
    %321 = tpu.concatenate %319, %320 in 1 : vector<8x2xf32>, vector<8x510xf32> -> vector<8x512xf32>
    %322 = vector.shape_cast %318 : vector<1x512xi1> to vector<1x512xi1>
    %323 = vector.broadcast %322 : vector<1x512xi1> to vector<8x512xi1>
    %324 = arith.select %323, %321, %316 : vector<8x512xi1>, vector<8x512xf32>
    %c0_i32_110 = arith.constant 0 : i32
    %325 = vector.broadcast %c0_i32_110 : i32 to vector<1x512xi32>
    %326 = arith.cmpi eq, %7, %325 : vector<1x512xi32>
    %cst_111 = arith.constant 0.000000e+00 : f32
    %327 = vector.broadcast %cst_111 : f32 to vector<8x32xf32>
    %328 = vector.extract_strided_slice %324 {offsets = [0, 32], sizes = [8, 480], strides = [1, 1]} : vector<8x512xf32> to vector<8x480xf32>
    %329 = tpu.concatenate %328, %327 in 1 : vector<8x480xf32>, vector<8x32xf32> -> vector<8x512xf32>
    %330 = vector.shape_cast %326 : vector<1x512xi1> to vector<1x512xi1>
    %331 = vector.broadcast %330 : vector<1x512xi1> to vector<8x512xi1>
    %332 = arith.select %331, %329, %324 : vector<8x512xi1>, vector<8x512xf32>
    %c9_i32_112 = arith.constant 9 : i32
    %333 = vector.broadcast %c9_i32_112 : i32 to vector<1x512xi32>
    %334 = arith.cmpi eq, %7, %333 : vector<1x512xi32>
    %cst_113 = arith.constant 0.000000e+00 : f32
    %335 = vector.broadcast %cst_113 : f32 to vector<8x32xf32>
    %336 = vector.extract_strided_slice %332 {offsets = [0, 0], sizes = [8, 480], strides = [1, 1]} : vector<8x512xf32> to vector<8x480xf32>
    %337 = tpu.concatenate %335, %336 in 1 : vector<8x32xf32>, vector<8x480xf32> -> vector<8x512xf32>
    %338 = vector.shape_cast %334 : vector<1x512xi1> to vector<1x512xi1>
    %339 = vector.broadcast %338 : vector<1x512xi1> to vector<8x512xi1>
    %340 = arith.select %339, %337, %332 : vector<8x512xi1>, vector<8x512xf32>
    %c2_114 = arith.constant 2 : index
    %c0_115 = arith.constant 0 : index
    %c0_116 = arith.constant 0 : index
    %341 = vector.load %arg3[%c2_114, %c0_115, %c0_116] : memref<3x8x72xf32, #tpu.memory_space<vmem>>, vector<1x8x72xf32>
    %342 = vector.shape_cast %341 : vector<1x8x72xf32> to vector<8x72xf32>
    %343 = vector.extract_strided_slice %340 {offsets = [0, 0], sizes = [8, 478], strides = [1, 1]} : vector<8x512xf32> to vector<8x478xf32>
    %344 = vector.extract_strided_slice %340 {offsets = [0, 1], sizes = [8, 478], strides = [1, 1]} : vector<8x512xf32> to vector<8x478xf32>
    %345 = vector.extract_strided_slice %340 {offsets = [0, 2], sizes = [8, 478], strides = [1, 1]} : vector<8x512xf32> to vector<8x478xf32>
    %346 = vector.extract_strided_slice %340 {offsets = [0, 16], sizes = [8, 478], strides = [1, 1]} : vector<8x512xf32> to vector<8x478xf32>
    %347 = vector.extract_strided_slice %340 {offsets = [0, 17], sizes = [8, 478], strides = [1, 1]} : vector<8x512xf32> to vector<8x478xf32>
    %348 = vector.extract_strided_slice %340 {offsets = [0, 18], sizes = [8, 478], strides = [1, 1]} : vector<8x512xf32> to vector<8x478xf32>
    %349 = vector.extract_strided_slice %340 {offsets = [0, 32], sizes = [8, 478], strides = [1, 1]} : vector<8x512xf32> to vector<8x478xf32>
    %350 = vector.extract_strided_slice %340 {offsets = [0, 33], sizes = [8, 478], strides = [1, 1]} : vector<8x512xf32> to vector<8x478xf32>
    %351 = vector.extract_strided_slice %340 {offsets = [0, 34], sizes = [8, 478], strides = [1, 1]} : vector<8x512xf32> to vector<8x478xf32>
    %352 = tpu.concatenate %343, %344, %345, %346, %347, %348, %349, %350, %351 in 0 : vector<8x478xf32>, vector<8x478xf32>, vector<8x478xf32>, vector<8x478xf32>, vector<8x478xf32>, vector<8x478xf32>, vector<8x478xf32>, vector<8x478xf32>, vector<8x478xf32> -> vector<72x478xf32>
    %cst_117 = arith.constant dense<0.000000e+00> : vector<8x478xf32>
    %353 = tpu.matmul %342, %352, %cst_117 {dimension_numbers = #tpu.dot_dimension_numbers<[1], [0], [0], [1], [0, 0, 1, 1], [], []>} : vector<8x72xf32>, vector<72x478xf32>, vector<8x478xf32> -> vector<8x478xf32>
    %c4 = arith.constant 4 : index
    %c0_118 = arith.constant 0 : index
    %c0_119 = arith.constant 0 : index
    %354 = vector.load %arg4[%c4, %c0_118, %c0_119] : memref<5x8x1xf32, #tpu.memory_space<vmem>>, vector<1x8x1xf32>
    %355 = vector.shape_cast %354 : vector<1x8x1xf32> to vector<8x1xf32>
    %356 = vector.broadcast %355 : vector<8x1xf32> to vector<8x478xf32>
    %357 = arith.addf %353, %356 : vector<8x478xf32>
    %cst_120 = arith.constant 0.000000e+00 : f32
    %358 = vector.broadcast %cst_120 : f32 to vector<8x478xf32>
    %359 = arith.maximumf %357, %358 : vector<8x478xf32>
    %360 = arith.addf %359, %253 : vector<8x478xf32>
    %cst_121 = arith.constant 0.000000e+00 : f32
    %361 = vector.broadcast %cst_121 : f32 to vector<8x478xf32>
    %362 = arith.maximumf %360, %361 : vector<8x478xf32>
    %363 = tpu.iota {dimensions = array<i32: 0>} : vector<478x1xi32>
    %c8_i32_122 = arith.constant 8 : i32
    %364 = vector.broadcast %c8_i32_122 : i32 to vector<478x1xi32>
    %365 = arith.shrsi %363, %364 : vector<478x1xi32>
    %c4_i32_123 = arith.constant 4 : i32
    %366 = vector.broadcast %c4_i32_123 : i32 to vector<478x1xi32>
    %367 = arith.shrsi %363, %366 : vector<478x1xi32>
    %c15_i32_124 = arith.constant 15 : i32
    %368 = vector.broadcast %c15_i32_124 : i32 to vector<478x1xi32>
    %369 = arith.andi %367, %368 : vector<478x1xi32>
    %c15_i32_125 = arith.constant 15 : i32
    %370 = vector.broadcast %c15_i32_125 : i32 to vector<478x1xi32>
    %371 = arith.andi %363, %370 : vector<478x1xi32>
    %c8_i32_126 = arith.constant 8 : i32
    %372 = vector.broadcast %c8_i32_126 : i32 to vector<478x1xi32>
    %373 = arith.cmpi slt, %369, %372 : vector<478x1xi32>
    %c8_i32_127 = arith.constant 8 : i32
    %374 = vector.broadcast %c8_i32_127 : i32 to vector<478x1xi32>
    %375 = arith.cmpi slt, %371, %374 : vector<478x1xi32>
    %376 = arith.andi %373, %375 : vector<478x1xi1>
    %c64_i32 = arith.constant 64 : i32
    %377 = vector.broadcast %c64_i32 : i32 to vector<478x1xi32>
    %378 = arith.muli %365, %377 : vector<478x1xi32>
    %c8_i32_128 = arith.constant 8 : i32
    %379 = vector.broadcast %c8_i32_128 : i32 to vector<478x1xi32>
    %380 = arith.muli %369, %379 : vector<478x1xi32>
    %381 = arith.addi %378, %380 : vector<478x1xi32>
    %382 = arith.addi %381, %371 : vector<478x1xi32>
    %383 = tpu.iota {dimensions = array<i32: 1>} : vector<1x128xi32>
    %384 = vector.broadcast %382 : vector<478x1xi32> to vector<478x128xi32>
    %385 = vector.broadcast %383 : vector<1x128xi32> to vector<478x128xi32>
    %386 = arith.cmpi eq, %384, %385 : vector<478x128xi32>
    %387 = vector.broadcast %376 : vector<478x1xi1> to vector<478x128xi1>
    %388 = arith.andi %387, %386 : vector<478x128xi1>
    %cst_129 = arith.constant 1.000000e+00 : f32
    %cst_130 = arith.constant 0.000000e+00 : f32
    %389 = vector.broadcast %cst_129 : f32 to vector<478x128xf32>
    %390 = vector.broadcast %cst_130 : f32 to vector<478x128xf32>
    %391 = arith.select %388, %389, %390 : vector<478x128xi1>, vector<478x128xf32>
    %cst_131 = arith.constant dense<0.000000e+00> : vector<8x128xf32>
    %392 = tpu.matmul %362, %391, %cst_131 {dimension_numbers = #tpu.dot_dimension_numbers<[1], [0], [0], [1], [0, 0, 1, 1], [], []>} : vector<8x478xf32>, vector<478x128xf32>, vector<8x128xf32> -> vector<8x128xf32>
    %c0_132 = arith.constant 0 : index
    %c0_133 = arith.constant 0 : index
    %393 = vector.load %arg5[%c0_132, %c0_133] : memref<8x128xf32, #tpu.memory_space<vmem>>, vector<8x128xf32>
    tpu.vector_store %arg5[%c0_132, %c0_133], %392 {strides = array<i32>} : memref<8x128xf32, #tpu.memory_space<vmem>>, vector<8x128xf32>,
    return
  }
  func.func @transform_0(%arg0: i32) -> (i32, i32) {
    %c0_i32 = arith.constant 0 : i32
    %c0_i32_0 = arith.constant 0 : i32
    return %c0_i32, %arg0 : i32, i32
  }
  func.func @transform_1(%arg0: i32) -> (i32, i32) {
    %c0_i32 = arith.constant 0 : i32
    %c0_i32_0 = arith.constant 0 : i32
    %c0_i32_1 = arith.constant 0 : i32
    return %c0_i32, %c0_i32_0 : i32, i32
  }
  func.func @transform_2(%arg0: i32) -> (i32, i32, i32) {
    %c0_i32 = arith.constant 0 : i32
    %c0_i32_0 = arith.constant 0 : i32
    %c0_i32_1 = arith.constant 0 : i32
    %c0_i32_2 = arith.constant 0 : i32
    return %c0_i32, %c0_i32_0, %c0_i32_1 : i32, i32, i32
  }
  func.func @transform_3(%arg0: i32) -> (i32, i32, i32) {
    %c0_i32 = arith.constant 0 : i32
    %c0_i32_0 = arith.constant 0 : i32
    %c0_i32_1 = arith.constant 0 : i32
    %c0_i32_2 = arith.constant 0 : i32
    return %c0_i32, %c0_i32_0, %c0_i32_1 : i32, i32, i32
  }
  func.func @transform_4(%arg0: i32) -> (i32, i32) {
    %c0_i32 = arith.constant 0 : i32
    %c0_i32_0 = arith.constant 0 : i32
    return %c0_i32, %arg0 : i32, i32
  }
}

</mosaic_0001>

<bundles_post_ra>
// kernel: down_block.1
= control target key start
LH: loop header
LB: loop body
LE: loop exit
PB: predicated region body
PF: predicated region fallthrough
CT: control target
= control target key end

     0   :  { %v19_v0 = vlaneseq  ;;  %s8783_s25 = smov 127   ;;  %s8784_s26 = smov 112   ;;  %s15108_s0 = inlined_call_operand.vmem [shape: f32[4,512], index: 0, kind: input, shape index: {}]   ;;  %s15109_s3 = inlined_call_operand.vmem [shape: f32[5,8,1], index: 3, kind: input, shape index: {}]   ;;  %s15110_s1 = inlined_call_operand.vmem [shape: f32[16,36], index: 1, kind: input, shape index: {}]   ;;  %s15111_s2 = inlined_call_operand.vmem [shape: f32[3,8,72], index: 2, kind: input, shape index: {}]   ;;  %s15112_s4 = inlined_call_operand.vmem [shape: f32[8,128], index: 4, kind: output, shape index: {}]  }
   0x1   :  { %v8827_v1 = vld [vmem:[%s15108_s0] sm:$0xff]  ;;  %s8785_s5 = smov 111   ;;  %s8788_s11 = smov 17  }
   0x2   :  { %v8829_v2 = vand.u32 127, %v19_v0  ;;  %v8831_v3 = vshrl.u32 %v19_v0, 7  ;;  %v8835_v4 = vcombine.high %v8827_v1, %v8827_v1  ;;  %s8789_s12 = smov 126   ;;  %s8790_s13 = smov 2  }
   0x3   :  { %s8791_s14 = smov 96   ;;  %s8792_s15 = smov 32  }
   0x4   :  { %15299 = vst [vmem:[#allocation2_spill] sm:$0xff] %v8829_v2  ;;  %v21_v5 = vadd.s32 128, %v8829_v2  ;;  %v23_v6 = vadd.s32 384, %v8829_v2  ;;  %v24_v7 = vshra.s32 %v8829_v2, 8  ;;  %783 = vmatprep.mubr.f32.mxu0 %v8835_v4  ;;  %925 = vmatprep.mubr.f32.mxu1 %v8835_v4  ;;  %v8843_v8 = vadd.s32 8, %v8831_v3  ;;  %s8793_s16 = smov 110  }
   0x5   :  { %v28_v9 = vshra.s32 %v8829_v2, 4  ;;  %v8847_v10 = vadd.s32 256, %v8829_v2  ;;  %v8852_v14 = vand.u32 15, %v8829_v2  ;;  %v8859_v18 = vadd.s32 16, %v8831_v3  ;;  %s8794_s19 = smov 95   ;;  %s8795_s20 = smov 94  }
   0x6   :  { %v25_v11 = vshra.s32 %v21_v5, 8  ;;  %v29_v12 = vshra.s32 %v21_v5, 4  ;;  %v8849_v13 = vand.u32 15, %v21_v5  ;;  %v31_v15 = vshra.s32 %v23_v6, 4 }
   0x7   :  { %15301 = vst [vmem:[#allocation4_spill] sm:$0xff] %v8852_v14  ;;  %v8854_v16 = vand.u32 15, %v23_v6  ;;  %v8856_v17 = vand.u32 15, %v28_v9  ;;  %v27_v21 = vshra.s32 %v23_v6, 8  ;;  %v8866_v22 = vmul.u32 256, %v24_v7 }
   0x8   :  { %15300 = vst [vmem:[#allocation3_spill] sm:$0xff] %v8849_v13  ;;  %v8861_v19 = vand.u32 15, %v29_v12  ;;  %v8864_v20 = vmul.u32 2, %v8849_v13  ;;  %v8868_v23 = vmul.u32 256, %v25_v11  ;;  %v8870_v24 = vand.u32 15, %v31_v15 }
   0x9   :  { %15302 = vst [vmem:[#allocation5_spill] sm:$0xff] %v8854_v16  ;;  %15303 = vst [vmem:[#allocation6_spill] sm:$0xff] %v8856_v17  ;;  %v8873_v25 = vmul.u32 2, %v8854_v16  ;;  %v30_v26 = vshra.s32 %v8847_v10, 4  ;;  %v8881_v29 = vmul.u32 2, %v8856_v17  ;;  %v26_v30 = vshra.s32 %v8847_v10, 8 }
   0xa   :  { %15304 = vst [vmem:[#allocation7_spill] sm:$0xff] %v8861_v19  ;;  %15305 = vst [vmem:[#allocation8_spill] sm:$0xff] %v8866_v22  ;;  %v8877_v27 = vmul.u32 2, %v8861_v19  ;;  %v97_v28 = vadd.s32 4294967295, %v8864_v20  ;;  %v8885_v31 = vmul.u32 2, %v8870_v24  ;;  %v8900_v42 = vand.u32 15, %v8847_v10 }
   0xb   :  { %15306 = vst [vmem:[#allocation9_spill] sm:$0xff] %v8868_v23  ;;  %15307 = vst [vmem:[#allocation10_spill] sm:$0xff] %v8870_v24  ;;  %v99_v32 = vadd.s32 4294967295, %v8873_v25  ;;  %v8889_v33 = vmul.u32 2, %v8852_v14  ;;  %v8891_v34 = vand.u32 15, %v30_v26  ;;  %v8894_v37 = vmul.u32 256, %v27_v21 }
   0xc   :  { %15308 = vst [vmem:[#allocation11_spill] sm:$0xff] %v8877_v27  ;;  %15309 = vst [vmem:[#allocation12_spill] sm:$0xff] %v8881_v29  ;;  %v49_v35 = vadd.s32 4294967295, %v8877_v27  ;;  %v101_v36 = vsub.s32 0, %v97_v28  ;;  %v48_v38 = vadd.s32 4294967295, %v8881_v29  ;;  %v51_v39 = vadd.s32 4294967295, %v8885_v31 }
   0xd   :  { %15310 = vst [vmem:[#allocation13_spill] sm:$0xff] %v8885_v31  ;;  %15311 = vst [vmem:[#allocation14_spill] sm:$0xff] %v8891_v34  ;;  %v103_v40 = vsub.s32 0, %v99_v32  ;;  %v96_v41 = vadd.s32 4294967295, %v8889_v33  ;;  %v8903_v45 = vmul.u32 2, %v8891_v34  ;;  %v8906_v60 = vmul.u32 2, %v8900_v42 }
   0xe   :  { %15312 = vst [vmem:[#allocation15_spill] sm:$0xff] %v8894_v37  ;;  %15313 = vst [vmem:[#allocation16_spill] sm:$0xff] %v8900_v42  ;;  %v53_v43 = vsub.s32 0, %v49_v35  ;;  %vm106_vm0 = vcmp.gt.s32.totalorder %v97_v28, %v101_v36  ;;  %v52_v44 = vsub.s32 0, %v48_v38  ;;  %v55_v47 = vsub.s32 0, %v51_v39 }
   0xf   :  { %15314 = vst [vmem:[#allocation17_spill] sm:$0xff] %v8903_v45  ;;  %v107_v46 = vsel %vm106_vm0, %v97_v28, %v101_v36  ;;  %vm110_vm1 = vcmp.gt.s32.totalorder %v99_v32, %v103_v40  ;;  %v100_v48 = vsub.s32 0, %v96_v41  ;;  %v50_v6 = vadd.s32 4294967295, %v8903_v45  ;;  %v9697_v45 = vld [vmem:[%s15108_s0 + $0x8] sm:$0xff] }
  0x10   :  { %vm58_vm2 = vcmp.gt.s32.totalorder %v49_v35, %v53_v43  ;;  %v113_v49 = vsub.s32 15, %v107_v46  ;;  %v111_v50 = vsel %vm110_vm1, %v99_v32, %v103_v40  ;;  %vm56_vm3 = vcmp.gt.s32.totalorder %v48_v38, %v52_v44 }
  0x11   :  { %v59_v51 = vsel %vm58_vm2, %v49_v35, %v53_v43  ;;  %vm62_vm4 = vcmp.gt.s32.totalorder %v51_v39, %v55_v47  ;;  %v115_v52 = vsub.s32 15, %v111_v50  ;;  %v57_v53 = vsel %vm56_vm3, %v48_v38, %v52_v44 }
  0x12   :  { %v65_v54 = vsub.s32 15, %v59_v51  ;;  %v117_v55 = vsub.s32 0, %v113_v49  ;;  %v63_v56 = vsel %vm62_vm4, %v51_v39, %v55_v47  ;;  %v64_v57 = vsub.s32 15, %v57_v53 }
  0x13   :  { %v67_v58 = vsub.s32 15, %v63_v56  ;;  %v119_v59 = vsub.s32 0, %v115_v52  ;;  %vm104_vm5 = vcmp.gt.s32.totalorder %v96_v41, %v100_v48  ;;  %v8911_v9 = vmul.u32 256, %v26_v30 }
  0x14   :  { %v69_v61 = vsub.s32 0, %v65_v54  ;;  %vm122_vm6 = vcmp.gt.s32.totalorder %v113_v49, %v117_v55  ;;  %v68_v62 = vsub.s32 0, %v64_v57  ;;  %v105_v63 = vsel %vm104_vm5, %v96_v41, %v100_v48 }
  0x15   :  { %v71_v0 = vsub.s32 0, %v67_v58  ;;  %vm126_vm7 = vcmp.gt.s32.totalorder %v115_v52, %v119_v59  ;;  %v112_v5 = vsub.s32 15, %v105_v63  ;;  %v8909_v7 = vsel %vm122_vm6, %v113_v49, %v117_v55  ;;  %15316 = vst [vmem:[#allocation19_spill] sm:$0xff] %v8911_v9 }
  0x16   :  { %vm74_vm8 = vcmp.gt.s32.totalorder %v65_v54, %v69_v61  ;;  %15315 = vst [vmem:[#allocation18_spill] sm:$0xff] %v8909_v7  ;;  %vm72_vm9 = vcmp.gt.s32.totalorder %v64_v57, %v68_v62  ;;  %v8913_v11 = vsel %vm126_vm7, %v115_v52, %v119_v59  ;;  %v15116_v32 = vsub.s32 15, %v8909_v7 }
  0x17   :  { %v75_v10 = vsel %vm74_vm8, %v65_v54, %v69_v61  ;;  %vm78_vm10 = vcmp.gt.s32.totalorder %v67_v58, %v71_v0  ;;  %15317 = vst [vmem:[#allocation20_spill] sm:$0xff] %v8913_v11  ;;  %v73_v12 = vsel %vm72_vm9, %v64_v57, %v68_v62  ;;  %v116_v28 = vsub.s32 0, %v112_v5 }
  0x18   :  { %v81_v15 = vsub.s32 15, %v75_v10  ;;  %v79_v21 = vsel %vm78_vm10, %v67_v58, %v71_v0  ;;  %v80_v26 = vsub.s32 15, %v73_v12  ;;  %v54_v36 = vsub.s32 0, %v50_v6 }
  0x19   :  { %v83_v35 = vsub.s32 15, %v79_v21  ;;  %v98_v38 = vadd.s32 4294967295, %v8906_v60  ;;  %v15114_v40 = vsub.s32 15, %v8913_v11  ;;  %vm120_vm11 = vcmp.gt.s32.totalorder %v112_v5, %v116_v28 }
  0x1a   :  { %v85_v39 = vmul.u32 16, %v81_v15  ;;  %v84_v30 = vmul.u32 16, %v80_v26  ;;  %v8918_v43 = vsel %vm120_vm11, %v112_v5, %v116_v28  ;;  %vm60_vm12 = vcmp.gt.s32.totalorder %v50_v6, %v54_v36 }
  0x1b   :  { %v87_v41 = vmul.u32 16, %v83_v35  ;;  %15318 = vst [vmem:[#allocation21_spill] sm:$0xff] %v8918_v43  ;;  %v102_v44 = vsub.s32 0, %v98_v38  ;;  %v15115_v48 = vsub.s32 15, %v8918_v43  ;;  %v61_v49 = vsel %vm60_vm12, %v50_v6, %v54_v36 }
  0x1c   :  { %v8921_v46 = vadd.s32 %v85_v39, %v8868_v23  ;;  %v8924_v47 = vadd.s32 %v84_v30, %v8866_v22  ;;  %v66_v51 = vsub.s32 15, %v61_v49  ;;  %v8931_v52 = vadd.s32 24, %v8831_v3 }
  0x1d   :  { %v8928_v50 = vadd.s32 %v87_v41, %v8894_v37  ;;  %vm108_vm13 = vcmp.gt.s32.totalorder %v98_v38, %v102_v44  ;;  %v8944_v56 = vadd.s32 32, %v8831_v3  ;;  %v8952_v61 = vadd.s32 40, %v8831_v3 }
  0x1e   :  { %v8936_v53 = vadd.s32 %v15116_v32, %v8921_v46  ;;  %v8941_v54 = vadd.s32 %v15115_v48, %v8924_v47  ;;  %v109_v55 = vsel %vm108_vm13, %v98_v38, %v102_v44  ;;  %v70_v58 = vsub.s32 0, %v66_v51 }
  0x1f   :  { %v8949_v57 = vadd.s32 %v15114_v40, %v8928_v50  ;;  %v114_v59 = vsub.s32 15, %v109_v55  ;;  %v15147_v63 = vmov 1.0|1.0   ;;  %v8972_v5 = vadd.s32 48, %v8831_v3 }
  0x20   :  { %vm202_vm14 = vcmp.eq.s32.totalorder %v8831_v3, %v8936_v53  ;;  %vm206_vm15 = vcmp.eq.s32.totalorder %v8843_v8, %v8936_v53  ;;  %vm201_vm0 = vcmp.eq.s32.totalorder %v8831_v3, %v8941_v54  ;;  %vm205_vm1 = vcmp.eq.s32.totalorder %v8843_v8, %v8941_v54 }
  0x21   :  { %vm7240_vm2 = vmpackc.low %vm206_vm15, %vm202_vm14  ;;  %vm204_vm3 = vcmp.eq.s32.totalorder %v8831_v3, %v8949_v57  ;;  %vm208_vm4 = vcmp.eq.s32.totalorder %v8843_v8, %v8949_v57  ;;  %vm76_vm5 = vcmp.gt.s32.totalorder %v66_v51, %v70_v58  ;;  %v118_v62 = vsub.s32 0, %v114_v59 }
  0x22   :  { %7241 = vmatprep.subr.msk.bf16.mxu0 %vm7240_vm2, %v15147_v63  ;;  %vm7368_vm6 = vmpackc.low %vm208_vm4, %vm204_vm3  ;;  %v77_v0 = vsel %vm76_vm5, %v66_v51, %v70_v58  ;;  %vm210_vm7 = vcmp.eq.s32.totalorder %v8859_v18, %v8936_v53  ;;  %vm214_vm8 = vcmp.eq.s32.totalorder %v8931_v52, %v8936_v53  ;;  %vm209_vm11 = vcmp.eq.s32.totalorder %v8859_v18, %v8941_v54 }
  0x23   :  { %7369 = vmatprep.subr.msk.bf16.mxu1 %vm7368_vm6, %v15147_v63  ;;  %vm7242_vm9 = vmpackc.low %vm205_vm1, %vm201_vm0  ;;  %v82_v6 = vsub.s32 15, %v77_v0  ;;  %vm124_vm10 = vcmp.gt.s32.totalorder %v114_v59, %v118_v62  ;;  %v8981_v10 = vadd.s32 56, %v8831_v3  ;;  %vm213_vm13 = vcmp.eq.s32.totalorder %v8931_v52, %v8941_v54 }
  0x24   :  { %7243 = vmatpush1.bf16.msk.msra.mxu0 %vm7242_vm9, %v15147_v63  ;;  %v8984_v12 = vsel %vm124_vm10, %v114_v59, %v118_v62  ;;  %vm7244_vm12 = vmpackc.low %vm214_vm8, %vm210_vm7  ;;  %vm218_vm14 = vcmp.eq.s32.totalorder %v8944_v56, %v8936_v53  ;;  %vm222_vm15 = vcmp.eq.s32.totalorder %v8952_v61, %v8936_v53  ;;  %vm217_vm1 = vcmp.eq.s32.totalorder %v8944_v56, %v8941_v54 }
  0x25   :  { %15319 = vst [vmem:[#allocation22_spill] sm:$0xff] %v8984_v12  ;;  %v86_v15 = vmul.u32 16, %v82_v6  ;;  %v15113_v21 = vsub.s32 15, %v8984_v12  ;;  %7245 = vmatprep.subr.msk.bf16.mxu0 %vm7244_vm12, %v15147_v63  ;;  %vm7246_vm0 = vmpackc.low %vm213_vm13, %vm209_vm11  ;;  %vm221_vm2 = vcmp.eq.s32.totalorder %v8952_v61, %v8941_v54  ;;  %vm226_vm4 = vcmp.eq.s32.totalorder %v8972_v5, %v8936_v53 }
  0x26   :  { %vm7248_vm3 = vmpackc.low %vm222_vm15, %vm218_vm14  ;;  %vm230_vm5 = vcmp.eq.s32.totalorder %v8981_v10, %v8936_v53  ;;  %vm212_vm6 = vcmp.eq.s32.totalorder %v8859_v18, %v8949_v57  ;;  %vm216_vm7 = vcmp.eq.s32.totalorder %v8931_v52, %v8949_v57  ;;  %vm220_vm9 = vcmp.eq.s32.totalorder %v8944_v56, %v8949_v57 }
  0x27   :  { %v8999_v26 = vadd.s32 %v86_v15, %v8911_v9  ;;  %vm7250_vm8 = vmpackc.low %vm221_vm2, %vm217_vm1  ;;  %vm224_vm10 = vcmp.eq.s32.totalorder %v8952_v61, %v8949_v57  ;;  %v9021_v35 = vadd.s32 64, %v8831_v3  ;;  %v9024_v36 = vadd.s32 72, %v8831_v3 }
  0x28   :  { %7247 = vmatpush1.bf16.msk.msra.mxu0 %vm7246_vm0, %v15147_v63  ;;  %vm7252_vm11 = vmpackc.low %vm230_vm5, %vm226_vm4  ;;  %vm225_vm2 = vcmp.eq.s32.totalorder %v8972_v5, %v8941_v54  ;;  %vm228_vm5 = vcmp.eq.s32.totalorder %v8972_v5, %v8949_v57  ;;  %v9058_v39 = vadd.s32 80, %v8831_v3  ;;  %v9061_v30 = vadd.s32 88, %v8831_v3 }
  0x29   :  { %v9013_v28 = vadd.s32 %v15113_v21, %v8999_v26  ;;  %7249 = vmatprep.subr.msk.bf16.mxu0 %vm7248_vm3, %v15147_v63  ;;  %vm7372_vm14 = vmpackc.low %vm216_vm7, %vm212_vm6  ;;  %vm229_vm3 = vcmp.eq.s32.totalorder %v8981_v10, %v8941_v54  ;;  %vm232_vm6 = vcmp.eq.s32.totalorder %v8981_v10, %v8949_v57  ;;  %v9093_v44 = vadd.s32 96, %v8831_v3 }
  0x2a   :  { %vm9043_vm4 = vmpackc.low %vm224_vm10, %vm220_vm9  ;;  %vm238_vm9 = vcmp.eq.s32.totalorder %v9024_v36, %v8936_v53  ;;  %v9096_v49 = vadd.s32 104, %v8831_v3  ;;  %v9132_v58 = vadd.s32 112, %v8831_v3  ;;  %v9135_v59 = vadd.s32 120, %v8831_v3 }
  0x2b   :  { %vm203_vm12 = vcmp.eq.s32.totalorder %v8831_v3, %v9013_v28  ;;  %vm207_vm13 = vcmp.eq.s32.totalorder %v8843_v8, %v9013_v28  ;;  %vm211_vm15 = vcmp.eq.s32.totalorder %v8859_v18, %v9013_v28  ;;  %vm215_vm0 = vcmp.eq.s32.totalorder %v8931_v52, %v9013_v28 }
  0x2c   :  { %vm7370_vm1 = vmpackc.low %vm207_vm13, %vm203_vm12  ;;  %7251 = vmatpush1.bf16.msk.msra.mxu0 %vm7250_vm8, %v15147_v63  ;;  %vm234_vm8 = vcmp.eq.s32.totalorder %v9021_v35, %v8936_v53  ;;  %vm219_vm10 = vcmp.eq.s32.totalorder %v8944_v56, %v9013_v28  ;;  %v9173_v6 = vadd.s32 128, %v8831_v3  ;;  %v9176_v15 = vadd.s32 136, %v8831_v3 }
  0x2d   :  { %7371 = vmatpush1.bf16.msk.msra.mxu1 %vm7370_vm1, %v15147_v63  ;;  %7253 = vmatprep.subr.msk.bf16.mxu0 %vm7252_vm11, %v15147_v63  ;;  %vm7374_vm7 = vmpackc.low %vm215_vm0, %vm211_vm15  ;;  %vm223_vm11 = vcmp.eq.s32.totalorder %v8952_v61, %v9013_v28  ;;  %vm237_vm15 = vcmp.eq.s32.totalorder %v9024_v36, %v8941_v54  ;;  %vm227_vm0 = vcmp.eq.s32.totalorder %v8972_v5, %v9013_v28  ;;  %v9214_v51 = vadd.s32 144, %v8831_v3 }
  0x2e   :  { %7373 = vmatprep.subr.msk.bf16.mxu1 %vm7372_vm14, %v15147_v63  ;;  %vm7254_vm12 = vmpackc.low %vm229_vm3, %vm225_vm2  ;;  %vm233_vm14 = vcmp.eq.s32.totalorder %v9021_v35, %v8941_v54  ;;  %vm231_vm1 = vcmp.eq.s32.totalorder %v8981_v10, %v9013_v28  ;;  %v9217_v55 = vadd.s32 152, %v8831_v3  ;;  %v9255_v38 = vadd.s32 160, %v8831_v3 }
  0x2f   :  { %vm9070_vm13 = vmpackc.low %vm232_vm6, %vm228_vm5  ;;  %vm242_vm5 = vcmp.eq.s32.totalorder %v9058_v39, %v8936_v53  ;;  %vm246_vm6 = vcmp.eq.s32.totalorder %v9061_v30, %v8936_v53  ;;  %v9258_v21 = vadd.s32 168, %v8831_v3  ;;  %v9296_v62 = vadd.s32 176, %v8831_v3 }
  0x30   :  { %7255 = vmatpush1.bf16.msk.msra.mxu0 %vm7254_vm12, %v15147_v63  ;;  %vm7256_vm2 = vmpackc.low %vm238_vm9, %vm234_vm8  ;;  %vm235_vm12 = vcmp.eq.s32.totalorder %v9021_v35, %v9013_v28  ;;  %v9299_v48 = vadd.s32 184, %v8831_v3  ;;  %v9337_v41 = vadd.s32 192, %v8831_v3  ;;  %v9340_v2 = vadd.s32 200, %v8831_v3 }
  0x31   :  { %7375 = vmatpush1.bf16.msk.msra.mxu1 %vm7374_vm7, %v15147_v63  ;;  %vm7378_vm3 = vmpackc.low %vm223_vm11, %vm219_vm10  ;;  %7257 = vmatprep.subr.msk.bf16.mxu0 %vm7256_vm2, %v15147_v63  ;;  %vm236_vm7 = vcmp.eq.s32.totalorder %v9021_v35, %v8949_v57  ;;  %vm241_vm10 = vcmp.eq.s32.totalorder %v9058_v39, %v8941_v54  ;;  %vm245_vm11 = vcmp.eq.s32.totalorder %v9061_v30, %v8941_v54  ;;  %v9378_v0 = vadd.s32 208, %v8831_v3 }
  0x32   :  { %7377 = vmatprep.subr.msk.bf16.mxu1 %vm9043_vm4, %v15147_v63  ;;  %vm240_vm4 = vcmp.eq.s32.totalorder %v9024_v36, %v8949_v57  ;;  %vm7258_vm8 = vmpackc.low %vm237_vm15, %vm233_vm14  ;;  %vm239_vm14 = vcmp.eq.s32.totalorder %v9024_v36, %v9013_v28  ;;  %vm254_vm2 = vcmp.eq.s32.totalorder %v9096_v49, %v8936_v53  ;;  %v9381_v34 = vadd.s32 216, %v8831_v3 }
  0x33   :  { %vm9105_vm9 = vmpackc.low %vm231_vm1, %vm227_vm0  ;;  %vm250_vm1 = vcmp.eq.s32.totalorder %v9093_v44, %v8936_v53  ;;  %15352 = vst [vmem:[#allocation23_spill] sm:$0xff] %v9378_v0  ;;  %v9419_v40 = vadd.s32 224, %v8831_v3  ;;  %v9422_v17 = vadd.s32 232, %v8831_v3  ;;  %v9460_v32 = vadd.s32 240, %v8831_v3 }
  0x34   :  { %7259 = vmatpush1.bf16.msk.msra.mxu0 %vm7258_vm8, %v15147_v63  ;;  %vm7260_vm15 = vmpackc.low %vm246_vm6, %vm242_vm5  ;;  %vm243_vm8 = vcmp.eq.s32.totalorder %v9058_v39, %v9013_v28  ;;  %v9463_v16 = vadd.s32 248, %v8831_v3  ;;  %v9501_v24 = vadd.s32 256, %v8831_v3  ;;  %v9504_v13 = vadd.s32 264, %v8831_v3 }
  0x35   :  { %7379 = vmatpush1.bf16.msk.msra.mxu1 %vm7378_vm3, %v15147_v63  ;;  %vm9122_vm0 = vmpackc.low %vm240_vm4, %vm236_vm7  ;;  %7261 = vmatprep.subr.msk.bf16.mxu0 %vm7260_vm15, %v15147_v63  ;;  %vm248_vm3 = vcmp.eq.s32.totalorder %v9061_v30, %v8949_v57  ;;  %vm249_vm7 = vcmp.eq.s32.totalorder %v9093_v44, %v8941_v54  ;;  %vm253_vm4 = vcmp.eq.s32.totalorder %v9096_v49, %v8941_v54  ;;  %v9542_v19 = vadd.s32 272, %v8831_v3 }
  0x36   :  { %7381 = vmatprep.subr.msk.bf16.mxu1 %vm9070_vm13, %v15147_v63  ;;  %vm244_vm13 = vcmp.eq.s32.totalorder %v9058_v39, %v8949_v57  ;;  %vm7262_vm5 = vmpackc.low %vm245_vm11, %vm241_vm10  ;;  %vm247_vm10 = vcmp.eq.s32.totalorder %v9061_v30, %v9013_v28  ;;  %vm252_vm15 = vcmp.eq.s32.totalorder %v9093_v44, %v8949_v57  ;;  %15357 = vst [vmem:[#allocation24_spill] sm:$0xff] %v9419_v40  ;;  %v9545_v11 = vadd.s32 280, %v8831_v3 }
  0x37   :  { %vm9144_vm6 = vmpackc.low %vm239_vm14, %vm235_vm12  ;;  %vm262_vm14 = vcmp.eq.s32.totalorder %v9135_v59, %v8936_v53  ;;  %15358 = vst [vmem:[#allocation25_spill] sm:$0xff] %v9422_v17  ;;  %v9583_v42 = vadd.s32 288, %v8831_v3  ;;  %v9586_v43 = vadd.s32 296, %v8831_v3  ;;  %v9631_v14 = vadd.s32 304, %v8831_v3 }
  0x38   :  { %7263 = vmatpush1.bf16.msk.msra.mxu0 %vm7262_vm5, %v15147_v63  ;;  %vm7264_vm11 = vmpackc.low %vm254_vm2, %vm250_vm1  ;;  %vm251_vm5 = vcmp.eq.s32.totalorder %v9093_v44, %v9013_v28  ;;  %15363 = vst [vmem:[#allocation26_spill] sm:$0xff] %v9460_v32  ;;  %v9634_v7 = vadd.s32 312, %v8831_v3  ;;  %v9672_v12 = vadd.s32 320, %v8831_v3  ;;  %v9675_v23 = vadd.s32 328, %v8831_v3 }
  0x39   :  { %7383 = vmatpush1.bf16.msk.msra.mxu1 %vm9105_vm9, %v15147_v63  ;;  %vm9163_vm12 = vmpackc.low %vm248_vm3, %vm244_vm13  ;;  %7265 = vmatprep.subr.msk.bf16.mxu0 %vm7264_vm11, %v15147_v63  ;;  %vm258_vm9 = vcmp.eq.s32.totalorder %v9132_v58, %v8936_v53  ;;  %vm257_vm13 = vcmp.eq.s32.totalorder %v9132_v58, %v8941_v54  ;;  %vm261_vm3 = vcmp.eq.s32.totalorder %v9135_v59, %v8941_v54  ;;  %v9725_v9 = vadd.s32 336, %v8831_v3 }
  0x3a   :  { %7385 = vmatprep.subr.msk.bf16.mxu1 %vm9122_vm0, %v15147_v63  ;;  %vm256_vm0 = vcmp.eq.s32.totalorder %v9096_v49, %v8949_v57  ;;  %vm7266_vm1 = vmpackc.low %vm253_vm4, %vm249_vm7  ;;  %vm255_vm7 = vcmp.eq.s32.totalorder %v9096_v49, %v9013_v28  ;;  %vm260_vm11 = vcmp.eq.s32.totalorder %v9132_v58, %v8949_v57  ;;  %15364 = vst [vmem:[#allocation27_spill] sm:$0xff] %v9463_v16  ;;  %v9728_v31 = vadd.s32 344, %v8831_v3 }
  0x3b   :  { %vm9185_vm2 = vmpackc.low %vm247_vm10, %vm243_vm8  ;;  %vm270_vm10 = vcmp.eq.s32.totalorder %v9176_v15, %v8936_v53  ;;  %15369 = vst [vmem:[#allocation28_spill] sm:$0xff] %v9501_v24  ;;  %v9742_v22 = vcombine.high %v9697_v45, %v9697_v45  ;;  %v15404_v29 = vmov 1.0|1.0   ;;  %v9777_v37 = vadd.s32 352, %v8831_v3 }
  0x3c   :  { %7267 = vmatpush1.bf16.msk.msra.mxu0 %vm7266_vm1, %v15147_v63  ;;  %vm7268_vm4 = vmpackc.low %vm262_vm14, %vm258_vm9  ;;  %vm259_vm1 = vcmp.eq.s32.totalorder %v9132_v58, %v9013_v28  ;;  %15370 = vst [vmem:[#allocation29_spill] sm:$0xff] %v9504_v13  ;;  %v9910_v27 = vadd.s32 400, %v8831_v3 }
  0x3d   :  { %7387 = vmatpush1.bf16.msk.msra.mxu1 %vm9144_vm6, %v15147_v63  ;;  %vm9204_vm8 = vmpackc.low %vm256_vm0, %vm252_vm15  ;;  %7269 = vmatprep.subr.msk.bf16.mxu0 %vm7268_vm4, %v15147_v63  ;;  %vm266_vm6 = vcmp.eq.s32.totalorder %v9173_v6, %v8936_v53  ;;  %vm265_vm15 = vcmp.eq.s32.totalorder %v9173_v6, %v8941_v54  ;;  %vm269_vm0 = vcmp.eq.s32.totalorder %v9176_v15, %v8941_v54 }
  0x3e   :  { %7389 = vmatprep.subr.msk.bf16.mxu1 %vm9163_vm12, %v15147_v63  ;;  %vm264_vm12 = vcmp.eq.s32.totalorder %v9135_v59, %v8949_v57  ;;  %vm7270_vm9 = vmpackc.low %vm261_vm3, %vm257_vm13  ;;  %vm263_vm13 = vcmp.eq.s32.totalorder %v9135_v59, %v9013_v28  ;;  %vm268_vm4 = vcmp.eq.s32.totalorder %v9173_v6, %v8949_v57  ;;  %15375 = vst [vmem:[#allocation30_spill] sm:$0xff] %v9542_v19 }
  0x3f   :  { %vm9226_vm14 = vmpackc.low %vm255_vm7, %vm251_vm5  ;;  %vm278_vm7 = vcmp.eq.s32.totalorder %v9217_v55, %v8936_v53  ;;  %15376 = vst [vmem:[#allocation31_spill] sm:$0xff] %v9545_v11 }
  0x40   :  { %7271 = vmatpush1.bf16.msk.msra.mxu0 %vm7270_vm9, %v15147_v63  ;;  %vm7272_vm3 = vmpackc.low %vm270_vm10, %vm266_vm6  ;;  %vm267_vm9 = vcmp.eq.s32.totalorder %v9173_v6, %v9013_v28  ;;  %15381 = vst [vmem:[#allocation32_spill] sm:$0xff] %v9583_v42 }
  0x41   :  { %7391 = vmatpush1.bf16.msk.msra.mxu1 %vm9185_vm2, %v15147_v63  ;;  %vm9245_vm5 = vmpackc.low %vm264_vm12, %vm260_vm11  ;;  %7273 = vmatprep.subr.msk.bf16.mxu0 %vm7272_vm3, %v15147_v63  ;;  %vm274_vm2 = vcmp.eq.s32.totalorder %v9214_v51, %v8936_v53  ;;  %vm273_vm11 = vcmp.eq.s32.totalorder %v9214_v51, %v8941_v54  ;;  %vm277_vm12 = vcmp.eq.s32.totalorder %v9217_v55, %v8941_v54 }
  0x42   :  { %7393 = vmatprep.subr.msk.bf16.mxu1 %vm9204_vm8, %v15147_v63  ;;  %vm272_vm8 = vcmp.eq.s32.totalorder %v9176_v15, %v8949_v57  ;;  %vm7274_vm6 = vmpackc.low %vm269_vm0, %vm265_vm15  ;;  %vm271_vm15 = vcmp.eq.s32.totalorder %v9176_v15, %v9013_v28  ;;  %vm276_vm3 = vcmp.eq.s32.totalorder %v9214_v51, %v8949_v57  ;;  %15382 = vst [vmem:[#allocation33_spill] sm:$0xff] %v9586_v43 }
  0x43   :  { %vm9267_vm10 = vmpackc.low %vm263_vm13, %vm259_vm1  ;;  %vm286_vm13 = vcmp.eq.s32.totalorder %v9258_v21, %v8936_v53  ;;  %15387 = vst [vmem:[#allocation34_spill] sm:$0xff] %v9631_v14 }
  0x44   :  { %7275 = vmatpush1.bf16.msk.msra.mxu0 %vm7274_vm6, %v15147_v63  ;;  %vm7276_vm0 = vmpackc.low %vm278_vm7, %vm274_vm2  ;;  %vm275_vm6 = vcmp.eq.s32.totalorder %v9214_v51, %v9013_v28  ;;  %15388 = vst [vmem:[#allocation35_spill] sm:$0xff] %v9634_v7 }
  0x45   :  { %7395 = vmatpush1.bf16.msk.msra.mxu1 %vm9226_vm14, %v15147_v63  ;;  %vm9286_vm1 = vmpackc.low %vm272_vm8, %vm268_vm4  ;;  %7277 = vmatprep.subr.msk.bf16.mxu0 %vm7276_vm0, %v15147_v63  ;;  %vm282_vm14 = vcmp.eq.s32.totalorder %v9255_v38, %v8936_v53  ;;  %vm281_vm4 = vcmp.eq.s32.totalorder %v9255_v38, %v8941_v54  ;;  %vm285_vm8 = vcmp.eq.s32.totalorder %v9258_v21, %v8941_v54 }
  0x46   :  { %7397 = vmatprep.subr.msk.bf16.mxu1 %vm9245_vm5, %v15147_v63  ;;  %vm280_vm5 = vcmp.eq.s32.totalorder %v9217_v55, %v8949_v57  ;;  %vm7278_vm2 = vmpackc.low %vm277_vm12, %vm273_vm11  ;;  %vm279_vm11 = vcmp.eq.s32.totalorder %v9217_v55, %v9013_v28  ;;  %vm284_vm0 = vcmp.eq.s32.totalorder %v9255_v38, %v8949_v57  ;;  %15393 = vst [vmem:[#allocation36_spill] sm:$0xff] %v9672_v12 }
  0x47   :  { %vm9308_vm7 = vmpackc.low %vm271_vm15, %vm267_vm9  ;;  %vm294_vm15 = vcmp.eq.s32.totalorder %v9299_v48, %v8936_v53  ;;  %15394 = vst [vmem:[#allocation37_spill] sm:$0xff] %v9675_v23 }
  0x48   :  { %7279 = vmatpush1.bf16.msk.msra.mxu0 %vm7278_vm2, %v15147_v63  ;;  %vm7280_vm12 = vmpackc.low %vm286_vm13, %vm282_vm14  ;;  %vm283_vm2 = vcmp.eq.s32.totalorder %v9255_v38, %v9013_v28  ;;  %15399 = vst [vmem:[#allocation38_spill] sm:$0xff] %v9725_v9 }
  0x49   :  { %7399 = vmatpush1.bf16.msk.msra.mxu1 %vm9267_vm10, %v15147_v63  ;;  %vm9327_vm9 = vmpackc.low %vm280_vm5, %vm276_vm3  ;;  %7281 = vmatprep.subr.msk.bf16.mxu0 %vm7280_vm12, %v15147_v63  ;;  %vm290_vm10 = vcmp.eq.s32.totalorder %v9296_v62, %v8936_v53  ;;  %vm289_vm3 = vcmp.eq.s32.totalorder %v9296_v62, %v8941_v54  ;;  %vm293_vm5 = vcmp.eq.s32.totalorder %v9299_v48, %v8941_v54 }
  0x4a   :  { %7401 = vmatprep.subr.msk.bf16.mxu1 %vm9286_vm1, %v15147_v63  ;;  %vm288_vm1 = vcmp.eq.s32.totalorder %v9258_v21, %v8949_v57  ;;  %vm7282_vm14 = vmpackc.low %vm285_vm8, %vm281_vm4  ;;  %vm287_vm4 = vcmp.eq.s32.totalorder %v9258_v21, %v9013_v28  ;;  %vm292_vm12 = vcmp.eq.s32.totalorder %v9296_v62, %v8949_v57  ;;  %15400 = vst [vmem:[#allocation39_spill] sm:$0xff] %v9728_v31 }
  0x4b   :  { %vm9349_vm13 = vmpackc.low %vm279_vm11, %vm275_vm6  ;;  %vm302_vm11 = vcmp.eq.s32.totalorder %v9340_v2, %v8936_v53  ;;  %15401 = vst [vmem:[#allocation40_spill] sm:$0xff] %v9742_v22 }
  0x4c   :  { %7283 = vmatpush1.bf16.msk.msra.mxu0 %vm7282_vm14, %v15147_v63  ;;  %vm7284_vm8 = vmpackc.low %vm294_vm15, %vm290_vm10  ;;  %vm291_vm14 = vcmp.eq.s32.totalorder %v9296_v62, %v9013_v28  ;;  %15407 = vst [vmem:[#allocation41_spill] sm:$0xff] %v9777_v37 }
  0x4d   :  { %7403 = vmatpush1.bf16.msk.msra.mxu1 %vm9308_vm7, %v15147_v63  ;;  %vm9368_vm6 = vmpackc.low %vm288_vm1, %vm284_vm0  ;;  %7285 = vmatprep.subr.msk.bf16.mxu0 %vm7284_vm8, %v15147_v63  ;;  %vm298_vm7 = vcmp.eq.s32.totalorder %v9337_v41, %v8936_v53  ;;  %vm297_vm0 = vcmp.eq.s32.totalorder %v9337_v41, %v8941_v54  ;;  %vm301_vm1 = vcmp.eq.s32.totalorder %v9340_v2, %v8941_v54 }
  0x4e   :  { %7405 = vmatprep.subr.msk.bf16.mxu1 %vm9327_vm9, %v15147_v63  ;;  %vm296_vm9 = vcmp.eq.s32.totalorder %v9299_v48, %v8949_v57  ;;  %vm7286_vm10 = vmpackc.low %vm293_vm5, %vm289_vm3  ;;  %vm295_vm3 = vcmp.eq.s32.totalorder %v9299_v48, %v9013_v28  ;;  %vm300_vm8 = vcmp.eq.s32.totalorder %v9337_v41, %v8949_v57  ;;  %15425 = vst [vmem:[#allocation47_spill] sm:$0xff] %v9910_v27 }
  0x4f   :  { %vm9390_vm15 = vmpackc.low %vm287_vm4, %vm283_vm2  ;;  %vm310_vm4 = vcmp.eq.s32.totalorder %v9381_v34, %v8936_v53 }
  0x50   :  { %7287 = vmatpush1.bf16.msk.msra.mxu0 %vm7286_vm10, %v15147_v63  ;;  %vm7288_vm5 = vmpackc.low %vm302_vm11, %vm298_vm7  ;;  %vm299_vm10 = vcmp.eq.s32.totalorder %v9337_v41, %v9013_v28 }
  0x51   :  { %7407 = vmatpush1.bf16.msk.msra.mxu1 %vm9349_vm13, %v15147_v63  ;;  %vm9409_vm2 = vmpackc.low %vm296_vm9, %vm292_vm12  ;;  %7289 = vmatprep.subr.msk.bf16.mxu0 %vm7288_vm5, %v15147_v63  ;;  %vm306_vm13 = vcmp.eq.s32.totalorder %v9378_v0, %v8936_v53  ;;  %vm305_vm12 = vcmp.eq.s32.totalorder %v9378_v0, %v8941_v54  ;;  %vm309_vm9 = vcmp.eq.s32.totalorder %v9381_v34, %v8941_v54 }
  0x52   :  { %7409 = vmatprep.subr.msk.bf16.mxu1 %vm9368_vm6, %v15147_v63  ;;  %vm304_vm6 = vcmp.eq.s32.totalorder %v9340_v2, %v8949_v57  ;;  %vm7290_vm7 = vmpackc.low %vm301_vm1, %vm297_vm0  ;;  %vm303_vm0 = vcmp.eq.s32.totalorder %v9340_v2, %v9013_v28  ;;  %vm308_vm5 = vcmp.eq.s32.totalorder %v9378_v0, %v8949_v57 }
  0x53   :  { %vm9431_vm11 = vmpackc.low %vm295_vm3, %vm291_vm14  ;;  %vm318_vm3 = vcmp.eq.s32.totalorder %v9422_v17, %v8936_v53 }
  0x54   :  { %7291 = vmatpush1.bf16.msk.msra.mxu0 %vm7290_vm7, %v15147_v63  ;;  %vm7292_vm1 = vmpackc.low %vm310_vm4, %vm306_vm13  ;;  %vm307_vm7 = vcmp.eq.s32.totalorder %v9378_v0, %v9013_v28 }
  0x55   :  { %7411 = vmatpush1.bf16.msk.msra.mxu1 %vm9390_vm15, %v15147_v63  ;;  %vm9450_vm14 = vmpackc.low %vm304_vm6, %vm300_vm8  ;;  %7293 = vmatprep.subr.msk.bf16.mxu0 %vm7292_vm1, %v15147_v63  ;;  %vm314_vm15 = vcmp.eq.s32.totalorder %v9419_v40, %v8936_v53  ;;  %vm313_vm8 = vcmp.eq.s32.totalorder %v9419_v40, %v8941_v54  ;;  %vm317_vm6 = vcmp.eq.s32.totalorder %v9422_v17, %v8941_v54 }
  0x56   :  { %7413 = vmatprep.subr.msk.bf16.mxu1 %vm9409_vm2, %v15147_v63  ;;  %vm312_vm2 = vcmp.eq.s32.totalorder %v9381_v34, %v8949_v57  ;;  %vm7294_vm13 = vmpackc.low %vm309_vm9, %vm305_vm12  ;;  %vm311_vm12 = vcmp.eq.s32.totalorder %v9381_v34, %v9013_v28  ;;  %vm316_vm1 = vcmp.eq.s32.totalorder %v9419_v40, %v8949_v57 }
  0x57   :  { %vm9472_vm4 = vmpackc.low %vm303_vm0, %vm299_vm10  ;;  %vm326_vm0 = vcmp.eq.s32.totalorder %v9463_v16, %v8936_v53 }
  0x58   :  { %7295 = vmatpush1.bf16.msk.msra.mxu0 %vm7294_vm13, %v15147_v63  ;;  %vm7296_vm9 = vmpackc.low %vm318_vm3, %vm314_vm15  ;;  %vm315_vm13 = vcmp.eq.s32.totalorder %v9419_v40, %v9013_v28 }
  0x59   :  { %7415 = vmatpush1.bf16.msk.msra.mxu1 %vm9431_vm11, %v15147_v63  ;;  %vm9491_vm10 = vmpackc.low %vm312_vm2, %vm308_vm5  ;;  %7297 = vmatprep.subr.msk.bf16.mxu0 %vm7296_vm9, %v15147_v63  ;;  %vm322_vm11 = vcmp.eq.s32.totalorder %v9460_v32, %v8936_v53  ;;  %vm321_vm5 = vcmp.eq.s32.totalorder %v9460_v32, %v8941_v54  ;;  %vm325_vm2 = vcmp.eq.s32.totalorder %v9463_v16, %v8941_v54 }
  0x5a   :  { %7417 = vmatprep.subr.msk.bf16.mxu1 %vm9450_vm14, %v15147_v63  ;;  %vm320_vm14 = vcmp.eq.s32.totalorder %v9422_v17, %v8949_v57  ;;  %vm7298_vm15 = vmpackc.low %vm317_vm6, %vm313_vm8  ;;  %vm319_vm8 = vcmp.eq.s32.totalorder %v9422_v17, %v9013_v28  ;;  %vm324_vm9 = vcmp.eq.s32.totalorder %v9460_v32, %v8949_v57 }
  0x5b   :  { %vm9513_vm3 = vmpackc.low %vm311_vm12, %vm307_vm7  ;;  %vm334_vm12 = vcmp.eq.s32.totalorder %v9504_v13, %v8936_v53 }
  0x5c   :  { %7299 = vmatpush1.bf16.msk.msra.mxu0 %vm7298_vm15, %v15147_v63  ;;  %vm7300_vm6 = vmpackc.low %vm326_vm0, %vm322_vm11  ;;  %vm323_vm15 = vcmp.eq.s32.totalorder %v9460_v32, %v9013_v28 }
  0x5d   :  { %7419 = vmatpush1.bf16.msk.msra.mxu1 %vm9472_vm4, %v15147_v63  ;;  %vm9532_vm7 = vmpackc.low %vm320_vm14, %vm316_vm1  ;;  %7301 = vmatprep.subr.msk.bf16.mxu0 %vm7300_vm6, %v15147_v63  ;;  %vm330_vm4 = vcmp.eq.s32.totalorder %v9501_v24, %v8936_v53  ;;  %vm329_vm1 = vcmp.eq.s32.totalorder %v9501_v24, %v8941_v54  ;;  %vm333_vm14 = vcmp.eq.s32.totalorder %v9504_v13, %v8941_v54 }
  0x5e   :  { %7421 = vmatprep.subr.msk.bf16.mxu1 %vm9491_vm10, %v15147_v63  ;;  %vm328_vm10 = vcmp.eq.s32.totalorder %v9463_v16, %v8949_v57  ;;  %vm7302_vm11 = vmpackc.low %vm325_vm2, %vm321_vm5  ;;  %vm327_vm5 = vcmp.eq.s32.totalorder %v9463_v16, %v9013_v28  ;;  %vm332_vm6 = vcmp.eq.s32.totalorder %v9501_v24, %v8949_v57  ;;  %v8776_v16 = vld [vmem:[%s15108_s0] sm:$0xff] }
  0x5f   :  { %vm9554_vm0 = vmpackc.low %vm319_vm8, %vm315_vm13  ;;  %vm342_vm8 = vcmp.eq.s32.totalorder %v9545_v11, %v8936_v53 }
  0x60   :  { %7303 = vmatpush1.bf16.msk.msra.mxu0 %vm7302_vm11, %v15147_v63  ;;  %vm7304_vm2 = vmpackc.low %vm334_vm12, %vm330_vm4  ;;  %vm331_vm11 = vcmp.eq.s32.totalorder %v9501_v24, %v9013_v28  ;;  %v10176_v24 = vadd.s32 472, %v8831_v3 }
  0x61   :  { %7423 = vmatpush1.bf16.msk.msra.mxu1 %vm9513_vm3, %v15147_v63  ;;  %vm9573_vm13 = vmpackc.low %vm328_vm10, %vm324_vm9  ;;  %7305 = vmatprep.subr.msk.bf16.mxu0 %vm7304_vm2, %v15147_v63  ;;  %vm338_vm3 = vcmp.eq.s32.totalorder %v9542_v19, %v8936_v53  ;;  %vm337_vm9 = vcmp.eq.s32.totalorder %v9542_v19, %v8941_v54  ;;  %vm341_vm10 = vcmp.eq.s32.totalorder %v9545_v11, %v8941_v54 }
  0x62   :  { %7425 = vmatprep.subr.msk.bf16.mxu1 %vm9532_vm7, %v15147_v63  ;;  %vm336_vm7 = vcmp.eq.s32.totalorder %v9504_v13, %v8949_v57  ;;  %vm7306_vm4 = vmpackc.low %vm333_vm14, %vm329_vm1  ;;  %vm335_vm1 = vcmp.eq.s32.totalorder %v9504_v13, %v9013_v28  ;;  %vm340_vm2 = vcmp.eq.s32.totalorder %v9542_v19, %v8949_v57  ;;  %v1005_v13 = vsub.s32 0, %v8906_v60  ;;  %15454 = vst [vmem:[#allocation54_spill] sm:$0xff] %v10176_v24 }
  0x63   :  { %784 = vmatmul.mubr.f32.vlgmr.msra.gmra.mrb[0].mxu0 %v8827_v1  ;;  %vm9599_vm12 = vmpackc.low %vm327_vm5, %vm323_vm15  ;;  %vm350_vm5 = vcmp.eq.s32.totalorder %v9586_v43, %v8936_v53 }
  0x64   :  { %7307 = vmatpush1.bf16.msk.msra.mxu0 %vm7306_vm4, %v15147_v63  ;;  %vm7308_vm14 = vmpackc.low %vm342_vm8, %vm338_vm3  ;;  %vm339_vm4 = vcmp.eq.s32.totalorder %v9542_v19, %v9013_v28  ;;  %854 = vmatprep.mubr.f32.mxu0 %v9742_v22 }
  0x65   :  { %7427 = vmatpush1.bf16.msk.msra.mxu1 %vm9554_vm0, %v15147_v63  ;;  %vm9621_vm15 = vmpackc.low %vm336_vm7, %vm332_vm6  ;;  %7309 = vmatprep.subr.msk.bf16.mxu0 %vm7308_vm14, %v15147_v63  ;;  %vm346_vm0 = vcmp.eq.s32.totalorder %v9583_v42, %v8936_v53  ;;  %vm345_vm6 = vcmp.eq.s32.totalorder %v9583_v42, %v8941_v54  ;;  %vm349_vm7 = vcmp.eq.s32.totalorder %v9586_v43, %v8941_v54 }
  0x66   :  { %7429 = vmatprep.subr.msk.bf16.mxu1 %vm9573_vm13, %v15147_v63  ;;  %vm344_vm13 = vcmp.eq.s32.totalorder %v9545_v11, %v8949_v57  ;;  %vm7310_vm3 = vmpackc.low %vm341_vm10, %vm337_vm9  ;;  %vm343_vm9 = vcmp.eq.s32.totalorder %v9545_v11, %v9013_v28  ;;  %vm348_vm14 = vcmp.eq.s32.totalorder %v9583_v42, %v8949_v57  ;;  %v10084_v11 = vadd.s32 448, %v8831_v3 }
  0x67   :  { %vm9643_vm8 = vmpackc.low %vm335_vm1, %vm331_vm11  ;;  %vm358_vm1 = vcmp.eq.s32.totalorder %v9634_v7, %v8936_v53 }
  0x68   :  { %7311 = vmatpush1.bf16.msk.msra.mxu0 %vm7310_vm3, %v15147_v63  ;;  %vm7312_vm10 = vmpackc.low %vm350_vm5, %vm346_vm0  ;;  %vm347_vm3 = vcmp.eq.s32.totalorder %v9583_v42, %v9013_v28  ;;  %v9950_v42 = vadd.s32 416, %v8831_v3  ;;  %15444 = vst [vmem:[#allocation52_spill] sm:$0xff] %v10084_v11 }
  0x69   :  { %7431 = vmatpush1.bf16.msk.msra.mxu1 %vm9599_vm12, %v15147_v63  ;;  %vm9662_vm11 = vmpackc.low %vm344_vm13, %vm340_vm2  ;;  %7313 = vmatprep.subr.msk.bf16.mxu0 %vm7312_vm10, %v15147_v63  ;;  %vm354_vm12 = vcmp.eq.s32.totalorder %v9631_v14, %v8936_v53  ;;  %vm353_vm2 = vcmp.eq.s32.totalorder %v9631_v14, %v8941_v54  ;;  %vm357_vm13 = vcmp.eq.s32.totalorder %v9634_v7, %v8941_v54 }
  0x6a   :  { %7433 = vmatprep.subr.msk.bf16.mxu1 %vm9621_vm15, %v15147_v63  ;;  %vm352_vm15 = vcmp.eq.s32.totalorder %v9586_v43, %v8949_v57  ;;  %vm7314_vm0 = vmpackc.low %vm349_vm7, %vm345_vm6  ;;  %vm351_vm6 = vcmp.eq.s32.totalorder %v9586_v43, %v9013_v28  ;;  %vm356_vm10 = vcmp.eq.s32.totalorder %v9631_v14, %v8949_v57  ;;  %15429 = vst [vmem:[#allocation49_spill] sm:$0xff] %v9950_v42 }
  0x6b   :  { %vm9685_vm5 = vmpackc.low %vm343_vm9, %vm339_vm4  ;;  %vm366_vm9 = vcmp.eq.s32.totalorder %v9675_v23, %v8936_v53 }
  0x6c   :  { %926 = vmatmul.mubr.f32.vlgmr.msra.gmra.mrb[0].mxu1 %v8827_v1  ;;  %7315 = vmatpush1.bf16.msk.msra.mxu0 %vm7314_vm0, %v15147_v63  ;;  %vm7316_vm7 = vmpackc.low %vm358_vm1, %vm354_vm12  ;;  %vm355_vm0 = vcmp.eq.s32.totalorder %v9631_v14, %v9013_v28  ;;  %v9872_v1 = vadd.s32 392, %v8831_v3 }
  0x6d   :  { %7435 = vmatpush1.bf16.msk.msra.mxu1 %vm9643_vm8, %v15147_v63  ;;  %vm9715_vm4 = vmpackc.low %vm352_vm15, %vm348_vm14  ;;  %7317 = vmatprep.subr.msk.bf16.mxu0 %vm7316_vm7, %v15147_v63  ;;  %vm362_vm8 = vcmp.eq.s32.totalorder %v9672_v12, %v8936_v53  ;;  %vm361_vm14 = vcmp.eq.s32.totalorder %v9672_v12, %v8941_v54  ;;  %vm365_vm15 = vcmp.eq.s32.totalorder %v9675_v23, %v8941_v54 }
  0x6e   :  { %7437 = vmatprep.subr.msk.bf16.mxu1 %vm9662_vm11, %v15147_v63  ;;  %vm360_vm11 = vcmp.eq.s32.totalorder %v9634_v7, %v8949_v57  ;;  %vm7318_vm12 = vmpackc.low %vm357_vm13, %vm353_vm2  ;;  %vm359_vm2 = vcmp.eq.s32.totalorder %v9634_v7, %v9013_v28  ;;  %v9780_v7 = vadd.s32 360, %v8831_v3  ;;  %vm364_vm7 = vcmp.eq.s32.totalorder %v9672_v12, %v8949_v57  ;;  %996 = vmatprep.mubr.f32.mxu1 %v9742_v22 }
  0x6f   :  { %vm9744_vm1 = vmpackc.low %vm351_vm6, %vm347_vm3  ;;  %vm374_vm6 = vcmp.eq.s32.totalorder %v9728_v31, %v8936_v53  ;;  %v9828_v63 = vadd.s32 368, %v8831_v3  ;;  %15420 = vst [vmem:[#allocation46_spill] sm:$0xff] %v9872_v1  ;;  %v10108_v22 = vadd.s32 456, %v8831_v3 }
  0x70   :  { %7319 = vmatpush1.bf16.msk.msra.mxu0 %vm7318_vm12, %v15404_v29  ;;  %vm7320_vm13 = vmpackc.low %vm366_vm9, %vm362_vm8  ;;  %15408 = vst [vmem:[#allocation42_spill] sm:$0xff] %v9780_v7  ;;  %vm363_vm12 = vcmp.eq.s32.totalorder %v9672_v12, %v9013_v28  ;;  %v9857_v12 = vadd.s32 384, %v8831_v3 }
  0x71   :  { %7439 = vmatpush1.bf16.msk.msra.mxu1 %vm9685_vm5, %v15404_v29  ;;  %vm9767_vm3 = vmpackc.low %vm360_vm11, %vm356_vm10  ;;  %7321 = vmatprep.subr.msk.bf16.mxu0 %vm7320_vm13, %v15404_v29  ;;  %vm370_vm5 = vcmp.eq.s32.totalorder %v9725_v9, %v8936_v53  ;;  %vm369_vm10 = vcmp.eq.s32.totalorder %v9725_v9, %v8941_v54  ;;  %vm373_vm11 = vcmp.eq.s32.totalorder %v9728_v31, %v8941_v54 }
  0x72   :  { %7441 = vmatprep.subr.msk.bf16.mxu1 %vm9715_vm4, %v15404_v29  ;;  %vm368_vm4 = vcmp.eq.s32.totalorder %v9675_v23, %v8949_v57  ;;  %vm7322_vm8 = vmpackc.low %vm365_vm15, %vm361_vm14  ;;  %vm367_vm14 = vcmp.eq.s32.totalorder %v9675_v23, %v9013_v28  ;;  %15413 = vst [vmem:[#allocation43_spill] sm:$0xff] %v9828_v63  ;;  %v9831_v23 = vadd.s32 376, %v8831_v3  ;;  %vm372_vm13 = vcmp.eq.s32.totalorder %v9725_v9, %v8949_v57 }
  0x73   :  { %vm9796_vm9 = vmpackc.low %vm359_vm2, %vm355_vm0  ;;  %vm382_vm2 = vcmp.eq.s32.totalorder %v9780_v7, %v8936_v53  ;;  %15417 = vst [vmem:[#allocation45_spill] sm:$0xff] %v9857_v12 }
  0x74   :  { %7323 = vmatpush1.bf16.msk.msra.mxu0 %vm7322_vm8, %v15404_v29  ;;  %vm7324_vm15 = vmpackc.low %vm374_vm6, %vm370_vm5  ;;  %15414 = vst [vmem:[#allocation44_spill] sm:$0xff] %v9831_v23  ;;  %vm371_vm8 = vcmp.eq.s32.totalorder %v9725_v9, %v9013_v28  ;;  %v1003_v9 = vsub.s32 0, %v8889_v33 }
  0x75   :  { %7443 = vmatpush1.bf16.msk.msra.mxu1 %vm9744_vm1, %v15404_v29  ;;  %vm9818_vm0 = vmpackc.low %vm368_vm4, %vm364_vm7  ;;  %7325 = vmatprep.subr.msk.bf16.mxu0 %vm7324_vm15, %v15404_v29  ;;  %vm378_vm1 = vcmp.eq.s32.totalorder %v9777_v37, %v8936_v53  ;;  %vm377_vm7 = vcmp.eq.s32.totalorder %v9777_v37, %v8941_v54  ;;  %vm381_vm4 = vcmp.eq.s32.totalorder %v9780_v7, %v8941_v54 }
  0x76   :  { %7445 = vmatprep.subr.msk.bf16.mxu1 %vm9767_vm3, %v15404_v29  ;;  %vm376_vm3 = vcmp.eq.s32.totalorder %v9728_v31, %v8949_v57  ;;  %vm7326_vm5 = vmpackc.low %vm373_vm11, %vm369_vm10  ;;  %vm375_vm10 = vcmp.eq.s32.totalorder %v9728_v31, %v9013_v28  ;;  %vm380_vm15 = vcmp.eq.s32.totalorder %v9777_v37, %v8949_v57  ;;  %v1006_v31 = vsub.s32 0, %v8873_v25 }
  0x77   :  { %vm9840_vm6 = vmpackc.low %vm367_vm14, %vm363_vm12  ;;  %vm390_vm14 = vcmp.eq.s32.totalorder %v9831_v23, %v8936_v53 }
  0x78   :  { %7327 = vmatpush1.bf16.msk.msra.mxu0 %vm7326_vm5, %v15404_v29  ;;  %vm7328_vm11 = vmpackc.low %vm382_vm2, %vm378_vm1  ;;  %vm379_vm5 = vcmp.eq.s32.totalorder %v9777_v37, %v9013_v28  ;;  %v1004_v37 = vsub.s32 0, %v8864_v20 }
  0x79   :  { %7447 = vmatpush1.bf16.msk.msra.mxu1 %vm9796_vm9, %v15404_v29  ;;  %vm9862_vm12 = vmpackc.low %vm376_vm3, %vm372_vm13  ;;  %7329 = vmatprep.subr.msk.bf16.mxu0 %vm7328_vm11, %v15404_v29  ;;  %vm386_vm9 = vcmp.eq.s32.totalorder %v9828_v63, %v8936_v53  ;;  %vm385_vm13 = vcmp.eq.s32.totalorder %v9828_v63, %v8941_v54  ;;  %vm389_vm3 = vcmp.eq.s32.totalorder %v9831_v23, %v8941_v54 }
  0x7a   :  { %7449 = vmatprep.subr.msk.bf16.mxu1 %vm9818_vm0, %v15404_v29  ;;  %vm384_vm0 = vcmp.eq.s32.totalorder %v9780_v7, %v8949_v57  ;;  %vm7330_vm1 = vmpackc.low %vm381_vm4, %vm377_vm7  ;;  %vm383_vm7 = vcmp.eq.s32.totalorder %v9780_v7, %v9013_v28  ;;  %v9913_v7 = vadd.s32 408, %v8831_v3  ;;  %vm388_vm11 = vcmp.eq.s32.totalorder %v9828_v63, %v8949_v57 }
  0x7b   :  { %vm9881_vm2 = vmpackc.low %vm375_vm10, %vm371_vm8  ;;  %vm394_vm8 = vcmp.eq.s32.totalorder %v9857_v12, %v8936_v53 }
  0x7c   :  { %7331 = vmatpush1.bf16.msk.msra.mxu0 %vm7330_vm1, %v15404_v29  ;;  %vm7332_vm4 = vmpackc.low %vm390_vm14, %vm386_vm9  ;;  %15426 = vst [vmem:[#allocation48_spill] sm:$0xff] %v9913_v7  ;;  %vm387_vm1 = vcmp.eq.s32.totalorder %v9828_v63, %v9013_v28  ;;  %v10010_v63 = vadd.s32 432, %v8831_v3 }
  0x7d   :  { %7451 = vmatpush1.bf16.msk.msra.mxu1 %vm9840_vm6, %v15404_v29  ;;  %vm9902_vm10 = vmpackc.low %vm384_vm0, %vm380_vm15  ;;  %7333 = vmatprep.subr.msk.bf16.mxu0 %vm7332_vm4, %v15404_v29  ;;  %vm398_vm6 = vcmp.eq.s32.totalorder %v9872_v1, %v8936_v53  ;;  %vm393_vm15 = vcmp.eq.s32.totalorder %v9857_v12, %v8941_v54  ;;  %vm397_vm0 = vcmp.eq.s32.totalorder %v9872_v1, %v8941_v54 }
  0x7e   :  { %7453 = vmatprep.subr.msk.bf16.mxu1 %vm9862_vm12, %v15404_v29  ;;  %vm392_vm12 = vcmp.eq.s32.totalorder %v9831_v23, %v8949_v57  ;;  %vm7334_vm9 = vmpackc.low %vm389_vm3, %vm385_vm13  ;;  %vm391_vm13 = vcmp.eq.s32.totalorder %v9831_v23, %v9013_v28  ;;  %v9965_v23 = vadd.s32 424, %v8831_v3  ;;  %vm1009_vm4 = vcmp.gt.s32.totalorder %v8864_v20, %v1004_v37  ;;  %15437 = vst [vmem:[#allocation51_spill] sm:$0xff] %v10010_v63 }
  0x7f   :  { %vm9926_vm14 = vmpackc.low %vm383_vm7, %vm379_vm5  ;;  %vm402_vm5 = vcmp.eq.s32.totalorder %v9910_v27, %v8936_v53  ;;  %vm406_vm7 = vcmp.eq.s32.totalorder %v9913_v7, %v8936_v53  ;;  %v1010_v19 = vsel %vm1009_vm4, %v8864_v20, %v1004_v37  ;;  %v10033_v20 = vadd.s32 440, %v8831_v3 }
  0x80   :  { %7335 = vmatpush1.bf16.msk.msra.mxu0 %vm7334_vm9, %v15404_v29  ;;  %vm7336_vm3 = vmpackc.low %vm398_vm6, %vm394_vm8  ;;  %15432 = vst [vmem:[#allocation50_spill] sm:$0xff] %v9965_v23  ;;  %vm396_vm8 = vcmp.eq.s32.totalorder %v9857_v12, %v8949_v57  ;;  %vm401_vm9 = vcmp.eq.s32.totalorder %v9910_v27, %v8941_v54 }
  0x81   :  { %7455 = vmatpush1.bf16.msk.msra.mxu1 %vm9881_vm2, %v15404_v29  ;;  %vm9955_vm2 = vmpackc.low %vm392_vm12, %vm388_vm11  ;;  %7337 = vmatprep.subr.msk.bf16.mxu0 %vm7336_vm3, %v15404_v29  ;;  %vm395_vm12 = vcmp.eq.s32.totalorder %v9857_v12, %v9013_v28  ;;  %vm410_vm3 = vcmp.eq.s32.totalorder %v9950_v42, %v8936_v53 }
  0x82   :  { %7457 = vmatprep.subr.msk.bf16.mxu1 %vm9902_vm10, %v15404_v29  ;;  %vm400_vm10 = vcmp.eq.s32.totalorder %v9872_v1, %v8949_v57  ;;  %vm7338_vm6 = vmpackc.low %vm397_vm0, %vm393_vm15  ;;  %vm405_vm15 = vcmp.eq.s32.totalorder %v9913_v7, %v8941_v54  ;;  %vm9994_vm0 = vcmp.gt.s32.totalorder %v8889_v33, %v1003_v9 }
  0x83   :  { %vm9982_vm11 = vmpackc.low %vm391_vm13, %vm387_vm1  ;;  %vm399_vm1 = vcmp.eq.s32.totalorder %v9872_v1, %v9013_v28  ;;  %v1008_v14 = vsel %vm9994_vm0, %v8889_v33, %v1003_v9  ;;  %v1016_v33 = vsub.s32 15, %v1010_v19 }
  0x84   :  { %7339 = vmatpush1.bf16.msk.msra.mxu0 %vm7338_vm6, %v15404_v29  ;;  %vm7340_vm13 = vmpackc.low %vm406_vm7, %vm402_vm5  ;;  %vm414_vm5 = vcmp.eq.s32.totalorder %v9965_v23, %v8936_v53  ;;  %vm408_vm7 = vcmp.eq.s32.totalorder %v9913_v7, %v8949_v57  ;;  %vm403_vm6 = vcmp.eq.s32.totalorder %v9910_v27, %v9013_v28  ;;  %v1015_v1 = vsub.s32 15, %v1008_v14 }
  0x85   :  { %7459 = vmatpush1.bf16.msk.msra.mxu1 %vm9926_vm14, %v15404_v29  ;;  %vm10023_vm14 = vmpackc.low %vm400_vm10, %vm396_vm8  ;;  %7341 = vmatprep.subr.msk.bf16.mxu0 %vm7340_vm13, %v15404_v29  ;;  %vm10046_vm8 = vcmp.gt.s32.totalorder %v8873_v25, %v1006_v31  ;;  %vm10087_vm13 = vcmp.gt.s32.totalorder %v8906_v60, %v1005_v13  ;;  %v10155_v14 = vadd.s32 464, %v8831_v3 }
  0x86   :  { %7461 = vmatprep.subr.msk.bf16.mxu1 %vm9955_vm2, %v15404_v29  ;;  %vm404_vm2 = vcmp.eq.s32.totalorder %v9910_v27, %v8949_v57  ;;  %vm7342_vm4 = vmpackc.low %vm405_vm15, %vm401_vm9  ;;  %vm409_vm9 = vcmp.eq.s32.totalorder %v9950_v42, %v8941_v54  ;;  %vm413_vm15 = vcmp.eq.s32.totalorder %v9965_v23, %v8941_v54  ;;  %v1014_v43 = vsel %vm10046_vm8, %v8873_v25, %v1006_v31  ;;  %v15556_v25 = vld [vmem:[#allocation31_spill] sm:$0xff] }
  0x87   :  { %vm10059_vm10 = vmpackc.low %vm399_vm1, %vm395_vm12  ;;  %vm407_vm12 = vcmp.eq.s32.totalorder %v9913_v7, %v9013_v28  ;;  %vm418_vm1 = vcmp.eq.s32.totalorder %v10010_v63, %v8936_v53  ;;  %vm421_vm8 = vcmp.eq.s32.totalorder %v10033_v20, %v8941_v54  ;;  %v1020_v31 = vsub.s32 0, %v1016_v33  ;;  %15451 = vst [vmem:[#allocation53_spill] sm:$0xff] %v10155_v14 }
  0x88   :  { %7343 = vmatpush1.bf16.msk.msra.mxu0 %vm7342_vm4, %v15404_v29  ;;  %vm7344_vm0 = vmpackc.low %vm414_vm5, %vm410_vm3  ;;  %vm422_vm3 = vcmp.eq.s32.totalorder %v10033_v20, %v8936_v53  ;;  %vm416_vm5 = vcmp.eq.s32.totalorder %v9965_v23, %v8949_v57  ;;  %vm417_vm4 = vcmp.eq.s32.totalorder %v10010_v63, %v8941_v54  ;;  %v1012_v37 = vsel %vm10087_vm13, %v8906_v60, %v1005_v13 }
  0x89   :  { %7463 = vmatpush1.bf16.msk.msra.mxu1 %vm9982_vm11, %v15404_v29  ;;  %vm10100_vm11 = vmpackc.low %vm408_vm7, %vm404_vm2  ;;  %7345 = vmatprep.subr.msk.bf16.mxu0 %vm7344_vm0, %v15404_v29  ;;  %v1018_v13 = vsub.s32 15, %v1014_v43  ;;  %vm430_vm0 = vcmp.eq.s32.totalorder %v10108_v22, %v8936_v53  ;;  %v1019_v19 = vsub.s32 0, %v1015_v1  ;;  %vm424_vm13 = vcmp.eq.s32.totalorder %v10033_v20, %v8949_v57 }
  0x8a   :  { %7465 = vmatprep.subr.msk.bf16.mxu1 %vm10023_vm14, %v15404_v29  ;;  %vm412_vm14 = vcmp.eq.s32.totalorder %v9950_v42, %v8949_v57  ;;  %vm7346_vm2 = vmpackc.low %vm413_vm15, %vm409_vm9  ;;  %vm415_vm9 = vcmp.eq.s32.totalorder %v9965_v23, %v9013_v28  ;;  %v10188_v9 = vsub.s32 15, %v1012_v37  ;;  %v10244_v60 = vadd.s32 488, %v8831_v3  ;;  %v15559_v37 = vld [vmem:[#allocation40_spill] sm:$0xff] }
  0x8b   :  { %vm10129_vm7 = vmpackc.low %vm407_vm12, %vm403_vm6  ;;  %vm411_vm6 = vcmp.eq.s32.totalorder %v9950_v42, %v9013_v28  ;;  %vm426_vm12 = vcmp.eq.s32.totalorder %v10084_v11, %v8936_v53  ;;  %v1022_v23 = vsub.s32 0, %v1018_v13  ;;  %v10241_v42 = vadd.s32 480, %v8831_v3 }
  0x8c   :  { %7347 = vmatpush1.bf16.msk.msra.mxu0 %vm7346_vm2, %v15404_v29  ;;  %vm7348_vm15 = vmpackc.low %vm422_vm3, %vm418_vm1  ;;  %vm420_vm1 = vcmp.eq.s32.totalorder %v10010_v63, %v8949_v57  ;;  %vm10205_vm2 = vcmp.gt.s32.totalorder %v1016_v33, %v1020_v31  ;;  %v1021_v12 = vsub.s32 0, %v10188_v9  ;;  %v10323_v7 = vadd.s32 504, %v8831_v3 }
  0x8d   :  { %7467 = vmatpush1.bf16.msk.msra.mxu1 %vm10059_vm10, %v15404_v29  ;;  %vm10166_vm10 = vmpackc.low %vm416_vm5, %vm412_vm14  ;;  %7349 = vmatprep.subr.msk.bf16.mxu0 %vm7348_vm15, %v15404_v29  ;;  %vm425_vm14 = vcmp.eq.s32.totalorder %v10084_v11, %v8941_v54  ;;  %vm429_vm5 = vcmp.eq.s32.totalorder %v10108_v22, %v8941_v54  ;;  %vm438_vm15 = vcmp.eq.s32.totalorder %v10176_v24, %v8936_v53 }
  0x8e   :  { %7469 = vmatprep.subr.msk.bf16.mxu1 %vm10100_vm11, %v15404_v29  ;;  %vm7350_vm11 = vmpackc.low %vm421_vm8, %vm417_vm4  ;;  %vm419_vm4 = vcmp.eq.s32.totalorder %v10010_v63, %v9013_v28  ;;  %vm423_vm8 = vcmp.eq.s32.totalorder %v10033_v20, %v9013_v28  ;;  %v10262_v27 = vsel %vm10205_vm2, %v1016_v33, %v1020_v31  ;;  %vm431_vm2 = vcmp.eq.s32.totalorder %v10108_v22, %v9013_v28 }
  0x8f   :  { %vm10196_vm3 = vmpackc.low %vm415_vm9, %vm411_vm6  ;;  %vm434_vm9 = vcmp.eq.s32.totalorder %v10155_v14, %v8936_v53  ;;  %15463 = vst [vmem:[#allocation55_spill] sm:$0xff] %v10262_v27  ;;  %v10294_v33 = vadd.s32 496, %v8831_v3 }
  0x90   :  { %7351 = vmatpush1.bf16.msk.msra.mxu0 %vm7350_vm11, %v15404_v29  ;;  %vm7352_vm6 = vmpackc.low %vm430_vm0, %vm426_vm12  ;;  %vm428_vm12 = vcmp.eq.s32.totalorder %v10084_v11, %v8949_v57  ;;  %vm432_vm0 = vcmp.eq.s32.totalorder %v10108_v22, %v8949_v57  ;;  %vm427_vm11 = vcmp.eq.s32.totalorder %v10084_v11, %v9013_v28 }
  0x91   :  { %7471 = vmatpush1.bf16.msk.msra.mxu1 %vm10129_vm7, %v15404_v29  ;;  %vm10233_vm7 = vmpackc.low %vm424_vm13, %vm420_vm1  ;;  %7353 = vmatprep.subr.msk.bf16.mxu0 %vm7352_vm6, %v15404_v29  ;;  %vm442_vm6 = vcmp.eq.s32.totalorder %v10241_v42, %v8936_v53 }
  0x92   :  { %7473 = vmatprep.subr.msk.bf16.mxu1 %vm10166_vm10, %v15404_v29  ;;  %vm10246_vm10 = vcmp.gt.s32.totalorder %v1015_v1, %v1019_v19  ;;  %vm7354_vm1 = vmpackc.low %vm429_vm5, %vm425_vm14  ;;  %vm433_vm14 = vcmp.eq.s32.totalorder %v10155_v14, %v8941_v54  ;;  %vm437_vm5 = vcmp.eq.s32.totalorder %v10176_v24, %v8941_v54 }
  0x93   :  { %vm10271_vm13 = vmpackc.low %vm423_vm8, %vm419_vm4  ;;  %vm10296_vm8 = vcmp.gt.s32.totalorder %v1018_v13, %v1022_v23  ;;  %v10302_v43 = vsel %vm10246_vm10, %v1015_v1, %v1019_v19  ;;  %v15549_v19 = vld [vmem:[#allocation28_spill] sm:$0xff] }
  0x94   :  { %7355 = vmatpush1.bf16.msk.msra.mxu0 %vm7354_vm1, %v15404_v29  ;;  %vm7356_vm4 = vmpackc.low %vm438_vm15, %vm434_vm9  ;;  %15468 = vst [vmem:[#allocation56_spill] sm:$0xff] %v10302_v43  ;;  %vm446_vm9 = vcmp.eq.s32.totalorder %v10244_v60, %v8936_v53  ;;  %vm440_vm15 = vcmp.eq.s32.totalorder %v10176_v24, %v8949_v57  ;;  %vm441_vm1 = vcmp.eq.s32.totalorder %v10241_v42, %v8941_v54  ;;  %v15205_v11 = vsub.s32 15, %v10302_v43  ;;  %v15581_v43 = vld [vmem:[#allocation39_spill] sm:$0xff] }
  0x95   :  { %7475 = vmatpush1.bf16.msk.msra.mxu1 %vm10196_vm3, %v15404_v29  ;;  %vm10313_vm3 = vmpackc.low %vm432_vm0, %vm428_vm12  ;;  %7357 = vmatprep.subr.msk.bf16.mxu0 %vm7356_vm4, %v15404_v29  ;;  %vm10337_vm12 = vcmp.gt.s32.totalorder %v10188_v9, %v1021_v12  ;;  %v10358_v1 = vsel %vm10296_vm8, %v1018_v13, %v1022_v23  ;;  %vm450_vm4 = vcmp.eq.s32.totalorder %v10294_v33, %v8936_v53  ;;  %v15478_v23 = vsub.s32 15, %v10262_v27  ;;  %v15596_v27 = vld [vmem:[#allocation13_spill] sm:$0xff] }
  0x96   :  { %7477 = vmatprep.subr.msk.bf16.mxu1 %vm10233_vm7, %v15404_v29  ;;  %vm436_vm7 = vcmp.eq.s32.totalorder %v10155_v14, %v8949_v57  ;;  %vm7358_vm10 = vmpackc.low %vm437_vm5, %vm433_vm14  ;;  %vm445_vm14 = vcmp.eq.s32.totalorder %v10244_v60, %v8941_v54  ;;  %15475 = vst [vmem:[#allocation57_spill] sm:$0xff] %v10358_v1  ;;  %vm439_vm5 = vcmp.eq.s32.totalorder %v10176_v24, %v9013_v28 }
  0x97   :  { %vm10347_vm0 = vmpackc.low %vm431_vm2, %vm427_vm11  ;;  %vm435_vm11 = vcmp.eq.s32.totalorder %v10155_v14, %v9013_v28  ;;  %vm454_vm8 = vcmp.eq.s32.totalorder %v10323_v7, %v8936_v53  ;;  %v10395_v13 = vadd.s32 %v15478_v23, %v8921_v46  ;;  %v10400_v31 = vsel %vm10337_vm12, %v10188_v9, %v1021_v12  ;;  %v15544_v23 = vld [vmem:[#allocation27_spill] sm:$0xff]  ;;  %v15580_v9 = vld [vmem:[#allocation38_spill] sm:$0xff] }
  0x98   :  { %7359 = vmatpush1.bf16.msk.msra.mxu0 %vm7358_vm10, %v15404_v29  ;;  %vm7360_vm2 = vmpackc.low %vm446_vm9, %vm442_vm6  ;;  %15479 = vst [vmem:[#allocation58_spill] sm:$0xff] %v10400_v31  ;;  %vm448_vm6 = vcmp.eq.s32.totalorder %v10244_v60, %v8949_v57  ;;  %v15204_v46 = vsub.s32 15, %v10358_v1  ;;  %vm453_vm10 = vcmp.eq.s32.totalorder %v10323_v7, %v8941_v54  ;;  %v10425_v12 = vadd.s32 %v15205_v11, %v8924_v47  ;;  %v15569_v11 = vld [vmem:[#allocation35_spill] sm:$0xff] }
  0x99   :  { %7479 = vmatpush1.bf16.msk.msra.mxu1 %vm10271_vm13, %v15404_v29  ;;  %vm10385_vm13 = vmpackc.low %vm440_vm15, %vm436_vm7  ;;  %7361 = vmatprep.subr.msk.bf16.mxu0 %vm7360_vm2, %v15404_v29  ;;  %vm449_vm15 = vcmp.eq.s32.totalorder %v10294_v33, %v8941_v54  ;;  %vm443_vm12 = vcmp.eq.s32.totalorder %v10241_v42, %v9013_v28  ;;  %v15203_v47 = vsub.s32 15, %v10400_v31  ;;  %vm452_vm2 = vcmp.eq.s32.totalorder %v10294_v33, %v8949_v57  ;;  %v15550_v54 = vld [vmem:[#allocation29_spill] sm:$0xff] }
  0x9a   :  { %7481 = vmatprep.subr.msk.bf16.mxu1 %vm10313_vm3, %v15404_v29  ;;  %vm444_vm3 = vcmp.eq.s32.totalorder %v10241_v42, %v8949_v57  ;;  %vm7362_vm9 = vmpackc.low %vm445_vm14, %vm441_vm1  ;;  %vm447_vm1 = vcmp.eq.s32.totalorder %v10244_v60, %v9013_v28  ;;  %v10466_v53 = vadd.s32 %v15204_v46, %v8928_v50  ;;  %v15575_v31 = vld [vmem:[#allocation37_spill] sm:$0xff] }
  0x9b   :  { %vm10413_vm7 = vmpackc.low %vm439_vm5, %vm435_vm11  ;;  %vm1040_vm11 = vcmp.eq.s32.totalorder %v8831_v3, %v10395_v13  ;;  %vm1044_vm5 = vcmp.eq.s32.totalorder %v8843_v8, %v10395_v13  ;;  %v10487_v50 = vadd.s32 %v15203_v47, %v8999_v26  ;;  %v15563_v47 = vld [vmem:[#allocation33_spill] sm:$0xff]  ;;  %v15574_v26 = vld [vmem:[#allocation36_spill] sm:$0xff] }
  0x9c   :  { %7363 = vmatpush1.bf16.msk.msra.mxu0 %vm7362_vm9, %v15404_v29  ;;  %vm7364_vm14 = vmpackc.low %vm454_vm8, %vm450_vm4  ;;  %vm456_vm4 = vcmp.eq.s32.totalorder %v10323_v7, %v8949_v57  ;;  %vm451_vm9 = vcmp.eq.s32.totalorder %v10294_v33, %v9013_v28  ;;  %v15562_v57 = vld [vmem:[#allocation32_spill] sm:$0xff]  ;;  %v15586_v46 = vld [vmem:[#allocation41_spill] sm:$0xff] }
  0x9d   :  { %7483 = vmatpush1.bf16.msk.msra.mxu1 %vm10347_vm0, %v15404_v29  ;;  %vm10447_vm0 = vmpackc.low %vm448_vm6, %vm444_vm3  ;;  %7365 = vmatprep.subr.msk.bf16.mxu0 %vm7364_vm14, %v15404_v29  ;;  %vm1039_vm3 = vcmp.eq.s32.totalorder %v8831_v3, %v10425_v12  ;;  %vm1043_vm6 = vcmp.eq.s32.totalorder %v8843_v8, %v10425_v12  ;;  %vm1042_vm14 = vcmp.eq.s32.totalorder %v8831_v3, %v10466_v53 }
  0x9e   :  { %7485 = vmatprep.subr.msk.bf16.mxu1 %vm10385_vm13, %v15404_v29  ;;  %vm7366_vm13 = vmpackc.low %vm453_vm10, %vm449_vm15  ;;  %vm455_vm15 = vcmp.eq.s32.totalorder %v10323_v7, %v9013_v28  ;;  %v15555_v28 = vld [vmem:[#allocation30_spill] sm:$0xff] }
  0x9f   :  { %vm10468_vm8 = vmpackc.low %vm447_vm1, %vm443_vm12  ;;  %vm1052_vm1 = vcmp.eq.s32.totalorder %v8931_v52, %v10395_v13 }
  0xa0   :  { %7367 = vmatpush1.bf16.msk.msra.mxu0 %vm7366_vm13, %v15404_v29  ;;  %vm7496_vm10 = vmpackc.low %vm1044_vm5, %vm1040_vm11  ;;  %vm1041_vm13 = vcmp.eq.s32.totalorder %v8831_v3, %v10487_v50 }
  0xa1   :  { %7487 = vmatpush1.bf16.msk.msra.mxu1 %vm10413_vm7, %v15404_v29  ;;  %vm10492_vm12 = vmpackc.low %vm456_vm4, %vm452_vm2  ;;  %7497 = vmatprep.subr.msk.bf16.mxu0 %vm7496_vm10, %v15404_v29  ;;  %vm1048_vm7 = vcmp.eq.s32.totalorder %v8859_v18, %v10395_v13  ;;  %vm1047_vm2 = vcmp.eq.s32.totalorder %v8859_v18, %v10425_v12  ;;  %vm1051_vm4 = vcmp.eq.s32.totalorder %v8931_v52, %v10425_v12 }
  0xa2   :  { %7489 = vmatprep.subr.msk.bf16.mxu1 %vm10447_vm0, %v15404_v29  ;;  %vm1046_vm0 = vcmp.eq.s32.totalorder %v8843_v8, %v10466_v53  ;;  %vm7498_vm11 = vmpackc.low %vm1043_vm6, %vm1039_vm3  ;;  %vm1045_vm3 = vcmp.eq.s32.totalorder %v8843_v8, %v10487_v50  ;;  %vm1050_vm10 = vcmp.eq.s32.totalorder %v8859_v18, %v10466_v53 }
  0xa3   :  { %855 = vmatmul.mubr.f32.vlgmr.msra.gmra.mrb[0].mxu0 %v9697_v45  ;;  %vm10509_vm5 = vmpackc.low %vm455_vm15, %vm451_vm9  ;;  %vm1060_vm15 = vcmp.eq.s32.totalorder %v8952_v61, %v10395_v13 }
  0xa4   :  { %7499 = vmatpush1.bf16.msk.msra.mxu0 %vm7498_vm11, %v15404_v29  ;;  %1615 = vmatprep.mubr.f32.mxu0 %v8835_v4  ;;  %vm7500_vm6 = vmpackc.low %vm1052_vm1, %vm1048_vm7  ;;  %vm1054_vm7 = vcmp.eq.s32.totalorder %v8931_v52, %v10466_v53  ;;  %vm1049_vm11 = vcmp.eq.s32.totalorder %v8859_v18, %v10487_v50 }
  0xa5   :  { %7491 = vmatpush1.bf16.msk.msra.mxu1 %vm10468_vm8, %v15404_v29  ;;  %vm10529_vm9 = vmpackc.low %vm1046_vm0, %vm1042_vm14  ;;  %7501 = vmatprep.subr.msk.bf16.mxu0 %vm7500_vm6, %v15404_v29  ;;  %vm1056_vm8 = vcmp.eq.s32.totalorder %v8944_v56, %v10395_v13  ;;  %vm1055_vm14 = vcmp.eq.s32.totalorder %v8944_v56, %v10425_v12  ;;  %vm1059_vm0 = vcmp.eq.s32.totalorder %v8952_v61, %v10425_v12 }
  0xa6   :  { %7493 = vmatprep.subr.msk.bf16.mxu1 %vm10492_vm12, %v15404_v29  ;;  %vm7502_vm1 = vmpackc.low %vm1051_vm4, %vm1047_vm2  ;;  %vm1053_vm2 = vcmp.eq.s32.totalorder %v8931_v52, %v10487_v50  ;;  %vm1058_vm6 = vcmp.eq.s32.totalorder %v8944_v56, %v10466_v53 }
  0xa7   :  { %vm10542_vm12 = vmpackc.low %vm1045_vm3, %vm1041_vm13  ;;  %vm1068_vm3 = vcmp.eq.s32.totalorder %v8981_v10, %v10395_v13 }
  0xa8   :  { %7503 = vmatpush1.bf16.msk.msra.mxu0 %vm7502_vm1, %v15404_v29  ;;  %vm7504_vm4 = vmpackc.low %vm1060_vm15, %vm1056_vm8  ;;  %vm1062_vm8 = vcmp.eq.s32.totalorder %v8952_v61, %v10466_v53  ;;  %vm1057_vm1 = vcmp.eq.s32.totalorder %v8944_v56, %v10487_v50 }
  0xa9   :  { %7495 = vmatpush1.bf16.msk.msra.mxu1 %vm10509_vm5, %v15404_v29  ;;  %vm10561_vm13 = vmpackc.low %vm1054_vm7, %vm1050_vm10  ;;  %7505 = vmatprep.subr.msk.bf16.mxu0 %vm7504_vm4, %v15404_v29  ;;  %vm1064_vm5 = vcmp.eq.s32.totalorder %v8972_v5, %v10395_v13  ;;  %vm1063_vm10 = vcmp.eq.s32.totalorder %v8972_v5, %v10425_v12  ;;  %vm1067_vm7 = vcmp.eq.s32.totalorder %v8981_v10, %v10425_v12 }
  0xaa   :  { %7625 = vmatprep.subr.msk.bf16.mxu1 %vm10529_vm9, %v15404_v29  ;;  %vm7506_vm15 = vmpackc.low %vm1059_vm0, %vm1055_vm14  ;;  %vm1061_vm14 = vcmp.eq.s32.totalorder %v8952_v61, %v10487_v50  ;;  %vm1066_vm4 = vcmp.eq.s32.totalorder %v8972_v5, %v10466_v53 }
  0xab   :  { %vm10575_vm9 = vmpackc.low %vm1053_vm2, %vm1049_vm11  ;;  %vm1076_vm2 = vcmp.eq.s32.totalorder %v9024_v36, %v10395_v13 }
  0xac   :  { %997 = vmatmul.mubr.f32.vlgmr.msra.gmra.mrb[0].mxu1 %v9697_v45  ;;  %7507 = vmatpush1.bf16.msk.msra.mxu0 %vm7506_vm15, %v15404_v29  ;;  %vm7508_vm0 = vmpackc.low %vm1068_vm3, %vm1064_vm5  ;;  %vm1070_vm5 = vcmp.eq.s32.totalorder %v8981_v10, %v10466_v53  ;;  %vm1065_vm15 = vcmp.eq.s32.totalorder %v8972_v5, %v10487_v50  ;;  %v15568_v45 = vld [vmem:[#allocation34_spill] sm:$0xff] }
  0xad   :  { %7627 = vmatpush1.bf16.msk.msra.mxu1 %vm10542_vm12, %v15404_v29  ;;  %1757 = vmatprep.mubr.f32.mxu1 %v8835_v4  ;;  %vm10595_vm11 = vmpackc.low %vm1062_vm8, %vm1058_vm6  ;;  %vm1072_vm12 = vcmp.eq.s32.totalorder %v9021_v35, %v10395_v13  ;;  %vm1071_vm6 = vcmp.eq.s32.totalorder %v9021_v35, %v10425_v12  ;;  %vm1075_vm8 = vcmp.eq.s32.totalorder %v9024_v36, %v10425_v12 }
  0xae   :  { %7629 = vmatprep.subr.msk.bf16.mxu1 %vm10561_vm13, %v15404_v29  ;;  %7509 = vmatprep.subr.msk.bf16.mxu0 %vm7508_vm0, %v15404_v29  ;;  %vm7510_vm3 = vmpackc.low %vm1067_vm7, %vm1063_vm10  ;;  %vm1069_vm10 = vcmp.eq.s32.totalorder %v8981_v10, %v10487_v50  ;;  %vm1074_vm0 = vcmp.eq.s32.totalorder %v9021_v35, %v10466_v53 }
  0xaf   :  { %vm10608_vm13 = vmpackc.low %vm1061_vm14, %vm1057_vm1  ;;  %vm1084_vm14 = vcmp.eq.s32.totalorder %v9061_v30, %v10395_v13 }
  0xb0   :  { %7511 = vmatpush1.bf16.msk.msra.mxu0 %vm7510_vm3, %v15404_v29  ;;  %vm7512_vm7 = vmpackc.low %vm1076_vm2, %vm1072_vm12  ;;  %vm1078_vm12 = vcmp.eq.s32.totalorder %v9024_v36, %v10466_v53  ;;  %vm1073_vm3 = vcmp.eq.s32.totalorder %v9021_v35, %v10487_v50 }
  0xb1   :  { %7631 = vmatpush1.bf16.msk.msra.mxu1 %vm10575_vm9, %v15404_v29  ;;  %vm10627_vm1 = vmpackc.low %vm1070_vm5, %vm1066_vm4  ;;  %7513 = vmatprep.subr.msk.bf16.mxu0 %vm7512_vm7, %v15404_v29  ;;  %vm1080_vm9 = vcmp.eq.s32.totalorder %v9058_v39, %v10395_v13  ;;  %vm1079_vm4 = vcmp.eq.s32.totalorder %v9058_v39, %v10425_v12  ;;  %vm1083_vm5 = vcmp.eq.s32.totalorder %v9061_v30, %v10425_v12 }
  0xb2   :  { %7633 = vmatprep.subr.msk.bf16.mxu1 %vm10595_vm11, %v15404_v29  ;;  %vm7514_vm2 = vmpackc.low %vm1075_vm8, %vm1071_vm6  ;;  %vm1077_vm6 = vcmp.eq.s32.totalorder %v9024_v36, %v10487_v50  ;;  %vm1082_vm7 = vcmp.eq.s32.totalorder %v9058_v39, %v10466_v53 }
  0xb3   :  { %vm10640_vm11 = vmpackc.low %vm1069_vm10, %vm1065_vm15  ;;  %vm1092_vm10 = vcmp.eq.s32.totalorder %v9096_v49, %v10395_v13 }
  0xb4   :  { %7515 = vmatpush1.bf16.msk.msra.mxu0 %vm7514_vm2, %v15404_v29  ;;  %vm7516_vm8 = vmpackc.low %vm1084_vm14, %vm1080_vm9  ;;  %vm1086_vm9 = vcmp.eq.s32.totalorder %v9061_v30, %v10466_v53  ;;  %vm1081_vm2 = vcmp.eq.s32.totalorder %v9058_v39, %v10487_v50 }
  0xb5   :  { %7635 = vmatpush1.bf16.msk.msra.mxu1 %vm10608_vm13, %v15404_v29  ;;  %vm10659_vm15 = vmpackc.low %vm1078_vm12, %vm1074_vm0  ;;  %7517 = vmatprep.subr.msk.bf16.mxu0 %vm7516_vm8, %v15404_v29  ;;  %vm1088_vm13 = vcmp.eq.s32.totalorder %v9093_v44, %v10395_v13  ;;  %vm1087_vm0 = vcmp.eq.s32.totalorder %v9093_v44, %v10425_v12  ;;  %vm1091_vm12 = vcmp.eq.s32.totalorder %v9096_v49, %v10425_v12 }
  0xb6   :  { %7637 = vmatprep.subr.msk.bf16.mxu1 %vm10627_vm1, %v15404_v29  ;;  %vm7518_vm14 = vmpackc.low %vm1083_vm5, %vm1079_vm4  ;;  %vm1085_vm4 = vcmp.eq.s32.totalorder %v9061_v30, %v10487_v50  ;;  %vm1090_vm8 = vcmp.eq.s32.totalorder %v9093_v44, %v10466_v53 }
  0xb7   :  { %vm10672_vm1 = vmpackc.low %vm1077_vm6, %vm1073_vm3  ;;  %vm1100_vm6 = vcmp.eq.s32.totalorder %v9135_v59, %v10395_v13 }
  0xb8   :  { %7519 = vmatpush1.bf16.msk.msra.mxu0 %vm7518_vm14, %v15404_v29  ;;  %vm7520_vm5 = vmpackc.low %vm1092_vm10, %vm1088_vm13  ;;  %vm1094_vm13 = vcmp.eq.s32.totalorder %v9096_v49, %v10466_v53  ;;  %vm1089_vm14 = vcmp.eq.s32.totalorder %v9093_v44, %v10487_v50 }
  0xb9   :  { %7639 = vmatpush1.bf16.msk.msra.mxu1 %vm10640_vm11, %v15404_v29  ;;  %vm10691_vm3 = vmpackc.low %vm1086_vm9, %vm1082_vm7  ;;  %7521 = vmatprep.subr.msk.bf16.mxu0 %vm7520_vm5, %v15404_v29  ;;  %vm1096_vm11 = vcmp.eq.s32.totalorder %v9132_v58, %v10395_v13  ;;  %vm1095_vm7 = vcmp.eq.s32.totalorder %v9132_v58, %v10425_v12  ;;  %vm1099_vm9 = vcmp.eq.s32.totalorder %v9135_v59, %v10425_v12 }
  0xba   :  { %7641 = vmatprep.subr.msk.bf16.mxu1 %vm10659_vm15, %v15404_v29  ;;  %vm7522_vm10 = vmpackc.low %vm1091_vm12, %vm1087_vm0  ;;  %vm1093_vm0 = vcmp.eq.s32.totalorder %v9096_v49, %v10487_v50  ;;  %vm1098_vm5 = vcmp.eq.s32.totalorder %v9132_v58, %v10466_v53 }
  0xbb   :  { %vm10704_vm15 = vmpackc.low %vm1085_vm4, %vm1081_vm2  ;;  %vm1108_vm4 = vcmp.eq.s32.totalorder %v9176_v15, %v10395_v13 }
  0xbc   :  { %7523 = vmatpush1.bf16.msk.msra.mxu0 %vm7522_vm10, %v15404_v29  ;;  %vm7524_vm12 = vmpackc.low %vm1100_vm6, %vm1096_vm11  ;;  %vm1102_vm11 = vcmp.eq.s32.totalorder %v9135_v59, %v10466_v53  ;;  %vm1097_vm10 = vcmp.eq.s32.totalorder %v9132_v58, %v10487_v50 }
  0xbd   :  { %7643 = vmatpush1.bf16.msk.msra.mxu1 %vm10672_vm1, %v15404_v29  ;;  %vm10723_vm2 = vmpackc.low %vm1094_vm13, %vm1090_vm8  ;;  %7525 = vmatprep.subr.msk.bf16.mxu0 %vm7524_vm12, %v15404_v29  ;;  %vm1104_vm1 = vcmp.eq.s32.totalorder %v9173_v6, %v10395_v13  ;;  %vm1103_vm8 = vcmp.eq.s32.totalorder %v9173_v6, %v10425_v12  ;;  %vm1107_vm13 = vcmp.eq.s32.totalorder %v9176_v15, %v10425_v12 }
  0xbe   :  { %7645 = vmatprep.subr.msk.bf16.mxu1 %vm10691_vm3, %v15404_v29  ;;  %vm7526_vm6 = vmpackc.low %vm1099_vm9, %vm1095_vm7  ;;  %vm1101_vm7 = vcmp.eq.s32.totalorder %v9135_v59, %v10487_v50  ;;  %vm1106_vm12 = vcmp.eq.s32.totalorder %v9173_v6, %v10466_v53 }
  0xbf   :  { %vm10736_vm3 = vmpackc.low %vm1093_vm0, %vm1089_vm14  ;;  %vm1116_vm0 = vcmp.eq.s32.totalorder %v9217_v55, %v10395_v13 }
  0xc0   :  { %7527 = vmatpush1.bf16.msk.msra.mxu0 %vm7526_vm6, %v15404_v29  ;;  %vm7528_vm9 = vmpackc.low %vm1108_vm4, %vm1104_vm1  ;;  %vm1110_vm1 = vcmp.eq.s32.totalorder %v9176_v15, %v10466_v53  ;;  %vm1105_vm6 = vcmp.eq.s32.totalorder %v9173_v6, %v10487_v50 }
  0xc1   :  { %7647 = vmatpush1.bf16.msk.msra.mxu1 %vm10704_vm15, %v15404_v29  ;;  %vm10755_vm14 = vmpackc.low %vm1102_vm11, %vm1098_vm5  ;;  %7529 = vmatprep.subr.msk.bf16.mxu0 %vm7528_vm9, %v15404_v29  ;;  %vm1112_vm15 = vcmp.eq.s32.totalorder %v9214_v51, %v10395_v13  ;;  %vm1111_vm5 = vcmp.eq.s32.totalorder %v9214_v51, %v10425_v12  ;;  %vm1115_vm11 = vcmp.eq.s32.totalorder %v9217_v55, %v10425_v12 }
  0xc2   :  { %7649 = vmatprep.subr.msk.bf16.mxu1 %vm10723_vm2, %v15404_v29  ;;  %vm7530_vm4 = vmpackc.low %vm1107_vm13, %vm1103_vm8  ;;  %vm1109_vm8 = vcmp.eq.s32.totalorder %v9176_v15, %v10487_v50  ;;  %vm1114_vm9 = vcmp.eq.s32.totalorder %v9214_v51, %v10466_v53 }
  0xc3   :  { %vm10768_vm2 = vmpackc.low %vm1101_vm7, %vm1097_vm10  ;;  %vm1124_vm7 = vcmp.eq.s32.totalorder %v9258_v21, %v10395_v13 }
  0xc4   :  { %7531 = vmatpush1.bf16.msk.msra.mxu0 %vm7530_vm4, %v15404_v29  ;;  %vm7532_vm13 = vmpackc.low %vm1116_vm0, %vm1112_vm15  ;;  %vm1118_vm15 = vcmp.eq.s32.totalorder %v9217_v55, %v10466_v53  ;;  %vm1113_vm4 = vcmp.eq.s32.totalorder %v9214_v51, %v10487_v50 }
  0xc5   :  { %7651 = vmatpush1.bf16.msk.msra.mxu1 %vm10736_vm3, %v15404_v29  ;;  %vm10787_vm10 = vmpackc.low %vm1110_vm1, %vm1106_vm12  ;;  %7533 = vmatprep.subr.msk.bf16.mxu0 %vm7532_vm13, %v15404_v29  ;;  %vm1120_vm3 = vcmp.eq.s32.totalorder %v9255_v38, %v10395_v13  ;;  %vm1119_vm12 = vcmp.eq.s32.totalorder %v9255_v38, %v10425_v12  ;;  %vm1123_vm1 = vcmp.eq.s32.totalorder %v9258_v21, %v10425_v12 }
  0xc6   :  { %7653 = vmatprep.subr.msk.bf16.mxu1 %vm10755_vm14, %v15404_v29  ;;  %vm7534_vm0 = vmpackc.low %vm1115_vm11, %vm1111_vm5  ;;  %vm1117_vm5 = vcmp.eq.s32.totalorder %v9217_v55, %v10487_v50  ;;  %vm1122_vm13 = vcmp.eq.s32.totalorder %v9255_v38, %v10466_v53 }
  0xc7   :  { %vm10800_vm14 = vmpackc.low %vm1109_vm8, %vm1105_vm6  ;;  %vm1132_vm8 = vcmp.eq.s32.totalorder %v9299_v48, %v10395_v13 }
  0xc8   :  { %7535 = vmatpush1.bf16.msk.msra.mxu0 %vm7534_vm0, %v15404_v29  ;;  %vm7536_vm11 = vmpackc.low %vm1124_vm7, %vm1120_vm3  ;;  %vm1126_vm3 = vcmp.eq.s32.totalorder %v9258_v21, %v10466_v53  ;;  %vm1121_vm0 = vcmp.eq.s32.totalorder %v9255_v38, %v10487_v50 }
  0xc9   :  { %7655 = vmatpush1.bf16.msk.msra.mxu1 %vm10768_vm2, %v15404_v29  ;;  %vm10819_vm6 = vmpackc.low %vm1118_vm15, %vm1114_vm9  ;;  %7537 = vmatprep.subr.msk.bf16.mxu0 %vm7536_vm11, %v15404_v29  ;;  %vm1128_vm2 = vcmp.eq.s32.totalorder %v9296_v62, %v10395_v13  ;;  %vm1127_vm9 = vcmp.eq.s32.totalorder %v9296_v62, %v10425_v12  ;;  %vm1131_vm15 = vcmp.eq.s32.totalorder %v9299_v48, %v10425_v12 }
  0xca   :  { %7657 = vmatprep.subr.msk.bf16.mxu1 %vm10787_vm10, %v15404_v29  ;;  %vm7538_vm7 = vmpackc.low %vm1123_vm1, %vm1119_vm12  ;;  %vm1125_vm12 = vcmp.eq.s32.totalorder %v9258_v21, %v10487_v50  ;;  %vm1130_vm11 = vcmp.eq.s32.totalorder %v9296_v62, %v10466_v53 }
  0xcb   :  { %vm10832_vm10 = vmpackc.low %vm1117_vm5, %vm1113_vm4  ;;  %vm1140_vm5 = vcmp.eq.s32.totalorder %v9340_v2, %v10395_v13 }
  0xcc   :  { %7539 = vmatpush1.bf16.msk.msra.mxu0 %vm7538_vm7, %v15404_v29  ;;  %vm7540_vm1 = vmpackc.low %vm1132_vm8, %vm1128_vm2  ;;  %vm1134_vm2 = vcmp.eq.s32.totalorder %v9299_v48, %v10466_v53  ;;  %vm1129_vm7 = vcmp.eq.s32.totalorder %v9296_v62, %v10487_v50 }
  0xcd   :  { %7659 = vmatpush1.bf16.msk.msra.mxu1 %vm10800_vm14, %v15404_v29  ;;  %vm10851_vm4 = vmpackc.low %vm1126_vm3, %vm1122_vm13  ;;  %7541 = vmatprep.subr.msk.bf16.mxu0 %vm7540_vm1, %v15404_v29  ;;  %vm1136_vm14 = vcmp.eq.s32.totalorder %v9337_v41, %v10395_v13  ;;  %vm1135_vm13 = vcmp.eq.s32.totalorder %v9337_v41, %v10425_v12  ;;  %vm1139_vm3 = vcmp.eq.s32.totalorder %v9340_v2, %v10425_v12 }
  0xce   :  { %7661 = vmatprep.subr.msk.bf16.mxu1 %vm10819_vm6, %v15404_v29  ;;  %vm7542_vm8 = vmpackc.low %vm1131_vm15, %vm1127_vm9  ;;  %vm1133_vm9 = vcmp.eq.s32.totalorder %v9299_v48, %v10487_v50  ;;  %vm1138_vm1 = vcmp.eq.s32.totalorder %v9337_v41, %v10466_v53 }
  0xcf   :  { %vm10864_vm6 = vmpackc.low %vm1125_vm12, %vm1121_vm0  ;;  %vm1148_vm12 = vcmp.eq.s32.totalorder %v9381_v34, %v10395_v13 }
  0xd0   :  { %7543 = vmatpush1.bf16.msk.msra.mxu0 %vm7542_vm8, %v15404_v29  ;;  %vm7544_vm15 = vmpackc.low %vm1140_vm5, %vm1136_vm14  ;;  %vm1142_vm14 = vcmp.eq.s32.totalorder %v9340_v2, %v10466_v53  ;;  %vm1137_vm8 = vcmp.eq.s32.totalorder %v9337_v41, %v10487_v50 }
  0xd1   :  { %7663 = vmatpush1.bf16.msk.msra.mxu1 %vm10832_vm10, %v15404_v29  ;;  %vm10883_vm0 = vmpackc.low %vm1134_vm2, %vm1130_vm11  ;;  %7545 = vmatprep.subr.msk.bf16.mxu0 %vm7544_vm15, %v15404_v29  ;;  %vm1144_vm10 = vcmp.eq.s32.totalorder %v9378_v0, %v10395_v13  ;;  %vm1143_vm11 = vcmp.eq.s32.totalorder %v9378_v0, %v10425_v12  ;;  %vm1147_vm2 = vcmp.eq.s32.totalorder %v9381_v34, %v10425_v12 }
  0xd2   :  { %7665 = vmatprep.subr.msk.bf16.mxu1 %vm10851_vm4, %v15404_v29  ;;  %vm7546_vm5 = vmpackc.low %vm1139_vm3, %vm1135_vm13  ;;  %vm1141_vm13 = vcmp.eq.s32.totalorder %v9340_v2, %v10487_v50  ;;  %vm1146_vm15 = vcmp.eq.s32.totalorder %v9378_v0, %v10466_v53 }
  0xd3   :  { %vm10896_vm4 = vmpackc.low %vm1133_vm9, %vm1129_vm7  ;;  %vm1156_vm9 = vcmp.eq.s32.totalorder %v9422_v17, %v10395_v13 }
  0xd4   :  { %7547 = vmatpush1.bf16.msk.msra.mxu0 %vm7546_vm5, %v15404_v29  ;;  %vm7548_vm3 = vmpackc.low %vm1148_vm12, %vm1144_vm10  ;;  %vm1150_vm10 = vcmp.eq.s32.totalorder %v9381_v34, %v10466_v53  ;;  %vm1145_vm5 = vcmp.eq.s32.totalorder %v9378_v0, %v10487_v50 }
  0xd5   :  { %7667 = vmatpush1.bf16.msk.msra.mxu1 %vm10864_vm6, %v15404_v29  ;;  %vm10915_vm7 = vmpackc.low %vm1142_vm14, %vm1138_vm1  ;;  %7549 = vmatprep.subr.msk.bf16.mxu0 %vm7548_vm3, %v15404_v29  ;;  %vm1152_vm6 = vcmp.eq.s32.totalorder %v9419_v40, %v10395_v13  ;;  %vm1151_vm1 = vcmp.eq.s32.totalorder %v9419_v40, %v10425_v12  ;;  %vm1155_vm14 = vcmp.eq.s32.totalorder %v9422_v17, %v10425_v12 }
  0xd6   :  { %7669 = vmatprep.subr.msk.bf16.mxu1 %vm10883_vm0, %v15404_v29  ;;  %vm7550_vm12 = vmpackc.low %vm1147_vm2, %vm1143_vm11  ;;  %vm1149_vm11 = vcmp.eq.s32.totalorder %v9381_v34, %v10487_v50  ;;  %vm1154_vm3 = vcmp.eq.s32.totalorder %v9419_v40, %v10466_v53 }
  0xd7   :  { %vm10928_vm0 = vmpackc.low %vm1141_vm13, %vm1137_vm8  ;;  %vm1164_vm13 = vcmp.eq.s32.totalorder %v15544_v23, %v10395_v13 }
  0xd8   :  { %7551 = vmatpush1.bf16.msk.msra.mxu0 %vm7550_vm12, %v15404_v29  ;;  %vm7552_vm2 = vmpackc.low %vm1156_vm9, %vm1152_vm6  ;;  %vm1158_vm6 = vcmp.eq.s32.totalorder %v9422_v17, %v10466_v53  ;;  %vm1153_vm12 = vcmp.eq.s32.totalorder %v9419_v40, %v10487_v50 }
  0xd9   :  { %7671 = vmatpush1.bf16.msk.msra.mxu1 %vm10896_vm4, %v15404_v29  ;;  %vm10947_vm8 = vmpackc.low %vm1150_vm10, %vm1146_vm15  ;;  %7553 = vmatprep.subr.msk.bf16.mxu0 %vm7552_vm2, %v15404_v29  ;;  %vm1160_vm4 = vcmp.eq.s32.totalorder %v9460_v32, %v10395_v13  ;;  %vm1159_vm15 = vcmp.eq.s32.totalorder %v9460_v32, %v10425_v12  ;;  %vm1163_vm10 = vcmp.eq.s32.totalorder %v15544_v23, %v10425_v12 }
  0xda   :  { %7673 = vmatprep.subr.msk.bf16.mxu1 %vm10915_vm7, %v15404_v29  ;;  %vm7554_vm9 = vmpackc.low %vm1155_vm14, %vm1151_vm1  ;;  %vm1157_vm1 = vcmp.eq.s32.totalorder %v9422_v17, %v10487_v50  ;;  %vm1162_vm2 = vcmp.eq.s32.totalorder %v9460_v32, %v10466_v53 }
  0xdb   :  { %vm10960_vm7 = vmpackc.low %vm1149_vm11, %vm1145_vm5  ;;  %vm1172_vm11 = vcmp.eq.s32.totalorder %v15550_v54, %v10395_v13 }
  0xdc   :  { %7555 = vmatpush1.bf16.msk.msra.mxu0 %vm7554_vm9, %v15404_v29  ;;  %vm7556_vm14 = vmpackc.low %vm1164_vm13, %vm1160_vm4  ;;  %vm1166_vm4 = vcmp.eq.s32.totalorder %v15544_v23, %v10466_v53  ;;  %vm1161_vm9 = vcmp.eq.s32.totalorder %v9460_v32, %v10487_v50 }
  0xdd   :  { %7675 = vmatpush1.bf16.msk.msra.mxu1 %vm10928_vm0, %v15404_v29  ;;  %vm10979_vm5 = vmpackc.low %vm1158_vm6, %vm1154_vm3  ;;  %7557 = vmatprep.subr.msk.bf16.mxu0 %vm7556_vm14, %v15404_v29  ;;  %vm1168_vm0 = vcmp.eq.s32.totalorder %v15549_v19, %v10395_v13  ;;  %vm1167_vm3 = vcmp.eq.s32.totalorder %v15549_v19, %v10425_v12  ;;  %vm1171_vm6 = vcmp.eq.s32.totalorder %v15550_v54, %v10425_v12 }
  0xde   :  { %7677 = vmatprep.subr.msk.bf16.mxu1 %vm10947_vm8, %v15404_v29  ;;  %vm7558_vm13 = vmpackc.low %vm1163_vm10, %vm1159_vm15  ;;  %vm1165_vm15 = vcmp.eq.s32.totalorder %v15544_v23, %v10487_v50  ;;  %vm1170_vm14 = vcmp.eq.s32.totalorder %v15549_v19, %v10466_v53 }
  0xdf   :  { %vm10992_vm8 = vmpackc.low %vm1157_vm1, %vm1153_vm12  ;;  %vm1180_vm1 = vcmp.eq.s32.totalorder %v15556_v25, %v10395_v13 }
  0xe0   :  { %7559 = vmatpush1.bf16.msk.msra.mxu0 %vm7558_vm13, %v15404_v29  ;;  %vm7560_vm10 = vmpackc.low %vm1172_vm11, %vm1168_vm0  ;;  %vm1174_vm0 = vcmp.eq.s32.totalorder %v15550_v54, %v10466_v53  ;;  %vm1169_vm13 = vcmp.eq.s32.totalorder %v15549_v19, %v10487_v50 }
  0xe1   :  { %7679 = vmatpush1.bf16.msk.msra.mxu1 %vm10960_vm7, %v15404_v29  ;;  %vm11011_vm12 = vmpackc.low %vm1166_vm4, %vm1162_vm2  ;;  %7561 = vmatprep.subr.msk.bf16.mxu0 %vm7560_vm10, %v15404_v29  ;;  %vm1176_vm7 = vcmp.eq.s32.totalorder %v15555_v28, %v10395_v13  ;;  %vm1175_vm2 = vcmp.eq.s32.totalorder %v15555_v28, %v10425_v12  ;;  %vm1179_vm4 = vcmp.eq.s32.totalorder %v15556_v25, %v10425_v12 }
  0xe2   :  { %7681 = vmatprep.subr.msk.bf16.mxu1 %vm10979_vm5, %v15404_v29  ;;  %vm7562_vm5 = vmpackc.low %vm1171_vm6, %vm1167_vm3  ;;  %vm1173_vm3 = vcmp.eq.s32.totalorder %v15550_v54, %v10487_v50  ;;  %vm1178_vm10 = vcmp.eq.s32.totalorder %v15555_v28, %v10466_v53  ;;  %v15601_v54 = vld [vmem:[#allocation17_spill] sm:$0xff] }
  0xe3   :  { %1616 = vmatmul.mubr.f32.vlgmr.msra.gmra.mrb[2].mxu0 %v8776_v16  ;;  %vm11030_vm11 = vmpackc.low %vm1165_vm15, %vm1161_vm9  ;;  %vm1188_vm15 = vcmp.eq.s32.totalorder %v15563_v47, %v10395_v13  ;;  %v1837_v19 = vsub.s32 0, %v15601_v54 }
  0xe4   :  { %7563 = vmatpush1.bf16.msk.msra.mxu0 %vm7562_vm5, %v15404_v29  ;;  %1686 = vmatprep.mubr.f32.mxu0 %v15559_v37  ;;  %vm7564_vm6 = vmpackc.low %vm1180_vm1, %vm1176_vm7  ;;  %vm1177_vm5 = vcmp.eq.s32.totalorder %v15555_v28, %v10487_v50 }
  0xe5   :  { %7683 = vmatpush1.bf16.msk.msra.mxu1 %vm10992_vm8, %v15404_v29  ;;  %vm11056_vm9 = vmpackc.low %vm1174_vm0, %vm1170_vm14  ;;  %7565 = vmatprep.subr.msk.bf16.mxu0 %vm7564_vm6, %v15404_v29  ;;  %vm1184_vm8 = vcmp.eq.s32.totalorder %v15562_v57, %v10395_v13  ;;  %vm1183_vm14 = vcmp.eq.s32.totalorder %v15562_v57, %v10425_v12  ;;  %vm1187_vm0 = vcmp.eq.s32.totalorder %v15563_v47, %v10425_v12 }
  0xe6   :  { %7685 = vmatprep.subr.msk.bf16.mxu1 %vm11011_vm12, %v15404_v29  ;;  %vm1182_vm12 = vcmp.eq.s32.totalorder %v15556_v25, %v10466_v53  ;;  %vm7566_vm7 = vmpackc.low %vm1179_vm4, %vm1175_vm2  ;;  %vm1181_vm2 = vcmp.eq.s32.totalorder %v15556_v25, %v10487_v50  ;;  %vm1186_vm6 = vcmp.eq.s32.totalorder %v15562_v57, %v10466_v53  ;;  %v15615_v25 = vld [vmem:[#allocation48_spill] sm:$0xff] }
  0xe7   :  { %vm11069_vm1 = vmpackc.low %vm1173_vm3, %vm1169_vm13  ;;  %vm1196_vm3 = vcmp.eq.s32.totalorder %v15569_v11, %v10395_v13 }
  0xe8   :  { %7567 = vmatpush1.bf16.msk.msra.mxu0 %vm7566_vm7, %v15404_v29  ;;  %vm7568_vm4 = vmpackc.low %vm1188_vm15, %vm1184_vm8  ;;  %vm1190_vm8 = vcmp.eq.s32.totalorder %v15563_v47, %v10466_v53  ;;  %vm1185_vm7 = vcmp.eq.s32.totalorder %v15562_v57, %v10487_v50 }
  0xe9   :  { %7687 = vmatpush1.bf16.msk.msra.mxu1 %vm11030_vm11, %v15404_v29  ;;  %vm11088_vm13 = vmpackc.low %vm1182_vm12, %vm1178_vm10  ;;  %7569 = vmatprep.subr.msk.bf16.mxu0 %vm7568_vm4, %v15404_v29  ;;  %vm1192_vm11 = vcmp.eq.s32.totalorder %v15568_v45, %v10395_v13  ;;  %vm1191_vm10 = vcmp.eq.s32.totalorder %v15568_v45, %v10425_v12  ;;  %vm1195_vm12 = vcmp.eq.s32.totalorder %v15569_v11, %v10425_v12 }
  0xea   :  { %7689 = vmatprep.subr.msk.bf16.mxu1 %vm11056_vm9, %v15404_v29  ;;  %vm7570_vm15 = vmpackc.low %vm1187_vm0, %vm1183_vm14  ;;  %vm1189_vm14 = vcmp.eq.s32.totalorder %v15563_v47, %v10487_v50  ;;  %vm1194_vm4 = vcmp.eq.s32.totalorder %v15568_v45, %v10466_v53 }
  0xeb   :  { %vm11101_vm9 = vmpackc.low %vm1181_vm2, %vm1177_vm5  ;;  %vm1204_vm2 = vcmp.eq.s32.totalorder %v15575_v31, %v10395_v13 }
  0xec   :  { %1758 = vmatmul.mubr.f32.vlgmr.msra.gmra.mrb[2].mxu1 %v8776_v16  ;;  %7571 = vmatpush1.bf16.msk.msra.mxu0 %vm7570_vm15, %v15404_v29  ;;  %vm7572_vm0 = vmpackc.low %vm1196_vm3, %vm1192_vm11  ;;  %vm1198_vm11 = vcmp.eq.s32.totalorder %v15569_v11, %v10466_v53  ;;  %vm1193_vm15 = vcmp.eq.s32.totalorder %v15568_v45, %v10487_v50  ;;  %v15594_v16 = vld [vmem:[#allocation43_spill] sm:$0xff] }
  0xed   :  { %7691 = vmatpush1.bf16.msk.msra.mxu1 %vm11069_vm1, %v15404_v29  ;;  %1828 = vmatprep.mubr.f32.mxu1 %v15559_v37  ;;  %vm11121_vm5 = vmpackc.low %vm1190_vm8, %vm1186_vm6  ;;  %vm1200_vm1 = vcmp.eq.s32.totalorder %v15574_v26, %v10395_v13  ;;  %vm1199_vm6 = vcmp.eq.s32.totalorder %v15574_v26, %v10425_v12  ;;  %vm1203_vm8 = vcmp.eq.s32.totalorder %v15575_v31, %v10425_v12  ;;  %v15595_v37 = vld [vmem:[#allocation44_spill] sm:$0xff] }
  0xee   :  { %7693 = vmatprep.subr.msk.bf16.mxu1 %vm11088_vm13, %v15404_v29  ;;  %7573 = vmatprep.subr.msk.bf16.mxu0 %vm7572_vm0, %v15404_v29  ;;  %vm7574_vm3 = vmpackc.low %vm1195_vm12, %vm1191_vm10  ;;  %vm1197_vm10 = vcmp.eq.s32.totalorder %v15569_v11, %v10487_v50  ;;  %vm1202_vm0 = vcmp.eq.s32.totalorder %v15574_v26, %v10466_v53  ;;  %v15587_v11 = vld [vmem:[#allocation42_spill] sm:$0xff] }
  0xef   :  { %vm11134_vm13 = vmpackc.low %vm1189_vm14, %vm1185_vm7  ;;  %vm1212_vm14 = vcmp.eq.s32.totalorder %v15581_v43, %v10395_v13 }
  0xf0   :  { %7575 = vmatpush1.bf16.msk.msra.mxu0 %vm7574_vm3, %v15404_v29  ;;  %vm7576_vm12 = vmpackc.low %vm1204_vm2, %vm1200_vm1  ;;  %vm1206_vm1 = vcmp.eq.s32.totalorder %v15575_v31, %v10466_v53  ;;  %vm1201_vm3 = vcmp.eq.s32.totalorder %v15574_v26, %v10487_v50  ;;  %v15588_v26 = vld [vmem:[#allocation11_spill] sm:$0xff] }
  0xf1   :  { %7695 = vmatpush1.bf16.msk.msra.mxu1 %vm11101_vm9, %v15404_v29  ;;  %vm11153_vm7 = vmpackc.low %vm1198_vm11, %vm1194_vm4  ;;  %7577 = vmatprep.subr.msk.bf16.mxu0 %vm7576_vm12, %v15404_v29  ;;  %vm1208_vm9 = vcmp.eq.s32.totalorder %v15580_v9, %v10395_v13  ;;  %vm1207_vm4 = vcmp.eq.s32.totalorder %v15580_v9, %v10425_v12  ;;  %vm1211_vm11 = vcmp.eq.s32.totalorder %v15581_v43, %v10425_v12  ;;  %v1836_v45 = vsub.s32 0, %v15588_v26 }
  0xf2   :  { %7697 = vmatprep.subr.msk.bf16.mxu1 %vm11121_vm5, %v15404_v29  ;;  %vm7578_vm2 = vmpackc.low %vm1203_vm8, %vm1199_vm6  ;;  %vm1205_vm6 = vcmp.eq.s32.totalorder %v15575_v31, %v10487_v50  ;;  %vm1210_vm12 = vcmp.eq.s32.totalorder %v15580_v9, %v10466_v53  ;;  %v15591_v31 = vld [vmem:[#allocation12_spill] sm:$0xff] }
  0xf3   :  { %vm11166_vm5 = vmpackc.low %vm1197_vm10, %vm1193_vm15  ;;  %vm1220_vm10 = vcmp.eq.s32.totalorder %v15587_v11, %v10395_v13  ;;  %v1835_v47 = vsub.s32 0, %v15591_v31 }
  0xf4   :  { %7579 = vmatpush1.bf16.msk.msra.mxu0 %vm7578_vm2, %v15404_v29  ;;  %vm7580_vm8 = vmpackc.low %vm1212_vm14, %vm1208_vm9  ;;  %vm1209_vm2 = vcmp.eq.s32.totalorder %v15580_v9, %v10487_v50 }
  0xf5   :  { %7699 = vmatpush1.bf16.msk.msra.mxu1 %vm11134_vm13, %v15404_v29  ;;  %vm11185_vm15 = vmpackc.low %vm1206_vm1, %vm1202_vm0  ;;  %7581 = vmatprep.subr.msk.bf16.mxu0 %vm7580_vm8, %v15404_v29  ;;  %vm1216_vm13 = vcmp.eq.s32.totalorder %v15586_v46, %v10395_v13  ;;  %vm1215_vm0 = vcmp.eq.s32.totalorder %v15586_v46, %v10425_v12  ;;  %vm1219_vm1 = vcmp.eq.s32.totalorder %v15587_v11, %v10425_v12 }
  0xf6   :  { %7701 = vmatprep.subr.msk.bf16.mxu1 %vm11153_vm7, %v15404_v29  ;;  %vm1214_vm7 = vcmp.eq.s32.totalorder %v15581_v43, %v10466_v53  ;;  %vm7582_vm9 = vmpackc.low %vm1211_vm11, %vm1207_vm4  ;;  %vm1213_vm4 = vcmp.eq.s32.totalorder %v15581_v43, %v10487_v50  ;;  %vm1841_vm8 = vcmp.gt.s32.totalorder %v15588_v26, %v1836_v45  ;;  %v1838_v43 = vsub.s32 0, %v15596_v27 }
  0xf7   :  { %vm11199_vm14 = vmpackc.low %vm1205_vm6, %vm1201_vm3  ;;  %vm1228_vm6 = vcmp.eq.s32.totalorder %v15595_v37, %v10395_v13  ;;  %v1842_v28 = vsel %vm1841_vm8, %v15588_v26, %v1836_v45  ;;  %v15604_v45 = vld [vmem:[#allocation45_spill] sm:$0xff]  ;;  %v15605_v26 = vld [vmem:[#allocation46_spill] sm:$0xff] }
  0xf8   :  { %7583 = vmatpush1.bf16.msk.msra.mxu0 %vm7582_vm9, %v15404_v29  ;;  %vm7584_vm11 = vmpackc.low %vm1220_vm10, %vm1216_vm13  ;;  %vm1218_vm13 = vcmp.eq.s32.totalorder %v15586_v46, %v10466_v53  ;;  %vm1227_vm9 = vcmp.eq.s32.totalorder %v15595_v37, %v10425_v12  ;;  %v1848_v32 = vsub.s32 15, %v1842_v28  ;;  %v15614_v28 = vld [vmem:[#allocation47_spill] sm:$0xff] }
  0xf9   :  { %7703 = vmatpush1.bf16.msk.msra.mxu1 %vm11166_vm5, %v15404_v29  ;;  %vm11219_vm3 = vmpackc.low %vm1214_vm7, %vm1210_vm12  ;;  %7585 = vmatprep.subr.msk.bf16.mxu0 %vm7584_vm11, %v15404_v29  ;;  %vm1224_vm5 = vcmp.eq.s32.totalorder %v15594_v16, %v10395_v13  ;;  %vm1223_vm7 = vcmp.eq.s32.totalorder %v15594_v16, %v10425_v12  ;;  %vm11247_vm11 = vcmp.gt.s32.totalorder %v15591_v31, %v1835_v47 }
  0xfa   :  { %7705 = vmatprep.subr.msk.bf16.mxu1 %vm11185_vm15, %v15404_v29  ;;  %vm1222_vm15 = vcmp.eq.s32.totalorder %v15587_v11, %v10466_v53  ;;  %vm7586_vm10 = vmpackc.low %vm1219_vm1, %vm1215_vm0  ;;  %vm1217_vm0 = vcmp.eq.s32.totalorder %v15586_v46, %v10487_v50  ;;  %vm1221_vm1 = vcmp.eq.s32.totalorder %v15587_v11, %v10487_v50  ;;  %v1840_v11 = vsel %vm11247_vm11, %v15591_v31, %v1835_v47  ;;  %v15645_v47 = vld [vmem:[#allocation9_spill] sm:$0xff] }
  0xfb   :  { %vm11237_vm12 = vmpackc.low %vm1213_vm4, %vm1209_vm2  ;;  %vm1232_vm4 = vcmp.eq.s32.totalorder %v15604_v45, %v10395_v13  ;;  %vm1229_vm11 = vcmp.eq.s32.totalorder %v15595_v37, %v10487_v50  ;;  %v1847_v1 = vsub.s32 15, %v1840_v11  ;;  %v1852_v11 = vsub.s32 0, %v1848_v32 }
  0xfc   :  { %7587 = vmatpush1.bf16.msk.msra.mxu0 %vm7586_vm10, %v15404_v29  ;;  %vm7588_vm2 = vmpackc.low %vm1228_vm6, %vm1224_vm5  ;;  %vm1236_vm5 = vcmp.eq.s32.totalorder %v15605_v26, %v10395_v13  ;;  %vm1230_vm6 = vcmp.eq.s32.totalorder %v15595_v37, %v10466_v53  ;;  %vm1231_vm10 = vcmp.eq.s32.totalorder %v15604_v45, %v10425_v12  ;;  %v15725_v37 = vld [vmem:[#allocation26_spill] sm:$0xff] }
  0xfd   :  { %7707 = vmatpush1.bf16.msk.msra.mxu1 %vm11199_vm14, %v15404_v29  ;;  %vm11272_vm14 = vmpackc.low %vm1222_vm15, %vm1218_vm13  ;;  %7589 = vmatprep.subr.msk.bf16.mxu0 %vm7588_vm2, %v15404_v29  ;;  %vm11292_vm13 = vcmp.gt.s32.totalorder %v15596_v27, %v1838_v43  ;;  %vm1240_vm2 = vcmp.eq.s32.totalorder %v15614_v28, %v10395_v13  ;;  %v1851_v57 = vsub.s32 0, %v1847_v1 }
  0xfe   :  { %7709 = vmatprep.subr.msk.bf16.mxu1 %vm11219_vm3, %v15404_v29  ;;  %vm1226_vm3 = vcmp.eq.s32.totalorder %v15594_v16, %v10466_v53  ;;  %vm7590_vm8 = vmpackc.low %vm1227_vm9, %vm1223_vm7  ;;  %vm1235_vm7 = vcmp.eq.s32.totalorder %v15605_v26, %v10425_v12  ;;  %vm1225_vm9 = vcmp.eq.s32.totalorder %v15594_v16, %v10487_v50  ;;  %v1846_v9 = vsel %vm11292_vm13, %v15596_v27, %v1838_v43 }
  0xff   :  { %vm11302_vm15 = vmpackc.low %vm1221_vm1, %vm1217_vm0  ;;  %vm11322_vm1 = vcmp.gt.s32.totalorder %v15601_v54, %v1837_v19  ;;  %vm1243_vm13 = vcmp.eq.s32.totalorder %v15615_v25, %v10425_v12  ;;  %v1850_v27 = vsub.s32 15, %v1846_v9  ;;  %v15634_v9 = vld [vmem:[#allocation52_spill] sm:$0xff] }
 0x100   :  { %7591 = vmatpush1.bf16.msk.msra.mxu0 %vm7590_vm8, %v15404_v29  ;;  %vm7592_vm0 = vmpackc.low %vm1236_vm5, %vm1232_vm4  ;;  %vm1244_vm4 = vcmp.eq.s32.totalorder %v15615_v25, %v10395_v13  ;;  %vm1238_vm5 = vcmp.eq.s32.totalorder %v15605_v26, %v10466_v53  ;;  %vm1239_vm8 = vcmp.eq.s32.totalorder %v15614_v28, %v10425_v12  ;;  %v1844_v43 = vsel %vm11322_vm1, %v15601_v54, %v1837_v19  ;;  %v15620_v19 = vld [vmem:[#allocation49_spill] sm:$0xff]  ;;  %v15621_v54 = vld [vmem:[#allocation50_spill] sm:$0xff] }
 0x101   :  { %7711 = vmatpush1.bf16.msk.msra.mxu1 %vm11237_vm12, %v15404_v29  ;;  %vm11335_vm12 = vmpackc.low %vm1230_vm6, %vm1226_vm3  ;;  %7593 = vmatprep.subr.msk.bf16.mxu0 %vm7592_vm0, %v15404_v29  ;;  %vm1252_vm0 = vcmp.eq.s32.totalorder %v15621_v54, %v10395_v13  ;;  %vm1242_vm1 = vcmp.eq.s32.totalorder %v15614_v28, %v10466_v53  ;;  %v1849_v31 = vsub.s32 15, %v1844_v43  ;;  %v1854_v43 = vsub.s32 0, %v1850_v27 }
 0x102   :  { %7713 = vmatprep.subr.msk.bf16.mxu1 %vm11272_vm14, %v15404_v29  ;;  %vm1234_vm14 = vcmp.eq.s32.totalorder %v15604_v45, %v10466_v53  ;;  %vm7594_vm3 = vmpackc.low %vm1235_vm7, %vm1231_vm10  ;;  %vm1233_vm10 = vcmp.eq.s32.totalorder %v15604_v45, %v10487_v50  ;;  %vm1237_vm7 = vcmp.eq.s32.totalorder %v15605_v26, %v10487_v50 }
 0x103   :  { %vm11357_vm6 = vmpackc.low %vm1229_vm11, %vm1225_vm9  ;;  %vm1248_vm11 = vcmp.eq.s32.totalorder %v15620_v19, %v10395_v13 }
 0x104   :  { %7595 = vmatpush1.bf16.msk.msra.mxu0 %vm7594_vm3, %v15404_v29  ;;  %vm7596_vm9 = vmpackc.low %vm1244_vm4, %vm1240_vm2  ;;  %vm11416_vm3 = vcmp.gt.s32.totalorder %v1848_v32, %v1852_v11 }
 0x105   :  { %7715 = vmatpush1.bf16.msk.msra.mxu1 %vm11302_vm15, %v15404_v29  ;;  %vm11388_vm15 = vmpackc.low %vm1238_vm5, %vm1234_vm14  ;;  %7597 = vmatprep.subr.msk.bf16.mxu0 %vm7596_vm9, %v15404_v29  ;;  %vm1247_vm14 = vcmp.eq.s32.totalorder %v15620_v19, %v10425_v12  ;;  %vm1251_vm5 = vcmp.eq.s32.totalorder %v15621_v54, %v10425_v12  ;;  %vm1260_vm9 = vcmp.eq.s32.totalorder %v10033_v20, %v10395_v13 }
 0x106   :  { %7717 = vmatprep.subr.msk.bf16.mxu1 %vm11335_vm12, %v15404_v29  ;;  %vm1246_vm12 = vcmp.eq.s32.totalorder %v15615_v25, %v10466_v53  ;;  %vm7598_vm2 = vmpackc.low %vm1243_vm13, %vm1239_vm8  ;;  %vm1241_vm8 = vcmp.eq.s32.totalorder %v15614_v28, %v10487_v50  ;;  %vm1245_vm13 = vcmp.eq.s32.totalorder %v15615_v25, %v10487_v50  ;;  %v1858_v23 = vsel %vm11416_vm3, %v1848_v32, %v1852_v11 }
 0x107   :  { %vm11407_vm4 = vmpackc.low %vm1237_vm7, %vm1233_vm10  ;;  %v1853_v25 = vsub.s32 0, %v1849_v31 }
 0x108   :  { %7599 = vmatpush1.bf16.msk.msra.mxu0 %vm7598_vm2, %v15404_v29  ;;  %vm7600_vm10 = vmpackc.low %vm1252_vm0, %vm1248_vm11  ;;  %vm1855_vm11 = vcmp.gt.s32.totalorder %v1847_v1, %v1851_v57  ;;  %vm1250_vm0 = vcmp.eq.s32.totalorder %v15620_v19, %v10466_v53  ;;  %vm1255_vm2 = vcmp.eq.s32.totalorder %v10010_v63, %v10425_v12 }
 0x109   :  { %7719 = vmatpush1.bf16.msk.msra.mxu1 %vm11357_vm6, %v15404_v29  ;;  %vm11436_vm7 = vmpackc.low %vm1246_vm12, %vm1242_vm1  ;;  %7601 = vmatprep.subr.msk.bf16.mxu0 %vm7600_vm10, %v15404_v29  ;;  %vm1256_vm6 = vcmp.eq.s32.totalorder %v10010_v63, %v10395_v13  ;;  %vm1259_vm10 = vcmp.eq.s32.totalorder %v10033_v20, %v10425_v12  ;;  %v1856_v11 = vsel %vm1855_vm11, %v1847_v1, %v1851_v57  ;;  %v1864_v1 = vsub.s32 15, %v1858_v23 }
 0x10a   :  { %7721 = vmatprep.subr.msk.bf16.mxu1 %vm11388_vm15, %v15404_v29  ;;  %vm1254_vm15 = vcmp.eq.s32.totalorder %v15621_v54, %v10466_v53  ;;  %vm7602_vm1 = vmpackc.low %vm1251_vm5, %vm1247_vm14  ;;  %vm1249_vm14 = vcmp.eq.s32.totalorder %v15620_v19, %v10487_v50  ;;  %vm1253_vm5 = vcmp.eq.s32.totalorder %v15621_v54, %v10487_v50  ;;  %v1863_v54 = vsub.s32 15, %v1856_v11 }
 0x10b   :  { %vm11460_vm12 = vmpackc.low %vm1245_vm13, %vm1241_vm8  ;;  %vm11479_vm8 = vcmp.gt.s32.totalorder %v1850_v27, %v1854_v43  ;;  %vm1264_vm13 = vcmp.eq.s32.totalorder %v15634_v9, %v10395_v13 }
 0x10c   :  { %7603 = vmatpush1.bf16.msk.msra.mxu0 %vm7602_vm1, %v15404_v29  ;;  %vm7604_vm3 = vmpackc.low %vm1260_vm9, %vm1256_vm6  ;;  %vm1268_vm6 = vcmp.eq.s32.totalorder %v10108_v22, %v10395_v13  ;;  %vm1262_vm9 = vcmp.eq.s32.totalorder %v10033_v20, %v10466_v53  ;;  %vm1263_vm1 = vcmp.eq.s32.totalorder %v15634_v9, %v10425_v12  ;;  %v1862_v23 = vsel %vm11479_vm8, %v1850_v27, %v1854_v43 }
 0x10d   :  { %7723 = vmatpush1.bf16.msk.msra.mxu1 %vm11407_vm4, %v15404_v29  ;;  %vm11492_vm4 = vmpackc.low %vm1254_vm15, %vm1250_vm0  ;;  %7605 = vmatprep.subr.msk.bf16.mxu0 %vm7604_vm3, %v15404_v29  ;;  %vm11511_vm0 = vcmp.gt.s32.totalorder %v1849_v31, %v1853_v25  ;;  %vm1267_vm3 = vcmp.eq.s32.totalorder %v10108_v22, %v10425_v12  ;;  %vm1276_vm8 = vcmp.eq.s32.totalorder %v10176_v24, %v10395_v13  ;;  %v1868_v27 = vmul.u32 16, %v1864_v1 }
 0x10e   :  { %7725 = vmatprep.subr.msk.bf16.mxu1 %vm11436_vm7, %v15404_v29  ;;  %vm1258_vm7 = vcmp.eq.s32.totalorder %v10010_v63, %v10466_v53  ;;  %vm7606_vm11 = vmpackc.low %vm1259_vm10, %vm1255_vm2  ;;  %vm1257_vm2 = vcmp.eq.s32.totalorder %v10010_v63, %v10487_v50  ;;  %vm1261_vm10 = vcmp.eq.s32.totalorder %v10033_v20, %v10487_v50  ;;  %v1860_v43 = vsel %vm11511_vm0, %v1849_v31, %v1853_v25 }
 0x10f   :  { %vm11518_vm15 = vmpackc.low %vm1253_vm5, %vm1249_vm14  ;;  %vm1272_vm5 = vcmp.eq.s32.totalorder %v10155_v14, %v10395_v13  ;;  %v1866_v32 = vsub.s32 15, %v1862_v23  ;;  %v1867_v25 = vmul.u32 16, %v1863_v54  ;;  %vm1265_vm0 = vcmp.eq.s32.totalorder %v15634_v9, %v10487_v50  ;;  %v15648_v23 = vld [vmem:[#allocation8_spill] sm:$0xff] }
 0x110   :  { %7607 = vmatpush1.bf16.msk.msra.mxu0 %vm7606_vm11, %v15404_v29  ;;  %vm7608_vm14 = vmpackc.low %vm1268_vm6, %vm1264_vm13  ;;  %vm1270_vm13 = vcmp.eq.s32.totalorder %v10108_v22, %v10466_v53  ;;  %vm1275_vm11 = vcmp.eq.s32.totalorder %v10176_v24, %v10425_v12  ;;  %v1865_v31 = vsub.s32 15, %v1860_v43  ;;  %v11607_v1 = vadd.s32 %v1868_v27, %v15645_v47  ;;  %v15737_v47 = vld [vmem:[#allocation30_spill] sm:$0xff] }
 0x111   :  { %7727 = vmatpush1.bf16.msk.msra.mxu1 %vm11460_vm12, %v15404_v29  ;;  %vm11548_vm12 = vmpackc.low %vm1262_vm9, %vm1258_vm7  ;;  %7609 = vmatprep.subr.msk.bf16.mxu0 %vm7608_vm14, %v15404_v29  ;;  %vm1271_vm9 = vcmp.eq.s32.totalorder %v10155_v14, %v10425_v12  ;;  %vm1274_vm14 = vcmp.eq.s32.totalorder %v10155_v14, %v10466_v53  ;;  %v1870_v57 = vmul.u32 16, %v1866_v32  ;;  %v11629_v26 = vadd.s32 %v1867_v25, %v15648_v23  ;;  %v15651_v32 = vld [vmem:[#allocation18_spill] sm:$0xff]  ;;  %v15656_v23 = vld [vmem:[#allocation21_spill] sm:$0xff] }
 0x112   :  { %7729 = vmatprep.subr.msk.bf16.mxu1 %vm11492_vm4, %v15404_v29  ;;  %vm1266_vm4 = vcmp.eq.s32.totalorder %v15634_v9, %v10466_v53  ;;  %vm7610_vm6 = vmpackc.low %vm1267_vm3, %vm1263_vm1  ;;  %vm1269_vm1 = vcmp.eq.s32.totalorder %v10108_v22, %v10487_v50  ;;  %v1869_v27 = vmul.u32 16, %v1865_v31  ;;  %v15652_v11 = vsub.s32 15, %v15651_v32  ;;  %v15653_v31 = vld [vmem:[#allocation15_spill] sm:$0xff] }
 0x113   :  { %vm11569_vm7 = vmpackc.low %vm1261_vm10, %vm1257_vm2  ;;  %vm1280_vm2 = vcmp.eq.s32.totalorder %v10241_v42, %v10395_v13  ;;  %vm1284_vm10 = vcmp.eq.s32.totalorder %v10244_v60, %v10395_v13  ;;  %v11672_v54 = vadd.s32 %v1870_v57, %v15653_v31  ;;  %v15657_v32 = vsub.s32 15, %v15656_v23  ;;  %v15658_v57 = vld [vmem:[#allocation19_spill] sm:$0xff]  ;;  %v8778_v23 = vld [vmem:[%s15108_s0] sm:$0xff] }
 0x114   :  { %7611 = vmatpush1.bf16.msk.msra.mxu0 %vm7610_vm6, %v15404_v29  ;;  %vm7612_vm3 = vmpackc.low %vm1276_vm8, %vm1272_vm5  ;;  %vm1273_vm6 = vcmp.eq.s32.totalorder %v10155_v14, %v10487_v50  ;;  %v11659_v25 = vadd.s32 %v11607_v1, %v15652_v11  ;;  %v11699_v31 = vadd.s32 %v1869_v27, %v15658_v57  ;;  %v15762_v57 = vld [vmem:[#allocation38_spill] sm:$0xff] }
 0x115   :  { %7731 = vmatpush1.bf16.msk.msra.mxu1 %vm11518_vm15, %v15404_v29  ;;  %vm11597_vm15 = vmpackc.low %vm1270_vm13, %vm1266_vm4  ;;  %7613 = vmatprep.subr.msk.bf16.mxu0 %vm7612_vm3, %v15404_v29  ;;  %vm1279_vm4 = vcmp.eq.s32.totalorder %v10241_v42, %v10425_v12  ;;  %vm1283_vm13 = vcmp.eq.s32.totalorder %v10244_v60, %v10425_v12  ;;  %vm1282_vm3 = vcmp.eq.s32.totalorder %v10241_v42, %v10466_v53 }
 0x116   :  { %7733 = vmatprep.subr.msk.bf16.mxu1 %vm11548_vm12, %v15404_v29  ;;  %vm1278_vm12 = vcmp.eq.s32.totalorder %v10176_v24, %v10466_v53  ;;  %vm7614_vm5 = vmpackc.low %vm1275_vm11, %vm1271_vm9  ;;  %vm1277_vm9 = vcmp.eq.s32.totalorder %v10176_v24, %v10487_v50  ;;  %v11686_v11 = vadd.s32 %v11629_v26, %v15657_v32 }
 0x117   :  { %vm11619_vm8 = vmpackc.low %vm1269_vm1, %vm1265_vm0  ;;  %vm1292_vm1 = vcmp.eq.s32.totalorder %v10323_v7, %v10395_v13 }
 0x118   :  { %7615 = vmatpush1.bf16.msk.msra.mxu0 %vm7614_vm5, %v15404_v29  ;;  %vm7616_vm11 = vmpackc.low %vm1284_vm10, %vm1280_vm2  ;;  %vm1281_vm5 = vcmp.eq.s32.totalorder %v10241_v42, %v10487_v50 }
 0x119   :  { %7735 = vmatpush1.bf16.msk.msra.mxu1 %vm11569_vm7, %v15404_v29  ;;  %vm11647_vm0 = vmpackc.low %vm1278_vm12, %vm1274_vm14  ;;  %7617 = vmatprep.subr.msk.bf16.mxu0 %vm7616_vm11, %v15404_v29  ;;  %vm1288_vm7 = vcmp.eq.s32.totalorder %v10294_v33, %v10395_v13  ;;  %vm1287_vm14 = vcmp.eq.s32.totalorder %v10294_v33, %v10425_v12  ;;  %vm1291_vm12 = vcmp.eq.s32.totalorder %v10323_v7, %v10425_v12  ;;  %v15661_v13 = vld [vmem:[#allocation20_spill] sm:$0xff]  ;;  %v15665_v12 = vld [vmem:[#allocation22_spill] sm:$0xff] }
 0x11a   :  { %7737 = vmatprep.subr.msk.bf16.mxu1 %vm11597_vm15, %v15404_v29  ;;  %vm1286_vm15 = vcmp.eq.s32.totalorder %v10244_v60, %v10466_v53  ;;  %vm7618_vm2 = vmpackc.low %vm1283_vm13, %vm1279_vm4  ;;  %vm1285_vm4 = vcmp.eq.s32.totalorder %v10244_v60, %v10487_v50  ;;  %vm1290_vm11 = vcmp.eq.s32.totalorder %v10294_v33, %v10466_v53  ;;  %v15662_v27 = vsub.s32 15, %v15661_v13  ;;  %v15726_v13 = vld [vmem:[#allocation27_spill] sm:$0xff] }
 0x11b   :  { %vm11674_vm10 = vmpackc.low %vm1277_vm9, %vm1273_vm6  ;;  %vm1880_vm6 = vcmp.eq.s32.totalorder %v8831_v3, %v11659_v25  ;;  %vm1884_vm9 = vcmp.eq.s32.totalorder %v8843_v8, %v11659_v25 }
 0x11c   :  { %7619 = vmatpush1.bf16.msk.msra.mxu0 %vm7618_vm2, %v15404_v29  ;;  %vm7620_vm13 = vmpackc.low %vm1292_vm1, %vm1288_vm7  ;;  %v11726_v43 = vadd.s32 %v11672_v54, %v15662_v27  ;;  %vm1289_vm2 = vcmp.eq.s32.totalorder %v10294_v33, %v10487_v50  ;;  %v15738_v27 = vld [vmem:[#allocation31_spill] sm:$0xff] }
 0x11d   :  { %7739 = vmatpush1.bf16.msk.msra.mxu1 %vm11619_vm8, %v15404_v29  ;;  %vm11707_vm8 = vmpackc.low %vm1286_vm15, %vm1282_vm3  ;;  %7621 = vmatprep.subr.msk.bf16.mxu0 %vm7620_vm13, %v15404_v29  ;;  %vm1879_vm3 = vcmp.eq.s32.totalorder %v8831_v3, %v11686_v11  ;;  %vm1883_vm15 = vcmp.eq.s32.totalorder %v8843_v8, %v11686_v11 }
 0x11e   :  { %7741 = vmatprep.subr.msk.bf16.mxu1 %vm11647_vm0, %v15404_v29  ;;  %vm1294_vm0 = vcmp.eq.s32.totalorder %v10323_v7, %v10466_v53  ;;  %vm7622_vm7 = vmpackc.low %vm1291_vm12, %vm1287_vm14  ;;  %vm1293_vm14 = vcmp.eq.s32.totalorder %v10323_v7, %v10487_v50  ;;  %v15666_v53 = vsub.s32 15, %v15665_v12  ;;  %v8777_v50 = vld [vmem:[%s15108_s0 + $0x8] sm:$0xff]  ;;  %vm1882_vm13 = vcmp.eq.s32.totalorder %v8831_v3, %v11726_v43  ;;  %v15731_v12 = vld [vmem:[#allocation28_spill] sm:$0xff] }
 0x11f   :  { %vm11728_vm1 = vmpackc.low %vm1285_vm4, %vm1281_vm5  ;;  %vm1892_vm4 = vcmp.eq.s32.totalorder %v8931_v52, %v11659_v25 }
 0x120   :  { %7623 = vmatpush1.bf16.msk.msra.mxu0 %vm7622_vm7, %v15404_v29  ;;  %vm7752_vm12 = vmpackc.low %vm1884_vm9, %vm1880_vm6  ;;  %v11747_v32 = vadd.s32 %v11699_v31, %v15666_v53  ;;  %v15732_v53 = vld [vmem:[#allocation29_spill] sm:$0xff] }
 0x121   :  { %7743 = vmatpush1.bf16.msk.msra.mxu1 %vm11674_vm10, %v15404_v29  ;;  %vm11752_vm5 = vmpackc.low %vm1294_vm0, %vm1290_vm11  ;;  %7753 = vmatprep.subr.msk.bf16.mxu0 %vm7752_vm12, %v15404_v29  ;;  %vm1888_vm10 = vcmp.eq.s32.totalorder %v8859_v18, %v11659_v25  ;;  %vm1887_vm11 = vcmp.eq.s32.totalorder %v8859_v18, %v11686_v11  ;;  %vm1891_vm0 = vcmp.eq.s32.totalorder %v8931_v52, %v11686_v11 }
 0x122   :  { %7745 = vmatprep.subr.msk.bf16.mxu1 %vm11707_vm8, %v15404_v29  ;;  %vm1886_vm8 = vcmp.eq.s32.totalorder %v8843_v8, %v11726_v43  ;;  %vm7754_vm6 = vmpackc.low %vm1883_vm15, %vm1879_vm3  ;;  %vm1881_vm7 = vcmp.eq.s32.totalorder %v8831_v3, %v11747_v32  ;;  %vm1885_vm3 = vcmp.eq.s32.totalorder %v8843_v8, %v11747_v32  ;;  %vm1890_vm12 = vcmp.eq.s32.totalorder %v8859_v18, %v11726_v43 }
 0x123   :  { %1687 = vmatmul.mubr.f32.vlgmr.msra.gmra.mrb[2].mxu0 %v8777_v50  ;;  %vm11774_vm9 = vmpackc.low %vm1293_vm14, %vm1289_vm2  ;;  %vm1900_vm14 = vcmp.eq.s32.totalorder %v8952_v61, %v11659_v25 }
 0x124   :  { %7755 = vmatpush1.bf16.msk.msra.mxu0 %vm7754_vm6, %v15404_v29  ;;  %2455 = vmatprep.mubr.f32.mxu0 %v8835_v4  ;;  %vm7756_vm15 = vmpackc.low %vm1892_vm4, %vm1888_vm10  ;;  %vm1894_vm10 = vcmp.eq.s32.totalorder %v8931_v52, %v11726_v43  ;;  %vm1889_vm6 = vcmp.eq.s32.totalorder %v8859_v18, %v11747_v32 }
 0x125   :  { %7747 = vmatpush1.bf16.msk.msra.mxu1 %vm11728_vm1, %v15404_v29  ;;  %vm11797_vm2 = vmpackc.low %vm1886_vm8, %vm1882_vm13  ;;  %7757 = vmatprep.subr.msk.bf16.mxu0 %vm7756_vm15, %v15404_v29  ;;  %vm1896_vm1 = vcmp.eq.s32.totalorder %v8944_v56, %v11659_v25  ;;  %vm1895_vm13 = vcmp.eq.s32.totalorder %v8944_v56, %v11686_v11  ;;  %vm1899_vm8 = vcmp.eq.s32.totalorder %v8952_v61, %v11686_v11 }
 0x126   :  { %7749 = vmatprep.subr.msk.bf16.mxu1 %vm11752_vm5, %v15404_v29  ;;  %vm7758_vm4 = vmpackc.low %vm1891_vm0, %vm1887_vm11  ;;  %vm1893_vm11 = vcmp.eq.s32.totalorder %v8931_v52, %v11747_v32  ;;  %vm1898_vm15 = vcmp.eq.s32.totalorder %v8944_v56, %v11726_v43 }
 0x127   :  { %vm11810_vm5 = vmpackc.low %vm1885_vm3, %vm1881_vm7  ;;  %vm1908_vm3 = vcmp.eq.s32.totalorder %v8981_v10, %v11659_v25 }
 0x128   :  { %7759 = vmatpush1.bf16.msk.msra.mxu0 %vm7758_vm4, %v15404_v29  ;;  %vm7760_vm0 = vmpackc.low %vm1900_vm14, %vm1896_vm1  ;;  %vm1902_vm1 = vcmp.eq.s32.totalorder %v8952_v61, %v11726_v43  ;;  %vm1897_vm4 = vcmp.eq.s32.totalorder %v8944_v56, %v11747_v32 }
 0x129   :  { %7751 = vmatpush1.bf16.msk.msra.mxu1 %vm11774_vm9, %v15404_v29  ;;  %vm11829_vm7 = vmpackc.low %vm1894_vm10, %vm1890_vm12  ;;  %7761 = vmatprep.subr.msk.bf16.mxu0 %vm7760_vm0, %v15404_v29  ;;  %vm1904_vm9 = vcmp.eq.s32.totalorder %v8972_v5, %v11659_v25  ;;  %vm1903_vm12 = vcmp.eq.s32.totalorder %v8972_v5, %v11686_v11  ;;  %vm1907_vm10 = vcmp.eq.s32.totalorder %v8981_v10, %v11686_v11 }
 0x12a   :  { %7881 = vmatprep.subr.msk.bf16.mxu1 %vm11797_vm2, %v15404_v29  ;;  %vm7762_vm14 = vmpackc.low %vm1899_vm8, %vm1895_vm13  ;;  %vm1901_vm13 = vcmp.eq.s32.totalorder %v8952_v61, %v11747_v32  ;;  %vm1906_vm0 = vcmp.eq.s32.totalorder %v8972_v5, %v11726_v43 }
 0x12b   :  { %vm11842_vm2 = vmpackc.low %vm1893_vm11, %vm1889_vm6  ;;  %vm1916_vm11 = vcmp.eq.s32.totalorder %v9024_v36, %v11659_v25 }
 0x12c   :  { %1829 = vmatmul.mubr.f32.vlgmr.msra.gmra.mrb[2].mxu1 %v8777_v50  ;;  %7763 = vmatpush1.bf16.msk.msra.mxu0 %vm7762_vm14, %v15404_v29  ;;  %vm7764_vm8 = vmpackc.low %vm1908_vm3, %vm1904_vm9  ;;  %vm1910_vm9 = vcmp.eq.s32.totalorder %v8981_v10, %v11726_v43  ;;  %vm1905_vm14 = vcmp.eq.s32.totalorder %v8972_v5, %v11747_v32  ;;  %v15756_v50 = vld [vmem:[#allocation36_spill] sm:$0xff] }
 0x12d   :  { %7883 = vmatpush1.bf16.msk.msra.mxu1 %vm11810_vm5, %v15404_v29  ;;  %2597 = vmatprep.mubr.f32.mxu1 %v8835_v4  ;;  %vm11862_vm6 = vmpackc.low %vm1902_vm1, %vm1898_vm15  ;;  %vm1912_vm5 = vcmp.eq.s32.totalorder %v9021_v35, %v11659_v25  ;;  %vm1911_vm15 = vcmp.eq.s32.totalorder %v9021_v35, %v11686_v11  ;;  %vm1915_vm1 = vcmp.eq.s32.totalorder %v9024_v36, %v11686_v11 }
 0x12e   :  { %7885 = vmatprep.subr.msk.bf16.mxu1 %vm11829_vm7, %v15404_v29  ;;  %7765 = vmatprep.subr.msk.bf16.mxu0 %vm7764_vm8, %v15404_v29  ;;  %vm7766_vm3 = vmpackc.low %vm1907_vm10, %vm1903_vm12  ;;  %vm1909_vm12 = vcmp.eq.s32.totalorder %v8981_v10, %v11747_v32  ;;  %vm1914_vm8 = vcmp.eq.s32.totalorder %v9021_v35, %v11726_v43 }
 0x12f   :  { %vm11875_vm7 = vmpackc.low %vm1901_vm13, %vm1897_vm4  ;;  %vm1924_vm13 = vcmp.eq.s32.totalorder %v9061_v30, %v11659_v25 }
 0x130   :  { %7767 = vmatpush1.bf16.msk.msra.mxu0 %vm7766_vm3, %v15404_v29  ;;  %vm7768_vm10 = vmpackc.low %vm1916_vm11, %vm1912_vm5  ;;  %vm1918_vm5 = vcmp.eq.s32.totalorder %v9024_v36, %v11726_v43  ;;  %vm1913_vm3 = vcmp.eq.s32.totalorder %v9021_v35, %v11747_v32 }
 0x131   :  { %7887 = vmatpush1.bf16.msk.msra.mxu1 %vm11842_vm2, %v15404_v29  ;;  %vm11894_vm4 = vmpackc.low %vm1910_vm9, %vm1906_vm0  ;;  %7769 = vmatprep.subr.msk.bf16.mxu0 %vm7768_vm10, %v15404_v29  ;;  %vm1920_vm2 = vcmp.eq.s32.totalorder %v9058_v39, %v11659_v25  ;;  %vm1919_vm0 = vcmp.eq.s32.totalorder %v9058_v39, %v11686_v11  ;;  %vm1923_vm9 = vcmp.eq.s32.totalorder %v9061_v30, %v11686_v11 }
 0x132   :  { %7889 = vmatprep.subr.msk.bf16.mxu1 %vm11862_vm6, %v15404_v29  ;;  %vm7770_vm11 = vmpackc.low %vm1915_vm1, %vm1911_vm15  ;;  %vm1917_vm15 = vcmp.eq.s32.totalorder %v9024_v36, %v11747_v32  ;;  %vm1922_vm10 = vcmp.eq.s32.totalorder %v9058_v39, %v11726_v43 }
 0x133   :  { %vm11907_vm6 = vmpackc.low %vm1909_vm12, %vm1905_vm14  ;;  %vm1932_vm12 = vcmp.eq.s32.totalorder %v9096_v49, %v11659_v25 }
 0x134   :  { %7771 = vmatpush1.bf16.msk.msra.mxu0 %vm7770_vm11, %v15404_v29  ;;  %vm7772_vm1 = vmpackc.low %vm1924_vm13, %vm1920_vm2  ;;  %vm1926_vm2 = vcmp.eq.s32.totalorder %v9061_v30, %v11726_v43  ;;  %vm1921_vm11 = vcmp.eq.s32.totalorder %v9058_v39, %v11747_v32 }
 0x135   :  { %7891 = vmatpush1.bf16.msk.msra.mxu1 %vm11875_vm7, %v15404_v29  ;;  %vm11926_vm14 = vmpackc.low %vm1918_vm5, %vm1914_vm8  ;;  %7773 = vmatprep.subr.msk.bf16.mxu0 %vm7772_vm1, %v15404_v29  ;;  %vm1928_vm7 = vcmp.eq.s32.totalorder %v9093_v44, %v11659_v25  ;;  %vm1927_vm8 = vcmp.eq.s32.totalorder %v9093_v44, %v11686_v11  ;;  %vm1931_vm5 = vcmp.eq.s32.totalorder %v9096_v49, %v11686_v11 }
 0x136   :  { %7893 = vmatprep.subr.msk.bf16.mxu1 %vm11894_vm4, %v15404_v29  ;;  %vm7774_vm13 = vmpackc.low %vm1923_vm9, %vm1919_vm0  ;;  %vm1925_vm0 = vcmp.eq.s32.totalorder %v9061_v30, %v11747_v32  ;;  %vm1930_vm1 = vcmp.eq.s32.totalorder %v9093_v44, %v11726_v43 }
 0x137   :  { %vm11939_vm4 = vmpackc.low %vm1917_vm15, %vm1913_vm3  ;;  %vm1940_vm15 = vcmp.eq.s32.totalorder %v9135_v59, %v11659_v25 }
 0x138   :  { %7775 = vmatpush1.bf16.msk.msra.mxu0 %vm7774_vm13, %v15404_v29  ;;  %vm7776_vm9 = vmpackc.low %vm1932_vm12, %vm1928_vm7  ;;  %vm1934_vm7 = vcmp.eq.s32.totalorder %v9096_v49, %v11726_v43  ;;  %vm1929_vm13 = vcmp.eq.s32.totalorder %v9093_v44, %v11747_v32 }
 0x139   :  { %7895 = vmatpush1.bf16.msk.msra.mxu1 %vm11907_vm6, %v15404_v29  ;;  %vm11958_vm3 = vmpackc.low %vm1926_vm2, %vm1922_vm10  ;;  %7777 = vmatprep.subr.msk.bf16.mxu0 %vm7776_vm9, %v15404_v29  ;;  %vm1936_vm6 = vcmp.eq.s32.totalorder %v9132_v58, %v11659_v25  ;;  %vm1935_vm10 = vcmp.eq.s32.totalorder %v9132_v58, %v11686_v11  ;;  %vm1939_vm2 = vcmp.eq.s32.totalorder %v9135_v59, %v11686_v11 }
 0x13a   :  { %7897 = vmatprep.subr.msk.bf16.mxu1 %vm11926_vm14, %v15404_v29  ;;  %vm7778_vm12 = vmpackc.low %vm1931_vm5, %vm1927_vm8  ;;  %vm1933_vm8 = vcmp.eq.s32.totalorder %v9096_v49, %v11747_v32  ;;  %vm1938_vm9 = vcmp.eq.s32.totalorder %v9132_v58, %v11726_v43 }
 0x13b   :  { %vm11971_vm14 = vmpackc.low %vm1925_vm0, %vm1921_vm11  ;;  %vm1948_vm0 = vcmp.eq.s32.totalorder %v9176_v15, %v11659_v25 }
 0x13c   :  { %7779 = vmatpush1.bf16.msk.msra.mxu0 %vm7778_vm12, %v15404_v29  ;;  %vm7780_vm5 = vmpackc.low %vm1940_vm15, %vm1936_vm6  ;;  %vm1942_vm6 = vcmp.eq.s32.totalorder %v9135_v59, %v11726_v43  ;;  %vm1937_vm12 = vcmp.eq.s32.totalorder %v9132_v58, %v11747_v32 }
 0x13d   :  { %7899 = vmatpush1.bf16.msk.msra.mxu1 %vm11939_vm4, %v15404_v29  ;;  %vm11990_vm11 = vmpackc.low %vm1934_vm7, %vm1930_vm1  ;;  %7781 = vmatprep.subr.msk.bf16.mxu0 %vm7780_vm5, %v15404_v29  ;;  %vm1944_vm4 = vcmp.eq.s32.totalorder %v9173_v6, %v11659_v25  ;;  %vm1943_vm1 = vcmp.eq.s32.totalorder %v9173_v6, %v11686_v11  ;;  %vm1947_vm7 = vcmp.eq.s32.totalorder %v9176_v15, %v11686_v11 }
 0x13e   :  { %7901 = vmatprep.subr.msk.bf16.mxu1 %vm11958_vm3, %v15404_v29  ;;  %vm7782_vm15 = vmpackc.low %vm1939_vm2, %vm1935_vm10  ;;  %vm1941_vm10 = vcmp.eq.s32.totalorder %v9135_v59, %v11747_v32  ;;  %vm1946_vm5 = vcmp.eq.s32.totalorder %v9173_v6, %v11726_v43 }
 0x13f   :  { %vm12003_vm3 = vmpackc.low %vm1933_vm8, %vm1929_vm13  ;;  %vm1956_vm8 = vcmp.eq.s32.totalorder %v9217_v55, %v11659_v25 }
 0x140   :  { %7783 = vmatpush1.bf16.msk.msra.mxu0 %vm7782_vm15, %v15404_v29  ;;  %vm7784_vm2 = vmpackc.low %vm1948_vm0, %vm1944_vm4  ;;  %vm1950_vm4 = vcmp.eq.s32.totalorder %v9176_v15, %v11726_v43  ;;  %vm1945_vm15 = vcmp.eq.s32.totalorder %v9173_v6, %v11747_v32 }
 0x141   :  { %7903 = vmatpush1.bf16.msk.msra.mxu1 %vm11971_vm14, %v15404_v29  ;;  %vm12022_vm13 = vmpackc.low %vm1942_vm6, %vm1938_vm9  ;;  %7785 = vmatprep.subr.msk.bf16.mxu0 %vm7784_vm2, %v15404_v29  ;;  %vm1952_vm14 = vcmp.eq.s32.totalorder %v9214_v51, %v11659_v25  ;;  %vm1951_vm9 = vcmp.eq.s32.totalorder %v9214_v51, %v11686_v11  ;;  %vm1955_vm6 = vcmp.eq.s32.totalorder %v9217_v55, %v11686_v11 }
 0x142   :  { %7905 = vmatprep.subr.msk.bf16.mxu1 %vm11990_vm11, %v15404_v29  ;;  %vm7786_vm0 = vmpackc.low %vm1947_vm7, %vm1943_vm1  ;;  %vm1949_vm1 = vcmp.eq.s32.totalorder %v9176_v15, %v11747_v32  ;;  %vm1954_vm2 = vcmp.eq.s32.totalorder %v9214_v51, %v11726_v43 }
 0x143   :  { %vm12035_vm11 = vmpackc.low %vm1941_vm10, %vm1937_vm12  ;;  %vm1964_vm10 = vcmp.eq.s32.totalorder %v9258_v21, %v11659_v25 }
 0x144   :  { %7787 = vmatpush1.bf16.msk.msra.mxu0 %vm7786_vm0, %v15404_v29  ;;  %vm7788_vm7 = vmpackc.low %vm1956_vm8, %vm1952_vm14  ;;  %vm1958_vm14 = vcmp.eq.s32.totalorder %v9217_v55, %v11726_v43  ;;  %vm1953_vm0 = vcmp.eq.s32.totalorder %v9214_v51, %v11747_v32 }
 0x145   :  { %7907 = vmatpush1.bf16.msk.msra.mxu1 %vm12003_vm3, %v15404_v29  ;;  %vm12054_vm12 = vmpackc.low %vm1950_vm4, %vm1946_vm5  ;;  %7789 = vmatprep.subr.msk.bf16.mxu0 %vm7788_vm7, %v15404_v29  ;;  %vm1960_vm3 = vcmp.eq.s32.totalorder %v9255_v38, %v11659_v25  ;;  %vm1959_vm5 = vcmp.eq.s32.totalorder %v9255_v38, %v11686_v11  ;;  %vm1963_vm4 = vcmp.eq.s32.totalorder %v9258_v21, %v11686_v11 }
 0x146   :  { %7909 = vmatprep.subr.msk.bf16.mxu1 %vm12022_vm13, %v15404_v29  ;;  %vm7790_vm8 = vmpackc.low %vm1955_vm6, %vm1951_vm9  ;;  %vm1957_vm9 = vcmp.eq.s32.totalorder %v9217_v55, %v11747_v32  ;;  %vm1962_vm7 = vcmp.eq.s32.totalorder %v9255_v38, %v11726_v43 }
 0x147   :  { %vm12067_vm13 = vmpackc.low %vm1949_vm1, %vm1945_vm15  ;;  %vm1972_vm1 = vcmp.eq.s32.totalorder %v9299_v48, %v11659_v25 }
 0x148   :  { %7791 = vmatpush1.bf16.msk.msra.mxu0 %vm7790_vm8, %v15404_v29  ;;  %vm7792_vm6 = vmpackc.low %vm1964_vm10, %vm1960_vm3  ;;  %vm1966_vm3 = vcmp.eq.s32.totalorder %v9258_v21, %v11726_v43  ;;  %vm1961_vm8 = vcmp.eq.s32.totalorder %v9255_v38, %v11747_v32 }
 0x149   :  { %7911 = vmatpush1.bf16.msk.msra.mxu1 %vm12035_vm11, %v15404_v29  ;;  %vm12086_vm15 = vmpackc.low %vm1958_vm14, %vm1954_vm2  ;;  %7793 = vmatprep.subr.msk.bf16.mxu0 %vm7792_vm6, %v15404_v29  ;;  %vm1968_vm11 = vcmp.eq.s32.totalorder %v9296_v62, %v11659_v25  ;;  %vm1967_vm2 = vcmp.eq.s32.totalorder %v9296_v62, %v11686_v11  ;;  %vm1971_vm14 = vcmp.eq.s32.totalorder %v9299_v48, %v11686_v11 }
 0x14a   :  { %7913 = vmatprep.subr.msk.bf16.mxu1 %vm12054_vm12, %v15404_v29  ;;  %vm7794_vm10 = vmpackc.low %vm1963_vm4, %vm1959_vm5  ;;  %vm1965_vm5 = vcmp.eq.s32.totalorder %v9258_v21, %v11747_v32  ;;  %vm1970_vm6 = vcmp.eq.s32.totalorder %v9296_v62, %v11726_v43 }
 0x14b   :  { %vm12099_vm12 = vmpackc.low %vm1957_vm9, %vm1953_vm0  ;;  %vm1980_vm9 = vcmp.eq.s32.totalorder %v9340_v2, %v11659_v25 }
 0x14c   :  { %7795 = vmatpush1.bf16.msk.msra.mxu0 %vm7794_vm10, %v15404_v29  ;;  %vm7796_vm4 = vmpackc.low %vm1972_vm1, %vm1968_vm11  ;;  %vm1974_vm11 = vcmp.eq.s32.totalorder %v9299_v48, %v11726_v43  ;;  %vm1969_vm10 = vcmp.eq.s32.totalorder %v9296_v62, %v11747_v32 }
 0x14d   :  { %7915 = vmatpush1.bf16.msk.msra.mxu1 %vm12067_vm13, %v15404_v29  ;;  %vm12118_vm0 = vmpackc.low %vm1966_vm3, %vm1962_vm7  ;;  %7797 = vmatprep.subr.msk.bf16.mxu0 %vm7796_vm4, %v15404_v29  ;;  %vm1976_vm13 = vcmp.eq.s32.totalorder %v9337_v41, %v11659_v25  ;;  %vm1975_vm7 = vcmp.eq.s32.totalorder %v9337_v41, %v11686_v11  ;;  %vm1979_vm3 = vcmp.eq.s32.totalorder %v9340_v2, %v11686_v11 }
 0x14e   :  { %7917 = vmatprep.subr.msk.bf16.mxu1 %vm12086_vm15, %v15404_v29  ;;  %vm7798_vm1 = vmpackc.low %vm1971_vm14, %vm1967_vm2  ;;  %vm1973_vm2 = vcmp.eq.s32.totalorder %v9299_v48, %v11747_v32  ;;  %vm1978_vm4 = vcmp.eq.s32.totalorder %v9337_v41, %v11726_v43 }
 0x14f   :  { %vm12131_vm15 = vmpackc.low %vm1965_vm5, %vm1961_vm8  ;;  %vm1988_vm5 = vcmp.eq.s32.totalorder %v9381_v34, %v11659_v25 }
 0x150   :  { %7799 = vmatpush1.bf16.msk.msra.mxu0 %vm7798_vm1, %v15404_v29  ;;  %vm7800_vm14 = vmpackc.low %vm1980_vm9, %vm1976_vm13  ;;  %vm1982_vm13 = vcmp.eq.s32.totalorder %v9340_v2, %v11726_v43  ;;  %vm1977_vm1 = vcmp.eq.s32.totalorder %v9337_v41, %v11747_v32 }
 0x151   :  { %7919 = vmatpush1.bf16.msk.msra.mxu1 %vm12099_vm12, %v15404_v29  ;;  %vm12150_vm8 = vmpackc.low %vm1974_vm11, %vm1970_vm6  ;;  %7801 = vmatprep.subr.msk.bf16.mxu0 %vm7800_vm14, %v15404_v29  ;;  %vm1984_vm12 = vcmp.eq.s32.totalorder %v9378_v0, %v11659_v25  ;;  %vm1983_vm6 = vcmp.eq.s32.totalorder %v9378_v0, %v11686_v11  ;;  %vm1987_vm11 = vcmp.eq.s32.totalorder %v9381_v34, %v11686_v11 }
 0x152   :  { %7921 = vmatprep.subr.msk.bf16.mxu1 %vm12118_vm0, %v15404_v29  ;;  %vm7802_vm9 = vmpackc.low %vm1979_vm3, %vm1975_vm7  ;;  %vm1981_vm7 = vcmp.eq.s32.totalorder %v9340_v2, %v11747_v32  ;;  %vm1986_vm14 = vcmp.eq.s32.totalorder %v9378_v0, %v11726_v43 }
 0x153   :  { %vm12163_vm0 = vmpackc.low %vm1973_vm2, %vm1969_vm10  ;;  %vm1996_vm2 = vcmp.eq.s32.totalorder %v9422_v17, %v11659_v25 }
 0x154   :  { %7803 = vmatpush1.bf16.msk.msra.mxu0 %vm7802_vm9, %v15404_v29  ;;  %vm7804_vm3 = vmpackc.low %vm1988_vm5, %vm1984_vm12  ;;  %vm1990_vm12 = vcmp.eq.s32.totalorder %v9381_v34, %v11726_v43  ;;  %vm1985_vm9 = vcmp.eq.s32.totalorder %v9378_v0, %v11747_v32 }
 0x155   :  { %7923 = vmatpush1.bf16.msk.msra.mxu1 %vm12131_vm15, %v15404_v29  ;;  %vm12182_vm10 = vmpackc.low %vm1982_vm13, %vm1978_vm4  ;;  %7805 = vmatprep.subr.msk.bf16.mxu0 %vm7804_vm3, %v15404_v29  ;;  %vm1992_vm15 = vcmp.eq.s32.totalorder %v9419_v40, %v11659_v25  ;;  %vm1991_vm4 = vcmp.eq.s32.totalorder %v9419_v40, %v11686_v11  ;;  %vm1995_vm13 = vcmp.eq.s32.totalorder %v9422_v17, %v11686_v11 }
 0x156   :  { %7925 = vmatprep.subr.msk.bf16.mxu1 %vm12150_vm8, %v15404_v29  ;;  %vm7806_vm5 = vmpackc.low %vm1987_vm11, %vm1983_vm6  ;;  %vm1989_vm6 = vcmp.eq.s32.totalorder %v9381_v34, %v11747_v32  ;;  %vm1994_vm3 = vcmp.eq.s32.totalorder %v9419_v40, %v11726_v43 }
 0x157   :  { %vm12195_vm8 = vmpackc.low %vm1981_vm7, %vm1977_vm1  ;;  %vm2004_vm7 = vcmp.eq.s32.totalorder %v15726_v13, %v11659_v25 }
 0x158   :  { %7807 = vmatpush1.bf16.msk.msra.mxu0 %vm7806_vm5, %v15404_v29  ;;  %vm7808_vm11 = vmpackc.low %vm1996_vm2, %vm1992_vm15  ;;  %vm1998_vm15 = vcmp.eq.s32.totalorder %v9422_v17, %v11726_v43  ;;  %vm1993_vm5 = vcmp.eq.s32.totalorder %v9419_v40, %v11747_v32  ;;  %v15751_v40 = vld [vmem:[#allocation35_spill] sm:$0xff] }
 0x159   :  { %7927 = vmatpush1.bf16.msk.msra.mxu1 %vm12163_vm0, %v15404_v29  ;;  %vm12214_vm1 = vmpackc.low %vm1990_vm12, %vm1986_vm14  ;;  %7809 = vmatprep.subr.msk.bf16.mxu0 %vm7808_vm11, %v15404_v29  ;;  %vm2000_vm0 = vcmp.eq.s32.totalorder %v15725_v37, %v11659_v25  ;;  %vm1999_vm14 = vcmp.eq.s32.totalorder %v15725_v37, %v11686_v11  ;;  %vm2003_vm12 = vcmp.eq.s32.totalorder %v15726_v13, %v11686_v11 }
 0x15a   :  { %7929 = vmatprep.subr.msk.bf16.mxu1 %vm12182_vm10, %v15404_v29  ;;  %vm7810_vm2 = vmpackc.low %vm1995_vm13, %vm1991_vm4  ;;  %vm1997_vm4 = vcmp.eq.s32.totalorder %v9422_v17, %v11747_v32  ;;  %vm2002_vm11 = vcmp.eq.s32.totalorder %v15725_v37, %v11726_v43  ;;  %v15744_v17 = vld [vmem:[#allocation32_spill] sm:$0xff] }
 0x15b   :  { %vm12227_vm10 = vmpackc.low %vm1989_vm6, %vm1985_vm9  ;;  %vm2012_vm6 = vcmp.eq.s32.totalorder %v15732_v53, %v11659_v25 }
 0x15c   :  { %7811 = vmatpush1.bf16.msk.msra.mxu0 %vm7810_vm2, %v15404_v29  ;;  %vm7812_vm13 = vmpackc.low %vm2004_vm7, %vm2000_vm0  ;;  %vm2006_vm0 = vcmp.eq.s32.totalorder %v15726_v13, %v11726_v43  ;;  %vm2001_vm2 = vcmp.eq.s32.totalorder %v15725_v37, %v11747_v32  ;;  %v15741_v37 = vld [vmem:[#allocation40_spill] sm:$0xff] }
 0x15d   :  { %7931 = vmatpush1.bf16.msk.msra.mxu1 %vm12195_vm8, %v15404_v29  ;;  %vm12246_vm9 = vmpackc.low %vm1998_vm15, %vm1994_vm3  ;;  %7813 = vmatprep.subr.msk.bf16.mxu0 %vm7812_vm13, %v15404_v29  ;;  %vm2008_vm8 = vcmp.eq.s32.totalorder %v15731_v12, %v11659_v25  ;;  %vm2007_vm3 = vcmp.eq.s32.totalorder %v15731_v12, %v11686_v11  ;;  %vm2011_vm15 = vcmp.eq.s32.totalorder %v15732_v53, %v11686_v11 }
 0x15e   :  { %7933 = vmatprep.subr.msk.bf16.mxu1 %vm12214_vm1, %v15404_v29  ;;  %vm7814_vm7 = vmpackc.low %vm2003_vm12, %vm1999_vm14  ;;  %vm2005_vm14 = vcmp.eq.s32.totalorder %v15726_v13, %v11747_v32  ;;  %vm2010_vm13 = vcmp.eq.s32.totalorder %v15731_v12, %v11726_v43  ;;  %v15750_v13 = vld [vmem:[#allocation34_spill] sm:$0xff] }
 0x15f   :  { %vm12259_vm1 = vmpackc.low %vm1997_vm4, %vm1993_vm5  ;;  %vm2020_vm4 = vcmp.eq.s32.totalorder %v15738_v27, %v11659_v25 }
 0x160   :  { %7815 = vmatpush1.bf16.msk.msra.mxu0 %vm7814_vm7, %v15404_v29  ;;  %vm7816_vm12 = vmpackc.low %vm2012_vm6, %vm2008_vm8  ;;  %vm2014_vm8 = vcmp.eq.s32.totalorder %v15732_v53, %v11726_v43  ;;  %vm2009_vm7 = vcmp.eq.s32.totalorder %v15731_v12, %v11747_v32  ;;  %v15768_v12 = vld [vmem:[#allocation42_spill] sm:$0xff] }
 0x161   :  { %7935 = vmatpush1.bf16.msk.msra.mxu1 %vm12227_vm10, %v15404_v29  ;;  %vm12278_vm5 = vmpackc.low %vm2006_vm0, %vm2002_vm11  ;;  %7817 = vmatprep.subr.msk.bf16.mxu0 %vm7816_vm12, %v15404_v29  ;;  %vm2016_vm10 = vcmp.eq.s32.totalorder %v15737_v47, %v11659_v25  ;;  %vm2015_vm11 = vcmp.eq.s32.totalorder %v15737_v47, %v11686_v11  ;;  %vm2019_vm0 = vcmp.eq.s32.totalorder %v15738_v27, %v11686_v11 }
 0x162   :  { %7937 = vmatprep.subr.msk.bf16.mxu1 %vm12246_vm9, %v15404_v29  ;;  %vm7818_vm9 = vmpackc.low %vm2011_vm15, %vm2007_vm3  ;;  %vm2013_vm3 = vcmp.eq.s32.totalorder %v15732_v53, %v11747_v32  ;;  %v15745_v53 = vld [vmem:[#allocation33_spill] sm:$0xff]  ;;  %vm2018_vm12 = vcmp.eq.s32.totalorder %v15737_v47, %v11726_v43 }
 0x163   :  { %2456 = vmatmul.mubr.f32.vlgmr.msra.gmra.mrb[4].mxu0 %v8778_v23  ;;  %vm12297_vm6 = vmpackc.low %vm2005_vm14, %vm2001_vm2  ;;  %vm2028_vm14 = vcmp.eq.s32.totalorder %v15745_v53, %v11659_v25 }
 0x164   :  { %7819 = vmatpush1.bf16.msk.msra.mxu0 %vm7818_vm9, %v15404_v29  ;;  %2526 = vmatprep.mubr.f32.mxu0 %v15741_v37  ;;  %vm7820_vm15 = vmpackc.low %vm2020_vm4, %vm2016_vm10  ;;  %vm2017_vm9 = vcmp.eq.s32.totalorder %v15737_v47, %v11747_v32 }
 0x165   :  { %7939 = vmatpush1.bf16.msk.msra.mxu1 %vm12259_vm1, %v15404_v29  ;;  %vm12323_vm2 = vmpackc.low %vm2014_vm8, %vm2010_vm13  ;;  %7821 = vmatprep.subr.msk.bf16.mxu0 %vm7820_vm15, %v15404_v29  ;;  %vm2024_vm1 = vcmp.eq.s32.totalorder %v15744_v17, %v11659_v25  ;;  %vm2023_vm13 = vcmp.eq.s32.totalorder %v15744_v17, %v11686_v11  ;;  %vm2027_vm8 = vcmp.eq.s32.totalorder %v15745_v53, %v11686_v11 }
 0x166   :  { %7941 = vmatprep.subr.msk.bf16.mxu1 %vm12278_vm5, %v15404_v29  ;;  %vm2022_vm5 = vcmp.eq.s32.totalorder %v15738_v27, %v11726_v43  ;;  %vm7822_vm10 = vmpackc.low %vm2019_vm0, %vm2015_vm11  ;;  %vm2021_vm11 = vcmp.eq.s32.totalorder %v15738_v27, %v11747_v32  ;;  %vm2026_vm15 = vcmp.eq.s32.totalorder %v15744_v17, %v11726_v43 }
 0x167   :  { %vm12336_vm4 = vmpackc.low %vm2013_vm3, %vm2009_vm7  ;;  %vm2036_vm3 = vcmp.eq.s32.totalorder %v15751_v40, %v11659_v25 }
 0x168   :  { %7823 = vmatpush1.bf16.msk.msra.mxu0 %vm7822_vm10, %v15404_v29  ;;  %vm7824_vm0 = vmpackc.low %vm2028_vm14, %vm2024_vm1  ;;  %vm2030_vm1 = vcmp.eq.s32.totalorder %v15745_v53, %v11726_v43  ;;  %vm2025_vm10 = vcmp.eq.s32.totalorder %v15744_v17, %v11747_v32  ;;  %v15757_v17 = vld [vmem:[#allocation37_spill] sm:$0xff] }
 0x169   :  { %7943 = vmatpush1.bf16.msk.msra.mxu1 %vm12297_vm6, %v15404_v29  ;;  %vm12355_vm7 = vmpackc.low %vm2022_vm5, %vm2018_vm12  ;;  %7825 = vmatprep.subr.msk.bf16.mxu0 %vm7824_vm0, %v15404_v29  ;;  %vm2032_vm6 = vcmp.eq.s32.totalorder %v15750_v13, %v11659_v25  ;;  %vm2031_vm12 = vcmp.eq.s32.totalorder %v15750_v13, %v11686_v11  ;;  %vm2035_vm5 = vcmp.eq.s32.totalorder %v15751_v40, %v11686_v11 }
 0x16a   :  { %7945 = vmatprep.subr.msk.bf16.mxu1 %vm12323_vm2, %v15404_v29  ;;  %vm7826_vm14 = vmpackc.low %vm2027_vm8, %vm2023_vm13  ;;  %vm2029_vm13 = vcmp.eq.s32.totalorder %v15745_v53, %v11747_v32  ;;  %vm2034_vm0 = vcmp.eq.s32.totalorder %v15750_v13, %v11726_v43  ;;  %v15779_v53 = vld [vmem:[#allocation46_spill] sm:$0xff] }
 0x16b   :  { %vm12368_vm2 = vmpackc.low %vm2021_vm11, %vm2017_vm9  ;;  %vm2044_vm11 = vcmp.eq.s32.totalorder %v15757_v17, %v11659_v25 }
 0x16c   :  { %2598 = vmatmul.mubr.f32.vlgmr.msra.gmra.mrb[4].mxu1 %v8778_v23  ;;  %7827 = vmatpush1.bf16.msk.msra.mxu0 %vm7826_vm14, %v15404_v29  ;;  %vm7828_vm8 = vmpackc.low %vm2036_vm3, %vm2032_vm6  ;;  %vm2038_vm6 = vcmp.eq.s32.totalorder %v15751_v40, %v11726_v43  ;;  %vm2033_vm14 = vcmp.eq.s32.totalorder %v15750_v13, %v11747_v32  ;;  %v15774_v23 = vld [vmem:[#allocation44_spill] sm:$0xff] }
 0x16d   :  { %7947 = vmatpush1.bf16.msk.msra.mxu1 %vm12336_vm4, %v15404_v29  ;;  %2668 = vmatprep.mubr.f32.mxu1 %v15741_v37  ;;  %vm12388_vm9 = vmpackc.low %vm2030_vm1, %vm2026_vm15  ;;  %vm2040_vm4 = vcmp.eq.s32.totalorder %v15756_v50, %v11659_v25  ;;  %vm2039_vm15 = vcmp.eq.s32.totalorder %v15756_v50, %v11686_v11  ;;  %vm2043_vm1 = vcmp.eq.s32.totalorder %v15757_v17, %v11686_v11  ;;  %v15763_v37 = vld [vmem:[#allocation39_spill] sm:$0xff] }
 0x16e   :  { %7949 = vmatprep.subr.msk.bf16.mxu1 %vm12355_vm7, %v15404_v29  ;;  %7829 = vmatprep.subr.msk.bf16.mxu0 %vm7828_vm8, %v15404_v29  ;;  %vm7830_vm3 = vmpackc.low %vm2035_vm5, %vm2031_vm12  ;;  %vm2037_vm12 = vcmp.eq.s32.totalorder %v15751_v40, %v11747_v32  ;;  %vm2042_vm8 = vcmp.eq.s32.totalorder %v15756_v50, %v11726_v43 }
 0x16f   :  { %vm12401_vm7 = vmpackc.low %vm2029_vm13, %vm2025_vm10  ;;  %vm2052_vm13 = vcmp.eq.s32.totalorder %v15763_v37, %v11659_v25 }
 0x170   :  { %7831 = vmatpush1.bf16.msk.msra.mxu0 %vm7830_vm3, %v15404_v29  ;;  %vm7832_vm5 = vmpackc.low %vm2044_vm11, %vm2040_vm4  ;;  %vm2046_vm4 = vcmp.eq.s32.totalorder %v15757_v17, %v11726_v43  ;;  %vm2041_vm3 = vcmp.eq.s32.totalorder %v15756_v50, %v11747_v32 }
 0x171   :  { %7951 = vmatpush1.bf16.msk.msra.mxu1 %vm12368_vm2, %v15404_v29  ;;  %vm12420_vm10 = vmpackc.low %vm2038_vm6, %vm2034_vm0  ;;  %7833 = vmatprep.subr.msk.bf16.mxu0 %vm7832_vm5, %v15404_v29  ;;  %vm2048_vm2 = vcmp.eq.s32.totalorder %v15762_v57, %v11659_v25  ;;  %vm2047_vm0 = vcmp.eq.s32.totalorder %v15762_v57, %v11686_v11  ;;  %vm2051_vm6 = vcmp.eq.s32.totalorder %v15763_v37, %v11686_v11 }
 0x172   :  { %7953 = vmatprep.subr.msk.bf16.mxu1 %vm12388_vm9, %v15404_v29  ;;  %vm7834_vm11 = vmpackc.low %vm2043_vm1, %vm2039_vm15  ;;  %vm2045_vm15 = vcmp.eq.s32.totalorder %v15757_v17, %v11747_v32  ;;  %vm2050_vm5 = vcmp.eq.s32.totalorder %v15762_v57, %v11726_v43 }
 0x173   :  { %vm12433_vm9 = vmpackc.low %vm2037_vm12, %vm2033_vm14  ;;  %vm2060_vm12 = vcmp.eq.s32.totalorder %v15768_v12, %v11659_v25 }
 0x174   :  { %7835 = vmatpush1.bf16.msk.msra.mxu0 %vm7834_vm11, %v15404_v29  ;;  %vm7836_vm1 = vmpackc.low %vm2052_vm13, %vm2048_vm2  ;;  %vm2049_vm11 = vcmp.eq.s32.totalorder %v15762_v57, %v11747_v32  ;;  %v15790_v57 = vld [vmem:[#allocation50_spill] sm:$0xff] }
 0x175   :  { %7955 = vmatpush1.bf16.msk.msra.mxu1 %vm12401_vm7, %v15404_v29  ;;  %vm12452_vm14 = vmpackc.low %vm2046_vm4, %vm2042_vm8  ;;  %7837 = vmatprep.subr.msk.bf16.mxu0 %vm7836_vm1, %v15404_v29  ;;  %vm2056_vm7 = vcmp.eq.s32.totalorder %v15586_v46, %v11659_v25  ;;  %vm2055_vm8 = vcmp.eq.s32.totalorder %v15586_v46, %v11686_v11  ;;  %vm2059_vm4 = vcmp.eq.s32.totalorder %v15768_v12, %v11686_v11 }
 0x176   :  { %7957 = vmatprep.subr.msk.bf16.mxu1 %vm12420_vm10, %v15404_v29  ;;  %v12456_v13 = vpop.f32.mrb[0].mxu0  ;;  %vm2054_vm10 = vcmp.eq.s32.totalorder %v15763_v37, %v11726_v43  ;;  %vm7838_vm2 = vmpackc.low %vm2051_vm6, %vm2047_vm0  ;;  %vm2053_vm0 = vcmp.eq.s32.totalorder %v15763_v37, %v11747_v32  ;;  %vm2058_vm1 = vcmp.eq.s32.totalorder %v15586_v46, %v11726_v43 }
 0x177   :  { %v12463_v17 = vpop.f32.mrb[1].mxu0  ;;  %vm12472_vm13 = vmpackc.low %vm2045_vm15, %vm2041_vm3  ;;  %vm2068_vm15 = vcmp.eq.s32.totalorder %v15774_v23, %v11659_v25 }
 0x178   :  { %15769 = vst [vmem:[#allocation11_spill] sm:$0xff] %v12463_v17  ;;  %7839 = vmatpush1.bf16.msk.msra.mxu0 %vm7838_vm2, %v15404_v29  ;;  %vm7840_vm6 = vmpackc.low %vm2060_vm12, %vm2056_vm7  ;;  %vm2062_vm7 = vcmp.eq.s32.totalorder %v15768_v12, %v11726_v43  ;;  %vm2057_vm2 = vcmp.eq.s32.totalorder %v15586_v46, %v11747_v32 }
 0x179   :  { %7959 = vmatpush1.bf16.msk.msra.mxu1 %vm12433_vm9, %v15404_v29  ;;  %vm12491_vm3 = vmpackc.low %vm2054_vm10, %vm2050_vm5  ;;  %7841 = vmatprep.subr.msk.bf16.mxu0 %vm7840_vm6, %v15404_v29  ;;  %vm2064_vm9 = vcmp.eq.s32.totalorder %v15594_v16, %v11659_v25  ;;  %vm2063_vm5 = vcmp.eq.s32.totalorder %v15594_v16, %v11686_v11  ;;  %vm2067_vm10 = vcmp.eq.s32.totalorder %v15774_v23, %v11686_v11 }
 0x17a   :  { %7961 = vmatprep.subr.msk.bf16.mxu1 %vm12452_vm14, %v15404_v29  ;;  %vm7842_vm12 = vmpackc.low %vm2059_vm4, %vm2055_vm8  ;;  %vm2061_vm8 = vcmp.eq.s32.totalorder %v15768_v12, %v11747_v32  ;;  %vm2066_vm6 = vcmp.eq.s32.totalorder %v15594_v16, %v11726_v43 }
 0x17b   :  { %vm12504_vm14 = vmpackc.low %vm2053_vm0, %vm2049_vm11  ;;  %vm2076_vm0 = vcmp.eq.s32.totalorder %v15779_v53, %v11659_v25 }
 0x17c   :  { %7843 = vmatpush1.bf16.msk.msra.mxu0 %vm7842_vm12, %v15404_v29  ;;  %vm7844_vm4 = vmpackc.low %vm2068_vm15, %vm2064_vm9  ;;  %vm2065_vm12 = vcmp.eq.s32.totalorder %v15594_v16, %v11747_v32 }
 0x17d   :  { %7963 = vmatpush1.bf16.msk.msra.mxu1 %vm12472_vm13, %v15404_v29  ;;  %vm12523_vm11 = vmpackc.low %vm2062_vm7, %vm2058_vm1  ;;  %7845 = vmatprep.subr.msk.bf16.mxu0 %vm7844_vm4, %v15404_v29  ;;  %vm2072_vm13 = vcmp.eq.s32.totalorder %v15604_v45, %v11659_v25  ;;  %vm2071_vm1 = vcmp.eq.s32.totalorder %v15604_v45, %v11686_v11  ;;  %vm2075_vm7 = vcmp.eq.s32.totalorder %v15779_v53, %v11686_v11 }
 0x17e   :  { %7965 = vmatprep.subr.msk.bf16.mxu1 %vm12491_vm3, %v15404_v29  ;;  %vm2070_vm3 = vcmp.eq.s32.totalorder %v15774_v23, %v11726_v43  ;;  %vm7846_vm9 = vmpackc.low %vm2067_vm10, %vm2063_vm5  ;;  %vm2069_vm5 = vcmp.eq.s32.totalorder %v15774_v23, %v11747_v32  ;;  %vm2074_vm4 = vcmp.eq.s32.totalorder %v15604_v45, %v11726_v43 }
 0x17f   :  { %v12532_v46 = vpop.f32.mrb[0].mxu1  ;;  %vm12542_vm15 = vmpackc.low %vm2061_vm8, %vm2057_vm2  ;;  %vm2080_vm2 = vcmp.eq.s32.totalorder %v15614_v28, %v11659_v25 }
 0x180   :  { %15780 = vst [vmem:[#allocation12_spill] sm:$0xff] %v12532_v46  ;;  %v12538_v50 = vpop.f32.mrb[1].mxu1  ;;  %v8522_v12 = vpack.i.bf16 %v12532_v46, %v12463_v17  ;;  %7847 = vmatpush1.bf16.msk.msra.mxu0 %vm7846_vm9, %v15404_v29  ;;  %vm7848_vm10 = vmpackc.low %vm2076_vm0, %vm2072_vm13  ;;  %v15785_v46 = vld [vmem:[#allocation48_spill] sm:$0xff]  ;;  %vm2073_vm9 = vcmp.eq.s32.totalorder %v15604_v45, %v11747_v32  ;;  %v15910_v17 = vld [vmem:[#allocation35_spill] sm:$0xff] }
 0x181   :  { %7967 = vmatpush1.bf16.msk.msra.mxu1 %vm12504_vm14, %v15404_v29  ;;  %v8527_v27 = vpack.i.bf16 %v12456_v13, %v12538_v50  ;;  %vm12576_vm14 = vmpackc.low %vm2070_vm3, %vm2066_vm6  ;;  %vm2084_vm8 = vcmp.eq.s32.totalorder %v15785_v46, %v11659_v25  ;;  %7849 = vmatprep.subr.msk.bf16.mxu0 %vm7848_vm10, %v15404_v29  ;;  %vm2079_vm6 = vcmp.eq.s32.totalorder %v15614_v28, %v11686_v11 }
 0x182   :  { %8523 = vrot.lane.b32.xlu0 %v8522_v12, %s8783_s25  ;;  %7969 = vmatprep.subr.msk.bf16.mxu1 %vm12523_vm11, %v15404_v29  ;;  %vm2078_vm11 = vcmp.eq.s32.totalorder %v15779_v53, %v11726_v43  ;;  %vm7850_vm13 = vmpackc.low %vm2075_vm7, %vm2071_vm1  ;;  %vm2083_vm3 = vcmp.eq.s32.totalorder %v15785_v46, %v11686_v11  ;;  %vm2077_vm1 = vcmp.eq.s32.totalorder %v15779_v53, %v11747_v32 }
 0x183   :  { %vm12595_vm0 = vmpackc.low %vm2069_vm5, %vm2065_vm12  ;;  %vm2092_vm5 = vcmp.eq.s32.totalorder %v15790_v57, %v11659_v25  ;;  %vm2082_vm10 = vcmp.eq.s32.totalorder %v15614_v28, %v11726_v43 }
 0x184   :  { %7851 = vmatpush1.bf16.msk.msra.mxu0 %vm7850_vm13, %v15404_v29  ;;  %vm7852_vm7 = vmpackc.low %vm2084_vm8, %vm2080_vm2  ;;  %vm2086_vm2 = vcmp.eq.s32.totalorder %v15785_v46, %v11726_v43  ;;  %vm2081_vm13 = vcmp.eq.s32.totalorder %v15614_v28, %v11747_v32 }
 0x185   :  { %7971 = vmatpush1.bf16.msk.msra.mxu1 %vm12542_vm15, %v15404_v29  ;;  %vm12615_vm12 = vmpackc.low %vm2078_vm11, %vm2074_vm4  ;;  %vm2088_vm15 = vcmp.eq.s32.totalorder %v15620_v19, %v11659_v25  ;;  %7853 = vmatprep.subr.msk.bf16.mxu0 %vm7852_vm7, %v15404_v29  ;;  %vm2087_vm4 = vcmp.eq.s32.totalorder %v15620_v19, %v11686_v11  ;;  %vm2091_vm11 = vcmp.eq.s32.totalorder %v15790_v57, %v11686_v11 }
 0x186   :  { %8528 = vrot.lane.b32.xlu0 %v8527_v27, %s8783_s25  ;;  %7973 = vmatprep.subr.msk.bf16.mxu1 %vm12576_vm14, %v15404_v29  ;;  %vm7854_vm8 = vmpackc.low %vm2083_vm3, %vm2079_vm6  ;;  %vm2085_vm6 = vcmp.eq.s32.totalorder %v15785_v46, %v11747_v32  ;;  %vm2090_vm7 = vcmp.eq.s32.totalorder %v15620_v19, %v11726_v43  ;;  %v15811_v27 = vld [vmem:[#allocation55_spill] sm:$0xff] }
 0x187   :  { %vm12628_vm14 = vmpackc.low %vm2077_vm1, %vm2073_vm9  ;;  %vm2100_vm1 = vcmp.eq.s32.totalorder %v10033_v20, %v11659_v25  ;;  %v15812_v40 = vsub.s32 15, %v15811_v27 }
 0x188   :  { %7855 = vmatpush1.bf16.msk.msra.mxu0 %vm7854_vm8, %v15404_v29  ;;  %vm7856_vm3 = vmpackc.low %vm2092_vm5, %vm2088_vm15  ;;  %vm2094_vm15 = vcmp.eq.s32.totalorder %v15790_v57, %v11726_v43  ;;  %vm2089_vm8 = vcmp.eq.s32.totalorder %v15620_v19, %v11747_v32 }
 0x189   :  { %7975 = vmatpush1.bf16.msk.msra.mxu1 %vm12595_vm0, %v15404_v29  ;;  %vm12648_vm9 = vmpackc.low %vm2086_vm2, %vm2082_vm10  ;;  %vm2096_vm0 = vcmp.eq.s32.totalorder %v10010_v63, %v11659_v25  ;;  %7857 = vmatprep.subr.msk.bf16.mxu0 %vm7856_vm3, %v15404_v29  ;;  %vm2095_vm10 = vcmp.eq.s32.totalorder %v10010_v63, %v11686_v11  ;;  %vm2099_vm2 = vcmp.eq.s32.totalorder %v10033_v20, %v11686_v11 }
 0x18a   :  { %8533 = vrot.lane.b32.xlu0 %v8522_v12, %s8784_s26  ;;  %7977 = vmatprep.subr.msk.bf16.mxu1 %vm12615_vm12, %v15404_v29  ;;  %vm7858_vm12 = vmpackc.low %vm2091_vm11, %vm2087_vm4  ;;  %vm2093_vm4 = vcmp.eq.s32.totalorder %v15790_v57, %v11747_v32  ;;  %vm2098_vm3 = vcmp.eq.s32.totalorder %v10010_v63, %v11726_v43 }
 0x18b   :  { %vm12664_vm5 = vmpackc.low %vm2085_vm6, %vm2081_vm13  ;;  %vm2108_vm6 = vcmp.eq.s32.totalorder %v10108_v22, %v11659_v25 }
 0x18c   :  { %7859 = vmatpush1.bf16.msk.msra.mxu0 %vm7858_vm12, %v15404_v29  ;;  %vm7860_vm11 = vmpackc.low %vm2100_vm1, %vm2096_vm0  ;;  %vm2102_vm0 = vcmp.eq.s32.totalorder %v10033_v20, %v11726_v43  ;;  %vm2097_vm12 = vcmp.eq.s32.totalorder %v10010_v63, %v11747_v32 }
 0x18d   :  { %7979 = vmatpush1.bf16.msk.msra.mxu1 %vm12628_vm14, %v15404_v29  ;;  %vm12683_vm13 = vmpackc.low %vm2094_vm15, %vm2090_vm7  ;;  %7861 = vmatprep.subr.msk.bf16.mxu0 %vm7860_vm11, %v15404_v29  ;;  %vm2104_vm14 = vcmp.eq.s32.totalorder %v15634_v9, %v11659_v25  ;;  %vm2103_vm7 = vcmp.eq.s32.totalorder %v15634_v9, %v11686_v11  ;;  %vm2107_vm15 = vcmp.eq.s32.totalorder %v10108_v22, %v11686_v11 }
 0x18e   :  { %7981 = vmatprep.subr.msk.bf16.mxu1 %vm12648_vm9, %v15404_v29  ;;  %vm7862_vm1 = vmpackc.low %vm2099_vm2, %vm2095_vm10  ;;  %vm2101_vm10 = vcmp.eq.s32.totalorder %v10033_v20, %v11747_v32  ;;  %vm2106_vm11 = vcmp.eq.s32.totalorder %v15634_v9, %v11726_v43 }
 0x18f   :  { %vm12696_vm9 = vmpackc.low %vm2093_vm4, %vm2089_vm8  ;;  %vm2116_vm4 = vcmp.eq.s32.totalorder %v10176_v24, %v11659_v25 }
 0x190   :  { %7863 = vmatpush1.bf16.msk.msra.mxu0 %vm7862_vm1, %v15404_v29  ;;  %vm7864_vm2 = vmpackc.low %vm2108_vm6, %vm2104_vm14  ;;  %vm2110_vm14 = vcmp.eq.s32.totalorder %v10108_v22, %v11726_v43  ;;  %vm2105_vm1 = vcmp.eq.s32.totalorder %v15634_v9, %v11747_v32 }
 0x191   :  { %7983 = vmatpush1.bf16.msk.msra.mxu1 %vm12664_vm5, %v15404_v29  ;;  %vm12715_vm8 = vmpackc.low %vm2102_vm0, %vm2098_vm3  ;;  %7865 = vmatprep.subr.msk.bf16.mxu0 %vm7864_vm2, %v15404_v29  ;;  %vm2112_vm5 = vcmp.eq.s32.totalorder %v10155_v14, %v11659_v25  ;;  %vm2111_vm3 = vcmp.eq.s32.totalorder %v10155_v14, %v11686_v11  ;;  %vm2115_vm0 = vcmp.eq.s32.totalorder %v10176_v24, %v11686_v11 }
 0x192   :  { %7985 = vmatprep.subr.msk.bf16.mxu1 %vm12683_vm13, %v15404_v29  ;;  %vm7866_vm6 = vmpackc.low %vm2107_vm15, %vm2103_vm7  ;;  %vm2109_vm7 = vcmp.eq.s32.totalorder %v10108_v22, %v11747_v32  ;;  %vm2114_vm2 = vcmp.eq.s32.totalorder %v10155_v14, %v11726_v43 }
 0x193   :  { %vm12728_vm13 = vmpackc.low %vm2101_vm10, %vm2097_vm12  ;;  %vm2124_vm10 = vcmp.eq.s32.totalorder %v10244_v60, %v11659_v25 }
 0x194   :  { %7867 = vmatpush1.bf16.msk.msra.mxu0 %vm7866_vm6, %v15404_v29  ;;  %vm7868_vm15 = vmpackc.low %vm2116_vm4, %vm2112_vm5  ;;  %vm2118_vm5 = vcmp.eq.s32.totalorder %v10176_v24, %v11726_v43  ;;  %vm2113_vm6 = vcmp.eq.s32.totalorder %v10155_v14, %v11747_v32 }
 0x195   :  { %7987 = vmatpush1.bf16.msk.msra.mxu1 %vm12696_vm9, %v15404_v29  ;;  %vm12747_vm12 = vmpackc.low %vm2110_vm14, %vm2106_vm11  ;;  %7869 = vmatprep.subr.msk.bf16.mxu0 %vm7868_vm15, %v15404_v29  ;;  %vm2120_vm9 = vcmp.eq.s32.totalorder %v10241_v42, %v11659_v25  ;;  %vm2119_vm11 = vcmp.eq.s32.totalorder %v10241_v42, %v11686_v11  ;;  %vm2123_vm14 = vcmp.eq.s32.totalorder %v10244_v60, %v11686_v11 }
 0x196   :  { %7989 = vmatprep.subr.msk.bf16.mxu1 %vm12715_vm8, %v15404_v29  ;;  %vm7870_vm4 = vmpackc.low %vm2115_vm0, %vm2111_vm3  ;;  %vm2117_vm3 = vcmp.eq.s32.totalorder %v10176_v24, %v11747_v32  ;;  %v12791_v24 = vadd.s32 %v11607_v1, %v15812_v40  ;;  %vm2122_vm15 = vcmp.eq.s32.totalorder %v10241_v42, %v11726_v43  ;;  %v15815_v1 = vld [vmem:[#allocation56_spill] sm:$0xff] }
 0x197   :  { %vm12760_vm8 = vmpackc.low %vm2109_vm7, %vm2105_vm1  ;;  %vm2132_vm7 = vcmp.eq.s32.totalorder %v10323_v7, %v11659_v25 }
 0x198   :  { %7871 = vmatpush1.bf16.msk.msra.mxu0 %vm7870_vm4, %v15404_v29  ;;  %vm7872_vm0 = vmpackc.low %vm2124_vm10, %vm2120_vm9  ;;  %vm2121_vm4 = vcmp.eq.s32.totalorder %v10241_v42, %v11747_v32 }
 0x199   :  { %7991 = vmatpush1.bf16.msk.msra.mxu1 %vm12728_vm13, %v15404_v29  ;;  %vm12779_vm1 = vmpackc.low %vm2118_vm5, %vm2114_vm2  ;;  %7873 = vmatprep.subr.msk.bf16.mxu0 %vm7872_vm0, %v15404_v29  ;;  %vm2128_vm13 = vcmp.eq.s32.totalorder %v10294_v33, %v11659_v25  ;;  %vm2127_vm2 = vcmp.eq.s32.totalorder %v10294_v33, %v11686_v11  ;;  %vm2131_vm5 = vcmp.eq.s32.totalorder %v10323_v7, %v11686_v11  ;;  %v15816_v25 = vsub.s32 15, %v15815_v1  ;;  %v15879_v11 = vld [vmem:[#allocation24_spill] sm:$0xff] }
 0x19a   :  { %7993 = vmatprep.subr.msk.bf16.mxu1 %vm12747_vm12, %v15404_v29  ;;  %vm2126_vm12 = vcmp.eq.s32.totalorder %v10244_v60, %v11726_v43  ;;  %vm7874_vm9 = vmpackc.low %vm2123_vm14, %vm2119_vm11  ;;  %vm2125_vm11 = vcmp.eq.s32.totalorder %v10244_v60, %v11747_v32  ;;  %vm2130_vm0 = vcmp.eq.s32.totalorder %v10294_v33, %v11726_v43 }
 0x19b   :  { %vm12797_vm10 = vmpackc.low %vm2117_vm3, %vm2113_vm6  ;;  %v12809_v27 = vadd.s32 %v11629_v26, %v15816_v25  ;;  %vm2684_vm3 = vcmp.eq.s32.totalorder %v8843_v8, %v12791_v24  ;;  %v15819_v26 = vld [vmem:[#allocation57_spill] sm:$0xff] }
 0x19c   :  { %7875 = vmatpush1.bf16.msk.msra.mxu0 %vm7874_vm9, %v15404_v29  ;;  %vm7876_vm14 = vmpackc.low %vm2132_vm7, %vm2128_vm13  ;;  %vm2134_vm13 = vcmp.eq.s32.totalorder %v10323_v7, %v11726_v43  ;;  %v15820_v12 = vsub.s32 15, %v15819_v26  ;;  %vm2129_vm9 = vcmp.eq.s32.totalorder %v10294_v33, %v11747_v32  ;;  %v15959_v26 = vld [vmem:[#allocation54_spill] sm:$0xff] }
 0x19d   :  { %7995 = vmatpush1.bf16.msk.msra.mxu1 %vm12760_vm8, %v15404_v29  ;;  %vm12821_vm6 = vmpackc.low %vm2126_vm12, %vm2122_vm15  ;;  %7877 = vmatprep.subr.msk.bf16.mxu0 %vm7876_vm14, %v15404_v29  ;;  %vm2680_vm8 = vcmp.eq.s32.totalorder %v8831_v3, %v12791_v24  ;;  %vm2679_vm15 = vcmp.eq.s32.totalorder %v8831_v3, %v12809_v27  ;;  %vm2683_vm12 = vcmp.eq.s32.totalorder %v8843_v8, %v12809_v27 }
 0x19e   :  { %7997 = vmatprep.subr.msk.bf16.mxu1 %vm12779_vm1, %v15404_v29  ;;  %vm7878_vm7 = vmpackc.low %vm2131_vm5, %vm2127_vm2  ;;  %v12837_v37 = vadd.s32 %v11672_v54, %v15820_v12  ;;  %vm2133_vm2 = vcmp.eq.s32.totalorder %v10323_v7, %v11747_v32  ;;  %v15823_v54 = vld [vmem:[#allocation58_spill] sm:$0xff]  ;;  %v15891_v12 = vld [vmem:[#allocation28_spill] sm:$0xff] }
 0x19f   :  { %vm12839_vm1 = vmpackc.low %vm2125_vm11, %vm2121_vm4  ;;  %v15824_v43 = vsub.s32 15, %v15823_v54  ;;  %vm2692_vm11 = vcmp.eq.s32.totalorder %v8931_v52, %v12791_v24  ;;  %v15897_v54 = vld [vmem:[#allocation31_spill] sm:$0xff] }
 0x1a0   :  { %7879 = vmatpush1.bf16.msk.msra.mxu0 %vm7878_vm7, %v15404_v29  ;;  %vm8008_vm5 = vmpackc.low %vm2684_vm3, %vm2680_vm8  ;;  %vm2682_vm14 = vcmp.eq.s32.totalorder %v8831_v3, %v12837_v37 }
 0x1a1   :  { %7999 = vmatpush1.bf16.msk.msra.mxu1 %vm12797_vm10, %v15404_v29  ;;  %v12858_v1 = vadd.s32 %v11699_v31, %v15824_v43  ;;  %vm12863_vm4 = vmpackc.low %vm2134_vm13, %vm2130_vm0  ;;  %8009 = vmatprep.subr.msk.bf16.mxu0 %vm8008_vm5, %v15404_v29  ;;  %vm2688_vm10 = vcmp.eq.s32.totalorder %v8859_v18, %v12791_v24  ;;  %v8779_v31 = vld [vmem:[%s15108_s0 + $0x8] sm:$0xff]  ;;  %vm2687_vm0 = vcmp.eq.s32.totalorder %v8859_v18, %v12809_v27 }
 0x1a2   :  { %8001 = vmatprep.subr.msk.bf16.mxu1 %vm12821_vm6, %v15404_v29  ;;  %vm2686_vm6 = vcmp.eq.s32.totalorder %v8843_v8, %v12837_v37  ;;  %vm8010_vm8 = vmpackc.low %vm2683_vm12, %vm2679_vm15  ;;  %vm2691_vm13 = vcmp.eq.s32.totalorder %v8931_v52, %v12809_v27  ;;  %vm2690_vm5 = vcmp.eq.s32.totalorder %v8859_v18, %v12837_v37 }
 0x1a3   :  { %2527 = vmatmul.mubr.f32.vlgmr.msra.gmra.mrb[4].mxu0 %v8779_v31  ;;  %vm12885_vm3 = vmpackc.low %vm2133_vm2, %vm2129_vm9  ;;  %vm2681_vm7 = vcmp.eq.s32.totalorder %v8831_v3, %v12858_v1  ;;  %vm2685_vm15 = vcmp.eq.s32.totalorder %v8843_v8, %v12858_v1  ;;  %vm2700_vm2 = vcmp.eq.s32.totalorder %v8952_v61, %v12791_v24  ;;  %v15933_v8 = vld [vmem:[#allocation11_spill] sm:$0xff] }
 0x1a4   :  { %8011 = vmatpush1.bf16.msk.msra.mxu0 %vm8010_vm8, %v15404_v29  ;;  %3255 = vmatprep.mubr.f32.mxu0 %v8835_v4  ;;  %vm8012_vm12 = vmpackc.low %vm2692_vm11, %vm2688_vm10  ;;  %vm2694_vm10 = vcmp.eq.s32.totalorder %v8931_v52, %v12837_v37  ;;  %vm2689_vm8 = vcmp.eq.s32.totalorder %v8859_v18, %v12858_v1 }
 0x1a5   :  { %8003 = vmatpush1.bf16.msk.msra.mxu1 %vm12839_vm1, %v15404_v29  ;;  %vm12908_vm9 = vmpackc.low %vm2686_vm6, %vm2682_vm14  ;;  %8013 = vmatprep.subr.msk.bf16.mxu0 %vm8012_vm12, %v15404_v29  ;;  %vm2696_vm1 = vcmp.eq.s32.totalorder %v8944_v56, %v12791_v24  ;;  %vm2695_vm14 = vcmp.eq.s32.totalorder %v8944_v56, %v12809_v27  ;;  %vm2699_vm6 = vcmp.eq.s32.totalorder %v8952_v61, %v12809_v27 }
 0x1a6   :  { %8005 = vmatprep.subr.msk.bf16.mxu1 %vm12863_vm4, %v15404_v29  ;;  %vm8014_vm11 = vmpackc.low %vm2691_vm13, %vm2687_vm0  ;;  %vm2693_vm0 = vcmp.eq.s32.totalorder %v8931_v52, %v12858_v1  ;;  %vm2698_vm12 = vcmp.eq.s32.totalorder %v8944_v56, %v12837_v37  ;;  %v15880_v52 = vld [vmem:[#allocation25_spill] sm:$0xff] }
 0x1a7   :  { %vm12921_vm4 = vmpackc.low %vm2685_vm15, %vm2681_vm7  ;;  %vm2708_vm15 = vcmp.eq.s32.totalorder %v8981_v10, %v12791_v24 }
 0x1a8   :  { %8015 = vmatpush1.bf16.msk.msra.mxu0 %vm8014_vm11, %v15404_v29  ;;  %vm8016_vm13 = vmpackc.low %vm2700_vm2, %vm2696_vm1  ;;  %vm2702_vm1 = vcmp.eq.s32.totalorder %v8952_v61, %v12837_v37  ;;  %vm2697_vm11 = vcmp.eq.s32.totalorder %v8944_v56, %v12858_v1 }
 0x1a9   :  { %8007 = vmatpush1.bf16.msk.msra.mxu1 %vm12885_vm3, %v15404_v29  ;;  %vm12940_vm7 = vmpackc.low %vm2694_vm10, %vm2690_vm5  ;;  %8017 = vmatprep.subr.msk.bf16.mxu0 %vm8016_vm13, %v15404_v29  ;;  %vm2704_vm3 = vcmp.eq.s32.totalorder %v8972_v5, %v12791_v24  ;;  %vm2703_vm5 = vcmp.eq.s32.totalorder %v8972_v5, %v12809_v27  ;;  %vm2707_vm10 = vcmp.eq.s32.totalorder %v8981_v10, %v12809_v27 }
 0x1aa   :  { %8137 = vmatprep.subr.msk.bf16.mxu1 %vm12908_vm9, %v15404_v29  ;;  %vm8018_vm2 = vmpackc.low %vm2699_vm6, %vm2695_vm14  ;;  %vm2701_vm14 = vcmp.eq.s32.totalorder %v8952_v61, %v12858_v1  ;;  %vm2706_vm13 = vcmp.eq.s32.totalorder %v8972_v5, %v12837_v37  ;;  %v15886_v61 = vld [vmem:[#allocation27_spill] sm:$0xff] }
 0x1ab   :  { %vm12953_vm9 = vmpackc.low %vm2693_vm0, %vm2689_vm8  ;;  %vm2716_vm0 = vcmp.eq.s32.totalorder %v9024_v36, %v12791_v24 }
 0x1ac   :  { %2669 = vmatmul.mubr.f32.vlgmr.msra.gmra.mrb[4].mxu1 %v8779_v31  ;;  %8019 = vmatpush1.bf16.msk.msra.mxu0 %vm8018_vm2, %v15404_v29  ;;  %vm8020_vm6 = vmpackc.low %vm2708_vm15, %vm2704_vm3  ;;  %vm2710_vm3 = vcmp.eq.s32.totalorder %v8981_v10, %v12837_v37  ;;  %vm2705_vm2 = vcmp.eq.s32.totalorder %v8972_v5, %v12858_v1  ;;  %v15904_v31 = vld [vmem:[#allocation33_spill] sm:$0xff] }
 0x1ad   :  { %8139 = vmatpush1.bf16.msk.msra.mxu1 %vm12921_vm4, %v15404_v29  ;;  %3397 = vmatprep.mubr.f32.mxu1 %v8835_v4  ;;  %vm12973_vm8 = vmpackc.low %vm2702_vm1, %vm2698_vm12  ;;  %vm2712_vm4 = vcmp.eq.s32.totalorder %v9021_v35, %v12791_v24  ;;  %vm2711_vm12 = vcmp.eq.s32.totalorder %v9021_v35, %v12809_v27  ;;  %vm2715_vm1 = vcmp.eq.s32.totalorder %v9024_v36, %v12809_v27  ;;  %v15885_v4 = vld [vmem:[#allocation26_spill] sm:$0xff] }
 0x1ae   :  { %8141 = vmatprep.subr.msk.bf16.mxu1 %vm12940_vm7, %v15404_v29  ;;  %8021 = vmatprep.subr.msk.bf16.mxu0 %vm8020_vm6, %v15404_v29  ;;  %vm8022_vm15 = vmpackc.low %vm2707_vm10, %vm2703_vm5  ;;  %vm2709_vm5 = vcmp.eq.s32.totalorder %v8981_v10, %v12858_v1  ;;  %vm2714_vm6 = vcmp.eq.s32.totalorder %v9021_v35, %v12837_v37  ;;  %v15922_v10 = vld [vmem:[#allocation39_spill] sm:$0xff] }
 0x1af   :  { %vm12986_vm7 = vmpackc.low %vm2701_vm14, %vm2697_vm11  ;;  %vm2724_vm14 = vcmp.eq.s32.totalorder %v9061_v30, %v12791_v24 }
 0x1b0   :  { %8023 = vmatpush1.bf16.msk.msra.mxu0 %vm8022_vm15, %v15404_v29  ;;  %vm8024_vm10 = vmpackc.low %vm2716_vm0, %vm2712_vm4  ;;  %vm2718_vm4 = vcmp.eq.s32.totalorder %v9024_v36, %v12837_v37  ;;  %vm2713_vm15 = vcmp.eq.s32.totalorder %v9021_v35, %v12858_v1 }
 0x1b1   :  { %8143 = vmatpush1.bf16.msk.msra.mxu1 %vm12953_vm9, %v15404_v29  ;;  %vm13005_vm11 = vmpackc.low %vm2710_vm3, %vm2706_vm13  ;;  %8025 = vmatprep.subr.msk.bf16.mxu0 %vm8024_vm10, %v15404_v29  ;;  %vm2720_vm9 = vcmp.eq.s32.totalorder %v9058_v39, %v12791_v24  ;;  %vm2719_vm13 = vcmp.eq.s32.totalorder %v9058_v39, %v12809_v27  ;;  %vm2723_vm3 = vcmp.eq.s32.totalorder %v9061_v30, %v12809_v27 }
 0x1b2   :  { %8145 = vmatprep.subr.msk.bf16.mxu1 %vm12973_vm8, %v15404_v29  ;;  %vm8026_vm0 = vmpackc.low %vm2715_vm1, %vm2711_vm12  ;;  %vm2717_vm12 = vcmp.eq.s32.totalorder %v9024_v36, %v12858_v1  ;;  %vm2722_vm10 = vcmp.eq.s32.totalorder %v9058_v39, %v12837_v37  ;;  %v15892_v36 = vld [vmem:[#allocation29_spill] sm:$0xff] }
 0x1b3   :  { %vm13018_vm8 = vmpackc.low %vm2709_vm5, %vm2705_vm2  ;;  %vm2732_vm5 = vcmp.eq.s32.totalorder %v9096_v49, %v12791_v24 }
 0x1b4   :  { %8027 = vmatpush1.bf16.msk.msra.mxu0 %vm8026_vm0, %v15404_v29  ;;  %vm8028_vm1 = vmpackc.low %vm2724_vm14, %vm2720_vm9  ;;  %vm2726_vm9 = vcmp.eq.s32.totalorder %v9061_v30, %v12837_v37  ;;  %vm2721_vm0 = vcmp.eq.s32.totalorder %v9058_v39, %v12858_v1 }
 0x1b5   :  { %8147 = vmatpush1.bf16.msk.msra.mxu1 %vm12986_vm7, %v15404_v29  ;;  %vm13037_vm2 = vmpackc.low %vm2718_vm4, %vm2714_vm6  ;;  %8029 = vmatprep.subr.msk.bf16.mxu0 %vm8028_vm1, %v15404_v29  ;;  %vm2728_vm7 = vcmp.eq.s32.totalorder %v9093_v44, %v12791_v24  ;;  %vm2727_vm6 = vcmp.eq.s32.totalorder %v9093_v44, %v12809_v27  ;;  %vm2731_vm4 = vcmp.eq.s32.totalorder %v9096_v49, %v12809_v27 }
 0x1b6   :  { %8149 = vmatprep.subr.msk.bf16.mxu1 %vm13005_vm11, %v15404_v29  ;;  %vm8030_vm14 = vmpackc.low %vm2723_vm3, %vm2719_vm13  ;;  %vm2725_vm13 = vcmp.eq.s32.totalorder %v9061_v30, %v12858_v1  ;;  %vm2730_vm1 = vcmp.eq.s32.totalorder %v9093_v44, %v12837_v37 }
 0x1b7   :  { %vm13050_vm11 = vmpackc.low %vm2717_vm12, %vm2713_vm15  ;;  %vm2740_vm12 = vcmp.eq.s32.totalorder %v9135_v59, %v12791_v24 }
 0x1b8   :  { %8031 = vmatpush1.bf16.msk.msra.mxu0 %vm8030_vm14, %v15404_v29  ;;  %vm8032_vm3 = vmpackc.low %vm2732_vm5, %vm2728_vm7  ;;  %vm2734_vm7 = vcmp.eq.s32.totalorder %v9096_v49, %v12837_v37  ;;  %vm2729_vm14 = vcmp.eq.s32.totalorder %v9093_v44, %v12858_v1 }
 0x1b9   :  { %8151 = vmatpush1.bf16.msk.msra.mxu1 %vm13018_vm8, %v15404_v29  ;;  %vm13069_vm15 = vmpackc.low %vm2726_vm9, %vm2722_vm10  ;;  %8033 = vmatprep.subr.msk.bf16.mxu0 %vm8032_vm3, %v15404_v29  ;;  %vm2736_vm8 = vcmp.eq.s32.totalorder %v9132_v58, %v12791_v24  ;;  %vm2735_vm10 = vcmp.eq.s32.totalorder %v9132_v58, %v12809_v27  ;;  %vm2739_vm9 = vcmp.eq.s32.totalorder %v9135_v59, %v12809_v27 }
 0x1ba   :  { %8153 = vmatprep.subr.msk.bf16.mxu1 %vm13037_vm2, %v15404_v29  ;;  %vm8034_vm5 = vmpackc.low %vm2731_vm4, %vm2727_vm6  ;;  %vm2733_vm6 = vcmp.eq.s32.totalorder %v9096_v49, %v12858_v1  ;;  %vm2738_vm3 = vcmp.eq.s32.totalorder %v9132_v58, %v12837_v37  ;;  %v8780_v49 = vld [vmem:[%s15108_s0] sm:$0xff] }
 0x1bb   :  { %vm13082_vm2 = vmpackc.low %vm2725_vm13, %vm2721_vm0  ;;  %vm2748_vm13 = vcmp.eq.s32.totalorder %v9176_v15, %v12791_v24 }
 0x1bc   :  { %8035 = vmatpush1.bf16.msk.msra.mxu0 %vm8034_vm5, %v15404_v29  ;;  %vm8036_vm4 = vmpackc.low %vm2740_vm12, %vm2736_vm8  ;;  %vm2742_vm8 = vcmp.eq.s32.totalorder %v9135_v59, %v12837_v37  ;;  %vm2737_vm5 = vcmp.eq.s32.totalorder %v9132_v58, %v12858_v1 }
 0x1bd   :  { %8155 = vmatpush1.bf16.msk.msra.mxu1 %vm13050_vm11, %v15404_v29  ;;  %vm13101_vm0 = vmpackc.low %vm2734_vm7, %vm2730_vm1  ;;  %8037 = vmatprep.subr.msk.bf16.mxu0 %vm8036_vm4, %v15404_v29  ;;  %vm2744_vm11 = vcmp.eq.s32.totalorder %v9173_v6, %v12791_v24  ;;  %vm2743_vm1 = vcmp.eq.s32.totalorder %v9173_v6, %v12809_v27  ;;  %vm2747_vm7 = vcmp.eq.s32.totalorder %v9176_v15, %v12809_v27 }
 0x1be   :  { %8157 = vmatprep.subr.msk.bf16.mxu1 %vm13069_vm15, %v15404_v29  ;;  %vm8038_vm12 = vmpackc.low %vm2739_vm9, %vm2735_vm10  ;;  %vm2741_vm10 = vcmp.eq.s32.totalorder %v9135_v59, %v12858_v1  ;;  %vm2746_vm4 = vcmp.eq.s32.totalorder %v9173_v6, %v12837_v37  ;;  %v15900_v59 = vld [vmem:[#allocation40_spill] sm:$0xff] }
 0x1bf   :  { %vm13114_vm15 = vmpackc.low %vm2733_vm6, %vm2729_vm14  ;;  %vm2756_vm6 = vcmp.eq.s32.totalorder %v9217_v55, %v12791_v24 }
 0x1c0   :  { %8039 = vmatpush1.bf16.msk.msra.mxu0 %vm8038_vm12, %v15404_v29  ;;  %vm8040_vm9 = vmpackc.low %vm2748_vm13, %vm2744_vm11  ;;  %vm2750_vm11 = vcmp.eq.s32.totalorder %v9176_v15, %v12837_v37  ;;  %vm2745_vm12 = vcmp.eq.s32.totalorder %v9173_v6, %v12858_v1 }
 0x1c1   :  { %8159 = vmatpush1.bf16.msk.msra.mxu1 %vm13082_vm2, %v15404_v29  ;;  %vm13133_vm14 = vmpackc.low %vm2742_vm8, %vm2738_vm3  ;;  %8041 = vmatprep.subr.msk.bf16.mxu0 %vm8040_vm9, %v15404_v29  ;;  %vm2752_vm2 = vcmp.eq.s32.totalorder %v9214_v51, %v12791_v24  ;;  %vm2751_vm3 = vcmp.eq.s32.totalorder %v9214_v51, %v12809_v27  ;;  %vm2755_vm8 = vcmp.eq.s32.totalorder %v9217_v55, %v12809_v27 }
 0x1c2   :  { %8161 = vmatprep.subr.msk.bf16.mxu1 %vm13101_vm0, %v15404_v29  ;;  %vm8042_vm13 = vmpackc.low %vm2747_vm7, %vm2743_vm1  ;;  %vm2749_vm1 = vcmp.eq.s32.totalorder %v9176_v15, %v12858_v1  ;;  %vm2754_vm9 = vcmp.eq.s32.totalorder %v9214_v51, %v12837_v37  ;;  %v15903_v15 = vld [vmem:[#allocation32_spill] sm:$0xff] }
 0x1c3   :  { %vm13146_vm0 = vmpackc.low %vm2741_vm10, %vm2737_vm5  ;;  %vm2764_vm10 = vcmp.eq.s32.totalorder %v9258_v21, %v12791_v24 }
 0x1c4   :  { %8043 = vmatpush1.bf16.msk.msra.mxu0 %vm8042_vm13, %v15404_v29  ;;  %vm8044_vm7 = vmpackc.low %vm2756_vm6, %vm2752_vm2  ;;  %vm2758_vm2 = vcmp.eq.s32.totalorder %v9217_v55, %v12837_v37  ;;  %vm2753_vm13 = vcmp.eq.s32.totalorder %v9214_v51, %v12858_v1 }
 0x1c5   :  { %8163 = vmatpush1.bf16.msk.msra.mxu1 %vm13114_vm15, %v15404_v29  ;;  %vm13165_vm5 = vmpackc.low %vm2750_vm11, %vm2746_vm4  ;;  %8045 = vmatprep.subr.msk.bf16.mxu0 %vm8044_vm7, %v15404_v29  ;;  %vm2760_vm15 = vcmp.eq.s32.totalorder %v9255_v38, %v12791_v24  ;;  %vm2759_vm4 = vcmp.eq.s32.totalorder %v9255_v38, %v12809_v27  ;;  %vm2763_vm11 = vcmp.eq.s32.totalorder %v9258_v21, %v12809_v27 }
 0x1c6   :  { %8165 = vmatprep.subr.msk.bf16.mxu1 %vm13133_vm14, %v15404_v29  ;;  %vm8046_vm6 = vmpackc.low %vm2755_vm8, %vm2751_vm3  ;;  %vm2757_vm3 = vcmp.eq.s32.totalorder %v9217_v55, %v12858_v1  ;;  %vm2762_vm7 = vcmp.eq.s32.totalorder %v9255_v38, %v12837_v37 }
 0x1c7   :  { %vm13178_vm14 = vmpackc.low %vm2749_vm1, %vm2745_vm12  ;;  %vm2772_vm1 = vcmp.eq.s32.totalorder %v9299_v48, %v12791_v24 }
 0x1c8   :  { %8047 = vmatpush1.bf16.msk.msra.mxu0 %vm8046_vm6, %v15404_v29  ;;  %vm8048_vm8 = vmpackc.low %vm2764_vm10, %vm2760_vm15  ;;  %vm2766_vm15 = vcmp.eq.s32.totalorder %v9258_v21, %v12837_v37  ;;  %vm2761_vm6 = vcmp.eq.s32.totalorder %v9255_v38, %v12858_v1 }
 0x1c9   :  { %8167 = vmatpush1.bf16.msk.msra.mxu1 %vm13146_vm0, %v15404_v29  ;;  %vm13197_vm12 = vmpackc.low %vm2758_vm2, %vm2754_vm9  ;;  %8049 = vmatprep.subr.msk.bf16.mxu0 %vm8048_vm8, %v15404_v29  ;;  %vm2768_vm0 = vcmp.eq.s32.totalorder %v9296_v62, %v12791_v24  ;;  %vm2767_vm9 = vcmp.eq.s32.totalorder %v9296_v62, %v12809_v27  ;;  %vm2771_vm2 = vcmp.eq.s32.totalorder %v9299_v48, %v12809_v27 }
 0x1ca   :  { %8169 = vmatprep.subr.msk.bf16.mxu1 %vm13165_vm5, %v15404_v29  ;;  %vm8050_vm10 = vmpackc.low %vm2763_vm11, %vm2759_vm4  ;;  %vm2765_vm4 = vcmp.eq.s32.totalorder %v9258_v21, %v12858_v1  ;;  %vm2770_vm8 = vcmp.eq.s32.totalorder %v9296_v62, %v12837_v37  ;;  %v15909_v21 = vld [vmem:[#allocation34_spill] sm:$0xff] }
 0x1cb   :  { %vm13210_vm5 = vmpackc.low %vm2757_vm3, %vm2753_vm13  ;;  %vm2780_vm3 = vcmp.eq.s32.totalorder %v9340_v2, %v12791_v24 }
 0x1cc   :  { %8051 = vmatpush1.bf16.msk.msra.mxu0 %vm8050_vm10, %v15404_v29  ;;  %vm8052_vm11 = vmpackc.low %vm2772_vm1, %vm2768_vm0  ;;  %vm2774_vm0 = vcmp.eq.s32.totalorder %v9299_v48, %v12837_v37  ;;  %vm2769_vm10 = vcmp.eq.s32.totalorder %v9296_v62, %v12858_v1 }
 0x1cd   :  { %8171 = vmatpush1.bf16.msk.msra.mxu1 %vm13178_vm14, %v15404_v29  ;;  %vm13229_vm13 = vmpackc.low %vm2766_vm15, %vm2762_vm7  ;;  %8053 = vmatprep.subr.msk.bf16.mxu0 %vm8052_vm11, %v15404_v29  ;;  %vm2776_vm14 = vcmp.eq.s32.totalorder %v9337_v41, %v12791_v24  ;;  %vm2775_vm7 = vcmp.eq.s32.totalorder %v9337_v41, %v12809_v27  ;;  %vm2779_vm15 = vcmp.eq.s32.totalorder %v9340_v2, %v12809_v27 }
 0x1ce   :  { %8173 = vmatprep.subr.msk.bf16.mxu1 %vm13197_vm12, %v15404_v29  ;;  %vm8054_vm1 = vmpackc.low %vm2771_vm2, %vm2767_vm9  ;;  %vm2773_vm9 = vcmp.eq.s32.totalorder %v9299_v48, %v12858_v1  ;;  %vm2778_vm11 = vcmp.eq.s32.totalorder %v9337_v41, %v12837_v37 }
 0x1cf   :  { %vm13242_vm12 = vmpackc.low %vm2765_vm4, %vm2761_vm6  ;;  %vm2788_vm4 = vcmp.eq.s32.totalorder %v9381_v34, %v12791_v24 }
 0x1d0   :  { %8055 = vmatpush1.bf16.msk.msra.mxu0 %vm8054_vm1, %v15404_v29  ;;  %vm8056_vm2 = vmpackc.low %vm2780_vm3, %vm2776_vm14  ;;  %vm2782_vm14 = vcmp.eq.s32.totalorder %v9340_v2, %v12837_v37  ;;  %vm2777_vm1 = vcmp.eq.s32.totalorder %v9337_v41, %v12858_v1 }
 0x1d1   :  { %8175 = vmatpush1.bf16.msk.msra.mxu1 %vm13210_vm5, %v15404_v29  ;;  %vm13261_vm6 = vmpackc.low %vm2774_vm0, %vm2770_vm8  ;;  %8057 = vmatprep.subr.msk.bf16.mxu0 %vm8056_vm2, %v15404_v29  ;;  %vm2784_vm5 = vcmp.eq.s32.totalorder %v9378_v0, %v12791_v24  ;;  %vm2783_vm8 = vcmp.eq.s32.totalorder %v9378_v0, %v12809_v27  ;;  %vm2787_vm0 = vcmp.eq.s32.totalorder %v9381_v34, %v12809_v27 }
 0x1d2   :  { %8177 = vmatprep.subr.msk.bf16.mxu1 %vm13229_vm13, %v15404_v29  ;;  %vm8058_vm3 = vmpackc.low %vm2779_vm15, %vm2775_vm7  ;;  %vm2781_vm7 = vcmp.eq.s32.totalorder %v9340_v2, %v12858_v1  ;;  %vm2786_vm2 = vcmp.eq.s32.totalorder %v9378_v0, %v12837_v37  ;;  %v15916_v2 = vld [vmem:[#allocation37_spill] sm:$0xff] }
 0x1d3   :  { %vm13274_vm13 = vmpackc.low %vm2773_vm9, %vm2769_vm10  ;;  %vm2796_vm9 = vcmp.eq.s32.totalorder %v15880_v52, %v12791_v24 }
 0x1d4   :  { %8059 = vmatpush1.bf16.msk.msra.mxu0 %vm8058_vm3, %v15404_v29  ;;  %vm8060_vm15 = vmpackc.low %vm2788_vm4, %vm2784_vm5  ;;  %vm2790_vm5 = vcmp.eq.s32.totalorder %v9381_v34, %v12837_v37  ;;  %vm2785_vm3 = vcmp.eq.s32.totalorder %v9378_v0, %v12858_v1 }
 0x1d5   :  { %8179 = vmatpush1.bf16.msk.msra.mxu1 %vm13242_vm12, %v15404_v29  ;;  %vm13293_vm10 = vmpackc.low %vm2782_vm14, %vm2778_vm11  ;;  %8061 = vmatprep.subr.msk.bf16.mxu0 %vm8060_vm15, %v15404_v29  ;;  %vm2792_vm12 = vcmp.eq.s32.totalorder %v15879_v11, %v12791_v24  ;;  %vm2791_vm11 = vcmp.eq.s32.totalorder %v15879_v11, %v12809_v27  ;;  %vm2795_vm14 = vcmp.eq.s32.totalorder %v15880_v52, %v12809_v27 }
 0x1d6   :  { %8181 = vmatprep.subr.msk.bf16.mxu1 %vm13261_vm6, %v15404_v29  ;;  %vm8062_vm4 = vmpackc.low %vm2787_vm0, %vm2783_vm8  ;;  %vm2789_vm8 = vcmp.eq.s32.totalorder %v9381_v34, %v12858_v1  ;;  %vm2794_vm15 = vcmp.eq.s32.totalorder %v15879_v11, %v12837_v37  ;;  %v15921_v34 = vld [vmem:[#allocation38_spill] sm:$0xff] }
 0x1d7   :  { %vm13306_vm6 = vmpackc.low %vm2781_vm7, %vm2777_vm1  ;;  %vm2804_vm7 = vcmp.eq.s32.totalorder %v15886_v61, %v12791_v24 }
 0x1d8   :  { %8063 = vmatpush1.bf16.msk.msra.mxu0 %vm8062_vm4, %v15404_v29  ;;  %vm8064_vm0 = vmpackc.low %vm2796_vm9, %vm2792_vm12  ;;  %vm2798_vm12 = vcmp.eq.s32.totalorder %v15880_v52, %v12837_v37  ;;  %vm2793_vm4 = vcmp.eq.s32.totalorder %v15879_v11, %v12858_v1 }
 0x1d9   :  { %8183 = vmatpush1.bf16.msk.msra.mxu1 %vm13274_vm13, %v15404_v29  ;;  %vm13325_vm1 = vmpackc.low %vm2790_vm5, %vm2786_vm2  ;;  %8065 = vmatprep.subr.msk.bf16.mxu0 %vm8064_vm0, %v15404_v29  ;;  %vm2800_vm13 = vcmp.eq.s32.totalorder %v15885_v4, %v12791_v24  ;;  %vm2799_vm2 = vcmp.eq.s32.totalorder %v15885_v4, %v12809_v27  ;;  %vm2803_vm5 = vcmp.eq.s32.totalorder %v15886_v61, %v12809_v27 }
 0x1da   :  { %8185 = vmatprep.subr.msk.bf16.mxu1 %vm13293_vm10, %v15404_v29  ;;  %vm8066_vm9 = vmpackc.low %vm2795_vm14, %vm2791_vm11  ;;  %vm2797_vm11 = vcmp.eq.s32.totalorder %v15880_v52, %v12858_v1  ;;  %vm2802_vm0 = vcmp.eq.s32.totalorder %v15885_v4, %v12837_v37  ;;  %v15915_v52 = vld [vmem:[#allocation36_spill] sm:$0xff] }
 0x1db   :  { %vm13338_vm10 = vmpackc.low %vm2789_vm8, %vm2785_vm3  ;;  %vm2812_vm8 = vcmp.eq.s32.totalorder %v15892_v36, %v12791_v24 }
 0x1dc   :  { %8067 = vmatpush1.bf16.msk.msra.mxu0 %vm8066_vm9, %v15404_v29  ;;  %vm8068_vm14 = vmpackc.low %vm2804_vm7, %vm2800_vm13  ;;  %vm2806_vm13 = vcmp.eq.s32.totalorder %v15886_v61, %v12837_v37  ;;  %vm2801_vm9 = vcmp.eq.s32.totalorder %v15885_v4, %v12858_v1 }
 0x1dd   :  { %8187 = vmatpush1.bf16.msk.msra.mxu1 %vm13306_vm6, %v15404_v29  ;;  %vm13357_vm3 = vmpackc.low %vm2798_vm12, %vm2794_vm15  ;;  %8069 = vmatprep.subr.msk.bf16.mxu0 %vm8068_vm14, %v15404_v29  ;;  %vm2808_vm6 = vcmp.eq.s32.totalorder %v15891_v12, %v12791_v24  ;;  %vm2807_vm15 = vcmp.eq.s32.totalorder %v15891_v12, %v12809_v27  ;;  %vm2811_vm12 = vcmp.eq.s32.totalorder %v15892_v36, %v12809_v27 }
 0x1de   :  { %8189 = vmatprep.subr.msk.bf16.mxu1 %vm13325_vm1, %v15404_v29  ;;  %vm8070_vm7 = vmpackc.low %vm2803_vm5, %vm2799_vm2  ;;  %vm2805_vm2 = vcmp.eq.s32.totalorder %v15886_v61, %v12858_v1  ;;  %vm2810_vm14 = vcmp.eq.s32.totalorder %v15891_v12, %v12837_v37  ;;  %v15280_v61 = vmov 0.0  }
 0x1df   :  { %vm13370_vm1 = vmpackc.low %vm2797_vm11, %vm2793_vm4  ;;  %vm2820_vm11 = vcmp.eq.s32.totalorder %v15897_v54, %v12791_v24 }
 0x1e0   :  { %8071 = vmatpush1.bf16.msk.msra.mxu0 %vm8070_vm7, %v15404_v29  ;;  %vm8072_vm5 = vmpackc.low %vm2812_vm8, %vm2808_vm6  ;;  %vm2814_vm6 = vcmp.eq.s32.totalorder %v15892_v36, %v12837_v37  ;;  %vm2809_vm7 = vcmp.eq.s32.totalorder %v15891_v12, %v12858_v1 }
 0x1e1   :  { %8191 = vmatpush1.bf16.msk.msra.mxu1 %vm13338_vm10, %v15404_v29  ;;  %vm13389_vm4 = vmpackc.low %vm2806_vm13, %vm2802_vm0  ;;  %8073 = vmatprep.subr.msk.bf16.mxu0 %vm8072_vm5, %v15404_v29  ;;  %vm2816_vm10 = vcmp.eq.s32.totalorder %v15737_v47, %v12791_v24  ;;  %vm2815_vm0 = vcmp.eq.s32.totalorder %v15737_v47, %v12809_v27  ;;  %vm2819_vm13 = vcmp.eq.s32.totalorder %v15897_v54, %v12809_v27 }
 0x1e2   :  { %8193 = vmatprep.subr.msk.bf16.mxu1 %vm13357_vm3, %v15404_v29  ;;  %vm8074_vm3 = vmpackc.low %vm2811_vm12, %vm2807_vm15  ;;  %vm2813_vm15 = vcmp.eq.s32.totalorder %v15892_v36, %v12858_v1  ;;  %vm2818_vm5 = vcmp.eq.s32.totalorder %v15737_v47, %v12837_v37 }
 0x1e3   :  { %3256 = vmatmul.mubr.f32.vlgmr.msra.gmra.mrb[6].mxu0 %v8780_v49  ;;  %vm13408_vm8 = vmpackc.low %vm2805_vm2, %vm2801_vm9  ;;  %vm2828_vm2 = vcmp.eq.s32.totalorder %v15904_v31, %v12791_v24 }
 0x1e4   :  { %8075 = vmatpush1.bf16.msk.msra.mxu0 %vm8074_vm3, %v15404_v29  ;;  %3326 = vmatprep.mubr.f32.mxu0 %v15900_v59  ;;  %vm8076_vm12 = vmpackc.low %vm2820_vm11, %vm2816_vm10  ;;  %vm2817_vm3 = vcmp.eq.s32.totalorder %v15737_v47, %v12858_v1 }
 0x1e5   :  { %8195 = vmatpush1.bf16.msk.msra.mxu1 %vm13370_vm1, %v15404_v29  ;;  %vm13434_vm9 = vmpackc.low %vm2814_vm6, %vm2810_vm14  ;;  %8077 = vmatprep.subr.msk.bf16.mxu0 %vm8076_vm12, %v15404_v29  ;;  %vm2824_vm1 = vcmp.eq.s32.totalorder %v15903_v15, %v12791_v24  ;;  %vm2823_vm14 = vcmp.eq.s32.totalorder %v15903_v15, %v12809_v27  ;;  %vm2827_vm6 = vcmp.eq.s32.totalorder %v15904_v31, %v12809_v27 }
 0x1e6   :  { %8197 = vmatprep.subr.msk.bf16.mxu1 %vm13389_vm4, %v15404_v29  ;;  %vm2822_vm4 = vcmp.eq.s32.totalorder %v15897_v54, %v12837_v37  ;;  %vm8078_vm10 = vmpackc.low %vm2819_vm13, %vm2815_vm0  ;;  %vm2821_vm0 = vcmp.eq.s32.totalorder %v15897_v54, %v12858_v1  ;;  %vm2826_vm12 = vcmp.eq.s32.totalorder %v15903_v15, %v12837_v37  ;;  %v15927_v54 = vld [vmem:[#allocation41_spill] sm:$0xff] }
 0x1e7   :  { %vm13447_vm11 = vmpackc.low %vm2813_vm15, %vm2809_vm7  ;;  %vm2836_vm15 = vcmp.eq.s32.totalorder %v15910_v17, %v12791_v24 }
 0x1e8   :  { %8079 = vmatpush1.bf16.msk.msra.mxu0 %vm8078_vm10, %v15404_v29  ;;  %vm8080_vm13 = vmpackc.low %vm2828_vm2, %vm2824_vm1  ;;  %vm2830_vm1 = vcmp.eq.s32.totalorder %v15904_v31, %v12837_v37  ;;  %vm2825_vm10 = vcmp.eq.s32.totalorder %v15903_v15, %v12858_v1 }
 0x1e9   :  { %8199 = vmatpush1.bf16.msk.msra.mxu1 %vm13408_vm8, %v15404_v29  ;;  %vm13466_vm7 = vmpackc.low %vm2822_vm4, %vm2818_vm5  ;;  %8081 = vmatprep.subr.msk.bf16.mxu0 %vm8080_vm13, %v15404_v29  ;;  %vm2832_vm8 = vcmp.eq.s32.totalorder %v15909_v21, %v12791_v24  ;;  %vm2831_vm5 = vcmp.eq.s32.totalorder %v15909_v21, %v12809_v27  ;;  %vm2835_vm4 = vcmp.eq.s32.totalorder %v15910_v17, %v12809_v27 }
 0x1ea   :  { %8201 = vmatprep.subr.msk.bf16.mxu1 %vm13434_vm9, %v15404_v29  ;;  %vm8082_vm2 = vmpackc.low %vm2827_vm6, %vm2823_vm14  ;;  %vm2829_vm14 = vcmp.eq.s32.totalorder %v15904_v31, %v12858_v1  ;;  %vm2834_vm13 = vcmp.eq.s32.totalorder %v15909_v21, %v12837_v37 }
 0x1eb   :  { %vm13479_vm9 = vmpackc.low %vm2821_vm0, %vm2817_vm3  ;;  %vm2844_vm0 = vcmp.eq.s32.totalorder %v15916_v2, %v12791_v24 }
 0x1ec   :  { %3398 = vmatmul.mubr.f32.vlgmr.msra.gmra.mrb[6].mxu1 %v8780_v49  ;;  %8083 = vmatpush1.bf16.msk.msra.mxu0 %vm8082_vm2, %v15404_v29  ;;  %vm8084_vm6 = vmpackc.low %vm2836_vm15, %vm2832_vm8  ;;  %vm2838_vm8 = vcmp.eq.s32.totalorder %v15910_v17, %v12837_v37  ;;  %vm2833_vm2 = vcmp.eq.s32.totalorder %v15909_v21, %v12858_v1  ;;  %v15928_v49 = vld [vmem:[#allocation42_spill] sm:$0xff] }
 0x1ed   :  { %8203 = vmatpush1.bf16.msk.msra.mxu1 %vm13447_vm11, %v15404_v29  ;;  %3468 = vmatprep.mubr.f32.mxu1 %v15900_v59  ;;  %vm13499_vm3 = vmpackc.low %vm2830_vm1, %vm2826_vm12  ;;  %vm2840_vm11 = vcmp.eq.s32.totalorder %v15915_v52, %v12791_v24  ;;  %vm2839_vm12 = vcmp.eq.s32.totalorder %v15915_v52, %v12809_v27  ;;  %vm2843_vm1 = vcmp.eq.s32.totalorder %v15916_v2, %v12809_v27 }
 0x1ee   :  { %8205 = vmatprep.subr.msk.bf16.mxu1 %vm13466_vm7, %v15404_v29  ;;  %8085 = vmatprep.subr.msk.bf16.mxu0 %vm8084_vm6, %v15404_v29  ;;  %vm8086_vm15 = vmpackc.low %vm2835_vm4, %vm2831_vm5  ;;  %vm2837_vm5 = vcmp.eq.s32.totalorder %v15910_v17, %v12858_v1  ;;  %vm2842_vm6 = vcmp.eq.s32.totalorder %v15915_v52, %v12837_v37 }
 0x1ef   :  { %vm13512_vm7 = vmpackc.low %vm2829_vm14, %vm2825_vm10  ;;  %vm2852_vm14 = vcmp.eq.s32.totalorder %v15922_v10, %v12791_v24 }
 0x1f0   :  { %8087 = vmatpush1.bf16.msk.msra.mxu0 %vm8086_vm15, %v15404_v29  ;;  %vm8088_vm4 = vmpackc.low %vm2844_vm0, %vm2840_vm11  ;;  %vm2846_vm11 = vcmp.eq.s32.totalorder %v15916_v2, %v12837_v37  ;;  %vm2841_vm15 = vcmp.eq.s32.totalorder %v15915_v52, %v12858_v1 }
 0x1f1   :  { %8207 = vmatpush1.bf16.msk.msra.mxu1 %vm13479_vm9, %v15404_v29  ;;  %vm13531_vm10 = vmpackc.low %vm2838_vm8, %vm2834_vm13  ;;  %8089 = vmatprep.subr.msk.bf16.mxu0 %vm8088_vm4, %v15404_v29  ;;  %vm2848_vm9 = vcmp.eq.s32.totalorder %v15921_v34, %v12791_v24  ;;  %vm2847_vm13 = vcmp.eq.s32.totalorder %v15921_v34, %v12809_v27  ;;  %vm2851_vm8 = vcmp.eq.s32.totalorder %v15922_v10, %v12809_v27 }
 0x1f2   :  { %8209 = vmatprep.subr.msk.bf16.mxu1 %vm13499_vm3, %v15404_v29  ;;  %vm8090_vm0 = vmpackc.low %vm2843_vm1, %vm2839_vm12  ;;  %vm2845_vm12 = vcmp.eq.s32.totalorder %v15916_v2, %v12858_v1  ;;  %vm2860_vm4 = vcmp.eq.s32.totalorder %v15928_v49, %v12791_v24 }
 0x1f3   :  { %vm13544_vm3 = vmpackc.low %vm2837_vm5, %vm2833_vm2  ;;  %vm15257_vm5 = vcmask 1043456  }
 0x1f4   :  { %8091 = vmatpush1.bf16.msk.msra.mxu0 %vm8090_vm0, %v15404_v29  ;;  %vm8092_vm1 = vmpackc.low %vm2852_vm14, %vm2848_vm9  ;;  %vm2850_vm9 = vcmp.eq.s32.totalorder %v15921_v34, %v12837_v37  ;;  %vm2855_vm0 = vcmp.eq.s32.totalorder %v15927_v54, %v12809_v27 }
 0x1f5   :  { %8211 = vmatpush1.bf16.msk.msra.mxu1 %vm13512_vm7, %v15404_v29  ;;  %vm13563_vm2 = vmpackc.low %vm2846_vm11, %vm2842_vm6  ;;  %8093 = vmatprep.subr.msk.bf16.mxu0 %vm8092_vm1, %v15404_v29  ;;  %vm2856_vm7 = vcmp.eq.s32.totalorder %v15927_v54, %v12791_v24  ;;  %vm2849_vm11 = vcmp.eq.s32.totalorder %v15921_v34, %v12858_v1  ;;  %vm2859_vm1 = vcmp.eq.s32.totalorder %v15928_v49, %v12809_v27 }
 0x1f6   :  { %8213 = vmatprep.subr.msk.bf16.mxu1 %vm13531_vm10, %v15404_v29  ;;  %v1688_v30 = vpop.f32.mrb[2].mxu0  ;;  %vm2854_vm10 = vcmp.eq.s32.totalorder %v15922_v10, %v12837_v37  ;;  %vm8094_vm14 = vmpackc.low %vm2851_vm8, %vm2847_vm13  ;;  %vm2853_vm13 = vcmp.eq.s32.totalorder %v15922_v10, %v12858_v1 }
 0x1f7   :  { %v3479_v43 = vrot.slane %v1688_v30, 4  ;;  %v1690_v59 = vpop.f32.mrb[3].mxu0  ;;  %vm13585_vm6 = vmpackc.low %vm2845_vm12, %vm2841_vm15  ;;  %vm2864_vm15 = vcmp.eq.s32.totalorder %v15594_v16, %v12791_v24  ;;  %vm2868_vm12 = vcmp.eq.s32.totalorder %v15774_v23, %v12791_v24 }
 0x1f8   :  { %v3480_v31 = vrot.slane %v1690_v59, 4  ;;  %8095 = vmatpush1.bf16.msk.msra.mxu0 %vm8094_vm14, %v15404_v29  ;;  %vm8096_vm8 = vmpackc.low %vm2860_vm4, %vm2856_vm7  ;;  %vm2862_vm7 = vcmp.eq.s32.totalorder %v15928_v49, %v12837_v37  ;;  %vm2867_vm14 = vcmp.eq.s32.totalorder %v15774_v23, %v12809_v27 }
 0x1f9   :  { %8215 = vmatpush1.bf16.msk.msra.mxu1 %vm13544_vm3, %v15404_v29  ;;  %v13601_v55 = vsel %vm15257_vm5, %v12456_v13, %v3479_v43  ;;  %v8537_v32 = vpack.i.bf16 %v3479_v43, %v12456_v13  ;;  %vm13624_vm3 = vmpackc.low %vm2854_vm10, %vm2850_vm9  ;;  %8097 = vmatprep.subr.msk.bf16.mxu0 %vm8096_vm8, %v15404_v29  ;;  %vm2863_vm10 = vcmp.eq.s32.totalorder %v15594_v16, %v12809_v27  ;;  %v15940_v43 = vld [vmem:[#allocation12_spill] sm:$0xff] }
 0x1fa   :  { %8217 = vmatprep.subr.msk.bf16.mxu1 %vm13563_vm2, %v15404_v29  ;;  %v8542_v17 = vpack.i.bf16 %v3480_v31, %v12538_v50  ;;  %v13633_v2 = vsel %vm15257_vm5, %v15933_v8, %v3480_v31  ;;  %vm2858_vm2 = vcmp.eq.s32.totalorder %v15927_v54, %v12837_v37  ;;  %vm8098_vm4 = vmpackc.low %vm2859_vm1, %vm2855_vm0  ;;  %vm2857_vm0 = vcmp.eq.s32.totalorder %v15927_v54, %v12858_v1 }
 0x1fb   :  { %8538 = vrot.lane.b32.xlu1 %v8537_v32, %s8784_s26  ;;  %vm13649_vm9 = vmpackc.low %vm2853_vm13, %vm2849_vm11  ;;  %vm2861_vm11 = vcmp.eq.s32.totalorder %v15928_v49, %v12858_v1  ;;  %vm2876_vm8 = vcmp.eq.s32.totalorder %v15779_v53, %v12791_v24 }
 0x1fc   :  { %8099 = vmatpush1.bf16.msk.msra.mxu0 %vm8098_vm4, %v15404_v29  ;;  %vm8100_vm1 = vmpackc.low %vm2868_vm12, %vm2864_vm15  ;;  %vm2866_vm15 = vcmp.eq.s32.totalorder %v15594_v16, %v12837_v37  ;;  %vm2870_vm12 = vcmp.eq.s32.totalorder %v15774_v23, %v12837_v37  ;;  %vm2875_vm4 = vcmp.eq.s32.totalorder %v15779_v53, %v12809_v27 }
 0x1fd   :  { %8219 = vmatpush1.bf16.msk.msra.mxu1 %vm13585_vm6, %v15404_v29  ;;  %vm13671_vm13 = vmpackc.low %vm2862_vm7, %vm2858_vm2  ;;  %8101 = vmatprep.subr.msk.bf16.mxu0 %vm8100_vm1, %v15404_v29  ;;  %vm2872_vm6 = vcmp.eq.s32.totalorder %v15604_v45, %v12791_v24  ;;  %vm2871_vm7 = vcmp.eq.s32.totalorder %v15604_v45, %v12809_v27  ;;  %vm2884_vm1 = vcmp.eq.s32.totalorder %v15785_v46, %v12791_v24 }
 0x1fe   :  { %8221 = vmatprep.subr.msk.bf16.mxu1 %vm13624_vm3, %v15404_v29  ;;  %vm8102_vm3 = vmpackc.low %vm2867_vm14, %vm2863_vm10  ;;  %vm2865_vm10 = vcmp.eq.s32.totalorder %v15594_v16, %v12858_v1  ;;  %vm2869_vm14 = vcmp.eq.s32.totalorder %v15774_v23, %v12858_v1 }
 0x1ff   :  { %v1830_v10 = vpop.f32.mrb[2].mxu1  ;;  %8543 = vrot.lane.b32.xlu1 %v8542_v17, %s8784_s26  ;;  %vm13691_vm2 = vmpackc.low %vm2861_vm11, %vm2857_vm0  ;;  %vm2880_vm11 = vcmp.eq.s32.totalorder %v15614_v28, %v12791_v24 }
 0x200   :  { %v3481_v36 = vrot.slane %v1830_v10, 4  ;;  %v1832_v40 = vpop.f32.mrb[3].mxu1  ;;  %8103 = vmatpush1.bf16.msk.msra.mxu0 %vm8102_vm3, %v15404_v29  ;;  %vm8104_vm0 = vmpackc.low %vm2876_vm8, %vm2872_vm6  ;;  %vm2878_vm6 = vcmp.eq.s32.totalorder %v15779_v53, %v12837_v37  ;;  %vm2883_vm3 = vcmp.eq.s32.totalorder %v15785_v46, %v12809_v27 }
 0x201   :  { %v3482_v49 = vrot.slane %v1832_v40, 4  ;;  %8223 = vmatpush1.bf16.msk.msra.mxu1 %vm13649_vm9, %v15404_v29  ;;  %vm13726_vm9 = vmpackc.low %vm2870_vm12, %vm2866_vm15  ;;  %8105 = vmatprep.subr.msk.bf16.mxu0 %vm8104_vm0, %v15404_v29  ;;  %vm2879_vm12 = vcmp.eq.s32.totalorder %v15614_v28, %v12809_v27  ;;  %vm2892_vm0 = vcmp.eq.s32.totalorder %v15790_v57, %v12791_v24 }
 0x202   :  { %v13715_v59 = vsel %vm15257_vm5, %v15940_v43, %v3481_v36  ;;  %8225 = vmatprep.subr.msk.bf16.mxu1 %vm13671_vm13, %v15404_v29  ;;  %vm2874_vm13 = vcmp.eq.s32.totalorder %v15604_v45, %v12837_v37  ;;  %vm8106_vm8 = vmpackc.low %vm2875_vm4, %vm2871_vm7  ;;  %vm2873_vm7 = vcmp.eq.s32.totalorder %v15604_v45, %v12858_v1  ;;  %vm2877_vm4 = vcmp.eq.s32.totalorder %v15779_v53, %v12858_v1 }
 0x203   :  { %v8547_v31 = vpack.i.bf16 %v3482_v49, %v3481_v36  ;;  %v13747_v23 = vsel %vm15257_vm5, %v12538_v50, %v3482_v49  ;;  %vm13749_vm15 = vmpackc.low %vm2869_vm14, %vm2865_vm10  ;;  %vm2926_vm5 = vcmp.eq.s32.totalorder %v10244_v60, %v12837_v37 }
 0x204   :  { %8107 = vmatpush1.bf16.msk.msra.mxu0 %vm8106_vm8, %v15404_v29  ;;  %vm8108_vm10 = vmpackc.low %vm2884_vm1, %vm2880_vm11  ;;  %vm2882_vm8 = vcmp.eq.s32.totalorder %v15614_v28, %v12837_v37  ;;  %vm2886_vm11 = vcmp.eq.s32.totalorder %v15785_v46, %v12837_v37 }
 0x205   :  { %8227 = vmatpush1.bf16.msk.msra.mxu1 %vm13691_vm2, %v15404_v29  ;;  %8548 = vrot.lane.b32.xlu0 %v8547_v31, %s8784_s26  ;;  %vm13772_vm14 = vmpackc.low %vm2878_vm6, %vm2874_vm13  ;;  %vm2888_vm2 = vcmp.eq.s32.totalorder %v15620_v19, %v12791_v24  ;;  %vm2887_vm13 = vcmp.eq.s32.totalorder %v15620_v19, %v12809_v27  ;;  %vm2891_vm6 = vcmp.eq.s32.totalorder %v15790_v57, %v12809_v27 }
 0x206   :  { %8229 = vmatprep.subr.msk.bf16.mxu1 %vm13726_vm9, %v15404_v29  ;;  %8109 = vmatprep.subr.msk.bf16.mxu0 %vm8108_vm10, %v15404_v29  ;;  %vm8110_vm1 = vmpackc.low %vm2883_vm3, %vm2879_vm12  ;;  %vm2881_vm12 = vcmp.eq.s32.totalorder %v15614_v28, %v12858_v1  ;;  %vm2885_vm3 = vcmp.eq.s32.totalorder %v15785_v46, %v12858_v1  ;;  %vm2900_vm10 = vcmp.eq.s32.totalorder %v10033_v20, %v12791_v24 }
 0x207   :  { %vm13785_vm9 = vmpackc.low %vm2877_vm4, %vm2873_vm7 }
 0x208   :  { %8111 = vmatpush1.bf16.msk.msra.mxu0 %vm8110_vm1, %v15404_v29  ;;  %vm8112_vm7 = vmpackc.low %vm2892_vm0, %vm2888_vm2  ;;  %vm2890_vm1 = vcmp.eq.s32.totalorder %v15620_v19, %v12837_v37  ;;  %vm2894_vm2 = vcmp.eq.s32.totalorder %v15790_v57, %v12837_v37 }
 0x209   :  { %8231 = vmatpush1.bf16.msk.msra.mxu1 %vm13749_vm15, %v15404_v29  ;;  %3567 = vrot.lane.b32.xlu0 %v15933_v8, %s8785_s5  ;;  %vm13806_vm4 = vmpackc.low %vm2886_vm11, %vm2882_vm8  ;;  %vm2896_vm15 = vcmp.eq.s32.totalorder %v10010_v63, %v12791_v24  ;;  %vm2895_vm8 = vcmp.eq.s32.totalorder %v10010_v63, %v12809_v27  ;;  %vm2899_vm11 = vcmp.eq.s32.totalorder %v10033_v20, %v12809_v27 }
 0x20a   :  { %8233 = vmatprep.subr.msk.bf16.mxu1 %vm13772_vm14, %v15404_v29  ;;  %8113 = vmatprep.subr.msk.bf16.mxu0 %vm8112_vm7, %v15404_v29  ;;  %vm8114_vm14 = vmpackc.low %vm2891_vm6, %vm2887_vm13  ;;  %vm2889_vm13 = vcmp.eq.s32.totalorder %v15620_v19, %v12858_v1  ;;  %vm2893_vm6 = vcmp.eq.s32.totalorder %v15790_v57, %v12858_v1  ;;  %vm2908_vm7 = vcmp.eq.s32.totalorder %v10108_v22, %v12791_v24 }
 0x20b   :  { %vm13822_vm0 = vmpackc.low %vm2885_vm3, %vm2881_vm12 }
 0x20c   :  { %8115 = vmatpush1.bf16.msk.msra.mxu0 %vm8114_vm14, %v15404_v29  ;;  %vm8116_vm12 = vmpackc.low %vm2900_vm10, %vm2896_vm15  ;;  %vm2898_vm14 = vcmp.eq.s32.totalorder %v10010_v63, %v12837_v37  ;;  %vm2902_vm15 = vcmp.eq.s32.totalorder %v10033_v20, %v12837_v37 }
 0x20d   :  { %8235 = vmatpush1.bf16.msk.msra.mxu1 %vm13785_vm9, %v15404_v29  ;;  %3571 = vrot.lane.b32.xlu0 %v12538_v50, %s8785_s5  ;;  %vm13843_vm3 = vmpackc.low %vm2894_vm2, %vm2890_vm1  ;;  %vm2904_vm9 = vcmp.eq.s32.totalorder %v15634_v9, %v12791_v24  ;;  %vm2903_vm1 = vcmp.eq.s32.totalorder %v15634_v9, %v12809_v27  ;;  %vm2907_vm2 = vcmp.eq.s32.totalorder %v10108_v22, %v12809_v27 }
 0x20e   :  { %8237 = vmatprep.subr.msk.bf16.mxu1 %vm13806_vm4, %v15404_v29  ;;  %8117 = vmatprep.subr.msk.bf16.mxu0 %vm8116_vm12, %v15404_v29  ;;  %vm8118_vm10 = vmpackc.low %vm2899_vm11, %vm2895_vm8  ;;  %vm2897_vm12 = vcmp.eq.s32.totalorder %v10010_v63, %v12858_v1  ;;  %vm2901_vm8 = vcmp.eq.s32.totalorder %v10033_v20, %v12858_v1  ;;  %v5155_v63 = vshra.s32 %v15921_v34, 4 }
 0x20f   :  { %vm13856_vm4 = vmpackc.low %vm2893_vm6, %vm2889_vm13  ;;  %vm2916_vm6 = vcmp.eq.s32.totalorder %v15959_v26, %v12791_v24 }
 0x210   :  { %8119 = vmatpush1.bf16.msk.msra.mxu0 %vm8118_vm10, %v15404_v29  ;;  %vm8120_vm11 = vmpackc.low %vm2908_vm7, %vm2904_vm9  ;;  %vm2906_vm10 = vcmp.eq.s32.totalorder %v15634_v9, %v12837_v37  ;;  %vm2910_vm9 = vcmp.eq.s32.totalorder %v10108_v22, %v12837_v37 }
 0x211   :  { %8239 = vmatpush1.bf16.msk.msra.mxu1 %vm13822_vm0, %v15404_v29  ;;  %vm13875_vm13 = vmpackc.low %vm2902_vm15, %vm2898_vm14  ;;  %8121 = vmatprep.subr.msk.bf16.mxu0 %vm8120_vm11, %v15404_v29  ;;  %vm2912_vm0 = vcmp.eq.s32.totalorder %v10155_v14, %v12791_v24  ;;  %vm2911_vm14 = vcmp.eq.s32.totalorder %v10155_v14, %v12809_v27  ;;  %vm2915_vm15 = vcmp.eq.s32.totalorder %v15959_v26, %v12809_v27 }
 0x212   :  { %8241 = vmatprep.subr.msk.bf16.mxu1 %vm13843_vm3, %v15404_v29  ;;  %vm8122_vm7 = vmpackc.low %vm2907_vm2, %vm2903_vm1  ;;  %vm2905_vm11 = vcmp.eq.s32.totalorder %v15634_v9, %v12858_v1  ;;  %vm2909_vm1 = vcmp.eq.s32.totalorder %v10108_v22, %v12858_v1  ;;  %v8787_v22 = vmov 0   ;;  %v5065_v9 = vshra.s32 %v9093_v44, 8 }
 0x213   :  { %vm13888_vm3 = vmpackc.low %vm2901_vm8, %vm2897_vm12  ;;  %vm2924_vm8 = vcmp.eq.s32.totalorder %v10244_v60, %v12791_v24  ;;  %8562 = vset.pattern.permute.xlu0 %v8787_v22  ;;  %8633 = vset.pattern.permute.xlu1 %v8787_v22 }
 0x214   :  { %8123 = vmatpush1.bf16.msk.msra.mxu0 %vm8122_vm7, %v15404_v29  ;;  %vm8124_vm2 = vmpackc.low %vm2916_vm6, %vm2912_vm0  ;;  %vm2914_vm7 = vcmp.eq.s32.totalorder %v10155_v14, %v12837_v37  ;;  %vm2918_vm0 = vcmp.eq.s32.totalorder %v15959_v26, %v12837_v37 }
 0x215   :  { %8243 = vmatpush1.bf16.msk.msra.mxu1 %vm13856_vm4, %v15404_v29  ;;  %vm13907_vm12 = vmpackc.low %vm2910_vm9, %vm2906_vm10  ;;  %8125 = vmatprep.subr.msk.bf16.mxu0 %vm8124_vm2, %v15404_v29  ;;  %vm2920_vm4 = vcmp.eq.s32.totalorder %v10241_v42, %v12791_v24  ;;  %vm2919_vm10 = vcmp.eq.s32.totalorder %v10241_v42, %v12809_v27  ;;  %vm2923_vm9 = vcmp.eq.s32.totalorder %v10244_v60, %v12809_v27 }
 0x216   :  { %8245 = vmatprep.subr.msk.bf16.mxu1 %vm13875_vm13, %v15404_v29  ;;  %vm8126_vm6 = vmpackc.low %vm2915_vm15, %vm2911_vm14  ;;  %vm2913_vm2 = vcmp.eq.s32.totalorder %v10155_v14, %v12858_v1  ;;  %vm2917_vm14 = vcmp.eq.s32.totalorder %v15959_v26, %v12858_v1 }
 0x217   :  { %vm13920_vm13 = vmpackc.low %vm2909_vm1, %vm2905_vm11  ;;  %vm2928_vm1 = vcmp.eq.s32.totalorder %v10294_v33, %v12791_v24 }
 0x218   :  { %8127 = vmatpush1.bf16.msk.msra.mxu0 %vm8126_vm6, %v15404_v29  ;;  %vm8128_vm15 = vmpackc.low %vm2924_vm8, %vm2920_vm4  ;;  %vm2922_vm6 = vcmp.eq.s32.totalorder %v10241_v42, %v12837_v37 }
 0x219   :  { %8247 = vmatpush1.bf16.msk.msra.mxu1 %vm13888_vm3, %v15404_v29  ;;  %vm8252_vm11 = vmpackc.low %vm2918_vm0, %vm2914_vm7  ;;  %8129 = vmatprep.subr.msk.bf16.mxu0 %vm8128_vm15, %v15404_v29  ;;  %vm2932_vm3 = vcmp.eq.s32.totalorder %v10323_v7, %v12791_v24  ;;  %vm2931_vm7 = vcmp.eq.s32.totalorder %v10323_v7, %v12809_v27  ;;  %v8524_v24 = vpop.permute.xlu0 %8523 }
 0x21a   :  { %8249 = vmatprep.subr.msk.bf16.mxu1 %vm13907_vm12, %v15404_v29  ;;  %vm8130_vm4 = vmpackc.low %vm2923_vm9, %vm2919_vm10  ;;  %vm2927_vm12 = vcmp.eq.s32.totalorder %v10294_v33, %v12809_v27  ;;  %vm2921_vm10 = vcmp.eq.s32.totalorder %v10241_v42, %v12858_v1  ;;  %vm2925_vm9 = vcmp.eq.s32.totalorder %v10244_v60, %v12858_v1  ;;  %v8781_v42 = vld [vmem:[%s15108_s0 + $0x8] sm:$0xff] }
 0x21b   :  { %vm8254_vm8 = vmpackc.low %vm2917_vm14, %vm2913_vm2  ;;  %vm2930_vm14 = vcmp.eq.s32.totalorder %v10294_v33, %v12837_v37 }
 0x21c   :  { %8131 = vmatpush1.bf16.msk.msra.mxu0 %vm8130_vm4, %v15404_v29  ;;  %vm8132_vm0 = vmpackc.low %vm2932_vm3, %vm2928_vm1  ;;  %vm2934_vm4 = vcmp.eq.s32.totalorder %v10323_v7, %v12837_v37  ;;  %vm2933_vm1 = vcmp.eq.s32.totalorder %v10323_v7, %v12858_v1  ;;  %v8525_v37 = vunpack.i.l.bf16 %v8524_v24 }
 0x21d   :  { %8251 = vmatpush1.bf16.msk.msra.mxu1 %vm13920_vm13, %v15404_v29  ;;  %vm8256_vm15 = vmpackc.low %vm2926_vm5, %vm2922_vm6  ;;  %8133 = vmatprep.subr.msk.bf16.mxu0 %vm8132_vm0, %v15404_v29  ;;  %v8529_v60 = vpop.permute.xlu0 %8528  ;;  %vm15269_vm6 = vcmask 1039360  }
 0x21e   :  { %8253 = vmatprep.subr.msk.bf16.mxu1 %vm8252_vm11, %v15404_v29  ;;  %vm8134_vm2 = vmpackc.low %vm2931_vm7, %vm2927_vm12  ;;  %vm2929_vm11 = vcmp.eq.s32.totalorder %v10294_v33, %v12858_v1  ;;  %v8531_v27 = vunpack.i.h.bf16 %v8529_v60  ;;  %v8526_v33 = vunpack.i.h.bf16 %v8524_v24  ;;  %v8530_v32 = vunpack.i.l.bf16 %v8529_v60 }
 0x21f   :  { %vm8258_vm5 = vmpackc.low %vm2925_vm9, %vm2921_vm10 }
 0x220   :  { %8135 = vmatpush1.bf16.msk.msra.mxu0 %vm8134_vm2, %v15404_v29  ;;  %vm8260_vm13 = vmpackc.low %vm2934_vm4, %vm2930_vm14  ;;  %v3500_v36 = vsel %vm15269_vm6, %v8531_v27, %v8525_v37  ;;  %v3501_v49 = vsel %vm15269_vm6, %v8525_v37, %v8526_v33  ;;  %v3502_v46 = vsel %vm15269_vm6, %v8526_v33, %v8530_v32  ;;  %vm3573_vm2 = vcmask 908288  }
 0x221   :  { %8255 = vmatpush1.bf16.msk.msra.mxu1 %vm8254_vm8, %v15404_v29  ;;  %vm8262_vm3 = vmpackc.low %vm2933_vm1, %vm2929_vm11  ;;  %vm15966_vm8 = vcmask 1043456  }
 0x222   :  { %8257 = vmatprep.subr.msk.bf16.mxu1 %vm8256_vm15, %v15404_v29  ;;  %vm15967_vm12 = vmmov %vm15966_vm8  ;;  %vm15267_vm15 = vcmask 916480  }
 0x223   :  { %3327 = vmatmul.mubr.f32.vlgmr.msra.gmra.mrb[6].mxu0 %v8781_v42  ;;  %vm15968_vm7 = vmmov %vm15966_vm8 }
 0x224   :  { %vm15969_vm0 = vmmov %vm15968_vm7  ;;  %3675 = vmatprep.mubr.f32.mxu0 %v15280_v61 }
 0x225   :  { %8259 = vmatpush1.bf16.msk.msra.mxu1 %vm8258_vm5, %v15404_v29  ;;  %vm15970_vm10 = vmmov %vm15969_vm0 }
 0x226   :  { %8261 = vmatprep.subr.msk.bf16.mxu1 %vm8260_vm13, %v15404_v29  ;;  %vm15971_vm9 = vmmov %vm15969_vm0 }
 0x227   :  { %vm15972_vm14 = vmmov %vm15969_vm0 }
 0x228   :  { %vm15973_vm4 = vmmov %vm15969_vm0 }
 0x229   :  { %8263 = vmatpush1.bf16.msk.msra.mxu1 %vm8262_vm3, %v15404_v29  ;;  %vm15974_vm5 = vmmov %vm15969_vm0 }
 0x22a   :  { %vm15975_vm13 = vmmov %vm15969_vm0 }
 0x22b   :  { %vm15976_vm11 = vmmov %vm15969_vm0 }
 0x22c   :  { %3469 = vmatmul.mubr.f32.vlgmr.msra.gmra.mrb[6].mxu1 %v8781_v42  ;;  %v8534_v42 = vpop.permute.xlu0 %8533  ;;  %vm15977_vm1 = vmmov %vm15969_vm0 }
 0x22d   :  { %3752 = vmatprep.mubr.f32.mxu1 %v15280_v61  ;;  %v8536_v33 = vunpack.i.h.bf16 %v8534_v42  ;;  %v8535_v37 = vunpack.i.l.bf16 %v8534_v42  ;;  %vm15978_vm3 = vmmov %vm15969_vm0 }
 0x276   :  { %v2528_v7 = vpop.f32.mrb[4].mxu0 }
 0x277   :  { %v3511_v1 = vrot.slane %v2528_v7, 4  ;;  %v2530_v10 = vpop.f32.mrb[5].mxu0  ;;  %v8549_v60 = vpop.permute.xlu0 %8548 }
 0x278   :  { %v3512_v40 = vrot.slane %v2530_v10, 4  ;;  %v8550_v7 = vunpack.i.l.bf16 %v8549_v60 }
 0x279   :  { %v3582_v30 = vsel %vm15966_vm8, %v3500_v36, %v3511_v1  ;;  %vm3596_vm8 = vcmask 293888  }
 0x27a   :  { %v8266_v25 = vpack.c.bf16 %v3582_v30, %v13601_v55  ;;  %v3583_v29 = vsel %vm15967_vm12, %v3501_v49, %v3512_v40  ;;  %vm15979_vm12 = vmmov %vm15969_vm0 }
 0x27b   :  { %v8264_v31 = vpack.c.bf16 %v3583_v29, %v13633_v2  ;;  %v3544_v29 = vsel %vm15267_vm15, %v8535_v37, %v8536_v33 }
 0x27d   :  { %8265 = vmatprep.subr.bf16.mxu0 %v8264_v31 }
 0x27e   :  { %8267 = vmatpush1.bf16.msra.mxu0 %v8266_v25 }
 0x27f   :  { %v2670_v17 = vpop.f32.mrb[4].mxu1 }
 0x280   :  { %v3513_v53 = vrot.slane %v2670_v17, 4  ;;  %v2672_v48 = vpop.f32.mrb[5].mxu1 }
 0x281   :  { %v3514_v8 = vrot.slane %v2672_v48, 4 }
 0x282   :  { %v3584_v50 = vsel %vm15968_vm7, %v3502_v46, %v3513_v53  ;;  %v8552_v57 = vpack.i.bf16 %v3513_v53, %v3512_v40  ;;  %vm15980_vm7 = vmmov %vm15969_vm0 }
 0x283   :  { %v8274_v26 = vpack.c.bf16 %v3584_v50, %v13715_v59  ;;  %v8557_v20 = vpack.i.bf16 %v3511_v1, %v3514_v8  ;;  %v3585_v55 = vsel %vm15969_vm0, %v8530_v32, %v3514_v8  ;;  %v3765_v59 = vld [vmem:[%s15109_s3] sm:$0xff] }
 0x284   :  { %8553 = vrot.lane.b32.xlu1 %v8552_v57, %s8783_s25  ;;  %v8272_v2 = vpack.c.bf16 %v3585_v55, %v13747_v23  ;;  %3768 = vperm.xlu0 %8562, %v3765_v59   ;;  %v8539_v23 = vpop.permute.xlu1 %8538  ;;  %v8551_v57 = vunpack.i.h.bf16 %v8549_v60 }
 0x285   :  { %v8541_v49 = vunpack.i.h.bf16 %v8539_v23  ;;  %v8540_v25 = vunpack.i.l.bf16 %v8539_v23  ;;  %v3568_v23 = vpop.permute.xlu0 %3567 }
 0x286   :  { %8273 = vmatprep.subr.bf16.mxu1 %v8272_v2 }
 0x287   :  { %8275 = vmatpush1.bf16.msra.mxu1 %v8274_v26  ;;  %v3543_v55 = vsel %vm15267_vm15, %v8540_v25, %v8535_v37  ;;  %v3594_v25 = vld [vmem:[%s15110_s1] sm:$0xff] }
 0x288   :  { %8558 = vrot.lane.b32.xlu1 %v8557_v20, %s8783_s25  ;;  %v8544_v24 = vpop.permute.xlu1 %8543 }
 0x289   :  { %v8546_v27 = vunpack.i.h.bf16 %v8544_v24  ;;  %v8545_v31 = vunpack.i.l.bf16 %v8544_v24 }
 0x28b   :  { %v3558_v8 = vsel %vm15267_vm15, %v8541_v49, %v8546_v27  ;;  %v3545_v24 = vsel %vm15267_vm15, %v8536_v33, %v8545_v31  ;;  %v3593_v37 = vsel %vm15976_vm11, %v8545_v31, %v8551_v57  ;;  %vm15264_vm11 = vcmask 15360  }
 0x28c   :  { %3569 = vrot.lane.b32.xlu1 %v15940_v43, %s8785_s5  ;;  %v3559_v43 = vsel %vm15267_vm15, %v8546_v27, %v8550_v7  ;;  %v3590_v59 = vsel %vm15973_vm4, %v3543_v55, %v3558_v8 }
 0x28d   :  { %v3591_v53 = vsel %vm15971_vm9, %v3544_v29, %v3559_v43  ;;  %vm3826_vm9 = vcmask 1031168  }
 0x290   :  { %3565 = vrot.lane.b32.xlu1 %v12456_v13, %s8785_s5 }
 0x2f6   :  { %v8554_v1 = vpop.permute.xlu1 %8553  ;;  %v3328_v10 = vpop.f32.mrb[6].mxu0 }
 0x2f7   :  { %v8556_v36 = vunpack.i.h.bf16 %v8554_v1  ;;  %v8555_v40 = vunpack.i.l.bf16 %v8554_v1  ;;  %v3330_v30 = vpop.f32.mrb[7].mxu0 }
 0x2f9   :  { %v3528_v13 = vsel %vm15269_vm6, %v8555_v40, %v8556_v36 }
 0x2fa   :  { %v8559_v32 = vpop.permute.xlu1 %8558  ;;  %v3587_v17 = vsel %vm15970_vm10, %v3330_v30, %v3528_v13  ;;  %v3572_v13 = vpop.permute.xlu0 %3571  ;;  %vm15271_vm10 = vcmask 138240  }
 0x2fb   :  { %v8561_v48 = vunpack.i.h.bf16 %v8559_v32  ;;  %v8560_v46 = vunpack.i.l.bf16 %v8559_v32  ;;  %v8268_v50 = vpack.c.bf16 %v3591_v53, %v3587_v17 }
 0x2fd   :  { %v3529_v26 = vsel %vm15269_vm6, %v8556_v36, %v8560_v46  ;;  %v3527_v20 = vsel %vm15269_vm6, %v8561_v48, %v8555_v40  ;;  %8269 = vmatprep.subr.bf16.mxu0 %v8268_v50  ;;  %v3560_v36 = vsel %vm15267_vm15, %v8550_v7, %v8551_v57 }
 0x2fe   :  { %v3570_v2 = vpop.permute.xlu1 %3569  ;;  %v3586_v22 = vsel %vm15972_vm14, %v3328_v10, %v3527_v20  ;;  %v3592_v10 = vsel %vm15977_vm1, %v3545_v24, %v3560_v36 }
 0x2ff   :  { %v3470_v42 = vpop.f32.mrb[6].mxu1  ;;  %v8270_v27 = vpack.c.bf16 %v3590_v59, %v3586_v22  ;;  %v3575_v30 = vsel %vm3573_vm2, %v3568_v23, %v3570_v2  ;;  %v3576_v29 = vsel %vm3573_vm2, %v3570_v2, %v3572_v13 }
 0x300   :  { %v3588_v60 = vsel %vm15974_vm5, %v3470_v42, %v3529_v26  ;;  %v3472_v1 = vpop.f32.mrb[7].mxu1 }
 0x301   :  { %v3589_v40 = vsel %vm15975_vm13, %v3472_v1, %v8560_v46  ;;  %8271 = vmatpush1.bf16.msra.mxu0 %v8270_v27  ;;  %v8278_v33 = vpack.c.bf16 %v3592_v10, %v3588_v60 }
 0x302   :  { %v8276_v43 = vpack.c.bf16 %v3593_v37, %v3589_v40  ;;  %v3566_v49 = vpop.permute.xlu1 %3565  ;;  %7189 = vmatprep.subr.msk.mxu0 %vm15978_vm3, %v3575_v30  ;;  %v15981_v37 = vld [vmem:[#allocation3_spill] sm:$0xff]  ;;  %v15982_v30 = vld [vmem:[#allocation4_spill] sm:$0xff] }
 0x303   :  { %v3574_v7 = vsel %vm3573_vm2, %v3566_v49, %v3568_v23  ;;  %v3769_v31 = vpop.permute.xlu0 %3768  ;;  %vm15272_vm14 = vcmp.eq.s32.totalorder %v15981_v37, 0  ;;  %vm15270_vm4 = vcmp.eq.s32.totalorder %v15982_v30, 0  ;;  %vm15262_vm1 = vcmp.eq.s32.totalorder %v15982_v30, 9 }
 0x304   :  { %8277 = vmatprep.subr.bf16.mxu1 %v8276_v43  ;;  %vm15258_vm3 = vcmp.eq.s32.totalorder %v15981_v37, 9 }
 0x305   :  { %8279 = vmatpush1.bf16.msra.mxu1 %v8278_v33  ;;  %7190 = vmatpush1.msk.msra.mxu0 %vm15979_vm12, %v3574_v7 }
 0x306   :  { %7193 = vmatprep.subr.msk.mxu1 %vm15980_vm7, %v3572_v13  ;;  %7191 = vmatmul.mubr.msk.f32.vlgmr.msra.gmra.mrb[8].mxu0 %vm3596_vm8, %v3594_v25  ;;  %v15983_v13 = vld [vmem:[#allocation5_spill] sm:$0xff] }
 0x307   :  { %3681 = vmatprep.mubr.f32.mxu0 %v15280_v61  ;;  %vm15275_vm5 = vcmp.eq.s32.totalorder %v15983_v13, 0  ;;  %vm15260_vm7 = vcmp.eq.s32.totalorder %v15983_v13, 9 }
 0x309   :  { %7194 = vmatpush1.msk.msra.mxu1 %vm15969_vm0, %v3576_v29  ;;  %v15984_v29 = vld [vmem:[#allocation16_spill] sm:$0xff]  ;;  %vm3900_vm0 = vcmask 785408  }
 0x30a   :  { %7195 = vmatmul.mubr.msk.f32.vlgmr.msra.gmra.mrb[8].mxu1 %vm3596_vm8, %v3594_v25  ;;  %vm15273_vm13 = vcmp.eq.s32.totalorder %v15984_v29, 0  ;;  %vm15259_vm12 = vcmp.eq.s32.totalorder %v15984_v29, 9 }
 0x30b   :  { %3758 = vmatprep.mubr.f32.mxu1 %v15280_v61 }
 0x3d9   :  { %v3677_v32 = vpop.f32.mrb[8].mxu0 }
 0x3da   :  { %v3771_v17 = vadd.f32 %v3769_v31, %v3677_v32  ;;  %v3679_v53 = vpop.f32.mrb[9].mxu0 }
 0x3db   :  { %v3772_v20 = vadd.f32 %v3769_v31, %v3679_v53 }
 0x3dc   :  { %v3775_v48 = vmax.f32 %v3771_v17, 0.0 }
 0x3dd   :  { %v3754_v46 = vpop.f32.mrb[8].mxu1  ;;  %v3776_v2 = vmax.f32 %v3772_v20, 0.0 }
 0x3de   :  { %v3773_v8 = vadd.f32 %v3769_v31, %v3754_v46  ;;  %v3756_v50 = vpop.f32.mrb[9].mxu1  ;;  %3794 = vrot.lane.b32.xlu0 %v3775_v48, %s8788_s11 }
 0x3df   :  { %v3774_v26 = vadd.f32 %v3769_v31, %v3756_v50 }
 0x3e0   :  { %v3777_v57 = vmax.f32 %v3773_v8, 0.0 }
 0x3e1   :  { %v3778_v55 = vmax.f32 %v3774_v26, 0.0 }
 0x3e2   :  { %3798 = vrot.lane.b32.xlu1 %v3777_v57, %s8788_s11 }
 0x3e6   :  { %3800 = vrot.lane.b32.xlu1 %v3778_v55, %s8788_s11 }
 0x3ea   :  { %3796 = vrot.lane.b32.xlu1 %v3776_v2, %s8788_s11 }
 0x450   :  { %v3795_v22 = vpop.permute.xlu0 %3794 }
 0x451   :  { %v3810_v59 = vsel %vm15271_vm10, 0.0, %v3795_v22 }
 0x452   :  { %3818 = vrot.lane.b32.xlu0 %v3810_v59, %s8789_s12 }
 0x454   :  { %v3799_v23 = vpop.permute.xlu1 %3798 }
 0x458   :  { %v3801_v42 = vpop.permute.xlu1 %3800 }
 0x459   :  { %v3805_v1 = vsel %vm15271_vm10, %v3799_v23, %v3801_v42 }
 0x45a   :  { %v3811_v36 = vsel %vm3573_vm2, %v3805_v1, 0.0 }
 0x45c   :  { %v3797_v24 = vpop.permute.xlu1 %3796 }
 0x45d   :  { %v3804_v27 = vsel %vm15271_vm10, %v3797_v24, %v3799_v23  ;;  %v3803_v60 = vsel %vm15271_vm10, %v3795_v22, %v3797_v24  ;;  %v15985_v24 = vld [vmem:[#allocation6_spill] sm:$0xff] }
 0x45e   :  { %3822 = vrot.lane.b32.xlu0 %v3804_v27, %s8789_s12  ;;  %3820 = vrot.lane.b32.xlu1 %v3803_v60, %s8789_s12 }
 0x462   :  { %3824 = vrot.lane.b32.xlu1 %v3811_v36, %s8789_s12 }
 0x4c4   :  { %v3819_v40 = vpop.permute.xlu0 %3818 }
 0x4d0   :  { %v3823_v10 = vpop.permute.xlu0 %3822  ;;  %v3821_v43 = vpop.permute.xlu1 %3820 }
 0x4d1   :  { %v3827_v49 = vsel %vm3826_vm9, %v3819_v40, %v3821_v43  ;;  %v3828_v33 = vsel %vm3826_vm9, %v3821_v43, %v3823_v10  ;;  %v15986_v40 = vld [vmem:[#allocation7_spill] sm:$0xff] }
 0x4d2   :  { %v3844_v25 = vsel %vm15272_vm14, %v3828_v33, %v3803_v60  ;;  %v3843_v7 = vsel %vm15270_vm4, %v3827_v49, %v3810_v59 }
 0x4d3   :  { %3857 = vrot.lane.b32.xlu1 %v3844_v25, %s8790_s13  ;;  %3855 = vrot.lane.b32.xlu0 %v3843_v7, %s8790_s13 }
 0x4d4   :  { %v3825_v31 = vpop.permute.xlu1 %3824 }
 0x4d5   :  { %v3829_v32 = vsel %vm3826_vm9, %v3823_v10, %v3825_v31  ;;  %v3834_v17 = vsel %vm3826_vm9, %v3825_v31, 0.0  ;;  %v15987_v10 = vld [vmem:[#allocation14_spill] sm:$0xff] }
 0x4d6   :  { %v3846_v53 = vsel %vm15275_vm5, %v3834_v17, %v3811_v36  ;;  %v3845_v48 = vsel %vm15273_vm13, %v3829_v32, %v3804_v27  ;;  %v15988_v17 = vld [vmem:[#allocation10_spill] sm:$0xff] }
 0x4d7   :  { %3861 = vrot.lane.b32.xlu1 %v3846_v53, %s8790_s13  ;;  %3859 = vrot.lane.b32.xlu0 %v3845_v48, %s8790_s13 }
 0x545   :  { %v3856_v46 = vpop.permute.xlu0 %3855  ;;  %v3858_v8 = vpop.permute.xlu1 %3857 }
 0x546   :  { %v3871_v50 = vsel %vm15264_vm11, 0.0, %v3856_v46  ;;  %v3864_v57 = vsel %vm15264_vm11, %v3856_v46, %v3858_v8 }
 0x547   :  { %v3880_v26 = vsel %vm15262_vm1, %v3871_v50, %v3843_v7  ;;  %v3881_v20 = vsel %vm15258_vm3, %v3864_v57, %v3844_v25  ;;  %vm15261_vm3 = vcmp.eq.s32.totalorder %v15985_v24, 0  ;;  %vm3922_vm1 = vcmp.eq.s32.totalorder %v15986_v40, 9 }
 0x548   :  { %3892 = vrot.lane.b32.xlu0 %v3880_v26, %s8791_s14  ;;  %3894 = vrot.lane.b32.xlu1 %v3881_v20, %s8791_s14 }
 0x549   :  { %v3860_v55 = vpop.permute.xlu0 %3859  ;;  %v3862_v2 = vpop.permute.xlu1 %3861 }
 0x54a   :  { %v3865_v22 = vsel %vm15264_vm11, %v3858_v8, %v3860_v55  ;;  %v3866_v59 = vsel %vm15264_vm11, %v3860_v55, %v3862_v2  ;;  %vm3937_vm11 = vcmask 261120  }
 0x54b   :  { %v3882_v23 = vsel %vm15259_vm12, %v3865_v22, %v3845_v48  ;;  %v3883_v42 = vsel %vm15260_vm7, %v3866_v59, %v3846_v53  ;;  %vm15263_vm12 = vcmp.eq.s32.totalorder %v15986_v40, 0  ;;  %vm15266_vm7 = vcmp.eq.s32.totalorder %v15987_v10, 0 }
 0x54c   :  { %3896 = vrot.lane.b32.xlu0 %v3882_v23, %s8791_s14  ;;  %3898 = vrot.lane.b32.xlu1 %v3883_v42, %s8791_s14 }
 0x5ba   :  { %v3893_v27 = vpop.permute.xlu0 %3892  ;;  %v3895_v60 = vpop.permute.xlu1 %3894 }
 0x5bb   :  { %v3901_v1 = vsel %vm3900_vm0, %v3893_v27, %v3895_v60 }
 0x5bc   :  { %v3917_v36 = vsel %vm15261_vm3, %v3901_v1, %v3880_v26  ;;  %vm15265_vm3 = vcmp.eq.s32.totalorder %v15988_v17, 0  ;;  %v7198_v1 = vld [vmem:[%s15109_s3 + $0x10] sm:$0xff] }
 0x5bd   :  { %3929 = vrot.lane.b32.xlu0 %v3917_v36, %s8792_s15 }
 0x5be   :  { %v3897_v43 = vpop.permute.xlu0 %3896  ;;  %v3899_v49 = vpop.permute.xlu1 %3898 }
 0x5bf   :  { %v3902_v33 = vsel %vm3900_vm0, %v3895_v60, %v3897_v43  ;;  %v3903_v25 = vsel %vm3900_vm0, %v3897_v43, %v3899_v49  ;;  %v3908_v32 = vsel %vm3900_vm0, %v3899_v49, 0.0  ;;  %v3595_v60 = vld [vmem:[%s15110_s1 + $0x8] sm:$0xff] }
 0x5c0   :  { %v3918_v7 = vsel %vm15263_vm12, %v3902_v33, %v3881_v20  ;;  %v3919_v31 = vsel %vm15266_vm7, %v3903_v25, %v3882_v23  ;;  %v3920_v53 = vsel %vm15265_vm3, %v3908_v32, %v3883_v42  ;;  %vm3923_vm12 = vcmp.eq.s32.totalorder %v15987_v10, 9  ;;  %7196 = vmatmul.mubr.msk.f32.gmra.mrb[10].mxu1 %vm3596_vm8, %v3595_v60  ;;  %7192 = vmatmul.mubr.msk.f32.gmra.mrb[10].mxu0 %vm3596_vm8, %v3595_v60 }
 0x5c1   :  { %3931 = vrot.lane.b32.xlu1 %v3918_v7, %s8792_s15  ;;  %3933 = vrot.lane.b32.xlu0 %v3919_v31, %s8792_s15  ;;  %vm3921_vm3 = vcmp.eq.s32.totalorder %v15985_v24, 9  ;;  %vm3924_vm7 = vcmp.eq.s32.totalorder %v15988_v17, 9  ;;  %vm15268_vm8 = vcmask 900096  }
 0x5c2   :  { %4161 = vmatprep.mubr.f32.mxu0 %v15280_v61  ;;  %4232 = vmatprep.mubr.f32.mxu1 %v15280_v61 }
 0x5c5   :  { %3935 = vrot.lane.b32.xlu1 %v3920_v53, %s8792_s15 }
 0x62f   :  { %v3930_v48 = vpop.permute.xlu0 %3929 }
 0x630   :  { %v3945_v55 = vsel %vm3937_vm11, 0.0, %v3930_v48 }
 0x631   :  { %v3954_v23 = vsel %vm3921_vm3, %v3945_v55, %v3917_v36  ;;  %v7197_v36 = vld [vmem:[%s15109_s3 + $0x8] sm:$0xff] }
 0x633   :  { %v3934_v46 = vpop.permute.xlu0 %3933  ;;  %v3932_v8 = vpop.permute.xlu1 %3931 }
 0x634   :  { %v3938_v50 = vsel %vm3937_vm11, %v3930_v48, %v3932_v8  ;;  %v3939_v57 = vsel %vm3937_vm11, %v3932_v8, %v3934_v46 }
 0x635   :  { %v3955_v26 = vsel %vm3922_vm1, %v3938_v50, %v3918_v7  ;;  %v14113_v20 = vsel %vm3923_vm12, %v3939_v57, %v3919_v31 }
 0x636   :  { %v8563_v2 = vpack.i.bf16 %v14113_v20, %v3955_v26 }
 0x637   :  { %v3936_v22 = vpop.permute.xlu1 %3935 }
 0x638   :  { %v3940_v59 = vsel %vm3937_vm11, %v3934_v46, %v3936_v22  ;;  %8564 = vrot.lane.b32.xlu0 %v8563_v2, %s8783_s25 }
 0x639   :  { %v3957_v42 = vsel %vm3924_vm7, %v3940_v59, %v3920_v53 }
 0x63a   :  { %v8568_v27 = vpack.i.bf16 %v3954_v23, %v3957_v42 }
 0x63c   :  { %8574 = vrot.lane.b32.xlu0 %v8563_v2, %s8789_s12  ;;  %8569 = vrot.lane.b32.xlu1 %v8568_v27, %s8783_s25 }
 0x640   :  { %8584 = vrot.lane.b32.xlu0 %v8563_v2, %s8784_s26  ;;  %8579 = vrot.lane.b32.xlu1 %v8568_v27, %s8789_s12 }
 0x644   :  { %8594 = vrot.lane.b32.xlu0 %v8563_v2, %s8785_s5  ;;  %8589 = vrot.lane.b32.xlu1 %v8568_v27, %s8784_s26 }
 0x648   :  { %8604 = vrot.lane.b32.xlu0 %v8563_v2, %s8793_s16  ;;  %8599 = vrot.lane.b32.xlu1 %v8568_v27, %s8785_s5 }
 0x64c   :  { %8614 = vrot.lane.b32.xlu0 %v8563_v2, %s8791_s14  ;;  %8609 = vrot.lane.b32.xlu1 %v8568_v27, %s8793_s16 }
 0x650   :  { %8624 = vrot.lane.b32.xlu0 %v8563_v2, %s8794_s19  ;;  %8619 = vrot.lane.b32.xlu1 %v8568_v27, %s8791_s14 }
 0x654   :  { %4072 = vrot.lane.b32.xlu0 %v3955_v26, %s8795_s20  ;;  %8629 = vrot.lane.b32.xlu1 %v8568_v27, %s8794_s19 }
 0x658   :  { %4076 = vrot.lane.b32.xlu0 %v3957_v42, %s8795_s20  ;;  %4074 = vrot.lane.b32.xlu1 %v14113_v20, %s8795_s20 }
 0x65c   :  { %4090 = vperm.xlu0 %8562, %v7198_v1   ;;  %4070 = vrot.lane.b32.xlu1 %v3954_v23, %s8795_s20 }
 0x660   :  { %3783 = vperm.xlu1 %8633, %v7197_v36  }
 0x6aa   :  { %v8565_v43 = vpop.permute.xlu0 %8564 }
 0x6ab   :  { %v8567_v49 = vunpack.i.h.bf16 %v8565_v43  ;;  %v8566_v33 = vunpack.i.l.bf16 %v8565_v43 }
 0x6ad   :  { %v3972_v25 = vsel %vm15269_vm6, %v8566_v33, %v8567_v49 }
 0x6ae   :  { %v8575_v7 = vpop.permute.xlu0 %8574  ;;  %v8570_v31 = vpop.permute.xlu1 %8569  ;;  %v8280_v32 = vpack.c.bf16 %v3972_v25, %v3955_v26 }
 0x6af   :  { %v8572_v53 = vunpack.i.h.bf16 %v8570_v31  ;;  %v8571_v48 = vunpack.i.l.bf16 %v8570_v31  ;;  %v8577_v46 = vunpack.i.h.bf16 %v8575_v7  ;;  %v8576_v8 = vunpack.i.l.bf16 %v8575_v7 }
 0x6b0   :  { %8281 = vmatprep.subr.bf16.mxu0 %v8280_v32 }
 0x6b1   :  { %v3971_v50 = vsel %vm15269_vm6, %v8572_v53, %v8566_v33  ;;  %v3973_v57 = vsel %vm15269_vm6, %v8567_v49, %v8571_v48  ;;  %v8296_v55 = vpack.c.bf16 %v8571_v48, %v3957_v42  ;;  %v3987_v43 = vsel %vm3826_vm9, %v8576_v8, %v8577_v46 }
 0x6b2   :  { %v8282_v2 = vpack.c.bf16 %v3971_v50, %v3954_v23  ;;  %v8298_v22 = vpack.c.bf16 %v3973_v57, %v14113_v20  ;;  %v8585_v59 = vpop.permute.xlu0 %8584  ;;  %v8580_v27 = vpop.permute.xlu1 %8579  ;;  %vm15274_vm6 = vcmask 588800  }
 0x6b3   :  { %v8587_v60 = vunpack.i.h.bf16 %v8585_v59  ;;  %v8586_v1 = vunpack.i.l.bf16 %v8585_v59  ;;  %8297 = vmatprep.subr.bf16.mxu1 %v8296_v55  ;;  %v8582_v36 = vunpack.i.h.bf16 %v8580_v27  ;;  %v8581_v26 = vunpack.i.l.bf16 %v8580_v27 }
 0x6b4   :  { %8283 = vmatpush1.bf16.msra.mxu0 %v8282_v2  ;;  %8299 = vmatpush1.bf16.msra.mxu1 %v8298_v22 }
 0x6b5   :  { %v4002_v25 = vsel %vm15267_vm15, %v8586_v1, %v8587_v60  ;;  %v3986_v20 = vsel %vm3826_vm9, %v8582_v36, %v8576_v8  ;;  %v3988_v31 = vsel %vm3826_vm9, %v8577_v46, %v8581_v26 }
 0x6b6   :  { %v8595_v33 = vpop.permute.xlu0 %8594  ;;  %v8590_v7 = vpop.permute.xlu1 %8589  ;;  %v8284_v49 = vpack.c.bf16 %v4002_v25, %v3987_v43 }
 0x6b7   :  { %v8592_v42 = vunpack.i.h.bf16 %v8590_v7  ;;  %v8591_v23 = vunpack.i.l.bf16 %v8590_v7  ;;  %v8597_v32 = vunpack.i.h.bf16 %v8595_v33  ;;  %v8596_v53 = vunpack.i.l.bf16 %v8595_v33 }
 0x6b8   :  { %8285 = vmatprep.subr.bf16.mxu0 %v8284_v49 }
 0x6b9   :  { %v4001_v48 = vsel %vm15267_vm15, %v8592_v42, %v8586_v1  ;;  %v4003_v50 = vsel %vm15267_vm15, %v8587_v60, %v8591_v23  ;;  %v8300_v57 = vpack.c.bf16 %v8591_v23, %v8581_v26  ;;  %v4017_v46 = vsel %vm3573_vm2, %v8596_v53, %v8597_v32 }
 0x6ba   :  { %v8286_v55 = vpack.c.bf16 %v4001_v48, %v3986_v20  ;;  %v8302_v2 = vpack.c.bf16 %v4003_v50, %v3988_v31  ;;  %v8605_v22 = vpop.permute.xlu0 %8604  ;;  %v8600_v59 = vpop.permute.xlu1 %8599  ;;  %vm4062_vm15 = vcmask 777216  }
 0x6bb   :  { %v8607_v27 = vunpack.i.h.bf16 %v8605_v22  ;;  %v8606_v43 = vunpack.i.l.bf16 %v8605_v22  ;;  %8301 = vmatprep.subr.bf16.mxu1 %v8300_v57  ;;  %v8602_v25 = vunpack.i.h.bf16 %v8600_v59  ;;  %v8601_v8 = vunpack.i.l.bf16 %v8600_v59 }
 0x6bc   :  { %8287 = vmatpush1.bf16.msra.mxu0 %v8286_v55  ;;  %8303 = vmatpush1.bf16.msra.mxu1 %v8302_v2 }
 0x6bd   :  { %v4033_v36 = vsel %vm15268_vm8, %v8606_v43, %v8607_v27  ;;  %v4016_v49 = vsel %vm3573_vm2, %v8602_v25, %v8596_v53  ;;  %v4018_v42 = vsel %vm3573_vm2, %v8597_v32, %v8601_v8 }
 0x6be   :  { %v8615_v1 = vpop.permute.xlu0 %8614  ;;  %v8610_v33 = vpop.permute.xlu1 %8609  ;;  %v8288_v60 = vpack.c.bf16 %v4033_v36, %v4017_v46 }
 0x6bf   :  { %v8612_v26 = vunpack.i.h.bf16 %v8610_v33  ;;  %v8611_v7 = vunpack.i.l.bf16 %v8610_v33  ;;  %v8617_v23 = vunpack.i.h.bf16 %v8615_v1  ;;  %v8616_v20 = vunpack.i.l.bf16 %v8615_v1 }
 0x6c0   :  { %8289 = vmatprep.subr.bf16.mxu0 %v8288_v60 }
 0x6c1   :  { %v4032_v31 = vsel %vm15268_vm8, %v8612_v26, %v8606_v43  ;;  %v4034_v48 = vsel %vm15268_vm8, %v8607_v27, %v8611_v7  ;;  %v8304_v50 = vpack.c.bf16 %v8611_v7, %v8601_v8  ;;  %v4048_v53 = vsel %vm3900_vm0, %v8616_v20, %v8617_v23 }
 0x6c2   :  { %v8290_v57 = vpack.c.bf16 %v4032_v31, %v4016_v49  ;;  %v8306_v55 = vpack.c.bf16 %v4034_v48, %v4018_v42  ;;  %v8625_v2 = vpop.permute.xlu0 %8624  ;;  %v8620_v22 = vpop.permute.xlu1 %8619  ;;  %vm15298_vm8 = vcmask 769024  }
 0x6c3   :  { %v8627_v59 = vunpack.i.h.bf16 %v8625_v2  ;;  %v8626_v46 = vunpack.i.l.bf16 %v8625_v2  ;;  %8305 = vmatprep.subr.bf16.mxu1 %v8304_v50  ;;  %v8622_v36 = vunpack.i.h.bf16 %v8620_v22  ;;  %v8621_v32 = vunpack.i.l.bf16 %v8620_v22 }
 0x6c4   :  { %8291 = vmatpush1.bf16.msra.mxu0 %v8290_v57  ;;  %8307 = vmatpush1.bf16.msra.mxu1 %v8306_v55 }
 0x6c5   :  { %v4064_v25 = vsel %vm4062_vm15, %v8626_v46, %v8627_v59  ;;  %v4047_v60 = vsel %vm3900_vm0, %v8622_v36, %v8616_v20  ;;  %v4049_v26 = vsel %vm3900_vm0, %v8617_v23, %v8621_v32  ;;  %v3958_v23 = vld [vmem:[%s15111_s2] sm:$0xff] }
 0x6c6   :  { %v4073_v43 = vpop.permute.xlu0 %4072  ;;  %v8630_v1 = vpop.permute.xlu1 %8629  ;;  %v8292_v27 = vpack.c.bf16 %v4064_v25, %v4048_v53 }
 0x6c7   :  { %v8632_v8 = vunpack.i.h.bf16 %v8630_v1  ;;  %v8631_v33 = vunpack.i.l.bf16 %v8630_v1 }
 0x6c8   :  { %8293 = vmatprep.subr.bf16.mxu0 %v8292_v27 }
 0x6c9   :  { %v4063_v7 = vsel %vm4062_vm15, %v8632_v8, %v8626_v46  ;;  %v4065_v49 = vsel %vm4062_vm15, %v8627_v59, %v8631_v33  ;;  %v8308_v42 = vpack.c.bf16 %v8631_v33, %v8621_v32  ;;  %v3760_v59 = vpop.f32.mrb[10].mxu1  ;;  %v3683_v46 = vpop.f32.mrb[10].mxu0 }
 0x6ca   :  { %v8294_v31 = vpack.c.bf16 %v4063_v7, %v4047_v60  ;;  %v8310_v48 = vpack.c.bf16 %v4065_v49, %v4049_v26  ;;  %v4075_v50 = vpop.permute.xlu1 %4074  ;;  %v4077_v55 = vpop.permute.xlu0 %4076 }
 0x6cb   :  { %8309 = vmatprep.subr.bf16.mxu1 %v8308_v42  ;;  %v4080_v57 = vsel %vm15298_vm8, %v4073_v43, %v4075_v50  ;;  %v4081_v2 = vsel %vm15298_vm8, %v4075_v50, %v4077_v55  ;;  %v3762_v36 = vpop.f32.mrb[11].mxu1  ;;  %v3685_v32 = vpop.f32.mrb[11].mxu0 }
 0x6cc   :  { %8295 = vmatpush1.bf16.msra.mxu0 %v8294_v31  ;;  %8311 = vmatpush1.bf16.msra.mxu1 %v8310_v48 }
 0x6cd   :  { %4113 = vmatprep.subr.mxu0 %v4080_v57  ;;  %4184 = vmatprep.subr.mxu1 %v4077_v55 }
 0x6ce   :  { %v4071_v20 = vpop.permute.xlu1 %4070 }
 0x6cf   :  { %v4079_v22 = vsel %vm15298_vm8, %v4071_v20, %v4073_v43 }
 0x6d0   :  { %4114 = vmatpush1.msra.mxu0 %v4079_v22  ;;  %4185 = vmatpush1.msra.mxu1 %v4081_v2 }
 0x6d1   :  { %7199 = vmatmul.mubr.msk.f32.vlgmr.msra.gmra.mrb[12].mxu0 %vm15274_vm6, %v3958_v23  ;;  %7200 = vmatmul.mubr.msk.f32.vlgmr.msra.gmra.mrb[12].mxu1 %vm15274_vm6, %v3958_v23  ;;  %vm15997_vm6 = vcmp.eq.s32.totalorder %v15981_v37, 9 }
 0x6d2   :  { %4566 = vmatprep.mubr.f32.mxu0 %v15280_v61  ;;  %4637 = vmatprep.mubr.f32.mxu1 %v15280_v61 }
 0x6db   :  { %v4091_v53 = vpop.permute.xlu0 %4090 }
 0x6df   :  { %v3784_v25 = vpop.permute.xlu1 %3783 }
 0x6e0   :  { %v3786_v49 = vadd.f32 %v3784_v25, %v3683_v46  ;;  %v3788_v31 = vadd.f32 %v3784_v25, %v3760_v59  ;;  %v3787_v50 = vadd.f32 %v3784_v25, %v3685_v32  ;;  %v3789_v55 = vadd.f32 %v3784_v25, %v3762_v36 }
 0x7a4   :  { %v4163_v1 = vpop.f32.mrb[12].mxu0  ;;  %v4234_v27 = vpop.f32.mrb[12].mxu1 }
 0x7a5   :  { %v4164_v8 = vadd.f32 %v4163_v1, %v4091_v53  ;;  %v4235_v43 = vadd.f32 %v4234_v27, %v4091_v53  ;;  %v4165_v33 = vpop.f32.mrb[13].mxu0  ;;  %v4236_v60 = vpop.f32.mrb[13].mxu1 }
 0x7a6   :  { %v4166_v26 = vadd.f32 %v4165_v33, %v4091_v53  ;;  %v4237_v7 = vadd.f32 %v4236_v60, %v4091_v53 }
 0x7a7   :  { %v4239_v42 = vmax.f32 %v4164_v8, 0.0  ;;  %v4241_v48 = vmax.f32 %v4235_v43, 0.0 }
 0x7a8   :  { %v4240_v57 = vmax.f32 %v4166_v26, 0.0  ;;  %v4242_v20 = vmax.f32 %v4237_v7, 0.0 }
 0x7a9   :  { %v14188_v23 = vadd.f32 %v4239_v42, %v3786_v49  ;;  %v14190_v2 = vadd.f32 %v4241_v48, %v3788_v31 }
 0x7aa   :  { %v14192_v22 = vadd.f32 %v4240_v57, %v3787_v50  ;;  %v14194_v1 = vadd.f32 %v4242_v20, %v3789_v55 }
 0x7ab   :  { %15989 = vst [vmem:[#allocation43_spill] sm:$0xff] %v14188_v23  ;;  %15990 = vst [vmem:[#allocation13_spill] sm:$0xff] %v14190_v2  ;;  %v15278_v27 = vmax.f32 %v14190_v2, 0.0  ;;  %v15279_v59 = vmax.f32 %v14188_v23, 0.0  ;;  %v5087_v2 = vshra.s32 %v15737_v47, 8 }
 0x7ac   :  { %15991 = vst [vmem:[#allocation17_spill] sm:$0xff] %v14192_v22  ;;  %15992 = vst [vmem:[#allocation45_spill] sm:$0xff] %v14194_v1  ;;  %v15276_v53 = vmax.f32 %v14194_v1, 0.0  ;;  %v15277_v46 = vmax.f32 %v14192_v22, 0.0 }
 0x7ad   :  { %4259 = vrot.lane.b32.xlu0 %v15278_v27, %s8788_s11 }
 0x7ae   :  { %4261 = vrot.lane.b32.xlu1 %v15276_v53, %s8788_s11 }
 0x7b1   :  { %4255 = vrot.lane.b32.xlu0 %v15279_v59, %s8788_s11 }
 0x7b2   :  { %4257 = vrot.lane.b32.xlu1 %v15277_v46, %s8788_s11 }
 0x81f   :  { %v4260_v36 = vpop.permute.xlu0 %4259 }
 0x820   :  { %v4262_v32 = vpop.permute.xlu1 %4261 }
 0x821   :  { %v4265_v60 = vsel %vm15271_vm10, %v4260_v36, %v4262_v32 }
 0x822   :  { %v4271_v7 = vsel %vm3573_vm2, %v4265_v60, 0.0 }
 0x823   :  { %v4256_v25 = vpop.permute.xlu0 %4255 }
 0x824   :  { %v4258_v8 = vpop.permute.xlu1 %4257  ;;  %v4270_v43 = vsel %vm15271_vm10, 0.0, %v4256_v25 }
 0x825   :  { %4274 = vrot.lane.b32.xlu0 %v4270_v43, %s8789_s12  ;;  %v4263_v33 = vsel %vm15271_vm10, %v4256_v25, %v4258_v8  ;;  %v4264_v26 = vsel %vm15271_vm10, %v4258_v8, %v4260_v36  ;;  %vm15994_vm10 = vcmp.eq.s32.totalorder %v15982_v30, 9 }
 0x826   :  { %4276 = vrot.lane.b32.xlu1 %v4263_v33, %s8789_s12 }
 0x829   :  { %4278 = vrot.lane.b32.xlu0 %v4264_v26, %s8789_s12 }
 0x82a   :  { %4280 = vrot.lane.b32.xlu1 %v4271_v7, %s8789_s12 }
 0x897   :  { %v4275_v49 = vpop.permute.xlu0 %4274 }
 0x898   :  { %v4277_v42 = vpop.permute.xlu1 %4276 }
 0x899   :  { %v4282_v31 = vsel %vm3826_vm9, %v4275_v49, %v4277_v42 }
 0x89a   :  { %v4290_v48 = vsel %vm15270_vm4, %v4282_v31, %v4270_v43  ;;  %vm15993_vm4 = vcmask 15360  }
 0x89b   :  { %v4279_v50 = vpop.permute.xlu0 %4278  ;;  %4298 = vrot.lane.b32.xlu0 %v4290_v48, %s8790_s13 }
 0x89c   :  { %v4283_v57 = vsel %vm3826_vm9, %v4277_v42, %v4279_v50  ;;  %v4281_v55 = vpop.permute.xlu1 %4280 }
 0x89d   :  { %v4284_v20 = vsel %vm3826_vm9, %v4279_v50, %v4281_v55  ;;  %v4291_v36 = vsel %vm15272_vm14, %v4283_v57, %v4263_v33  ;;  %v4289_v32 = vsel %vm3826_vm9, %v4281_v55, 0.0  ;;  %vm15995_vm14 = vmmov %vm15993_vm4 }
 0x89e   :  { %4300 = vrot.lane.b32.xlu1 %v4291_v36, %s8790_s13  ;;  %v4292_v25 = vsel %vm15273_vm13, %v4284_v20, %v4264_v26  ;;  %v4293_v8 = vsel %vm15275_vm5, %v4289_v32, %v4271_v7  ;;  %vm15996_vm13 = vmmov %vm15993_vm4  ;;  %vm15998_vm5 = vcmp.eq.s32.totalorder %v15984_v29, 9 }
 0x89f   :  { %4302 = vrot.lane.b32.xlu0 %v4292_v25, %s8790_s13 }
 0x8a2   :  { %4304 = vrot.lane.b32.xlu1 %v4293_v8, %s8790_s13 }
 0x90d   :  { %v4299_v43 = vpop.permute.xlu0 %4298 }
 0x90e   :  { %v4313_v60 = vsel %vm15993_vm4, 0.0, %v4299_v43 }
 0x90f   :  { %v4314_v33 = vsel %vm15994_vm10, %v4313_v60, %v4290_v48  ;;  %vm15999_vm10 = vmmov %vm15993_vm4  ;;  %vm16000_vm4 = vcmp.eq.s32.totalorder %v15983_v13, 9 }
 0x910   :  { %4322 = vrot.lane.b32.xlu0 %v4314_v33, %s8791_s14  ;;  %v4301_v49 = vpop.permute.xlu1 %4300 }
 0x911   :  { %v4306_v42 = vsel %vm15995_vm14, %v4299_v43, %v4301_v49  ;;  %v4303_v31 = vpop.permute.xlu0 %4302  ;;  %vm16002_vm14 = vcmp.eq.s32.totalorder %v15986_v40, 0 }
 0x912   :  { %v4307_v26 = vsel %vm15996_vm13, %v4301_v49, %v4303_v31  ;;  %v4315_v50 = vsel %vm15997_vm6, %v4306_v42, %v4291_v36  ;;  %vm16001_vm6 = vcmp.eq.s32.totalorder %v15985_v24, 0  ;;  %vm16004_vm13 = vcmp.eq.s32.totalorder %v15988_v17, 0 }
 0x913   :  { %4324 = vrot.lane.b32.xlu1 %v4315_v50, %s8791_s14  ;;  %v4316_v7 = vsel %vm15998_vm5, %v4307_v26, %v4292_v25  ;;  %vm16003_vm5 = vcmp.eq.s32.totalorder %v15987_v10, 0 }
 0x914   :  { %4326 = vrot.lane.b32.xlu0 %v4316_v7, %s8791_s14  ;;  %v4305_v57 = vpop.permute.xlu1 %4304 }
 0x915   :  { %v4308_v48 = vsel %vm15999_vm10, %v4303_v31, %v4305_v57  ;;  %vm16005_vm10 = vcmask 1039360  }
 0x916   :  { %v4317_v55 = vsel %vm16000_vm4, %v4308_v48, %v4293_v8  ;;  %vm16006_vm4 = vmmov %vm16005_vm10 }
 0x917   :  { %4328 = vrot.lane.b32.xlu1 %v4317_v55, %s8791_s14 }
 0x982   :  { %v4323_v20 = vpop.permute.xlu0 %4322 }
 0x985   :  { %v4325_v32 = vpop.permute.xlu1 %4324 }
 0x986   :  { %v4330_v43 = vsel %vm3900_vm0, %v4323_v20, %v4325_v32  ;;  %v4327_v36 = vpop.permute.xlu0 %4326 }
 0x987   :  { %v4331_v60 = vsel %vm3900_vm0, %v4325_v32, %v4327_v36  ;;  %v4338_v25 = vsel %vm16001_vm6, %v4330_v43, %v4314_v33  ;;  %vm16007_vm6 = vmmov %vm16006_vm4 }
 0x988   :  { %4346 = vrot.lane.b32.xlu0 %v4338_v25, %s8792_s15  ;;  %v4339_v49 = vsel %vm16002_vm14, %v4331_v60, %v4315_v50  ;;  %vm16008_vm14 = vcmask 916480  }
 0x989   :  { %4348 = vrot.lane.b32.xlu1 %v4339_v49, %s8792_s15  ;;  %v4329_v8 = vpop.permute.xlu1 %4328 }
 0x98a   :  { %v4332_v42 = vsel %vm3900_vm0, %v4327_v36, %v4329_v8  ;;  %v4337_v31 = vsel %vm3900_vm0, %v4329_v8, 0.0 }
 0x98b   :  { %v4340_v26 = vsel %vm16003_vm5, %v4332_v42, %v4316_v7  ;;  %v4341_v57 = vsel %vm16004_vm13, %v4337_v31, %v4317_v55  ;;  %vm16009_vm5 = vmmov %vm16008_vm14 }
 0x98c   :  { %4350 = vrot.lane.b32.xlu0 %v4340_v26, %s8792_s15  ;;  %vm16010_vm13 = vmmov %vm16009_vm5 }
 0x98d   :  { %4352 = vrot.lane.b32.xlu1 %v4341_v57, %s8792_s15 }
 0x9fa   :  { %v4347_v33 = vpop.permute.xlu0 %4346 }
 0x9fb   :  { %v4349_v48 = vpop.permute.xlu1 %4348  ;;  %v4361_v20 = vsel %vm3937_vm11, 0.0, %v4347_v33 }
 0x9fc   :  { %v4354_v50 = vsel %vm3937_vm11, %v4347_v33, %v4349_v48  ;;  %v4362_v8 = vsel %vm3921_vm3, %v4361_v20, %v4338_v25  ;;  %v7202_v25 = vld [vmem:[%s15109_s3 + $0x18] sm:$0xff] }
 0x9fd   :  { %v4363_v7 = vsel %vm3922_vm1, %v4354_v50, %v4339_v49 }
 0x9fe   :  { %v4351_v32 = vpop.permute.xlu0 %4350 }
 0x9ff   :  { %v4355_v43 = vsel %vm3937_vm11, %v4349_v48, %v4351_v32  ;;  %v4353_v36 = vpop.permute.xlu1 %4352 }
 0xa00   :  { %v4364_v55 = vsel %vm3923_vm12, %v4355_v43, %v4340_v26  ;;  %v4356_v60 = vsel %vm3937_vm11, %v4351_v32, %v4353_v36 }
 0xa01   :  { %v4365_v42 = vsel %vm3924_vm7, %v4356_v60, %v4341_v57  ;;  %v8634_v31 = vpack.i.bf16 %v4364_v55, %v4363_v7 }
 0xa02   :  { %v8639_v33 = vpack.i.bf16 %v4362_v8, %v4365_v42 }
 0xa03   :  { %8635 = vrot.lane.b32.xlu0 %v8634_v31, %s8783_s25 }
 0xa04   :  { %8640 = vrot.lane.b32.xlu1 %v8639_v33, %s8783_s25 }
 0xa07   :  { %8645 = vrot.lane.b32.xlu0 %v8634_v31, %s8789_s12 }
 0xa08   :  { %8650 = vrot.lane.b32.xlu1 %v8639_v33, %s8789_s12 }
 0xa0b   :  { %8655 = vrot.lane.b32.xlu0 %v8634_v31, %s8784_s26 }
 0xa0c   :  { %8660 = vrot.lane.b32.xlu1 %v8639_v33, %s8784_s26 }
 0xa0f   :  { %8665 = vrot.lane.b32.xlu0 %v8634_v31, %s8785_s5 }
 0xa10   :  { %8670 = vrot.lane.b32.xlu1 %v8639_v33, %s8785_s5 }
 0xa13   :  { %8675 = vrot.lane.b32.xlu0 %v8634_v31, %s8793_s16 }
 0xa14   :  { %8680 = vrot.lane.b32.xlu1 %v8639_v33, %s8793_s16 }
 0xa17   :  { %8685 = vrot.lane.b32.xlu0 %v8634_v31, %s8791_s14 }
 0xa18   :  { %8690 = vrot.lane.b32.xlu1 %v8639_v33, %s8791_s14 }
 0xa1b   :  { %8695 = vrot.lane.b32.xlu0 %v8634_v31, %s8794_s19 }
 0xa1c   :  { %8700 = vrot.lane.b32.xlu1 %v8639_v33, %s8794_s19 }
 0xa1f   :  { %4479 = vrot.lane.b32.xlu0 %v4363_v7, %s8795_s20 }
 0xa20   :  { %4481 = vrot.lane.b32.xlu1 %v4364_v55, %s8795_s20 }
 0xa23   :  { %4483 = vrot.lane.b32.xlu0 %v4365_v42, %s8795_s20 }
 0xa24   :  { %4477 = vrot.lane.b32.xlu1 %v4362_v8, %s8795_s20 }
 0xa27   :  { %4496 = vperm.xlu0 %8562, %v7202_v25  }
 0xa75   :  { %v8636_v49 = vpop.permute.xlu0 %8635 }
 0xa76   :  { %v8638_v26 = vunpack.i.h.bf16 %v8636_v49  ;;  %v8637_v57 = vunpack.i.l.bf16 %v8636_v49  ;;  %v8641_v48 = vpop.permute.xlu1 %8640 }
 0xa77   :  { %v8643_v50 = vunpack.i.h.bf16 %v8641_v48  ;;  %v8642_v20 = vunpack.i.l.bf16 %v8641_v48 }
 0xa78   :  { %v4381_v32 = vsel %vm16005_vm10, %v8637_v57, %v8638_v26  ;;  %vm16011_vm10 = vcmask 900096  }
 0xa79   :  { %v4380_v43 = vsel %vm16006_vm4, %v8643_v50, %v8637_v57  ;;  %v4382_v36 = vsel %vm16007_vm6, %v8638_v26, %v8642_v20  ;;  %v8328_v60 = vpack.c.bf16 %v8642_v20, %v4365_v42  ;;  %v8646_v31 = vpop.permute.xlu0 %8645  ;;  %v8312_v33 = vpack.c.bf16 %v4381_v32, %v4363_v7  ;;  %vm16012_vm4 = vmmov %vm16011_vm10 }
 0xa7a   :  { %v8314_v53 = vpack.c.bf16 %v4380_v43, %v4362_v8  ;;  %v8330_v46 = vpack.c.bf16 %v4382_v36, %v4364_v55  ;;  %v8651_v27 = vpop.permute.xlu1 %8650  ;;  %v8648_v25 = vunpack.i.h.bf16 %v8646_v31  ;;  %v8647_v59 = vunpack.i.l.bf16 %v8646_v31  ;;  %vm16013_vm6 = vmmov %vm16012_vm4 }
 0xa7b   :  { %8313 = vmatprep.subr.bf16.mxu0 %v8312_v33  ;;  %8329 = vmatprep.subr.bf16.mxu1 %v8328_v60  ;;  %v8653_v49 = vunpack.i.h.bf16 %v8651_v27  ;;  %v8652_v61 = vunpack.i.l.bf16 %v8651_v27 }
 0xa7c   :  { %8315 = vmatpush1.bf16.msra.mxu0 %v8314_v53  ;;  %8331 = vmatpush1.bf16.msra.mxu1 %v8330_v46  ;;  %v4396_v55 = vsel %vm3826_vm9, %v8647_v59, %v8648_v25 }
 0xa7d   :  { %v8656_v48 = vpop.permute.xlu0 %8655  ;;  %v4395_v42 = vsel %vm3826_vm9, %v8653_v49, %v8647_v59  ;;  %v4397_v7 = vsel %vm3826_vm9, %v8648_v25, %v8652_v61 }
 0xa7e   :  { %v8658_v1 = vunpack.i.h.bf16 %v8656_v48  ;;  %v8657_v22 = vunpack.i.l.bf16 %v8656_v48  ;;  %v8661_v57 = vpop.permute.xlu1 %8660 }
 0xa7f   :  { %v8663_v50 = vunpack.i.h.bf16 %v8661_v57  ;;  %v8662_v26 = vunpack.i.l.bf16 %v8661_v57 }
 0xa80   :  { %v4411_v8 = vsel %vm16008_vm14, %v8657_v22, %v8658_v1  ;;  %vm16014_vm14 = vcmask 588800  }
 0xa81   :  { %v4410_v20 = vsel %vm16009_vm5, %v8663_v50, %v8657_v22  ;;  %v4412_v27 = vsel %vm16010_vm13, %v8658_v1, %v8662_v26  ;;  %v8332_v53 = vpack.c.bf16 %v8662_v26, %v8652_v61  ;;  %v8666_v46 = vpop.permute.xlu0 %8665  ;;  %v8316_v32 = vpack.c.bf16 %v4411_v8, %v4396_v55  ;;  %vm16015_vm5 = vmmov %vm16014_vm14 }
 0xa82   :  { %v8318_v43 = vpack.c.bf16 %v4410_v20, %v4395_v42  ;;  %v8334_v36 = vpack.c.bf16 %v4412_v27, %v4397_v7  ;;  %v8671_v60 = vpop.permute.xlu1 %8670  ;;  %v8668_v31 = vunpack.i.h.bf16 %v8666_v46  ;;  %v8667_v33 = vunpack.i.l.bf16 %v8666_v46 }
 0xa83   :  { %8317 = vmatprep.subr.bf16.mxu0 %v8316_v32  ;;  %8333 = vmatprep.subr.bf16.mxu1 %v8332_v53  ;;  %v8673_v49 = vunpack.i.h.bf16 %v8671_v60  ;;  %v8672_v48 = vunpack.i.l.bf16 %v8671_v60  ;;  %vm16017_vm13 = vcmask 138240  }
 0xa84   :  { %8319 = vmatpush1.bf16.msra.mxu0 %v8318_v43  ;;  %8335 = vmatpush1.bf16.msra.mxu1 %v8334_v36  ;;  %v4426_v42 = vsel %vm3573_vm2, %v8667_v33, %v8668_v31 }
 0xa85   :  { %v8676_v59 = vpop.permute.xlu0 %8675  ;;  %v4425_v61 = vsel %vm3573_vm2, %v8673_v49, %v8667_v33  ;;  %v4427_v26 = vsel %vm3573_vm2, %v8668_v31, %v8672_v48 }
 0xa86   :  { %v8678_v25 = vunpack.i.h.bf16 %v8676_v59  ;;  %v8677_v57 = vunpack.i.l.bf16 %v8676_v59  ;;  %v8681_v22 = vpop.permute.xlu1 %8680 }
 0xa87   :  { %v8683_v50 = vunpack.i.h.bf16 %v8681_v22  ;;  %v8682_v1 = vunpack.i.l.bf16 %v8681_v22 }
 0xa88   :  { %v4441_v7 = vsel %vm16011_vm10, %v8677_v57, %v8678_v25  ;;  %vm16018_vm10 = vmmov %vm16017_vm13 }
 0xa89   :  { %v4440_v55 = vsel %vm16012_vm4, %v8683_v50, %v8677_v57  ;;  %v4442_v8 = vsel %vm16013_vm6, %v8678_v25, %v8682_v1  ;;  %v8336_v20 = vpack.c.bf16 %v8682_v1, %v8672_v48  ;;  %v8686_v27 = vpop.permute.xlu0 %8685  ;;  %v8320_v53 = vpack.c.bf16 %v4441_v7, %v4426_v42  ;;  %vm16019_vm4 = vmmov %vm16018_vm10 }
 0xa8a   :  { %v8322_v46 = vpack.c.bf16 %v4440_v55, %v4425_v61  ;;  %v8338_v32 = vpack.c.bf16 %v4442_v8, %v4427_v26  ;;  %v8691_v43 = vpop.permute.xlu1 %8690  ;;  %v8688_v36 = vunpack.i.h.bf16 %v8686_v27  ;;  %v8687_v60 = vunpack.i.l.bf16 %v8686_v27  ;;  %vm16020_vm6 = vmmov %vm16019_vm4 }
 0xa8b   :  { %8321 = vmatprep.subr.bf16.mxu0 %v8320_v53  ;;  %8337 = vmatprep.subr.bf16.mxu1 %v8336_v20  ;;  %v8693_v49 = vunpack.i.h.bf16 %v8691_v43  ;;  %v8692_v59 = vunpack.i.l.bf16 %v8691_v43 }
 0xa8c   :  { %8323 = vmatpush1.bf16.msra.mxu0 %v8322_v46  ;;  %8339 = vmatpush1.bf16.msra.mxu1 %v8338_v32  ;;  %v4456_v61 = vsel %vm3900_vm0, %v8687_v60, %v8688_v36 }
 0xa8d   :  { %v8696_v31 = vpop.permute.xlu0 %8695  ;;  %v4455_v48 = vsel %vm3900_vm0, %v8693_v49, %v8687_v60  ;;  %v4457_v1 = vsel %vm3900_vm0, %v8688_v36, %v8692_v59  ;;  %v7201_v49 = vld [vmem:[%s15111_s2 + $0x8] sm:$0xff] }
 0xa8e   :  { %v8698_v33 = vunpack.i.h.bf16 %v8696_v31  ;;  %v8697_v22 = vunpack.i.l.bf16 %v8696_v31  ;;  %v8701_v57 = vpop.permute.xlu1 %8700  ;;  %v16016_v31 = vmov 0.0  }
 0xa8f   :  { %v8703_v50 = vunpack.i.h.bf16 %v8701_v57  ;;  %v8702_v25 = vunpack.i.l.bf16 %v8701_v57 }
 0xa90   :  { %v4471_v26 = vsel %vm4062_vm15, %v8697_v22, %v8698_v33 }
 0xa91   :  { %v4470_v42 = vsel %vm4062_vm15, %v8703_v50, %v8697_v22  ;;  %v4472_v7 = vsel %vm4062_vm15, %v8698_v33, %v8702_v25  ;;  %v8340_v55 = vpack.c.bf16 %v8702_v25, %v8692_v59  ;;  %v4480_v8 = vpop.permute.xlu0 %4479  ;;  %v8324_v20 = vpack.c.bf16 %v4471_v26, %v4456_v61 }
 0xa92   :  { %v8326_v27 = vpack.c.bf16 %v4470_v42, %v4455_v48  ;;  %v8342_v53 = vpack.c.bf16 %v4472_v7, %v4457_v1  ;;  %v4482_v46 = vpop.permute.xlu1 %4481 }
 0xa93   :  { %8325 = vmatprep.subr.bf16.mxu0 %v8324_v20  ;;  %8341 = vmatprep.subr.bf16.mxu1 %v8340_v55  ;;  %v4486_v32 = vsel %vm15298_vm8, %v4480_v8, %v4482_v46 }
 0xa94   :  { %8327 = vmatpush1.bf16.msra.mxu0 %v8326_v27  ;;  %8343 = vmatpush1.bf16.msra.mxu1 %v8342_v53 }
 0xa95   :  { %v4484_v43 = vpop.permute.xlu0 %4483  ;;  %4518 = vmatprep.subr.mxu0 %v4486_v32 }
 0xa96   :  { %v4487_v36 = vsel %vm15298_vm8, %v4482_v46, %v4484_v43  ;;  %v4478_v60 = vpop.permute.xlu1 %4477  ;;  %4589 = vmatprep.subr.mxu1 %v4484_v43 }
 0xa97   :  { %v4485_v59 = vsel %vm15298_vm8, %v4478_v60, %v4480_v8 }
 0xa98   :  { %4519 = vmatpush1.msra.mxu0 %v4485_v59  ;;  %4590 = vmatpush1.msra.mxu1 %v4487_v36 }
 0xa99   :  { %7203 = vmatmul.mubr.msk.f32.vlgmr.msra.gmra.mrb[14].mxu0 %vm16014_vm14, %v7201_v49  ;;  %7204 = vmatmul.mubr.msk.f32.vlgmr.msra.gmra.mrb[14].mxu1 %vm16015_vm5, %v7201_v49  ;;  %vm16021_vm14 = vcmp.eq.s32.totalorder %v15982_v30, 0  ;;  %vm16022_vm5 = vcmp.eq.s32.totalorder %v15981_v37, 0 }
 0xa9a   :  { %4963 = vmatprep.mubr.f32.mxu0 %v16016_v31  ;;  %5034 = vmatprep.mubr.f32.mxu1 %v16016_v31 }
 0xaa6   :  { %v4497_v33 = vpop.permute.xlu0 %4496 }
 0xb6c   :  { %v4568_v22 = vpop.f32.mrb[14].mxu0  ;;  %v4639_v57 = vpop.f32.mrb[14].mxu1 }
 0xb6d   :  { %v4640_v50 = vadd.f32 %v4639_v57, %v4497_v33  ;;  %v4570_v25 = vpop.f32.mrb[15].mxu0  ;;  %v4641_v48 = vpop.f32.mrb[15].mxu1  ;;  %v4569_v61 = vadd.f32 %v4568_v22, %v4497_v33 }
 0xb6e   :  { %v4642_v1 = vadd.f32 %v4641_v48, %v4497_v33  ;;  %v4571_v42 = vadd.f32 %v4570_v25, %v4497_v33 }
 0xb6f   :  { %v4646_v26 = vmax.f32 %v4640_v50, 0.0  ;;  %v4644_v55 = vmax.f32 %v4569_v61, 0.0 }
 0xb70   :  { %v4647_v7 = vmax.f32 %v4642_v1, 0.0  ;;  %v4645_v8 = vmax.f32 %v4571_v42, 0.0 }
 0xb71   :  { %4656 = vrot.lane.b32.xlu1 %v4646_v26, %s8788_s11 }
 0xb72   :  { %4658 = vrot.lane.b32.xlu0 %v4647_v7, %s8788_s11 }
 0xb75   :  { %4652 = vrot.lane.b32.xlu1 %v4644_v55, %s8788_s11 }
 0xb76   :  { %4654 = vrot.lane.b32.xlu0 %v4645_v8, %s8788_s11 }
 0xbe3   :  { %v4657_v20 = vpop.permute.xlu1 %4656 }
 0xbe4   :  { %v4659_v27 = vpop.permute.xlu0 %4658 }
 0xbe5   :  { %v4662_v36 = vsel %vm16019_vm4, %v4657_v20, %v4659_v27  ;;  %vm16025_vm4 = vcmask 15360  }
 0xbe6   :  { %v4668_v49 = vsel %vm3573_vm2, %v4662_v36, 0.0 }
 0xbe7   :  { %v4653_v53 = vpop.permute.xlu1 %4652 }
 0xbe8   :  { %v4655_v46 = vpop.permute.xlu0 %4654  ;;  %v4667_v32 = vsel %vm16017_vm13, 0.0, %v4653_v53  ;;  %vm16023_vm13 = vcmp.eq.s32.totalorder %v15984_v29, 0 }
 0xbe9   :  { %4671 = vrot.lane.b32.xlu1 %v4667_v32, %s8789_s12  ;;  %v4660_v43 = vsel %vm16018_vm10, %v4653_v53, %v4655_v46  ;;  %v4661_v60 = vsel %vm16020_vm6, %v4655_v46, %v4657_v20  ;;  %vm16024_vm10 = vcmp.eq.s32.totalorder %v15983_v13, 0  ;;  %vm16026_vm6 = vcmp.eq.s32.totalorder %v15982_v30, 9 }
 0xbea   :  { %4673 = vrot.lane.b32.xlu0 %v4660_v43, %s8789_s12 }
 0xbed   :  { %4675 = vrot.lane.b32.xlu1 %v4661_v60, %s8789_s12 }
 0xbee   :  { %4677 = vrot.lane.b32.xlu0 %v4668_v49, %s8789_s12 }
 0xc5b   :  { %v4672_v59 = vpop.permute.xlu1 %4671 }
 0xc5c   :  { %v4674_v33 = vpop.permute.xlu0 %4673 }
 0xc5d   :  { %v4679_v22 = vsel %vm3826_vm9, %v4672_v59, %v4674_v33 }
 0xc5e   :  { %v4687_v57 = vsel %vm16021_vm14, %v4679_v22, %v4667_v32  ;;  %vm16027_vm14 = vmmov %vm16025_vm4 }
 0xc5f   :  { %v4676_v50 = vpop.permute.xlu1 %4675  ;;  %4695 = vrot.lane.b32.xlu1 %v4687_v57, %s8790_s13 }
 0xc60   :  { %v4680_v25 = vsel %vm3826_vm9, %v4674_v33, %v4676_v50  ;;  %v4678_v48 = vpop.permute.xlu0 %4677 }
 0xc61   :  { %v4681_v1 = vsel %vm3826_vm9, %v4676_v50, %v4678_v48  ;;  %v4688_v61 = vsel %vm16022_vm5, %v4680_v25, %v4660_v43  ;;  %v4686_v26 = vsel %vm3826_vm9, %v4678_v48, 0.0  ;;  %vm16028_vm5 = vmmov %vm16025_vm4 }
 0xc62   :  { %4697 = vrot.lane.b32.xlu0 %v4688_v61, %s8790_s13  ;;  %v4689_v42 = vsel %vm16023_vm13, %v4681_v1, %v4661_v60  ;;  %v4690_v7 = vsel %vm16024_vm10, %v4686_v26, %v4668_v49  ;;  %vm16029_vm13 = vcmp.eq.s32.totalorder %v15981_v37, 9  ;;  %vm16030_vm10 = vcmp.eq.s32.totalorder %v15984_v29, 9 }
 0xc63   :  { %4699 = vrot.lane.b32.xlu1 %v4689_v42, %s8790_s13 }
 0xc66   :  { %4701 = vrot.lane.b32.xlu0 %v4690_v7, %s8790_s13 }
 0xcd1   :  { %v4696_v55 = vpop.permute.xlu1 %4695 }
 0xcd2   :  { %v4710_v8 = vsel %vm16025_vm4, 0.0, %v4696_v55 }
 0xcd3   :  { %v4711_v20 = vsel %vm16026_vm6, %v4710_v8, %v4687_v57  ;;  %vm16031_vm6 = vcmp.eq.s32.totalorder %v15983_v13, 9 }
 0xcd4   :  { %4719 = vrot.lane.b32.xlu1 %v4711_v20, %s8791_s14  ;;  %v4698_v27 = vpop.permute.xlu0 %4697 }
 0xcd5   :  { %v4703_v53 = vsel %vm16027_vm14, %v4696_v55, %v4698_v27  ;;  %v4700_v46 = vpop.permute.xlu1 %4699  ;;  %vm16032_vm14 = vcmp.eq.s32.totalorder %v15985_v24, 0  ;;  %v7206_v24 = vld [vmem:[%s15109_s3 + $0x20] sm:$0xff] }
 0xcd6   :  { %v4704_v32 = vsel %vm16028_vm5, %v4698_v27, %v4700_v46  ;;  %v4712_v43 = vsel %vm16029_vm13, %v4703_v53, %v4688_v61  ;;  %vm16033_vm5 = vcmp.eq.s32.totalorder %v15986_v40, 0  ;;  %vm16034_vm13 = vcmp.eq.s32.totalorder %v15987_v10, 0 }
 0xcd7   :  { %4721 = vrot.lane.b32.xlu0 %v4712_v43, %s8791_s14  ;;  %v4713_v36 = vsel %vm16030_vm10, %v4704_v32, %v4689_v42  ;;  %vm16035_vm10 = vcmp.eq.s32.totalorder %v15988_v17, 0  ;;  %v5113_v10 = vshra.s32 %v8831_v3, 4  ;;  %v5115_v17 = vshra.s32 %v8859_v18, 4 }
 0xcd8   :  { %4723 = vrot.lane.b32.xlu1 %v4713_v36, %s8791_s14  ;;  %v4702_v30 = vpop.permute.xlu0 %4701 }
 0xcd9   :  { %v4705_v60 = vsel %vm16025_vm4, %v4700_v46, %v4702_v30 }
 0xcda   :  { %v4714_v49 = vsel %vm16031_vm6, %v4705_v60, %v4690_v7  ;;  %v5053_v60 = vshra.s32 %v8831_v3, 8 }
 0xcdb   :  { %4725 = vrot.lane.b32.xlu0 %v4714_v49, %s8791_s14 }
 0xd46   :  { %v4720_v59 = vpop.permute.xlu1 %4719 }
 0xd49   :  { %v4722_v33 = vpop.permute.xlu0 %4721 }
 0xd4a   :  { %v4727_v37 = vsel %vm3900_vm0, %v4720_v59, %v4722_v33  ;;  %v4724_v22 = vpop.permute.xlu1 %4723  ;;  %v5117_v59 = vshra.s32 %v8944_v56, 4 }
 0xd4b   :  { %v4728_v57 = vsel %vm3900_vm0, %v4722_v33, %v4724_v22  ;;  %v4735_v29 = vsel %vm16032_vm14, %v4727_v37, %v4711_v20  ;;  %v5145_v33 = vshra.s32 %v15891_v12, 4  ;;  %v5055_v37 = vshra.s32 %v8859_v18, 8 }
 0xd4c   :  { %4743 = vrot.lane.b32.xlu1 %v4735_v29, %s8792_s15  ;;  %v4736_v50 = vsel %vm16033_vm5, %v4728_v57, %v4712_v43  ;;  %v5473_v57 = vmul.u32 64, %v5053_v60  ;;  %v5237_v60 = vand.u32 15, %v8944_v56 }
 0xd4d   :  { %4745 = vrot.lane.b32.xlu0 %v4736_v50, %s8792_s15  ;;  %v4726_v13 = vpop.permute.xlu0 %4725 }
 0xd4e   :  { %v4729_v25 = vsel %vm3900_vm0, %v4724_v22, %v4726_v13  ;;  %v4734_v48 = vsel %vm3900_vm0, %v4726_v13, 0.0  ;;  %v14451_v22 = vand.u32 15, %v5115_v17  ;;  %v14455_v13 = vand.u32 15, %v5117_v59 }
 0xd4f   :  { %v4737_v1 = vsel %vm16034_vm13, %v4729_v25, %v4713_v36  ;;  %v4738_v61 = vsel %vm16035_vm10, %v4734_v48, %v4714_v49  ;;  %v14446_v49 = vand.u32 15, %v5113_v10  ;;  %v5085_v25 = vshra.s32 %v15891_v12, 8 }
 0xd50   :  { %4747 = vrot.lane.b32.xlu1 %v4737_v1, %s8792_s15  ;;  %v14458_v48 = vand.u32 15, %v5145_v33  ;;  %v5235_v17 = vand.u32 15, %v8859_v18  ;;  %v5265_v59 = vand.u32 15, %v15891_v12 }
 0xd51   :  { %4749 = vrot.lane.b32.xlu0 %v4738_v61, %s8792_s15  ;;  %vm5293_vm6 = vcmp.lt.s32.totalorder %v14446_v49, 8 }
 0xdbe   :  { %v4744_v26 = vpop.permute.xlu1 %4743 }
 0xdbf   :  { %v4746_v42 = vpop.permute.xlu0 %4745  ;;  %v4758_v55 = vsel %vm3937_vm11, 0.0, %v4744_v26 }
 0xdc0   :  { %v4751_v7 = vsel %vm3937_vm11, %v4744_v26, %v4746_v42  ;;  %v14408_v43 = vsel %vm3921_vm3, %v4758_v55, %v4735_v29  ;;  %v5533_v29 = vmul.u32 8, %v14446_v49  ;;  %v5535_v26 = vmul.u32 8, %v14451_v22 }
 0xdc1   :  { %v14399_v53 = vsel %vm3922_vm1, %v4751_v7, %v4736_v50  ;;  %v5057_v50 = vshra.s32 %v8944_v56, 8 }
 0xdc2   :  { %v4748_v8 = vpop.permute.xlu1 %4747  ;;  %v5593_v7 = vadd.s32 %v5533_v29, %v5473_v57 }
 0xdc3   :  { %v4752_v20 = vsel %vm3937_vm11, %v4746_v42, %v4748_v8  ;;  %v4750_v27 = vpop.permute.xlu0 %4749  ;;  %v5233_v42 = vand.u32 15, %v8831_v3  ;;  %v5477_v55 = vmul.u32 64, %v5057_v50 }
 0xdc4   :  { %v14403_v46 = vsel %vm3923_vm12, %v4752_v20, %v4737_v1  ;;  %v4753_v32 = vsel %vm3937_vm11, %v4748_v8, %v4750_v27  ;;  %v5119_v1 = vshra.s32 %v8972_v5, 4  ;;  %v5537_v8 = vmul.u32 8, %v14455_v13 }
 0xdc5   :  { %v14412_v36 = vsel %vm3924_vm7, %v4753_v32, %v4738_v61  ;;  %v8704_v30 = vpack.i.bf16 %v14403_v46, %v14399_v53  ;;  %v5475_v61 = vmul.u32 64, %v5055_v37  ;;  %v15284_v20 = vmov 1.0  }
 0xdc6   :  { %v8709_v40 = vpack.i.bf16 %v14412_v36, %v14408_v43  ;;  %v14466_v27 = vpack.c.bf16 %v16016_v31, %v15284_v20  ;;  %v5505_v32 = vmul.u32 64, %v5085_v25  ;;  %v14475_v29 = vadd.s32 %v5593_v7, %v5233_v42 }
 0xdc7   :  { %8705 = vrot.lane.b32.xlu1 %v8704_v30, %s8783_s25  ;;  %v5595_v3 = vadd.s32 %v5535_v26, %v5475_v61  ;;  %v5597_v50 = vadd.s32 %v5537_v8, %v5477_v55  ;;  %vm16036_vm11 = vcmask 1039360   ;;  %vm16039_vm12 = vcmask 916480  }
 0xdc8   :  { %8710 = vrot.lane.b32.xlu0 %v8709_v40, %s8783_s25  ;;  %vm16037_vm1 = vmmov %vm16036_vm11 }
 0xdc9   :  { %vm16038_vm3 = vmmov %vm16037_vm1 }
 0xdca   :  { %vm16040_vm7 = vmmov %vm16039_vm12 }
 0xdcb   :  { %8715 = vrot.lane.b32.xlu1 %v8704_v30, %s8789_s12  ;;  %vm16041_vm4 = vmmov %vm16040_vm7 }
 0xdcc   :  { %8720 = vrot.lane.b32.xlu0 %v8704_v30, %s8784_s26 }
 0xdcf   :  { %8725 = vrot.lane.b32.xlu1 %v8709_v40, %s8789_s12 }
 0xdd0   :  { %8730 = vrot.lane.b32.xlu0 %v8709_v40, %s8784_s26 }
 0xdd3   :  { %8735 = vrot.lane.b32.xlu1 %v8704_v30, %s8785_s5 }
 0xdd4   :  { %8740 = vrot.lane.b32.xlu0 %v8704_v30, %s8793_s16 }
 0xdd7   :  { %8745 = vrot.lane.b32.xlu1 %v8709_v40, %s8785_s5 }
 0xdd8   :  { %8750 = vrot.lane.b32.xlu0 %v8709_v40, %s8793_s16 }
 0xddb   :  { %8755 = vrot.lane.b32.xlu1 %v8704_v30, %s8791_s14 }
 0xddc   :  { %8760 = vrot.lane.b32.xlu0 %v8704_v30, %s8794_s19  ;;  %v5565_v30 = vmul.u32 8, %v14458_v48 }
 0xdde   :  { %v5625_v18 = vadd.s32 %v5565_v30, %v5505_v32 }
 0xddf   :  { %8765 = vrot.lane.b32.xlu1 %v8709_v40, %s8791_s14 }
 0xde0   :  { %8770 = vrot.lane.b32.xlu0 %v8709_v40, %s8794_s19  ;;  %v5059_v40 = vshra.s32 %v8972_v5, 8 }
 0xde2   :  { %v5479_v61 = vmul.u32 64, %v5059_v40  ;;  %v5239_v40 = vand.u32 15, %v8972_v5  ;;  %v5507_v5 = vmul.u32 64, %v5087_v2 }
 0xde3   :  { %4876 = vrot.lane.b32.xlu1 %v14399_v53, %s8795_s20 }
 0xde4   :  { %4878 = vrot.lane.b32.xlu0 %v14403_v46, %s8795_s20 }
 0xde7   :  { %4874 = vrot.lane.b32.xlu1 %v14408_v43, %s8795_s20 }
 0xde8   :  { %4880 = vrot.lane.b32.xlu0 %v14412_v36, %s8795_s20 }
 0xdeb   :  { %4893 = vperm.xlu1 %8633, %v7206_v24   ;;  %v14470_v24 = vand.u32 15, %v5119_v1  ;;  %v5147_v1 = vshra.s32 %v15737_v47, 4 }
 0xded   :  { %v5539_v56 = vmul.u32 8, %v14470_v24 }
 0xe39   :  { %v8706_v10 = vpop.permute.xlu1 %8705 }
 0xe3a   :  { %v8708_v33 = vunpack.i.h.bf16 %v8706_v10  ;;  %v8707_v37 = vunpack.i.l.bf16 %v8706_v10  ;;  %v8711_v57 = vpop.permute.xlu0 %8710 }
 0xe3b   :  { %v8713_v25 = vunpack.i.h.bf16 %v8711_v57  ;;  %v8712_v20 = vunpack.i.l.bf16 %v8711_v57 }
 0xe3c   :  { %v4778_v23 = vsel %vm16036_vm11, %v8707_v37, %v8708_v33  ;;  %vm5295_vm11 = vcmp.lt.s32.totalorder %v14451_v22, 8 }
 0xe3d   :  { %v4779_v12 = vsel %vm16037_vm1, %v8708_v33, %v8713_v25  ;;  %v8360_v26 = vpack.c.bf16 %v8713_v25, %v14412_v36  ;;  %v4777_v42 = vsel %vm16038_vm3, %v8712_v20, %v8707_v37  ;;  %v8716_v7 = vpop.permute.xlu1 %8715  ;;  %v8344_v55 = vpack.c.bf16 %v4778_v23, %v14399_v53 }
 0xe3e   :  { %v8362_v8 = vpack.c.bf16 %v4779_v12, %v14403_v46  ;;  %v8346_v10 = vpack.c.bf16 %v4777_v42, %v14408_v43  ;;  %v8718_v57 = vunpack.i.h.bf16 %v8716_v7  ;;  %v8717_v31 = vunpack.i.l.bf16 %v8716_v7  ;;  %v8721_v14 = vpop.permute.xlu0 %8720 }
 0xe3f   :  { %v8723_v32 = vunpack.i.h.bf16 %v8721_v14  ;;  %v8722_v30 = vunpack.i.l.bf16 %v8721_v14  ;;  %8345 = vmatprep.subr.bf16.mxu0 %v8344_v55  ;;  %8361 = vmatprep.subr.bf16.mxu1 %v8360_v26  ;;  %v14488_v33 = vand.u32 15, %v5147_v1  ;;  %v14491_v23 = vadd.s32 %v5595_v3, %v5235_v17 }
 0xe40   :  { %8347 = vmatpush1.bf16.msra.mxu0 %v8346_v10  ;;  %8363 = vmatpush1.bf16.msra.mxu1 %v8362_v8  ;;  %v4793_v36 = vsel %vm3826_vm9, %v8717_v31, %v8718_v57  ;;  %v14493_v53 = vadd.s32 %v5597_v50, %v5237_v60  ;;  %v5121_v46 = vshra.s32 %v9021_v35, 4  ;;  %v14497_v14 = vadd.s32 %v5625_v18, %v5265_v59 }
 0xe41   :  { %v8726_v43 = vpop.permute.xlu1 %8725  ;;  %v4808_v20 = vsel %vm16039_vm12, %v8722_v30, %v8723_v32  ;;  %v5267_v37 = vand.u32 15, %v15737_v47  ;;  %v5599_v42 = vadd.s32 %v5539_v56, %v5479_v61  ;;  %v5567_v3 = vmul.u32 8, %v14488_v33 }
 0xe42   :  { %v8728_v25 = vunpack.i.h.bf16 %v8726_v43  ;;  %v8727_v1 = vunpack.i.l.bf16 %v8726_v43  ;;  %v8731_v12 = vpop.permute.xlu0 %8730  ;;  %v8348_v26 = vpack.c.bf16 %v4808_v20, %v4793_v36  ;;  %v5061_v60 = vshra.s32 %v9021_v35, 8 }
 0xe43   :  { %v8733_v7 = vunpack.i.h.bf16 %v8731_v12  ;;  %v8732_v17 = vunpack.i.l.bf16 %v8731_v12  ;;  %v14504_v59 = vand.u32 15, %v5121_v46  ;;  %v5089_v47 = vshra.s32 %v15903_v15, 8 }
 0xe44   :  { %v4794_v50 = vsel %vm3826_vm9, %v8718_v57, %v8728_v25  ;;  %v4792_v55 = vsel %vm3826_vm9, %v8727_v1, %v8717_v31  ;;  %8349 = vmatprep.subr.bf16.mxu0 %v8348_v26  ;;  %v5149_v8 = vshra.s32 %v15903_v15, 4  ;;  %v5627_v46 = vadd.s32 %v5567_v3, %v5507_v5 }
 0xe45   :  { %v8364_v2 = vpack.c.bf16 %v8733_v7, %v8728_v25  ;;  %v4807_v18 = vsel %vm16040_vm7, %v8732_v17, %v8722_v30  ;;  %v4809_v61 = vsel %vm16041_vm4, %v8723_v32, %v8733_v7  ;;  %v8736_v56 = vpop.permute.xlu1 %8735  ;;  %v14512_v25 = vadd.s32 %v5599_v42, %v5239_v40 }
 0xe46   :  { %v8350_v10 = vpack.c.bf16 %v4807_v18, %v4792_v55  ;;  %v8366_v36 = vpack.c.bf16 %v4809_v61, %v4794_v50  ;;  %v8738_v43 = vunpack.i.h.bf16 %v8736_v56  ;;  %v8737_v20 = vunpack.i.l.bf16 %v8736_v56  ;;  %v8741_v57 = vpop.permute.xlu0 %8740 }
 0xe47   :  { %v8743_v12 = vunpack.i.h.bf16 %v8741_v57  ;;  %v8742_v31 = vunpack.i.l.bf16 %v8741_v57  ;;  %8365 = vmatprep.subr.bf16.mxu1 %v8364_v2  ;;  %v5481_v32 = vmul.u32 64, %v5061_v60  ;;  %vm16042_vm9 = vcmask 900096  }
 0xe48   :  { %8351 = vmatpush1.bf16.msra.mxu0 %v8350_v10  ;;  %8367 = vmatpush1.bf16.msra.mxu1 %v8366_v36  ;;  %v4823_v30 = vsel %vm3573_vm2, %v8737_v20, %v8738_v43  ;;  %v5541_v50 = vmul.u32 8, %v14504_v59  ;;  %v14517_v55 = vand.u32 15, %v5149_v8  ;;  %v5509_v2 = vmul.u32 64, %v5089_v47  ;;  %v16043_v47 = vld [vmem:[#allocation2_spill] sm:$0xff]  ;;  %vm16044_vm5 = vmmov %vm16042_vm9 }
 0xe49   :  { %v8746_v7 = vpop.permute.xlu1 %8745  ;;  %v4838_v17 = vsel %vm16042_vm9, %v8742_v31, %v8743_v12  ;;  %v5063_v56 = vshra.s32 %v9058_v39, 8  ;;  %v14520_v42 = vadd.s32 %v5627_v46, %v5267_v37  ;;  %v5123_v60 = vshra.s32 %v9058_v39, 4  ;;  %vm16045_vm13 = vmmov %vm16044_vm5 }
 0xe4a   :  { %v8748_v5 = vunpack.i.h.bf16 %v8746_v7  ;;  %v8747_v3 = vunpack.i.l.bf16 %v8746_v7  ;;  %v8751_v18 = vpop.permute.xlu0 %8750  ;;  %v8352_v61 = vpack.c.bf16 %v4838_v17, %v4823_v30  ;;  %vm5713_vm14 = vcmp.eq.s32.totalorder %v14475_v29, %v16043_v47 }
 0xe4b   :  { %v8753_v10 = vunpack.i.h.bf16 %v8751_v18  ;;  %v8752_v40 = vunpack.i.l.bf16 %v8751_v18  ;;  %v5091_v8 = vshra.s32 %v15909_v21, 8  ;;  %v5151_v30 = vshra.s32 %v15909_v21, 4 }
 0xe4c   :  { %v4822_v36 = vsel %vm3573_vm2, %v8747_v3, %v8737_v20  ;;  %v4824_v57 = vsel %vm3573_vm2, %v8738_v43, %v8748_v5  ;;  %8353 = vmatprep.subr.bf16.mxu0 %v8352_v61  ;;  %v5569_v20 = vmul.u32 8, %v14517_v55  ;;  %vm5325_vm2 = vcmp.lt.s32.totalorder %v14458_v48, 8 }
 0xe4d   :  { %v8368_v7 = vpack.c.bf16 %v8753_v10, %v8748_v5  ;;  %v4837_v37 = vsel %vm16044_vm5, %v8752_v40, %v8742_v31  ;;  %v4839_v46 = vsel %vm16045_vm13, %v8743_v12, %v8753_v10  ;;  %v8756_v17 = vpop.permute.xlu1 %8755  ;;  %vm5745_vm10 = vcmp.eq.s32.totalorder %v14497_v14, %v16043_v47  ;;  %v7205_v14 = vld [vmem:[%s15111_s2 + $0x10] sm:$0xff] }
 0xe4e   :  { %v8354_v3 = vpack.c.bf16 %v4837_v37, %v4822_v36  ;;  %v8370_v43 = vpack.c.bf16 %v4839_v46, %v4824_v57  ;;  %v8758_v18 = vunpack.i.h.bf16 %v8756_v17  ;;  %v8757_v61 = vunpack.i.l.bf16 %v8756_v17  ;;  %v8761_v1 = vpop.permute.xlu0 %8760 }
 0xe4f   :  { %v8763_v26 = vunpack.i.h.bf16 %v8761_v1  ;;  %v8762_v4 = vunpack.i.l.bf16 %v8761_v1  ;;  %8369 = vmatprep.subr.bf16.mxu1 %v8368_v7  ;;  %v14536_v5 = vand.u32 15, %v5123_v60  ;;  %vm5715_vm1 = vcmp.eq.s32.totalorder %v14491_v23, %v16043_v47 }
 0xe50   :  { %8355 = vmatpush1.bf16.msra.mxu0 %v8354_v3  ;;  %8371 = vmatpush1.bf16.msra.mxu1 %v8370_v43  ;;  %v4853_v31 = vsel %vm3900_vm0, %v8757_v61, %v8758_v18  ;;  %v14543_v10 = vadd.s32 %v5541_v50, %v5481_v32  ;;  %v14545_v40 = vand.u32 15, %v5151_v30  ;;  %v5125_v1 = vshra.s32 %v9093_v44, 4 }
 0xe51   :  { %v8766_v36 = vpop.permute.xlu1 %8765  ;;  %v4868_v60 = vsel %vm4062_vm15, %v8762_v4, %v8763_v26  ;;  %v5629_v57 = vadd.s32 %v5569_v20, %v5509_v2  ;;  %v5483_v7 = vmul.u32 64, %v5063_v56  ;;  %v5511_v37 = vmul.u32 64, %v5091_v8 }
 0xe52   :  { %v8768_v46 = vunpack.i.h.bf16 %v8766_v36  ;;  %v8767_v17 = vunpack.i.l.bf16 %v8766_v36  ;;  %v8771_v3 = vpop.permute.xlu0 %8770  ;;  %v8356_v43 = vpack.c.bf16 %v4868_v60, %v4853_v31  ;;  %vm5327_vm3 = vcmp.lt.s32.totalorder %v14488_v33, 8 }
 0xe53   :  { %v5153_v12 = vshra.s32 %v15915_v52, 4  ;;  %v8773_v32 = vunpack.i.h.bf16 %v8771_v3  ;;  %v8772_v50 = vunpack.i.l.bf16 %v8771_v3  ;;  %v5543_v30 = vmul.u32 8, %v14536_v5 }
 0xe54   :  { %v4852_v11 = vsel %vm3900_vm0, %v8767_v17, %v8757_v61  ;;  %v4854_v2 = vsel %vm3900_vm0, %v8758_v18, %v8768_v46  ;;  %8357 = vmatprep.subr.bf16.mxu0 %v8356_v43  ;;  %vm5297_vm12 = vcmp.lt.s32.totalorder %v14455_v13, 8  ;;  %vm5717_vm7 = vcmp.eq.s32.totalorder %v14493_v53, %v16043_v47  ;;  %vm14573_vm0 = vmand %vm5293_vm6, %vm5713_vm14 }
 0xe55   :  { %v5571_v56 = vmul.u32 8, %v14545_v40  ;;  %v14559_v8 = vand.u32 15, %v5125_v1  ;;  %v8372_v20 = vpack.c.bf16 %v8773_v32, %v8768_v46  ;;  %v4867_v31 = vsel %vm4062_vm15, %v8772_v50, %v8762_v4  ;;  %v4877_v60 = vpop.permute.xlu1 %4876  ;;  %vm14590_vm6 = vmand %vm5325_vm2, %vm5745_vm10 }
 0xe56   :  { %v4869_v36 = vsel %vm4062_vm15, %v8763_v26, %v8773_v32  ;;  %v5093_v61 = vshra.s32 %v15915_v52, 8  ;;  %v8358_v17 = vpack.c.bf16 %v4867_v31, %v4852_v11  ;;  %v4879_v3 = vpop.permute.xlu0 %4878  ;;  %v14564_v43 = vand.u32 15, %v5153_v12  ;;  %vm14619_vm2 = vmand %vm5295_vm11, %vm5715_vm1 }
 0xe57   :  { %v8374_v18 = vpack.c.bf16 %v4869_v36, %v4854_v2  ;;  %8373 = vmatprep.subr.bf16.mxu1 %v8372_v20  ;;  %v4883_v0 = vsel %vm15298_vm8, %v4877_v60, %v4879_v3  ;;  %vm5747_vm15 = vcmp.eq.s32.totalorder %v14520_v42, %v16043_v47  ;;  %v5603_v11 = vadd.s32 %v5543_v30, %v5483_v7 }
 0xe58   :  { %v5271_v26 = vand.u32 15, %v15909_v21  ;;  %8359 = vmatpush1.bf16.msra.mxu0 %v8358_v17  ;;  %vm5299_vm4 = vcmp.lt.s32.totalorder %v14470_v24, 8  ;;  %vm5719_vm9 = vcmp.eq.s32.totalorder %v14512_v25, %v16043_v47  ;;  %v5631_v29 = vadd.s32 %v5571_v56, %v5511_v37 }
 0xe59   :  { %8375 = vmatpush1.bf16.msra.mxu1 %v8374_v18  ;;  %v5485_v12 = vmul.u32 64, %v5065_v9  ;;  %v5545_v49 = vmul.u32 8, %v14559_v8  ;;  %v5157_v1 = vshra.s32 %v15927_v54, 4  ;;  %v4875_v46 = vpop.permute.xlu1 %4874  ;;  %4915 = vmatprep.subr.mxu0 %v4883_v0  ;;  %vm5329_vm14 = vcmp.lt.s32.totalorder %v14517_v55, 8 }
 0xe5a   :  { %v16050_v7 = vand.u32 15, %v15903_v15  ;;  %v5513_v37 = vmul.u32 64, %v5093_v61  ;;  %v5127_v32 = vshra.s32 %v9132_v58, 4  ;;  %v4882_v50 = vsel %vm15298_vm8, %v4875_v46, %v4877_v60  ;;  %v4881_v0 = vpop.permute.xlu0 %4880 }
 0xe5b   :  { %vm8797_vm5 = vmmov 1   ;;  %v5573_v15 = vmul.u32 8, %v14564_v43  ;;  %v14611_v30 = vand.u32 15, %v5155_v63  ;;  %v4884_v2 = vsel %vm15298_vm8, %v4879_v3, %v4881_v0  ;;  %4986 = vmatprep.subr.mxu1 %v4881_v0 }
 0xe5c   :  { %v5689_v9 = vadd.s32 %v5629_v57, %v16050_v7  ;;  %vm14605_vm13 = vmpackc.low %vm8797_vm5, %vm14573_vm0  ;;  %v5095_v57 = vshra.s32 %v15921_v34, 8  ;;  %v16055_v20 = vand.u32 15, %v9021_v35  ;;  %v16056_v63 = vand.u32 15, %v9058_v39  ;;  %4916 = vmatpush1.msra.mxu0 %v4882_v50 }
 0xe5d   :  { %v5245_v60 = vand.u32 15, %v9093_v44  ;;  %4987 = vmatpush1.msra.mxu1 %v4884_v2  ;;  %vm14636_vm10 = vmpackc.low %vm8797_vm5, %vm14590_vm6  ;;  %v5691_v23 = vadd.s32 %v5631_v29, %v5271_v26  ;;  %v5605_v35 = vadd.s32 %v5545_v49, %v5485_v12  ;;  %v14641_v61 = vand.u32 15, %v5157_v1 }
 0xe5e   :  { %v14626_v31 = vadd.s32 %v14543_v10, %v16055_v20  ;;  %v14630_v36 = vadd.s32 %v5603_v11, %v16056_v63  ;;  %v5097_v10 = vshra.s32 %v15927_v54, 8  ;;  %vm16059_vm11 = vcmask 588800   ;;  %vm14650_vm0 = vmand %vm5327_vm3, %vm5747_vm15 }
 0xe5f   :  { %7207 = vmatmul.mubr.msk.f32.vlgmr.msra.gmra.mrb[16].mxu0 %vm16059_vm11, %v7205_v14  ;;  %vm16060_vm1 = vmmov %vm16059_vm11  ;;  %vm5749_vm6 = vcmp.eq.s32.totalorder %v5689_v9, %v16043_v47  ;;  %v5273_v44 = vand.u32 15, %v15915_v52  ;;  %v5067_v17 = vshra.s32 %v9132_v58, 8  ;;  %v5159_v18 = vshra.s32 %v15594_v16, 4 }
 0xe60   :  { %7208 = vmatmul.mubr.msk.f32.vlgmr.msra.gmra.mrb[16].mxu1 %vm16060_vm1, %v7205_v14  ;;  %v8798_v3 = vmov 0.0|0.0   ;;  %vm14662_vm11 = vmpackc.low %vm8797_vm5, %vm14619_vm2  ;;  %v5633_v42 = vadd.s32 %v5573_v15, %v5513_v37  ;;  %v14667_v4 = vand.u32 15, %v5127_v32  ;;  %v5515_v52 = vmul.u32 64, %v5095_v57 }
 0xe61   :  { %8376 = vmatprep.subr.bf16.mxu1 %v8798_v3  ;;  %8436 = vmatprep.subr.bf16.mxu0 %v8798_v3  ;;  %v5575_v11 = vmul.u32 8, %v14611_v30  ;;  %vm14678_vm3 = vmand %vm5297_vm12, %vm5717_vm7  ;;  %vm5301_vm15 = vcmp.lt.s32.totalorder %v14504_v59, 8  ;;  %vm5721_vm2 = vcmp.eq.s32.totalorder %v14626_v31, %v16043_v47  ;;  %v5129_v29 = vshra.s32 %v9173_v6, 4 }
 0xe62   :  { %8379 = vmatpush1.bf16.msk.msra.mxu1 %vm14605_vm13, %v14466_v27  ;;  %8439 = vmatpush1.bf16.msk.msra.mxu0 %vm14636_vm10, %v14466_v27  ;;  %vm5331_vm13 = vcmp.lt.s32.totalorder %v14545_v40, 8  ;;  %vm14695_vm12 = vmpackc.low %vm8797_vm5, %vm14650_vm0  ;;  %vm5303_vm7 = vcmp.lt.s32.totalorder %v14536_v5, 8  ;;  %vm5723_vm10 = vcmp.eq.s32.totalorder %v14630_v36, %v16043_v47  ;;  %vm5751_vm1 = vcmp.eq.s32.totalorder %v5691_v23, %v16043_v47 }
 0xe63   :  { %8380 = vmatprep.subr.bf16.mxu1 %v8798_v3  ;;  %8440 = vmatprep.subr.bf16.mxu0 %v8798_v3  ;;  %v14703_v53 = vadd.s32 %v5605_v35, %v5245_v60  ;;  %v5517_v12 = vmul.u32 64, %v5097_v10  ;;  %v5577_v49 = vmul.u32 8, %v14641_v61  ;;  %vm14710_vm0 = vmand %vm5329_vm14, %vm5749_vm6  ;;  %v5099_v21 = vshra.s32 %v15594_v16, 8 }
 0xe64   :  { %v5487_v46 = vmul.u32 64, %v5067_v17  ;;  %v14715_v7 = vand.u32 15, %v5159_v18  ;;  %v5161_v37 = vshra.s32 %v15604_v45, 4  ;;  %vm14721_vm8 = vmpackc.low %vm8797_vm5, %vm14678_vm3  ;;  %v5693_v9 = vadd.s32 %v5633_v42, %v5273_v44 }
 0xe65   :  { %v5547_v55 = vmul.u32 8, %v14667_v4  ;;  %v5275_v50 = vand.u32 15, %v15921_v34  ;;  %v5635_v0 = vadd.s32 %v5575_v11, %v5515_v52  ;;  %vm14735_vm14 = vmand %vm5299_vm4, %vm5719_vm9  ;;  %v5247_v34 = vand.u32 15, %v9132_v58 }
 0xe66   :  { %8383 = vmatpush1.bf16.msk.msra.mxu1 %vm14662_vm11, %v14466_v27  ;;  %8443 = vmatpush1.bf16.msk.msra.mxu0 %vm14695_vm12, %v14466_v27  ;;  %v5069_v48 = vshra.s32 %v9173_v6, 8  ;;  %v14744_v15 = vand.u32 15, %v5129_v29  ;;  %v5131_v57 = vshra.s32 %v9214_v51, 4  ;;  %vm14752_vm4 = vmpackc.low %vm8797_vm5, %vm14710_vm0  ;;  %vm5305_vm9 = vcmp.lt.s32.totalorder %v14559_v8, 8 }
 0xe67   :  { %8384 = vmatprep.subr.bf16.mxu1 %v8798_v3  ;;  %8444 = vmatprep.subr.bf16.mxu0 %v8798_v3  ;;  %vm5725_vm6 = vcmp.eq.s32.totalorder %v14703_v53, %v16043_v47  ;;  %vm5333_vm11 = vcmp.lt.s32.totalorder %v14564_v43, 8  ;;  %v5277_v58 = vand.u32 15, %v15927_v54  ;;  %v5637_v25 = vadd.s32 %v5577_v49, %v5517_v12  ;;  %vm14765_vm3 = vmand %vm5331_vm13, %vm5751_vm1 }
 0xe68   :  { %v5519_v56 = vmul.u32 64, %v5099_v21  ;;  %v5579_v20 = vmul.u32 8, %v14715_v7  ;;  %v5101_v63 = vshra.s32 %v15604_v45, 8  ;;  %v14771_v60 = vand.u32 15, %v5161_v37  ;;  %vm14776_vm12 = vmpackc.low %vm8797_vm5, %vm14735_vm14 }
 0xe69   :  { %vm5753_vm0 = vcmp.eq.s32.totalorder %v5693_v9, %v16043_v47  ;;  %v5607_v40 = vadd.s32 %v5547_v55, %v5487_v46  ;;  %v5695_v22 = vadd.s32 %v5635_v0, %v5275_v50  ;;  %v5163_v23 = vshra.s32 %v15614_v28, 4  ;;  %vm14790_vm13 = vmand %vm5301_vm15, %vm5721_vm2 }
 0xe6a   :  { %8387 = vmatpush1.bf16.msk.msra.mxu1 %vm14721_vm8, %v14466_v27  ;;  %8447 = vmatpush1.bf16.msk.msra.mxu0 %vm14752_vm4, %v14466_v27  ;;  %v5489_v10 = vmul.u32 64, %v5069_v48  ;;  %v5549_v39 = vmul.u32 8, %v14744_v15  ;;  %v5071_v44 = vshra.s32 %v9214_v51, 8  ;;  %v14799_v17 = vand.u32 15, %v5131_v57  ;;  %vm14806_vm8 = vmpackc.low %vm8797_vm5, %vm14765_vm3 }
 0xe6b   :  { %8388 = vmatprep.subr.bf16.mxu1 %v8798_v3  ;;  %8448 = vmatprep.subr.bf16.mxu0 %v8798_v3  ;;  %vm5307_vm15 = vcmp.lt.s32.totalorder %v14667_v4, 8  ;;  %vm5335_vm2 = vcmp.lt.s32.totalorder %v14611_v30, 8  ;;  %v5249_v31 = vand.u32 15, %v9173_v6  ;;  %v5697_v18 = vadd.s32 %v5637_v25, %v5277_v58  ;;  %vm14818_vm1 = vmand %vm5333_vm11, %vm5753_vm0 }
 0xe6c   :  { %v5133_v33 = vshra.s32 %v9255_v38, 4  ;;  %v5279_v52 = vand.u32 15, %v15594_v16  ;;  %v5639_v11 = vadd.s32 %v5579_v20, %v5519_v56  ;;  %v5521_v26 = vmul.u32 64, %v5101_v63  ;;  %vm14827_vm14 = vmpackc.low %vm8797_vm5, %vm14790_vm13  ;;  %v16117_v16 = vld [vmem:[#allocation23_spill] sm:$0xff] }
 0xe6d   :  { %v5581_v29 = vmul.u32 8, %v14771_v60  ;;  %vm5755_vm4 = vcmp.eq.s32.totalorder %v5695_v22, %v16043_v47  ;;  %v5103_v43 = vshra.s32 %v15614_v28, 8  ;;  %v14833_v13 = vand.u32 15, %v5163_v23  ;;  %vm14844_vm11 = vmand %vm5303_vm7, %vm5723_vm10 }
 0xe6e   :  { %v5165_v12 = vshra.s32 %v15620_v19, 4  ;;  %8391 = vmatpush1.bf16.msk.msra.mxu1 %vm14776_vm12, %v14466_v27  ;;  %8451 = vmatpush1.bf16.msk.msra.mxu0 %vm14806_vm8, %v14466_v27  ;;  %v5667_v49 = vadd.s32 %v5607_v40, %v5247_v34  ;;  %v5609_v1 = vadd.s32 %v5549_v39, %v5489_v10  ;;  %v5491_v46 = vmul.u32 64, %v5071_v44  ;;  %vm14857_vm7 = vmpackc.low %vm8797_vm5, %vm14818_vm1 }
 0xe6f   :  { %v5551_v21 = vmul.u32 8, %v14799_v17  ;;  %8392 = vmatprep.subr.bf16.mxu1 %v8798_v3  ;;  %8452 = vmatprep.subr.bf16.mxu0 %v8798_v3  ;;  %vm5337_vm10 = vcmp.lt.s32.totalorder %v14641_v61, 8  ;;  %vm5757_vm3 = vcmp.eq.s32.totalorder %v5697_v18, %v16043_v47  ;;  %v5073_v36 = vshra.s32 %v9255_v38, 8  ;;  %vm14870_vm12 = vmand %vm5335_vm2, %vm5755_vm4 }
 0xe70   :  { %v14864_v37 = vand.u32 15, %v5133_v33  ;;  %v5699_v9 = vadd.s32 %v5639_v11, %v5279_v52  ;;  %v5281_v55 = vand.u32 15, %v15604_v45  ;;  %v5641_v50 = vadd.s32 %v5581_v29, %v5521_v26  ;;  %vm14879_vm0 = vmpackc.low %vm8797_vm5, %vm14844_vm11 }
 0xe71   :  { %v5135_v0 = vshra.s32 %v9296_v62, 4  ;;  %v5523_v34 = vmul.u32 64, %v5103_v43  ;;  %v5583_v30 = vmul.u32 8, %v14833_v13  ;;  %v5105_v48 = vshra.s32 %v15620_v19, 8  ;;  %vm14895_vm13 = vmand %vm5305_vm9, %vm5725_vm6 }
 0xe72   :  { %v14885_v57 = vand.u32 15, %v5165_v12  ;;  %8395 = vmatpush1.bf16.msk.msra.mxu1 %vm14827_vm14, %v14466_v27  ;;  %8455 = vmatpush1.bf16.msk.msra.mxu0 %vm14857_vm7, %v14466_v27  ;;  %vm5727_vm8 = vcmp.eq.s32.totalorder %v5667_v49, %v16043_v47  ;;  %v5669_v24 = vadd.s32 %v5609_v1, %v5249_v31  ;;  %v5251_v58 = vand.u32 15, %v9214_v51  ;;  %vm14909_vm9 = vmpackc.low %vm8797_vm5, %vm14870_vm12  ;;  %v16118_v1 = vld [vmem:[#allocation51_spill] sm:$0xff] }
 0xe73   :  { %v5611_v25 = vadd.s32 %v5551_v21, %v5491_v46  ;;  %8396 = vmatprep.subr.bf16.mxu1 %v8798_v3  ;;  %8456 = vmatprep.subr.bf16.mxu0 %v8798_v3  ;;  %vm5339_vm6 = vcmp.lt.s32.totalorder %v14715_v7, 8  ;;  %v5493_v53 = vmul.u32 64, %v5073_v36  ;;  %v5553_v2 = vmul.u32 8, %v14864_v37  ;;  %vm14920_vm2 = vmand %vm5337_vm10, %vm5757_vm3 }
 0xe74   :  { %v5075_v56 = vshra.s32 %v9296_v62, 8  ;;  %vm5759_vm1 = vcmp.eq.s32.totalorder %v5699_v9, %v16043_v47  ;;  %v5701_v20 = vadd.s32 %v5641_v50, %v5281_v55  ;;  %v14925_v63 = vand.u32 15, %v5135_v0  ;;  %vm14931_vm14 = vmpackc.low %vm8797_vm5, %vm14895_vm13  ;;  %v16119_v55 = vld [vmem:[#allocation24_spill] sm:$0xff] }
 0xe75   :  { %v5283_v54 = vand.u32 15, %v15614_v28  ;;  %v5643_v22 = vadd.s32 %v5583_v30, %v5523_v34  ;;  %v5137_v61 = vshra.s32 %v9337_v41, 4  ;;  %v5525_v23 = vmul.u32 64, %v5105_v48  ;;  %vm14944_vm4 = vmand %vm5307_vm15, %vm5727_vm8  ;;  %v16120_v0 = vld [vmem:[#allocation52_spill] sm:$0xff] }
 0xe76   :  { %v5585_v35 = vmul.u32 8, %v14885_v57  ;;  %8399 = vmatpush1.bf16.msk.msra.mxu1 %vm14879_vm0, %v14466_v27  ;;  %8459 = vmatpush1.bf16.msk.msra.mxu0 %vm14909_vm9, %v14466_v27  ;;  %vm5309_vm11 = vcmp.lt.s32.totalorder %v14744_v15, 8  ;;  %vm5729_vm7 = vcmp.eq.s32.totalorder %v5669_v24, %v16043_v47  ;;  %vm14958_vm10 = vmpackc.low %vm8797_vm5, %vm14920_vm2  ;;  %v5671_v10 = vadd.s32 %v5611_v25, %v5251_v58 }
 0xe77   :  { %8400 = vmatprep.subr.bf16.mxu1 %v8798_v3  ;;  %8460 = vmatprep.subr.bf16.mxu0 %v8798_v3  ;;  %v5253_v39 = vand.u32 15, %v9255_v38  ;;  %v5613_v44 = vadd.s32 %v5553_v2, %v5493_v53  ;;  %vm5341_vm15 = vcmp.lt.s32.totalorder %v14771_v60, 8  ;;  %vm14968_vm3 = vmand %vm5339_vm6, %vm5759_vm1  ;;  %vm5761_vm12 = vcmp.eq.s32.totalorder %v5701_v20, %v16043_v47 }
 0xe78   :  { %v5495_v31 = vmul.u32 64, %v5075_v56  ;;  %v5555_v18 = vmul.u32 8, %v14925_v63  ;;  %v5077_v33 = vshra.s32 %v9337_v41, 8  ;;  %vm14978_vm0 = vmpackc.low %vm8797_vm5, %vm14944_vm4  ;;  %v5703_v42 = vadd.s32 %v5643_v22, %v5283_v54  ;;  %v16121_v54 = vld [vmem:[#allocation26_spill] sm:$0xff] }
 0xe79   :  { %v5197_v7 = vand.u32 15, %v5137_v61  ;;  %v5285_v52 = vand.u32 15, %v15620_v19  ;;  %v5645_v11 = vadd.s32 %v5585_v35, %v5525_v23  ;;  %vm5909_vm13 = vmand %vm5309_vm11, %vm5729_vm7  ;;  %vm5311_vm8 = vcmp.lt.s32.totalorder %v14799_v17, 8 }
 0xe7a   :  { %8403 = vmatpush1.bf16.msk.msra.mxu1 %vm14931_vm14, %v14466_v27  ;;  %8463 = vmatpush1.bf16.msk.msra.mxu0 %vm14958_vm10, %v14466_v27  ;;  %vm5731_vm9 = vcmp.eq.s32.totalorder %v5671_v10, %v16043_v47  ;;  %vm8466_vm6 = vmpackc.low %vm8797_vm5, %vm14968_vm3  ;;  %v5673_v19 = vadd.s32 %v5613_v44, %v5253_v39  ;;  %v5255_v26 = vand.u32 15, %v9296_v62  ;;  %v5615_v29 = vadd.s32 %v5555_v18, %v5495_v31  ;;  %v16122_v10 = vld [vmem:[#allocation53_spill] sm:$0xff] }
 0xe7b   :  { %8404 = vmatprep.subr.bf16.mxu1 %v8798_v3  ;;  %8464 = vmatprep.subr.bf16.mxu0 %v8798_v3  ;;  %vm15004_vm2 = vmand %vm5341_vm15, %vm5761_vm12  ;;  %vm5343_vm1 = vcmp.lt.s32.totalorder %v14833_v13, 8  ;;  %vm5763_vm4 = vcmp.eq.s32.totalorder %v5703_v42, %v16043_v47  ;;  %v5497_v6 = vmul.u32 64, %v5077_v33  ;;  %v5557_v43 = vmul.u32 8, %v5197_v7 }
 0xe7c   :  { %vm15011_vm14 = vmpackc.low %vm8797_vm5, %vm5909_vm13  ;;  %v5705_v12 = vadd.s32 %v5645_v11, %v5285_v52  ;;  %vm5313_vm7 = vcmp.lt.s32.totalorder %v14864_v37, 8  ;;  %vm5733_vm10 = vcmp.eq.s32.totalorder %v5673_v19, %v16043_v47  ;;  %v5257_v62 = vand.u32 15, %v9337_v41 }
 0xe7d   :  { %vm5911_vm11 = vmand %vm5311_vm8, %vm5731_vm9  ;;  %v5675_v60 = vadd.s32 %v5615_v29, %v5255_v26  ;;  %v5617_v13 = vadd.s32 %v5557_v43, %v5497_v6  ;;  %v5139_v49 = vshra.s32 %v16117_v16, 4  ;;  %v5167_v46 = vshra.s32 %v16118_v1, 4  ;;  %v4894_v43 = vpop.permute.xlu1 %4893 }
 0xe7e   :  { %8407 = vmatpush1.bf16.msk.msra.mxu1 %vm14978_vm0, %v14466_v27  ;;  %8467 = vmatpush1.bf16.msk.msra.mxu0 %vm8466_vm6, %v14466_v27  ;;  %vm8470_vm15 = vmpackc.low %vm8797_vm5, %vm15004_vm2  ;;  %vm5345_vm0 = vcmp.lt.s32.totalorder %v14885_v57, 8  ;;  %vm5765_vm13 = vcmp.eq.s32.totalorder %v5705_v12, %v16043_v47  ;;  %vm5315_vm2 = vcmp.lt.s32.totalorder %v14925_v63, 8  ;;  %v5079_v21 = vshra.s32 %v16117_v16, 8 }
 0xe7f   :  { %8408 = vmatprep.subr.bf16.mxu1 %v8798_v3  ;;  %8468 = vmatprep.subr.bf16.mxu0 %v8798_v3  ;;  %vm5943_vm3 = vmand %vm5343_vm1, %vm5763_vm4  ;;  %vm5735_vm1 = vcmp.eq.s32.totalorder %v5675_v60, %v16043_v47  ;;  %v5677_v41 = vadd.s32 %v5617_v13, %v5257_v62  ;;  %v5199_v5 = vand.u32 15, %v5139_v49  ;;  %v5107_v36 = vshra.s32 %v16118_v1, 8 }
 0xe80   :  { %vm8414_vm12 = vmpackc.low %vm8797_vm5, %vm5911_vm11  ;;  %v5227_v37 = vand.u32 15, %v5167_v46  ;;  %v5499_v32 = vmul.u32 64, %v5079_v21  ;;  %v5141_v50 = vshra.s32 %v16119_v55, 4  ;;  %v5169_v14 = vshra.s32 %v16120_v0, 4 }
 0xe81   :  { %vm5913_vm8 = vmand %vm5313_vm7, %vm5733_vm10  ;;  %vm5317_vm7 = vcmp.lt.s32.totalorder %v5197_v7, 8  ;;  %vm5737_vm10 = vcmp.eq.s32.totalorder %v5677_v41, %v16043_v47  ;;  %v5559_v9 = vmul.u32 8, %v5199_v5  ;;  %v5527_v34 = vmul.u32 64, %v5107_v36  ;;  %v16125_v36 = vld [vmem:[#allocation43_spill] sm:$0xff] }
 0xe82   :  { %8411 = vmatpush1.bf16.msk.msra.mxu1 %vm15011_vm14, %v14466_v27  ;;  %8471 = vmatpush1.bf16.msk.msra.mxu0 %vm8470_vm15, %v14466_v27  ;;  %vm8474_vm9 = vmpackc.low %vm8797_vm5, %vm5943_vm3  ;;  %v5587_v30 = vmul.u32 8, %v5227_v37  ;;  %v5259_v48 = vand.u32 15, %v16117_v16  ;;  %v5287_v45 = vand.u32 15, %v16118_v1  ;;  %v5081_v24 = vshra.s32 %v16119_v55, 8 }
 0xe83   :  { %8412 = vmatprep.subr.bf16.mxu1 %v8798_v3  ;;  %8472 = vmatprep.subr.bf16.mxu0 %v8798_v3  ;;  %vm5945_vm6 = vmand %vm5345_vm0, %vm5765_vm13  ;;  %v5619_v57 = vadd.s32 %v5559_v9, %v5499_v32  ;;  %v5201_v25 = vand.u32 15, %v5141_v50  ;;  %v5109_v8 = vshra.s32 %v16120_v0, 8  ;;  %v5229_v53 = vand.u32 15, %v5169_v14  ;;  %v16129_v50 = vld [vmem:[#allocation17_spill] sm:$0xff] }
 0xe84   :  { %vm8418_vm4 = vmpackc.low %vm8797_vm5, %vm5913_vm8  ;;  %v5647_v58 = vadd.s32 %v5587_v30, %v5527_v34  ;;  %v5501_v56 = vmul.u32 64, %v5081_v24  ;;  %v5143_v40 = vshra.s32 %v16121_v54, 4  ;;  %vm5319_vm0 = vcmp.lt.s32.totalorder %v5199_v5, 8  ;;  %v16131_v34 = vld [vmem:[#allocation45_spill] sm:$0xff] }
 0xe85   :  { %vm8478_vm14 = vmpackc.low %vm8797_vm5, %vm5945_vm6  ;;  %v5679_v2 = vadd.s32 %v5619_v57, %v5259_v48  ;;  %v5561_v20 = vmul.u32 8, %v5201_v25  ;;  %v5529_v63 = vmul.u32 64, %v5109_v8  ;;  %vm5347_vm8 = vcmp.lt.s32.totalorder %v5227_v37, 8 }
 0xe86   :  { %8415 = vmatpush1.bf16.msk.msra.mxu1 %vm8414_vm12, %v14466_v27  ;;  %8475 = vmatpush1.bf16.msk.msra.mxu0 %vm8474_vm9, %v14466_v27  ;;  %vm5915_vm11 = vmand %vm5315_vm2, %vm5735_vm1  ;;  %v5707_v51 = vadd.s32 %v5647_v58, %v5287_v45  ;;  %v5261_v22 = vand.u32 15, %v16119_v55  ;;  %v5289_v23 = vand.u32 15, %v16120_v0  ;;  %v5589_v35 = vmul.u32 8, %v5229_v53 }
 0xe87   :  { %8416 = vmatprep.subr.bf16.mxu1 %v8798_v3  ;;  %8476 = vmatprep.subr.bf16.mxu0 %v8798_v3  ;;  %vm8422_vm15 = vmpackc.low %vm8797_vm5, %vm5915_vm11  ;;  %vm5739_vm13 = vcmp.eq.s32.totalorder %v5679_v2, %v16043_v47  ;;  %v5621_v61 = vadd.s32 %v5561_v20, %v5501_v56  ;;  %v5083_v28 = vshra.s32 %v16121_v54, 8  ;;  %v5203_v4 = vand.u32 15, %v5143_v40 }
 0xe88   :  { %vm5917_vm3 = vmand %vm5317_vm7, %vm5737_vm10  ;;  %vm5767_vm6 = vcmp.eq.s32.totalorder %v5707_v51, %v16043_v47  ;;  %v5111_v39 = vshra.s32 %v16122_v10, 8  ;;  %v5171_v44 = vshra.s32 %v16122_v10, 4  ;;  %v5649_v31 = vadd.s32 %v5589_v35, %v5529_v63 }
 0xe89   :  { %vm8426_vm12 = vmpackc.low %vm8797_vm5, %vm5917_vm3  ;;  %v5681_v59 = vadd.s32 %v5621_v61, %v5261_v22  ;;  %vm5349_vm11 = vcmp.lt.s32.totalorder %v5229_v53, 8  ;;  %v5503_v18 = vmul.u32 64, %v5083_v28  ;;  %v5563_v33 = vmul.u32 8, %v5203_v4 }
 0xe8a   :  { %8419 = vmatpush1.bf16.msk.msra.mxu1 %vm8418_vm4, %v14466_v27  ;;  %8479 = vmatpush1.bf16.msk.msra.mxu0 %vm8478_vm14, %v14466_v27  ;;  %vm5919_vm9 = vmand %vm5319_vm0, %vm5739_vm13  ;;  %vm5321_vm14 = vcmp.lt.s32.totalorder %v5201_v25, 8  ;;  %v5709_v38 = vadd.s32 %v5649_v31, %v5289_v23  ;;  %v5263_v42 = vand.u32 15, %v16121_v54  ;;  %v5231_v7 = vand.u32 15, %v5171_v44 }
 0xe8b   :  { %8420 = vmatprep.subr.bf16.mxu1 %v8798_v3  ;;  %8480 = vmatprep.subr.bf16.mxu0 %v8798_v3  ;;  %vm8430_vm2 = vmpackc.low %vm8797_vm5, %vm5919_vm9  ;;  %vm5741_vm7 = vcmp.eq.s32.totalorder %v5681_v59, %v16043_v47  ;;  %v5623_v52 = vadd.s32 %v5563_v33, %v5503_v18  ;;  %v5531_v11 = vmul.u32 64, %v5111_v39  ;;  %v5291_v19 = vand.u32 15, %v16122_v10 }
 0xe8c   :  { %vm5947_vm1 = vmand %vm5347_vm8, %vm5767_vm6  ;;  %vm5769_vm3 = vcmp.eq.s32.totalorder %v5709_v38, %v16043_v47  ;;  %v5591_v15 = vmul.u32 8, %v5231_v7  ;;  %vm5323_vm0 = vcmp.lt.s32.totalorder %v5203_v4, 8  ;;  %v16123_v29 = vmov 0.0  }
 0xe8d   :  { %vm8482_vm4 = vmpackc.low %vm8797_vm5, %vm5947_vm1  ;;  %v5683_v26 = vadd.s32 %v5623_v52, %v5263_v42  ;;  %vm5351_vm6 = vcmp.lt.s32.totalorder %v5231_v7, 8  ;;  %v16124_v6 = vmov 1.0   ;;  %v16126_v37 = vmax.f32 %v16125_v36, 0.0 }
 0xe8e   :  { %8423 = vmatpush1.bf16.msk.msra.mxu1 %vm8422_vm15, %v14466_v27  ;;  %8483 = vmatpush1.bf16.msk.msra.mxu0 %vm8482_vm4, %v14466_v27  ;;  %vm5921_vm10 = vmand %vm5321_vm14, %vm5741_vm7  ;;  %v16130_v0 = vmax.f32 %v16129_v50, 0.0  ;;  %v16132_v30 = vmax.f32 %v16131_v34, 0.0 }
 0xe8f   :  { %8424 = vmatprep.subr.bf16.mxu1 %v8798_v3  ;;  %8484 = vmatprep.subr.bf16.mxu0 %v8798_v3  ;;  %vm8434_vm15 = vmpackc.low %vm8797_vm5, %vm5921_vm10  ;;  %vm5743_vm8 = vcmp.eq.s32.totalorder %v5683_v26, %v16043_v47 }
 0xe90   :  { %vm5923_vm9 = vmand %vm5323_vm0, %vm5743_vm8 }
 0xe92   :  { %8427 = vmatpush1.bf16.msk.msra.mxu1 %vm8426_vm12, %v14466_v27  ;;  %vm5949_vm12 = vmand %vm5349_vm11, %vm5769_vm3 }
 0xe93   :  { %8428 = vmatprep.subr.bf16.mxu1 %v8798_v3  ;;  %vm8486_vm13 = vmpackc.low %vm8797_vm5, %vm5949_vm12  ;;  %vm16133_vm5 = vcmask 769024  }
 0xe94   :  { %8487 = vmatpush1.bf16.msk.msra.mxu0 %vm8486_vm13, %v14466_v27 }
 0xe95   :  { %6142 = vmatprep.subr.mxu0 %v16123_v29 }
 0xe96   :  { %8431 = vmatpush1.bf16.msk.msra.mxu1 %vm8430_vm2, %v14466_v27 }
 0xe97   :  { %8432 = vmatprep.subr.bf16.mxu1 %v8798_v3  ;;  %v5651_v3 = vadd.s32 %v5591_v15, %v5531_v11 }
 0xe99   :  { %v5711_v17 = vadd.s32 %v5651_v3, %v5291_v19 }
 0xe9a   :  { %8435 = vmatpush1.bf16.msk.msra.mxu1 %vm8434_vm15, %v14466_v27 }
 0xe9b   :  { %6080 = vmatprep.subr.mxu1 %v16123_v29  ;;  %vm5771_vm2 = vcmp.eq.s32.totalorder %v5711_v17, %v16043_v47  ;;  %v16127_v47 = vld [vmem:[#allocation13_spill] sm:$0xff] }
 0xe9c   :  { %vm5951_vm1 = vmand %vm5351_vm6, %vm5771_vm2  ;;  %v16128_v9 = vmax.f32 %v16127_v47, 0.0 }
 0xe9d   :  { %7238 = vmatpush1.msk.msra.mxu0 %vm5951_vm1, %v16124_v6 }
 0xe9e   :  { %7224 = vmatpush1.msk.msra.mxu1 %vm5923_vm9, %v16124_v6 }
 0xf32   :  { %v4965_v12 = vpop.f32.mrb[16].mxu0 }
 0xf33   :  { %v5036_v62 = vpop.f32.mrb[16].mxu1  ;;  %v4966_v60 = vadd.f32 %v4965_v12, %v4894_v43  ;;  %v4967_v27 = vpop.f32.mrb[17].mxu0 }
 0xf34   :  { %v5037_v13 = vadd.f32 %v5036_v62, %v4894_v43  ;;  %v5038_v41 = vpop.f32.mrb[17].mxu1  ;;  %v4968_v16 = vadd.f32 %v4967_v27, %v4894_v43 }
 0xf35   :  { %v5039_v49 = vadd.f32 %v5038_v41, %v4894_v43  ;;  %v5041_v1 = vmax.f32 %v4966_v60, 0.0 }
 0xf36   :  { %v5043_v46 = vmax.f32 %v5037_v13, 0.0  ;;  %v5042_v21 = vmax.f32 %v4968_v16, 0.0 }
 0xf37   :  { %v5044_v5 = vmax.f32 %v5039_v49, 0.0  ;;  %v5045_v32 = vadd.f32 %v5041_v1, %v16126_v37 }
 0xf38   :  { %v5047_v55 = vadd.f32 %v5043_v46, %v16128_v9  ;;  %v5046_v14 = vadd.f32 %v5042_v21, %v16130_v0 }
 0xf39   :  { %v5048_v48 = vadd.f32 %v5044_v5, %v16132_v30  ;;  %v5049_v24 = vmax.f32 %v5045_v32, 0.0 }
 0xf3a   :  { %v5050_v57 = vmax.f32 %v5046_v14, 0.0  ;;  %v5051_v58 = vmax.f32 %v5047_v55, 0.0 }
 0xf3b   :  { %v5052_v45 = vmax.f32 %v5048_v48, 0.0 }
 0xf3c   :  { %6084 = vmatprep.mubr.f32.mxu1 %v5050_v57 }
 0xf3d   :  { %7239 = vmatprep.mubr.msk.f32.mxu0 %vm16133_vm5, %v5052_v45  ;;  %6085 = vmatmul.mubr.f32.vlgmr.msra.gmra.mrb[18].mxu1 %v5049_v24 }
 0xf3e   :  { %6155 = vmatmul.mubr.f32.vlgmr.msra.gmra.mrb[18].mxu0 %v5051_v58 }
0x1010   :  { %v6086_v25 = vpop.f32.mrb[18].mxu1 }
0x1011   :  { %v6156_v8 = vpop.f32.mrb[18].mxu0  ;;  %v6088_v2 = vpop.f32.mrb[19].mxu1 }
0x1012   :  { %v6157_v53 = vadd.f32 %v6156_v8, %v6086_v25  ;;  %v6158_v56 = vpop.f32.mrb[19].mxu0 }
0x1014   :  { %6160 = vst [vmem:[%s15112_s4] sm:$0xff] %v6157_v53 }

</bundles_post_ra>
